<compile_context>
chip_gen: v5e
topology: v5e:2x2
jax: 0.10.0
libtpu: 0.0.40
codegen_flags: <defaults>
</compile_context>

<pallas_src>
import functools

import jax
import jax.numpy as jnp
from jax.experimental import pallas as pl
from jax.experimental.pallas import tpu as pltpu


def _round_up(n, m):
    return ((n + m - 1) // m) * m


def _pick_tm(m, cap):
    """Row-tile size: <= cap, multiple of 8, and >= 2 grid steps when m allows
    (so dimension_semantics=('parallel',) can use both v7x TensorCores)."""
    if m <= 8:
        return m                      # single full block (block dim == array dim)
    return max(8, min(cap, _round_up(pl.cdiv(m, 2), 8)))


# --------------------- fused matmul + bias (+ ReLU) kernel ------------------ #

def _matmul_bias_act_kernel(x_ref, w_ref, b_ref, o_ref, *, apply_relu):
    # bf16 x bf16 -> f32 accumulation on the MXU; epilogue on the f32 acc.
    acc = jnp.dot(x_ref[...], w_ref[...], preferred_element_type=jnp.float32)
    acc = acc + b_ref[...]                         # (1, N) broadcast over rows
    if apply_relu:
        acc = jnp.maximum(acc, 0.0)
    o_ref[...] = acc.astype(o_ref.dtype)


def pallas_linear(x, w, b, *, relu, out_dtype=None, tm_cap=512):
    """y = x @ w + b (+ ReLU).  Rows are tiled/pipelined; weight + bias stay
    VMEM-resident across the grid.  Natural (unpadded) N is fine: the output
    block's last dim equals the full array dim."""
    m, k = x.shape
    kw_, n = w.shape
    assert k == kw_ and b.shape == (1, n)
    out_dtype = out_dtype or x.dtype
    tm = _pick_tm(m, tm_cap)
    return pl.pallas_call(
        functools.partial(_matmul_bias_act_kernel, apply_relu=relu),
        out_shape=jax.ShapeDtypeStruct((m, n), out_dtype),
        grid=(pl.cdiv(m, tm),),
        in_specs=[
            pl.BlockSpec((tm, k), lambda i: (i, 0)),   # activation rows: tiled
            pl.BlockSpec((k, n), lambda i: (0, 0)),    # weight: resident
            pl.BlockSpec((1, n), lambda i: (0, 0)),    # bias:   resident
        ],
        out_specs=pl.BlockSpec((tm, n), lambda i: (i, 0)),
        compiler_params=pltpu.CompilerParams(
            dimension_semantics=("parallel",),
            vmem_limit_bytes=32 * 1024 * 1024),
    )(x, w, b)


# ------------------------- fused 3-layer classifier ------------------------ #

def _mlp_kernel(x_ref, w1_ref, b1_ref, w2_ref, b2_ref, w3_ref, b3_ref, o_ref):
    # fc1 -> ReLU -> fc2 -> ReLU -> fc3; intermediates never leave VMEM/vregs.
    h = jnp.dot(x_ref[...], w1_ref[...], preferred_element_type=jnp.float32)
    h = jnp.maximum(h + b1_ref[...], 0.0)
    h = jnp.dot(h.astype(w2_ref.dtype), w2_ref[...],
                preferred_element_type=jnp.float32)
    h = jnp.maximum(h + b2_ref[...], 0.0)
    h = jnp.dot(h.astype(w3_ref.dtype), w3_ref[...],
                preferred_element_type=jnp.float32)
    o_ref[...] = (h + b3_ref[...]).astype(o_ref.dtype)


def pallas_mlp(x, w1, b1, w2, b2, w3, b3, *, tb_cap=128):
    m, k1 = x.shape
    n1, n2, n3 = w1.shape[1], w2.shape[1], w3.shape[1]
    tb = _pick_tm(m, tb_cap)
    return pl.pallas_call(
        _mlp_kernel,
        out_shape=jax.ShapeDtypeStruct((m, n3), jnp.float32),
        grid=(pl.cdiv(m, tb),),
        in_specs=[
            pl.BlockSpec((tb, k1), lambda i: (i, 0)),
            pl.BlockSpec((k1, n1), lambda i: (0, 0)),
            pl.BlockSpec((1, n1), lambda i: (0, 0)),
            pl.BlockSpec((n1, n2), lambda i: (0, 0)),
            pl.BlockSpec((1, n2), lambda i: (0, 0)),
            pl.BlockSpec((n2, n3), lambda i: (0, 0)),
            pl.BlockSpec((1, n3), lambda i: (0, 0)),
        ],
        out_specs=pl.BlockSpec((tb, n3), lambda i: (i, 0)),
        compiler_params=pltpu.CompilerParams(
            dimension_semantics=("parallel",),
            vmem_limit_bytes=32 * 1024 * 1024),
    )(x, w1, b1, w2, b2, w3, b3)


# --------------------------- in-kernel max pooling -------------------------- #

def _maxpool_kernel(x_ref, o_ref, row_ref, *, ksize, stride, oh_count, ow_count):
    # x_ref: (1, H, W, C) one image; o_ref: (1, OH, OW, C); row_ref: (W, C) f32.
    for oh in range(oh_count):                       # static unroll (<= 13)
        r0 = stride * oh
        hmax = x_ref[0, r0, :, :].astype(jnp.float32)
        for i in range(1, ksize):                    # H-window max (unit stride)
            hmax = jnp.maximum(hmax, x_ref[0, r0 + i, :, :].astype(jnp.float32))
        row_ref[...] = hmax
        # W-window max via stride-2 sublane reads from the scratch row.
        m = row_ref[pl.ds(0, ow_count, stride=stride), :]
        for j in range(1, ksize):
            m = jnp.maximum(m, row_ref[pl.ds(j, ow_count, stride=stride), :])
        o_ref[0, oh, :, :] = m.astype(o_ref.dtype)


def pallas_maxpool(x_nhwc, *, ksize=3, stride=2):
    """nn.MaxPool2d(ksize, stride) on NHWC; reads the raw conv output directly
    (no 9x window stack in HBM)."""
    b, h, w, c = x_nhwc.shape
    oh = (h - ksize) // stride + 1
    ow = (w - ksize) // stride + 1
    return pl.pallas_call(
        functools.partial(_maxpool_kernel, ksize=ksize, stride=stride,
                          oh_count=oh, ow_count=ow),
        out_shape=jax.ShapeDtypeStruct((b, oh, ow, c), x_nhwc.dtype),
        grid=(b,),
        in_specs=[pl.BlockSpec((1, h, w, c), lambda i: (i, 0, 0, 0))],
        out_specs=pl.BlockSpec((1, oh, ow, c), lambda i: (i, 0, 0, 0)),
        scratch_shapes=[pltpu.VMEM((w, c), jnp.float32)],
        compiler_params=pltpu.CompilerParams(
            dimension_semantics=("parallel",),
            vmem_limit_bytes=32 * 1024 * 1024),
    )(x_nhwc)


# --------------------------------- conv glue -------------------------------- #

def _im2col_nhwc(x_nhwc, kh, kw, k_pad=None):
    """Single-materialization im2col; optional zero tail folds K padding into
    the same concatenation (no second full-array copy)."""
    b, h, w, c = x_nhwc.shape
    oh, ow = h - kh + 1, w - kw + 1
    cols = [x_nhwc[:, i:i + oh, j:j + ow, :] for i in range(kh) for j in range(kw)]
    k = kh * kw * c
    if k_pad is not None and k_pad > k:
        cols.append(jnp.zeros((b, oh, ow, k_pad - k), x_nhwc.dtype))
    patches = jnp.concatenate(cols, axis=-1)
    return patches.reshape(b * oh * ow, patches.shape[-1]), (b, oh, ow)


# ------------------------------- model wrapper ------------------------------ #

def init_params(key, num_channels=3, num_classes=10):
    """Parameters in the original torch layouts / dtypes."""
    keys = jax.random.split(key, 10)
    s = 0.05
    return {
        "conv1_w": s * jax.random.normal(keys[0], (64, num_channels, 5, 5), jnp.float32),
        "conv1_b": s * jax.random.normal(keys[1], (64,), jnp.float32),
        "conv2_w": s * jax.random.normal(keys[2], (64, 64, 5, 5), jnp.float32),
        "conv2_b": s * jax.random.normal(keys[3], (64,), jnp.float32),
        "fc1_w":   s * jax.random.normal(keys[4], (384, 1024), jnp.float32),
        "fc1_b":   s * jax.random.normal(keys[5], (384,), jnp.float32),
        "fc2_w":   s * jax.random.normal(keys[6], (192, 384), jnp.float32),
        "fc2_b":   s * jax.random.normal(keys[7], (192,), jnp.float32),
        "fc3_w":   s * jax.random.normal(keys[8], (num_classes, 192), jnp.float32),
        "fc3_b":   s * jax.random.normal(keys[9], (num_classes,), jnp.float32),
    }


def prepare_params(params):
    """One-time weight prep: flatten/transpose to matmul layout, cast MXU
    operands to bf16 (biases stay f32 for the f32 epilogue).  Only conv1's
    contraction dim (75) is zero-padded (to 128); everything else is natural."""
    p = {}
    for name, k_pad in (("conv1", 128), ("conv2", None)):
        w = params[f"{name}_w"]                         # (CO, CI, KH, KW)
        co, ci, kh, kw = w.shape
        wf = jnp.transpose(w, (2, 3, 1, 0)).reshape(kh * kw * ci, co)
        if k_pad is not None and k_pad > wf.shape[0]:
            wf = jnp.pad(wf, ((0, k_pad - wf.shape[0]), (0, 0)))
        p[f"{name}_w"] = wf.astype(jnp.bfloat16)
        p[f"{name}_b"] = params[f"{name}_b"].astype(jnp.float32).reshape(1, co)
    for name in ("fc1", "fc2", "fc3"):
        w = params[f"{name}_w"]                         # (out, in) torch layout
        p[f"{name}_w"] = jnp.transpose(w).astype(jnp.bfloat16)
        p[f"{name}_b"] = params[f"{name}_b"].astype(jnp.float32).reshape(1, -1)
    return p


def cnn_mycifar10_forward(prepared, x_nchw):
    # featurizer: Conv(C->64,5) -> ReLU -> MaxPool(3,2) -> Conv(64->64,5) -> ReLU -> MaxPool(3,2)
    x = jnp.transpose(x_nchw, (0, 2, 3, 1)).astype(jnp.bfloat16)        # NCHW -> NHWC bf16

    cols, (b, oh, ow) = _im2col_nhwc(x, 5, 5, k_pad=prepared["conv1_w"].shape[0])
    y = pallas_linear(cols, prepared["conv1_w"], prepared["conv1_b"],
                      relu=True, out_dtype=jnp.bfloat16, tm_cap=2048)    # (B*28*28, 64)
    x = y.reshape(b, oh, ow, -1)                                         # (B,28,28,64)
    x = pallas_maxpool(x)                                                # (B,13,13,64)

    cols, (b, oh, ow) = _im2col_nhwc(x, 5, 5)                            # K = 1600 exact
    y = pallas_linear(cols, prepared["conv2_w"], prepared["conv2_b"],
                      relu=True, out_dtype=jnp.bfloat16, tm_cap=1024)    # (B*9*9, 64)
    x = y.reshape(b, oh, ow, -1)                                         # (B,9,9,64)
    x = pallas_maxpool(x)                                                # (B,4,4,64)

    # flatten in torch (C, H, W) order; classifier input and x0 share one source
    feats = jnp.transpose(x, (0, 3, 1, 2)).reshape(b, -1)                # (B,1024) bf16

    logits = pallas_mlp(feats,
                        prepared["fc1_w"], prepared["fc1_b"],
                        prepared["fc2_w"], prepared["fc2_b"],
                        prepared["fc3_w"], prepared["fc3_b"])            # (B,10) f32
    return logits, feats.astype(jnp.float32)


if __name__ == "__main__":
    key = jax.random.PRNGKey(0)
    pkey, xkey = jax.random.split(key)
    params = init_params(pkey, num_channels=3, num_classes=10)
    prepared = prepare_params(params)           # one-time weight prep (not per-step)

    # batch=2, channels=3, 32x32: the classifier's hard-coded 1024-wide input
    # pins the spatial size to 32x32 for this conv/pool stack.
    x = jax.random.normal(xkey, (2, 3, 32, 32), jnp.float32)

    logits, feats = jax.jit(cnn_mycifar10_forward)(prepared, x)
    jax.block_until_ready((logits, feats))
    assert logits.shape == (2, 10) and feats.shape == (2, 1024)
    print("KERNEL_OK")
</pallas_src>

<mosaic_0001>
module attributes {stable_mosaic.version = 11 : i64} {
  func.func @_matmul_bias_act_kernel(%arg0: i32, %arg1: memref<784x128xbf16, #tpu.memory_space<vmem>>, %arg2: memref<128x64xbf16, #tpu.memory_space<vmem>>, %arg3: memref<1x64xf32, #tpu.memory_space<vmem>>, %arg4: memref<784x64xbf16, #tpu.memory_space<vmem>>) attributes {dimension_semantics = [#tpu.dimension_semantics<parallel>], iteration_bounds = array<i64: 2>, scalar_prefetch = 0 : i64, scratch_operands = 0 : i64, tpu.core_type = #tpu.core_type<tc>, window_params = [{transform_indices = @transform_0, window_bounds = array<i64: 784, 128>}, {pipeline_mode = #tpu.pipeline_mode<synchronous>, transform_indices = @transform_1, window_bounds = array<i64: 128, 64>}, {pipeline_mode = #tpu.pipeline_mode<synchronous>, transform_indices = @transform_2, window_bounds = array<i64: 1, 64>}, {transform_indices = @transform_3, window_bounds = array<i64: 784, 64>}]} {
    %c0 = arith.constant 0 : index
    %c0_0 = arith.constant 0 : index
    %0 = vector.load %arg1[%c0, %c0_0] : memref<784x128xbf16, #tpu.memory_space<vmem>>, vector<784x128xbf16>
    %c0_1 = arith.constant 0 : index
    %c0_2 = arith.constant 0 : index
    %1 = vector.load %arg2[%c0_1, %c0_2] : memref<128x64xbf16, #tpu.memory_space<vmem>>, vector<128x64xbf16>
    %cst = arith.constant dense<0.000000e+00> : vector<784x64xf32>
    %2 = tpu.matmul %0, %1, %cst {dimension_numbers = #tpu.dot_dimension_numbers<[1], [0], [0], [1], [0, 0, 1, 1], [], []>} : vector<784x128xbf16>, vector<128x64xbf16>, vector<784x64xf32> -> vector<784x64xf32>
    %c0_3 = arith.constant 0 : index
    %c0_4 = arith.constant 0 : index
    %3 = vector.load %arg3[%c0_3, %c0_4] : memref<1x64xf32, #tpu.memory_space<vmem>>, vector<1x64xf32>
    %4 = vector.broadcast %3 : vector<1x64xf32> to vector<784x64xf32>
    %5 = arith.addf %2, %4 : vector<784x64xf32>
    %cst_5 = arith.constant 0.000000e+00 : f32
    %6 = vector.broadcast %cst_5 : f32 to vector<784x64xf32>
    %7 = arith.maximumf %5, %6 : vector<784x64xf32>
    %8 = arith.truncf %7 : vector<784x64xf32> to vector<784x64xbf16>
    %c0_6 = arith.constant 0 : index
    %c0_7 = arith.constant 0 : index
    %9 = vector.load %arg4[%c0_6, %c0_7] : memref<784x64xbf16, #tpu.memory_space<vmem>>, vector<784x64xbf16>
    tpu.vector_store %arg4[%c0_6, %c0_7], %8 {strides = array<i32>} : memref<784x64xbf16, #tpu.memory_space<vmem>>, vector<784x64xbf16>,
    return
  }
  func.func @transform_0(%arg0: i32) -> (i32, i32) {
    %c0_i32 = arith.constant 0 : i32
    %c0_i32_0 = arith.constant 0 : i32
    return %arg0, %c0_i32 : i32, i32
  }
  func.func @transform_1(%arg0: i32) -> (i32, i32) {
    %c0_i32 = arith.constant 0 : i32
    %c0_i32_0 = arith.constant 0 : i32
    %c0_i32_1 = arith.constant 0 : i32
    return %c0_i32, %c0_i32_0 : i32, i32
  }
  func.func @transform_2(%arg0: i32) -> (i32, i32) {
    %c0_i32 = arith.constant 0 : i32
    %c0_i32_0 = arith.constant 0 : i32
    %c0_i32_1 = arith.constant 0 : i32
    return %c0_i32, %c0_i32_0 : i32, i32
  }
  func.func @transform_3(%arg0: i32) -> (i32, i32) {
    %c0_i32 = arith.constant 0 : i32
    %c0_i32_0 = arith.constant 0 : i32
    return %arg0, %c0_i32 : i32, i32
  }
}

module attributes {stable_mosaic.version = 11 : i64} {
  func.func @_maxpool_kernel(%arg0: i32, %arg1: memref<1x28x28x64xbf16, #tpu.memory_space<vmem>>, %arg2: memref<1x13x13x64xbf16, #tpu.memory_space<vmem>>, %arg3: memref<28x64xf32, #tpu.memory_space<vmem>>) attributes {dimension_semantics = [#tpu.dimension_semantics<parallel>], iteration_bounds = array<i64: 2>, scalar_prefetch = 0 : i64, scratch_operands = 1 : i64, tpu.core_type = #tpu.core_type<tc>, window_params = [{transform_indices = @transform_0, window_bounds = array<i64: 1, 28, 28, 64>}, {transform_indices = @transform_1, window_bounds = array<i64: 1, 13, 13, 64>}]} {
    %c0 = arith.constant 0 : index
    %c0_0 = arith.constant 0 : index
    %c0_1 = arith.constant 0 : index
    %c0_2 = arith.constant 0 : index
    %0 = vector.load %arg1[%c0, %c0_0, %c0_1, %c0_2] : memref<1x28x28x64xbf16, #tpu.memory_space<vmem>>, vector<1x1x28x64xbf16>
    %1 = vector.shape_cast %0 : vector<1x1x28x64xbf16> to vector<28x64xbf16>
    %2 = arith.extf %1 : vector<28x64xbf16> to vector<28x64xf32>
    %c0_3 = arith.constant 0 : index
    %c1 = arith.constant 1 : index
    %c0_4 = arith.constant 0 : index
    %c0_5 = arith.constant 0 : index
    %3 = vector.load %arg1[%c0_3, %c1, %c0_4, %c0_5] : memref<1x28x28x64xbf16, #tpu.memory_space<vmem>>, vector<1x1x28x64xbf16>
    %4 = vector.shape_cast %3 : vector<1x1x28x64xbf16> to vector<28x64xbf16>
    %5 = arith.extf %4 : vector<28x64xbf16> to vector<28x64xf32>
    %6 = arith.maximumf %2, %5 : vector<28x64xf32>
    %c0_6 = arith.constant 0 : index
    %c2 = arith.constant 2 : index
    %c0_7 = arith.constant 0 : index
    %c0_8 = arith.constant 0 : index
    %7 = vector.load %arg1[%c0_6, %c2, %c0_7, %c0_8] : memref<1x28x28x64xbf16, #tpu.memory_space<vmem>>, vector<1x1x28x64xbf16>
    %8 = vector.shape_cast %7 : vector<1x1x28x64xbf16> to vector<28x64xbf16>
    %9 = arith.extf %8 : vector<28x64xbf16> to vector<28x64xf32>
    %10 = arith.maximumf %6, %9 : vector<28x64xf32>
    %c0_9 = arith.constant 0 : index
    %c0_10 = arith.constant 0 : index
    %11 = vector.load %arg3[%c0_9, %c0_10] : memref<28x64xf32, #tpu.memory_space<vmem>>, vector<28x64xf32>
    tpu.vector_store %arg3[%c0_9, %c0_10], %10 {strides = array<i32>} : memref<28x64xf32, #tpu.memory_space<vmem>>, vector<28x64xf32>,
    %c0_11 = arith.constant 0 : index
    %c0_12 = arith.constant 0 : index
    %12 = tpu.strided_load %arg3[%c0_11, %c0_12] {strides = array<i32: 2, 1>} : memref<28x64xf32, #tpu.memory_space<vmem>>, vector<13x64xf32>
    %c1_13 = arith.constant 1 : index
    %c0_14 = arith.constant 0 : index
    %13 = tpu.strided_load %arg3[%c1_13, %c0_14] {strides = array<i32: 2, 1>} : memref<28x64xf32, #tpu.memory_space<vmem>>, vector<13x64xf32>
    %14 = arith.maximumf %12, %13 : vector<13x64xf32>
    %c2_15 = arith.constant 2 : index
    %c0_16 = arith.constant 0 : index
    %15 = tpu.strided_load %arg3[%c2_15, %c0_16] {strides = array<i32: 2, 1>} : memref<28x64xf32, #tpu.memory_space<vmem>>, vector<13x64xf32>
    %16 = arith.maximumf %14, %15 : vector<13x64xf32>
    %17 = arith.truncf %16 : vector<13x64xf32> to vector<13x64xbf16>
    %c0_17 = arith.constant 0 : index
    %c0_18 = arith.constant 0 : index
    %c0_19 = arith.constant 0 : index
    %c0_20 = arith.constant 0 : index
    %18 = vector.load %arg2[%c0_17, %c0_18, %c0_19, %c0_20] : memref<1x13x13x64xbf16, #tpu.memory_space<vmem>>, vector<1x1x13x64xbf16>
    %19 = vector.shape_cast %18 : vector<1x1x13x64xbf16> to vector<13x64xbf16>
    %20 = vector.shape_cast %17 : vector<13x64xbf16> to vector<1x1x13x64xbf16>
    tpu.vector_store %arg2[%c0_17, %c0_18, %c0_19, %c0_20], %20 {strides = array<i32>} : memref<1x13x13x64xbf16, #tpu.memory_space<vmem>>, vector<1x1x13x64xbf16>,
    %c0_21 = arith.constant 0 : index
    %c2_22 = arith.constant 2 : index
    %c0_23 = arith.constant 0 : index
    %c0_24 = arith.constant 0 : index
    %21 = vector.load %arg1[%c0_21, %c2_22, %c0_23, %c0_24] : memref<1x28x28x64xbf16, #tpu.memory_space<vmem>>, vector<1x1x28x64xbf16>
    %22 = vector.shape_cast %21 : vector<1x1x28x64xbf16> to vector<28x64xbf16>
    %23 = arith.extf %22 : vector<28x64xbf16> to vector<28x64xf32>
    %c0_25 = arith.constant 0 : index
    %c3 = arith.constant 3 : index
    %c0_26 = arith.constant 0 : index
    %c0_27 = arith.constant 0 : index
    %24 = vector.load %arg1[%c0_25, %c3, %c0_26, %c0_27] : memref<1x28x28x64xbf16, #tpu.memory_space<vmem>>, vector<1x1x28x64xbf16>
    %25 = vector.shape_cast %24 : vector<1x1x28x64xbf16> to vector<28x64xbf16>
    %26 = arith.extf %25 : vector<28x64xbf16> to vector<28x64xf32>
    %27 = arith.maximumf %23, %26 : vector<28x64xf32>
    %c0_28 = arith.constant 0 : index
    %c4 = arith.constant 4 : index
    %c0_29 = arith.constant 0 : index
    %c0_30 = arith.constant 0 : index
    %28 = vector.load %arg1[%c0_28, %c4, %c0_29, %c0_30] : memref<1x28x28x64xbf16, #tpu.memory_space<vmem>>, vector<1x1x28x64xbf16>
    %29 = vector.shape_cast %28 : vector<1x1x28x64xbf16> to vector<28x64xbf16>
    %30 = arith.extf %29 : vector<28x64xbf16> to vector<28x64xf32>
    %31 = arith.maximumf %27, %30 : vector<28x64xf32>
    %c0_31 = arith.constant 0 : index
    %c0_32 = arith.constant 0 : index
    %32 = vector.load %arg3[%c0_31, %c0_32] : memref<28x64xf32, #tpu.memory_space<vmem>>, vector<28x64xf32>
    tpu.vector_store %arg3[%c0_31, %c0_32], %31 {strides = array<i32>} : memref<28x64xf32, #tpu.memory_space<vmem>>, vector<28x64xf32>,
    %c0_33 = arith.constant 0 : index
    %c0_34 = arith.constant 0 : index
    %33 = tpu.strided_load %arg3[%c0_33, %c0_34] {strides = array<i32: 2, 1>} : memref<28x64xf32, #tpu.memory_space<vmem>>, vector<13x64xf32>
    %c1_35 = arith.constant 1 : index
    %c0_36 = arith.constant 0 : index
    %34 = tpu.strided_load %arg3[%c1_35, %c0_36] {strides = array<i32: 2, 1>} : memref<28x64xf32, #tpu.memory_space<vmem>>, vector<13x64xf32>
    %35 = arith.maximumf %33, %34 : vector<13x64xf32>
    %c2_37 = arith.constant 2 : index
    %c0_38 = arith.constant 0 : index
    %36 = tpu.strided_load %arg3[%c2_37, %c0_38] {strides = array<i32: 2, 1>} : memref<28x64xf32, #tpu.memory_space<vmem>>, vector<13x64xf32>
    %37 = arith.maximumf %35, %36 : vector<13x64xf32>
    %38 = arith.truncf %37 : vector<13x64xf32> to vector<13x64xbf16>
    %c0_39 = arith.constant 0 : index
    %c1_40 = arith.constant 1 : index
    %c0_41 = arith.constant 0 : index
    %c0_42 = arith.constant 0 : index
    %39 = vector.load %arg2[%c0_39, %c1_40, %c0_41, %c0_42] : memref<1x13x13x64xbf16, #tpu.memory_space<vmem>>, vector<1x1x13x64xbf16>
    %40 = vector.shape_cast %39 : vector<1x1x13x64xbf16> to vector<13x64xbf16>
    %41 = vector.shape_cast %38 : vector<13x64xbf16> to vector<1x1x13x64xbf16>
    tpu.vector_store %arg2[%c0_39, %c1_40, %c0_41, %c0_42], %41 {strides = array<i32>} : memref<1x13x13x64xbf16, #tpu.memory_space<vmem>>, vector<1x1x13x64xbf16>,
    %c0_43 = arith.constant 0 : index
    %c4_44 = arith.constant 4 : index
    %c0_45 = arith.constant 0 : index
    %c0_46 = arith.constant 0 : index
    %42 = vector.load %arg1[%c0_43, %c4_44, %c0_45, %c0_46] : memref<1x28x28x64xbf16, #tpu.memory_space<vmem>>, vector<1x1x28x64xbf16>
    %43 = vector.shape_cast %42 : vector<1x1x28x64xbf16> to vector<28x64xbf16>
    %44 = arith.extf %43 : vector<28x64xbf16> to vector<28x64xf32>
    %c0_47 = arith.constant 0 : index
    %c5 = arith.constant 5 : index
    %c0_48 = arith.constant 0 : index
    %c0_49 = arith.constant 0 : index
    %45 = vector.load %arg1[%c0_47, %c5, %c0_48, %c0_49] : memref<1x28x28x64xbf16, #tpu.memory_space<vmem>>, vector<1x1x28x64xbf16>
    %46 = vector.shape_cast %45 : vector<1x1x28x64xbf16> to vector<28x64xbf16>
    %47 = arith.extf %46 : vector<28x64xbf16> to vector<28x64xf32>
    %48 = arith.maximumf %44, %47 : vector<28x64xf32>
    %c0_50 = arith.constant 0 : index
    %c6 = arith.constant 6 : index
    %c0_51 = arith.constant 0 : index
    %c0_52 = arith.constant 0 : index
    %49 = vector.load %arg1[%c0_50, %c6, %c0_51, %c0_52] : memref<1x28x28x64xbf16, #tpu.memory_space<vmem>>, vector<1x1x28x64xbf16>
    %50 = vector.shape_cast %49 : vector<1x1x28x64xbf16> to vector<28x64xbf16>
    %51 = arith.extf %50 : vector<28x64xbf16> to vector<28x64xf32>
    %52 = arith.maximumf %48, %51 : vector<28x64xf32>
    %c0_53 = arith.constant 0 : index
    %c0_54 = arith.constant 0 : index
    %53 = vector.load %arg3[%c0_53, %c0_54] : memref<28x64xf32, #tpu.memory_space<vmem>>, vector<28x64xf32>
    tpu.vector_store %arg3[%c0_53, %c0_54], %52 {strides = array<i32>} : memref<28x64xf32, #tpu.memory_space<vmem>>, vector<28x64xf32>,
    %c0_55 = arith.constant 0 : index
    %c0_56 = arith.constant 0 : index
    %54 = tpu.strided_load %arg3[%c0_55, %c0_56] {strides = array<i32: 2, 1>} : memref<28x64xf32, #tpu.memory_space<vmem>>, vector<13x64xf32>
    %c1_57 = arith.constant 1 : index
    %c0_58 = arith.constant 0 : index
    %55 = tpu.strided_load %arg3[%c1_57, %c0_58] {strides = array<i32: 2, 1>} : memref<28x64xf32, #tpu.memory_space<vmem>>, vector<13x64xf32>
    %56 = arith.maximumf %54, %55 : vector<13x64xf32>
    %c2_59 = arith.constant 2 : index
    %c0_60 = arith.constant 0 : index
    %57 = tpu.strided_load %arg3[%c2_59, %c0_60] {strides = array<i32: 2, 1>} : memref<28x64xf32, #tpu.memory_space<vmem>>, vector<13x64xf32>
    %58 = arith.maximumf %56, %57 : vector<13x64xf32>
    %59 = arith.truncf %58 : vector<13x64xf32> to vector<13x64xbf16>
    %c0_61 = arith.constant 0 : index
    %c2_62 = arith.constant 2 : index
    %c0_63 = arith.constant 0 : index
    %c0_64 = arith.constant 0 : index
    %60 = vector.load %arg2[%c0_61, %c2_62, %c0_63, %c0_64] : memref<1x13x13x64xbf16, #tpu.memory_space<vmem>>, vector<1x1x13x64xbf16>
    %61 = vector.shape_cast %60 : vector<1x1x13x64xbf16> to vector<13x64xbf16>
    %62 = vector.shape_cast %59 : vector<13x64xbf16> to vector<1x1x13x64xbf16>
    tpu.vector_store %arg2[%c0_61, %c2_62, %c0_63, %c0_64], %62 {strides = array<i32>} : memref<1x13x13x64xbf16, #tpu.memory_space<vmem>>, vector<1x1x13x64xbf16>,
    %c0_65 = arith.constant 0 : index
    %c6_66 = arith.constant 6 : index
    %c0_67 = arith.constant 0 : index
    %c0_68 = arith.constant 0 : index
    %63 = vector.load %arg1[%c0_65, %c6_66, %c0_67, %c0_68] : memref<1x28x28x64xbf16, #tpu.memory_space<vmem>>, vector<1x1x28x64xbf16>
    %64 = vector.shape_cast %63 : vector<1x1x28x64xbf16> to vector<28x64xbf16>
    %65 = arith.extf %64 : vector<28x64xbf16> to vector<28x64xf32>
    %c0_69 = arith.constant 0 : index
    %c7 = arith.constant 7 : index
    %c0_70 = arith.constant 0 : index
    %c0_71 = arith.constant 0 : index
    %66 = vector.load %arg1[%c0_69, %c7, %c0_70, %c0_71] : memref<1x28x28x64xbf16, #tpu.memory_space<vmem>>, vector<1x1x28x64xbf16>
    %67 = vector.shape_cast %66 : vector<1x1x28x64xbf16> to vector<28x64xbf16>
    %68 = arith.extf %67 : vector<28x64xbf16> to vector<28x64xf32>
    %69 = arith.maximumf %65, %68 : vector<28x64xf32>
    %c0_72 = arith.constant 0 : index
    %c8 = arith.constant 8 : index
    %c0_73 = arith.constant 0 : index
    %c0_74 = arith.constant 0 : index
    %70 = vector.load %arg1[%c0_72, %c8, %c0_73, %c0_74] : memref<1x28x28x64xbf16, #tpu.memory_space<vmem>>, vector<1x1x28x64xbf16>
    %71 = vector.shape_cast %70 : vector<1x1x28x64xbf16> to vector<28x64xbf16>
    %72 = arith.extf %71 : vector<28x64xbf16> to vector<28x64xf32>
    %73 = arith.maximumf %69, %72 : vector<28x64xf32>
    %c0_75 = arith.constant 0 : index
    %c0_76 = arith.constant 0 : index
    %74 = vector.load %arg3[%c0_75, %c0_76] : memref<28x64xf32, #tpu.memory_space<vmem>>, vector<28x64xf32>
    tpu.vector_store %arg3[%c0_75, %c0_76], %73 {strides = array<i32>} : memref<28x64xf32, #tpu.memory_space<vmem>>, vector<28x64xf32>,
    %c0_77 = arith.constant 0 : index
    %c0_78 = arith.constant 0 : index
    %75 = tpu.strided_load %arg3[%c0_77, %c0_78] {strides = array<i32: 2, 1>} : memref<28x64xf32, #tpu.memory_space<vmem>>, vector<13x64xf32>
    %c1_79 = arith.constant 1 : index
    %c0_80 = arith.constant 0 : index
    %76 = tpu.strided_load %arg3[%c1_79, %c0_80] {strides = array<i32: 2, 1>} : memref<28x64xf32, #tpu.memory_space<vmem>>, vector<13x64xf32>
    %77 = arith.maximumf %75, %76 : vector<13x64xf32>
    %c2_81 = arith.constant 2 : index
    %c0_82 = arith.constant 0 : index
    %78 = tpu.strided_load %arg3[%c2_81, %c0_82] {strides = array<i32: 2, 1>} : memref<28x64xf32, #tpu.memory_space<vmem>>, vector<13x64xf32>
    %79 = arith.maximumf %77, %78 : vector<13x64xf32>
    %80 = arith.truncf %79 : vector<13x64xf32> to vector<13x64xbf16>
    %c0_83 = arith.constant 0 : index
    %c3_84 = arith.constant 3 : index
    %c0_85 = arith.constant 0 : index
    %c0_86 = arith.constant 0 : index
    %81 = vector.load %arg2[%c0_83, %c3_84, %c0_85, %c0_86] : memref<1x13x13x64xbf16, #tpu.memory_space<vmem>>, vector<1x1x13x64xbf16>
    %82 = vector.shape_cast %81 : vector<1x1x13x64xbf16> to vector<13x64xbf16>
    %83 = vector.shape_cast %80 : vector<13x64xbf16> to vector<1x1x13x64xbf16>
    tpu.vector_store %arg2[%c0_83, %c3_84, %c0_85, %c0_86], %83 {strides = array<i32>} : memref<1x13x13x64xbf16, #tpu.memory_space<vmem>>, vector<1x1x13x64xbf16>,
    %c0_87 = arith.constant 0 : index
    %c8_88 = arith.constant 8 : index
    %c0_89 = arith.constant 0 : index
    %c0_90 = arith.constant 0 : index
    %84 = vector.load %arg1[%c0_87, %c8_88, %c0_89, %c0_90] : memref<1x28x28x64xbf16, #tpu.memory_space<vmem>>, vector<1x1x28x64xbf16>
    %85 = vector.shape_cast %84 : vector<1x1x28x64xbf16> to vector<28x64xbf16>
    %86 = arith.extf %85 : vector<28x64xbf16> to vector<28x64xf32>
    %c0_91 = arith.constant 0 : index
    %c9 = arith.constant 9 : index
    %c0_92 = arith.constant 0 : index
    %c0_93 = arith.constant 0 : index
    %87 = vector.load %arg1[%c0_91, %c9, %c0_92, %c0_93] : memref<1x28x28x64xbf16, #tpu.memory_space<vmem>>, vector<1x1x28x64xbf16>
    %88 = vector.shape_cast %87 : vector<1x1x28x64xbf16> to vector<28x64xbf16>
    %89 = arith.extf %88 : vector<28x64xbf16> to vector<28x64xf32>
    %90 = arith.maximumf %86, %89 : vector<28x64xf32>
    %c0_94 = arith.constant 0 : index
    %c10 = arith.constant 10 : index
    %c0_95 = arith.constant 0 : index
    %c0_96 = arith.constant 0 : index
    %91 = vector.load %arg1[%c0_94, %c10, %c0_95, %c0_96] : memref<1x28x28x64xbf16, #tpu.memory_space<vmem>>, vector<1x1x28x64xbf16>
    %92 = vector.shape_cast %91 : vector<1x1x28x64xbf16> to vector<28x64xbf16>
    %93 = arith.extf %92 : vector<28x64xbf16> to vector<28x64xf32>
    %94 = arith.maximumf %90, %93 : vector<28x64xf32>
    %c0_97 = arith.constant 0 : index
    %c0_98 = arith.constant 0 : index
    %95 = vector.load %arg3[%c0_97, %c0_98] : memref<28x64xf32, #tpu.memory_space<vmem>>, vector<28x64xf32>
    tpu.vector_store %arg3[%c0_97, %c0_98], %94 {strides = array<i32>} : memref<28x64xf32, #tpu.memory_space<vmem>>, vector<28x64xf32>,
    %c0_99 = arith.constant 0 : index
    %c0_100 = arith.constant 0 : index
    %96 = tpu.strided_load %arg3[%c0_99, %c0_100] {strides = array<i32: 2, 1>} : memref<28x64xf32, #tpu.memory_space<vmem>>, vector<13x64xf32>
    %c1_101 = arith.constant 1 : index
    %c0_102 = arith.constant 0 : index
    %97 = tpu.strided_load %arg3[%c1_101, %c0_102] {strides = array<i32: 2, 1>} : memref<28x64xf32, #tpu.memory_space<vmem>>, vector<13x64xf32>
    %98 = arith.maximumf %96, %97 : vector<13x64xf32>
    %c2_103 = arith.constant 2 : index
    %c0_104 = arith.constant 0 : index
    %99 = tpu.strided_load %arg3[%c2_103, %c0_104] {strides = array<i32: 2, 1>} : memref<28x64xf32, #tpu.memory_space<vmem>>, vector<13x64xf32>
    %100 = arith.maximumf %98, %99 : vector<13x64xf32>
    %101 = arith.truncf %100 : vector<13x64xf32> to vector<13x64xbf16>
    %c0_105 = arith.constant 0 : index
    %c4_106 = arith.constant 4 : index
    %c0_107 = arith.constant 0 : index
    %c0_108 = arith.constant 0 : index
    %102 = vector.load %arg2[%c0_105, %c4_106, %c0_107, %c0_108] : memref<1x13x13x64xbf16, #tpu.memory_space<vmem>>, vector<1x1x13x64xbf16>
    %103 = vector.shape_cast %102 : vector<1x1x13x64xbf16> to vector<13x64xbf16>
    %104 = vector.shape_cast %101 : vector<13x64xbf16> to vector<1x1x13x64xbf16>
    tpu.vector_store %arg2[%c0_105, %c4_106, %c0_107, %c0_108], %104 {strides = array<i32>} : memref<1x13x13x64xbf16, #tpu.memory_space<vmem>>, vector<1x1x13x64xbf16>,
    %c0_109 = arith.constant 0 : index
    %c10_110 = arith.constant 10 : index
    %c0_111 = arith.constant 0 : index
    %c0_112 = arith.constant 0 : index
    %105 = vector.load %arg1[%c0_109, %c10_110, %c0_111, %c0_112] : memref<1x28x28x64xbf16, #tpu.memory_space<vmem>>, vector<1x1x28x64xbf16>
    %106 = vector.shape_cast %105 : vector<1x1x28x64xbf16> to vector<28x64xbf16>
    %107 = arith.extf %106 : vector<28x64xbf16> to vector<28x64xf32>
    %c0_113 = arith.constant 0 : index
    %c11 = arith.constant 11 : index
    %c0_114 = arith.constant 0 : index
    %c0_115 = arith.constant 0 : index
    %108 = vector.load %arg1[%c0_113, %c11, %c0_114, %c0_115] : memref<1x28x28x64xbf16, #tpu.memory_space<vmem>>, vector<1x1x28x64xbf16>
    %109 = vector.shape_cast %108 : vector<1x1x28x64xbf16> to vector<28x64xbf16>
    %110 = arith.extf %109 : vector<28x64xbf16> to vector<28x64xf32>
    %111 = arith.maximumf %107, %110 : vector<28x64xf32>
    %c0_116 = arith.constant 0 : index
    %c12 = arith.constant 12 : index
    %c0_117 = arith.constant 0 : index
    %c0_118 = arith.constant 0 : index
    %112 = vector.load %arg1[%c0_116, %c12, %c0_117, %c0_118] : memref<1x28x28x64xbf16, #tpu.memory_space<vmem>>, vector<1x1x28x64xbf16>
    %113 = vector.shape_cast %112 : vector<1x1x28x64xbf16> to vector<28x64xbf16>
    %114 = arith.extf %113 : vector<28x64xbf16> to vector<28x64xf32>
    %115 = arith.maximumf %111, %114 : vector<28x64xf32>
    %c0_119 = arith.constant 0 : index
    %c0_120 = arith.constant 0 : index
    %116 = vector.load %arg3[%c0_119, %c0_120] : memref<28x64xf32, #tpu.memory_space<vmem>>, vector<28x64xf32>
    tpu.vector_store %arg3[%c0_119, %c0_120], %115 {strides = array<i32>} : memref<28x64xf32, #tpu.memory_space<vmem>>, vector<28x64xf32>,
    %c0_121 = arith.constant 0 : index
    %c0_122 = arith.constant 0 : index
    %117 = tpu.strided_load %arg3[%c0_121, %c0_122] {strides = array<i32: 2, 1>} : memref<28x64xf32, #tpu.memory_space<vmem>>, vector<13x64xf32>
    %c1_123 = arith.constant 1 : index
    %c0_124 = arith.constant 0 : index
    %118 = tpu.strided_load %arg3[%c1_123, %c0_124] {strides = array<i32: 2, 1>} : memref<28x64xf32, #tpu.memory_space<vmem>>, vector<13x64xf32>
    %119 = arith.maximumf %117, %118 : vector<13x64xf32>
    %c2_125 = arith.constant 2 : index
    %c0_126 = arith.constant 0 : index
    %120 = tpu.strided_load %arg3[%c2_125, %c0_126] {strides = array<i32: 2, 1>} : memref<28x64xf32, #tpu.memory_space<vmem>>, vector<13x64xf32>
    %121 = arith.maximumf %119, %120 : vector<13x64xf32>
    %122 = arith.truncf %121 : vector<13x64xf32> to vector<13x64xbf16>
    %c0_127 = arith.constant 0 : index
    %c5_128 = arith.constant 5 : index
    %c0_129 = arith.constant 0 : index
    %c0_130 = arith.constant 0 : index
    %123 = vector.load %arg2[%c0_127, %c5_128, %c0_129, %c0_130] : memref<1x13x13x64xbf16, #tpu.memory_space<vmem>>, vector<1x1x13x64xbf16>
    %124 = vector.shape_cast %123 : vector<1x1x13x64xbf16> to vector<13x64xbf16>
    %125 = vector.shape_cast %122 : vector<13x64xbf16> to vector<1x1x13x64xbf16>
    tpu.vector_store %arg2[%c0_127, %c5_128, %c0_129, %c0_130], %125 {strides = array<i32>} : memref<1x13x13x64xbf16, #tpu.memory_space<vmem>>, vector<1x1x13x64xbf16>,
    %c0_131 = arith.constant 0 : index
    %c12_132 = arith.constant 12 : index
    %c0_133 = arith.constant 0 : index
    %c0_134 = arith.constant 0 : index
    %126 = vector.load %arg1[%c0_131, %c12_132, %c0_133, %c0_134] : memref<1x28x28x64xbf16, #tpu.memory_space<vmem>>, vector<1x1x28x64xbf16>
    %127 = vector.shape_cast %126 : vector<1x1x28x64xbf16> to vector<28x64xbf16>
    %128 = arith.extf %127 : vector<28x64xbf16> to vector<28x64xf32>
    %c0_135 = arith.constant 0 : index
    %c13 = arith.constant 13 : index
    %c0_136 = arith.constant 0 : index
    %c0_137 = arith.constant 0 : index
    %129 = vector.load %arg1[%c0_135, %c13, %c0_136, %c0_137] : memref<1x28x28x64xbf16, #tpu.memory_space<vmem>>, vector<1x1x28x64xbf16>
    %130 = vector.shape_cast %129 : vector<1x1x28x64xbf16> to vector<28x64xbf16>
    %131 = arith.extf %130 : vector<28x64xbf16> to vector<28x64xf32>
    %132 = arith.maximumf %128, %131 : vector<28x64xf32>
    %c0_138 = arith.constant 0 : index
    %c14 = arith.constant 14 : index
    %c0_139 = arith.constant 0 : index
    %c0_140 = arith.constant 0 : index
    %133 = vector.load %arg1[%c0_138, %c14, %c0_139, %c0_140] : memref<1x28x28x64xbf16, #tpu.memory_space<vmem>>, vector<1x1x28x64xbf16>
    %134 = vector.shape_cast %133 : vector<1x1x28x64xbf16> to vector<28x64xbf16>
    %135 = arith.extf %134 : vector<28x64xbf16> to vector<28x64xf32>
    %136 = arith.maximumf %132, %135 : vector<28x64xf32>
    %c0_141 = arith.constant 0 : index
    %c0_142 = arith.constant 0 : index
    %137 = vector.load %arg3[%c0_141, %c0_142] : memref<28x64xf32, #tpu.memory_space<vmem>>, vector<28x64xf32>
    tpu.vector_store %arg3[%c0_141, %c0_142], %136 {strides = array<i32>} : memref<28x64xf32, #tpu.memory_space<vmem>>, vector<28x64xf32>,
    %c0_143 = arith.constant 0 : index
    %c0_144 = arith.constant 0 : index
    %138 = tpu.strided_load %arg3[%c0_143, %c0_144] {strides = array<i32: 2, 1>} : memref<28x64xf32, #tpu.memory_space<vmem>>, vector<13x64xf32>
    %c1_145 = arith.constant 1 : index
    %c0_146 = arith.constant 0 : index
    %139 = tpu.strided_load %arg3[%c1_145, %c0_146] {strides = array<i32: 2, 1>} : memref<28x64xf32, #tpu.memory_space<vmem>>, vector<13x64xf32>
    %140 = arith.maximumf %138, %139 : vector<13x64xf32>
    %c2_147 = arith.constant 2 : index
    %c0_148 = arith.constant 0 : index
    %141 = tpu.strided_load %arg3[%c2_147, %c0_148] {strides = array<i32: 2, 1>} : memref<28x64xf32, #tpu.memory_space<vmem>>, vector<13x64xf32>
    %142 = arith.maximumf %140, %141 : vector<13x64xf32>
    %143 = arith.truncf %142 : vector<13x64xf32> to vector<13x64xbf16>
    %c0_149 = arith.constant 0 : index
    %c6_150 = arith.constant 6 : index
    %c0_151 = arith.constant 0 : index
    %c0_152 = arith.constant 0 : index
    %144 = vector.load %arg2[%c0_149, %c6_150, %c0_151, %c0_152] : memref<1x13x13x64xbf16, #tpu.memory_space<vmem>>, vector<1x1x13x64xbf16>
    %145 = vector.shape_cast %144 : vector<1x1x13x64xbf16> to vector<13x64xbf16>
    %146 = vector.shape_cast %143 : vector<13x64xbf16> to vector<1x1x13x64xbf16>
    tpu.vector_store %arg2[%c0_149, %c6_150, %c0_151, %c0_152], %146 {strides = array<i32>} : memref<1x13x13x64xbf16, #tpu.memory_space<vmem>>, vector<1x1x13x64xbf16>,
    %c0_153 = arith.constant 0 : index
    %c14_154 = arith.constant 14 : index
    %c0_155 = arith.constant 0 : index
    %c0_156 = arith.constant 0 : index
    %147 = vector.load %arg1[%c0_153, %c14_154, %c0_155, %c0_156] : memref<1x28x28x64xbf16, #tpu.memory_space<vmem>>, vector<1x1x28x64xbf16>
    %148 = vector.shape_cast %147 : vector<1x1x28x64xbf16> to vector<28x64xbf16>
    %149 = arith.extf %148 : vector<28x64xbf16> to vector<28x64xf32>
    %c0_157 = arith.constant 0 : index
    %c15 = arith.constant 15 : index
    %c0_158 = arith.constant 0 : index
    %c0_159 = arith.constant 0 : index
    %150 = vector.load %arg1[%c0_157, %c15, %c0_158, %c0_159] : memref<1x28x28x64xbf16, #tpu.memory_space<vmem>>, vector<1x1x28x64xbf16>
    %151 = vector.shape_cast %150 : vector<1x1x28x64xbf16> to vector<28x64xbf16>
    %152 = arith.extf %151 : vector<28x64xbf16> to vector<28x64xf32>
    %153 = arith.maximumf %149, %152 : vector<28x64xf32>
    %c0_160 = arith.constant 0 : index
    %c16 = arith.constant 16 : index
    %c0_161 = arith.constant 0 : index
    %c0_162 = arith.constant 0 : index
    %154 = vector.load %arg1[%c0_160, %c16, %c0_161, %c0_162] : memref<1x28x28x64xbf16, #tpu.memory_space<vmem>>, vector<1x1x28x64xbf16>
    %155 = vector.shape_cast %154 : vector<1x1x28x64xbf16> to vector<28x64xbf16>
    %156 = arith.extf %155 : vector<28x64xbf16> to vector<28x64xf32>
    %157 = arith.maximumf %153, %156 : vector<28x64xf32>
    %c0_163 = arith.constant 0 : index
    %c0_164 = arith.constant 0 : index
    %158 = vector.load %arg3[%c0_163, %c0_164] : memref<28x64xf32, #tpu.memory_space<vmem>>, vector<28x64xf32>
    tpu.vector_store %arg3[%c0_163, %c0_164], %157 {strides = array<i32>} : memref<28x64xf32, #tpu.memory_space<vmem>>, vector<28x64xf32>,
    %c0_165 = arith.constant 0 : index
    %c0_166 = arith.constant 0 : index
    %159 = tpu.strided_load %arg3[%c0_165, %c0_166] {strides = array<i32: 2, 1>} : memref<28x64xf32, #tpu.memory_space<vmem>>, vector<13x64xf32>
    %c1_167 = arith.constant 1 : index
    %c0_168 = arith.constant 0 : index
    %160 = tpu.strided_load %arg3[%c1_167, %c0_168] {strides = array<i32: 2, 1>} : memref<28x64xf32, #tpu.memory_space<vmem>>, vector<13x64xf32>
    %161 = arith.maximumf %159, %160 : vector<13x64xf32>
    %c2_169 = arith.constant 2 : index
    %c0_170 = arith.constant 0 : index
    %162 = tpu.strided_load %arg3[%c2_169, %c0_170] {strides = array<i32: 2, 1>} : memref<28x64xf32, #tpu.memory_space<vmem>>, vector<13x64xf32>
    %163 = arith.maximumf %161, %162 : vector<13x64xf32>
    %164 = arith.truncf %163 : vector<13x64xf32> to vector<13x64xbf16>
    %c0_171 = arith.constant 0 : index
    %c7_172 = arith.constant 7 : index
    %c0_173 = arith.constant 0 : index
    %c0_174 = arith.constant 0 : index
    %165 = vector.load %arg2[%c0_171, %c7_172, %c0_173, %c0_174] : memref<1x13x13x64xbf16, #tpu.memory_space<vmem>>, vector<1x1x13x64xbf16>
    %166 = vector.shape_cast %165 : vector<1x1x13x64xbf16> to vector<13x64xbf16>
    %167 = vector.shape_cast %164 : vector<13x64xbf16> to vector<1x1x13x64xbf16>
    tpu.vector_store %arg2[%c0_171, %c7_172, %c0_173, %c0_174], %167 {strides = array<i32>} : memref<1x13x13x64xbf16, #tpu.memory_space<vmem>>, vector<1x1x13x64xbf16>,
    %c0_175 = arith.constant 0 : index
    %c16_176 = arith.constant 16 : index
    %c0_177 = arith.constant 0 : index
    %c0_178 = arith.constant 0 : index
    %168 = vector.load %arg1[%c0_175, %c16_176, %c0_177, %c0_178] : memref<1x28x28x64xbf16, #tpu.memory_space<vmem>>, vector<1x1x28x64xbf16>
    %169 = vector.shape_cast %168 : vector<1x1x28x64xbf16> to vector<28x64xbf16>
    %170 = arith.extf %169 : vector<28x64xbf16> to vector<28x64xf32>
    %c0_179 = arith.constant 0 : index
    %c17 = arith.constant 17 : index
    %c0_180 = arith.constant 0 : index
    %c0_181 = arith.constant 0 : index
    %171 = vector.load %arg1[%c0_179, %c17, %c0_180, %c0_181] : memref<1x28x28x64xbf16, #tpu.memory_space<vmem>>, vector<1x1x28x64xbf16>
    %172 = vector.shape_cast %171 : vector<1x1x28x64xbf16> to vector<28x64xbf16>
    %173 = arith.extf %172 : vector<28x64xbf16> to vector<28x64xf32>
    %174 = arith.maximumf %170, %173 : vector<28x64xf32>
    %c0_182 = arith.constant 0 : index
    %c18 = arith.constant 18 : index
    %c0_183 = arith.constant 0 : index
    %c0_184 = arith.constant 0 : index
    %175 = vector.load %arg1[%c0_182, %c18, %c0_183, %c0_184] : memref<1x28x28x64xbf16, #tpu.memory_space<vmem>>, vector<1x1x28x64xbf16>
    %176 = vector.shape_cast %175 : vector<1x1x28x64xbf16> to vector<28x64xbf16>
    %177 = arith.extf %176 : vector<28x64xbf16> to vector<28x64xf32>
    %178 = arith.maximumf %174, %177 : vector<28x64xf32>
    %c0_185 = arith.constant 0 : index
    %c0_186 = arith.constant 0 : index
    %179 = vector.load %arg3[%c0_185, %c0_186] : memref<28x64xf32, #tpu.memory_space<vmem>>, vector<28x64xf32>
    tpu.vector_store %arg3[%c0_185, %c0_186], %178 {strides = array<i32>} : memref<28x64xf32, #tpu.memory_space<vmem>>, vector<28x64xf32>,
    %c0_187 = arith.constant 0 : index
    %c0_188 = arith.constant 0 : index
    %180 = tpu.strided_load %arg3[%c0_187, %c0_188] {strides = array<i32: 2, 1>} : memref<28x64xf32, #tpu.memory_space<vmem>>, vector<13x64xf32>
    %c1_189 = arith.constant 1 : index
    %c0_190 = arith.constant 0 : index
    %181 = tpu.strided_load %arg3[%c1_189, %c0_190] {strides = array<i32: 2, 1>} : memref<28x64xf32, #tpu.memory_space<vmem>>, vector<13x64xf32>
    %182 = arith.maximumf %180, %181 : vector<13x64xf32>
    %c2_191 = arith.constant 2 : index
    %c0_192 = arith.constant 0 : index
    %183 = tpu.strided_load %arg3[%c2_191, %c0_192] {strides = array<i32: 2, 1>} : memref<28x64xf32, #tpu.memory_space<vmem>>, vector<13x64xf32>
    %184 = arith.maximumf %182, %183 : vector<13x64xf32>
    %185 = arith.truncf %184 : vector<13x64xf32> to vector<13x64xbf16>
    %c0_193 = arith.constant 0 : index
    %c8_194 = arith.constant 8 : index
    %c0_195 = arith.constant 0 : index
    %c0_196 = arith.constant 0 : index
    %186 = vector.load %arg2[%c0_193, %c8_194, %c0_195, %c0_196] : memref<1x13x13x64xbf16, #tpu.memory_space<vmem>>, vector<1x1x13x64xbf16>
    %187 = vector.shape_cast %186 : vector<1x1x13x64xbf16> to vector<13x64xbf16>
    %188 = vector.shape_cast %185 : vector<13x64xbf16> to vector<1x1x13x64xbf16>
    tpu.vector_store %arg2[%c0_193, %c8_194, %c0_195, %c0_196], %188 {strides = array<i32>} : memref<1x13x13x64xbf16, #tpu.memory_space<vmem>>, vector<1x1x13x64xbf16>,
    %c0_197 = arith.constant 0 : index
    %c18_198 = arith.constant 18 : index
    %c0_199 = arith.constant 0 : index
    %c0_200 = arith.constant 0 : index
    %189 = vector.load %arg1[%c0_197, %c18_198, %c0_199, %c0_200] : memref<1x28x28x64xbf16, #tpu.memory_space<vmem>>, vector<1x1x28x64xbf16>
    %190 = vector.shape_cast %189 : vector<1x1x28x64xbf16> to vector<28x64xbf16>
    %191 = arith.extf %190 : vector<28x64xbf16> to vector<28x64xf32>
    %c0_201 = arith.constant 0 : index
    %c19 = arith.constant 19 : index
    %c0_202 = arith.constant 0 : index
    %c0_203 = arith.constant 0 : index
    %192 = vector.load %arg1[%c0_201, %c19, %c0_202, %c0_203] : memref<1x28x28x64xbf16, #tpu.memory_space<vmem>>, vector<1x1x28x64xbf16>
    %193 = vector.shape_cast %192 : vector<1x1x28x64xbf16> to vector<28x64xbf16>
    %194 = arith.extf %193 : vector<28x64xbf16> to vector<28x64xf32>
    %195 = arith.maximumf %191, %194 : vector<28x64xf32>
    %c0_204 = arith.constant 0 : index
    %c20 = arith.constant 20 : index
    %c0_205 = arith.constant 0 : index
    %c0_206 = arith.constant 0 : index
    %196 = vector.load %arg1[%c0_204, %c20, %c0_205, %c0_206] : memref<1x28x28x64xbf16, #tpu.memory_space<vmem>>, vector<1x1x28x64xbf16>
    %197 = vector.shape_cast %196 : vector<1x1x28x64xbf16> to vector<28x64xbf16>
    %198 = arith.extf %197 : vector<28x64xbf16> to vector<28x64xf32>
    %199 = arith.maximumf %195, %198 : vector<28x64xf32>
    %c0_207 = arith.constant 0 : index
    %c0_208 = arith.constant 0 : index
    %200 = vector.load %arg3[%c0_207, %c0_208] : memref<28x64xf32, #tpu.memory_space<vmem>>, vector<28x64xf32>
    tpu.vector_store %arg3[%c0_207, %c0_208], %199 {strides = array<i32>} : memref<28x64xf32, #tpu.memory_space<vmem>>, vector<28x64xf32>,
    %c0_209 = arith.constant 0 : index
    %c0_210 = arith.constant 0 : index
    %201 = tpu.strided_load %arg3[%c0_209, %c0_210] {strides = array<i32: 2, 1>} : memref<28x64xf32, #tpu.memory_space<vmem>>, vector<13x64xf32>
    %c1_211 = arith.constant 1 : index
    %c0_212 = arith.constant 0 : index
    %202 = tpu.strided_load %arg3[%c1_211, %c0_212] {strides = array<i32: 2, 1>} : memref<28x64xf32, #tpu.memory_space<vmem>>, vector<13x64xf32>
    %203 = arith.maximumf %201, %202 : vector<13x64xf32>
    %c2_213 = arith.constant 2 : index
    %c0_214 = arith.constant 0 : index
    %204 = tpu.strided_load %arg3[%c2_213, %c0_214] {strides = array<i32: 2, 1>} : memref<28x64xf32, #tpu.memory_space<vmem>>, vector<13x64xf32>
    %205 = arith.maximumf %203, %204 : vector<13x64xf32>
    %206 = arith.truncf %205 : vector<13x64xf32> to vector<13x64xbf16>
    %c0_215 = arith.constant 0 : index
    %c9_216 = arith.constant 9 : index
    %c0_217 = arith.constant 0 : index
    %c0_218 = arith.constant 0 : index
    %207 = vector.load %arg2[%c0_215, %c9_216, %c0_217, %c0_218] : memref<1x13x13x64xbf16, #tpu.memory_space<vmem>>, vector<1x1x13x64xbf16>
    %208 = vector.shape_cast %207 : vector<1x1x13x64xbf16> to vector<13x64xbf16>
    %209 = vector.shape_cast %206 : vector<13x64xbf16> to vector<1x1x13x64xbf16>
    tpu.vector_store %arg2[%c0_215, %c9_216, %c0_217, %c0_218], %209 {strides = array<i32>} : memref<1x13x13x64xbf16, #tpu.memory_space<vmem>>, vector<1x1x13x64xbf16>,
    %c0_219 = arith.constant 0 : index
    %c20_220 = arith.constant 20 : index
    %c0_221 = arith.constant 0 : index
    %c0_222 = arith.constant 0 : index
    %210 = vector.load %arg1[%c0_219, %c20_220, %c0_221, %c0_222] : memref<1x28x28x64xbf16, #tpu.memory_space<vmem>>, vector<1x1x28x64xbf16>
    %211 = vector.shape_cast %210 : vector<1x1x28x64xbf16> to vector<28x64xbf16>
    %212 = arith.extf %211 : vector<28x64xbf16> to vector<28x64xf32>
    %c0_223 = arith.constant 0 : index
    %c21 = arith.constant 21 : index
    %c0_224 = arith.constant 0 : index
    %c0_225 = arith.constant 0 : index
    %213 = vector.load %arg1[%c0_223, %c21, %c0_224, %c0_225] : memref<1x28x28x64xbf16, #tpu.memory_space<vmem>>, vector<1x1x28x64xbf16>
    %214 = vector.shape_cast %213 : vector<1x1x28x64xbf16> to vector<28x64xbf16>
    %215 = arith.extf %214 : vector<28x64xbf16> to vector<28x64xf32>
    %216 = arith.maximumf %212, %215 : vector<28x64xf32>
    %c0_226 = arith.constant 0 : index
    %c22 = arith.constant 22 : index
    %c0_227 = arith.constant 0 : index
    %c0_228 = arith.constant 0 : index
    %217 = vector.load %arg1[%c0_226, %c22, %c0_227, %c0_228] : memref<1x28x28x64xbf16, #tpu.memory_space<vmem>>, vector<1x1x28x64xbf16>
    %218 = vector.shape_cast %217 : vector<1x1x28x64xbf16> to vector<28x64xbf16>
    %219 = arith.extf %218 : vector<28x64xbf16> to vector<28x64xf32>
    %220 = arith.maximumf %216, %219 : vector<28x64xf32>
    %c0_229 = arith.constant 0 : index
    %c0_230 = arith.constant 0 : index
    %221 = vector.load %arg3[%c0_229, %c0_230] : memref<28x64xf32, #tpu.memory_space<vmem>>, vector<28x64xf32>
    tpu.vector_store %arg3[%c0_229, %c0_230], %220 {strides = array<i32>} : memref<28x64xf32, #tpu.memory_space<vmem>>, vector<28x64xf32>,
    %c0_231 = arith.constant 0 : index
    %c0_232 = arith.constant 0 : index
    %222 = tpu.strided_load %arg3[%c0_231, %c0_232] {strides = array<i32: 2, 1>} : memref<28x64xf32, #tpu.memory_space<vmem>>, vector<13x64xf32>
    %c1_233 = arith.constant 1 : index
    %c0_234 = arith.constant 0 : index
    %223 = tpu.strided_load %arg3[%c1_233, %c0_234] {strides = array<i32: 2, 1>} : memref<28x64xf32, #tpu.memory_space<vmem>>, vector<13x64xf32>
    %224 = arith.maximumf %222, %223 : vector<13x64xf32>
    %c2_235 = arith.constant 2 : index
    %c0_236 = arith.constant 0 : index
    %225 = tpu.strided_load %arg3[%c2_235, %c0_236] {strides = array<i32: 2, 1>} : memref<28x64xf32, #tpu.memory_space<vmem>>, vector<13x64xf32>
    %226 = arith.maximumf %224, %225 : vector<13x64xf32>
    %227 = arith.truncf %226 : vector<13x64xf32> to vector<13x64xbf16>
    %c0_237 = arith.constant 0 : index
    %c10_238 = arith.constant 10 : index
    %c0_239 = arith.constant 0 : index
    %c0_240 = arith.constant 0 : index
    %228 = vector.load %arg2[%c0_237, %c10_238, %c0_239, %c0_240] : memref<1x13x13x64xbf16, #tpu.memory_space<vmem>>, vector<1x1x13x64xbf16>
    %229 = vector.shape_cast %228 : vector<1x1x13x64xbf16> to vector<13x64xbf16>
    %230 = vector.shape_cast %227 : vector<13x64xbf16> to vector<1x1x13x64xbf16>
    tpu.vector_store %arg2[%c0_237, %c10_238, %c0_239, %c0_240], %230 {strides = array<i32>} : memref<1x13x13x64xbf16, #tpu.memory_space<vmem>>, vector<1x1x13x64xbf16>,
    %c0_241 = arith.constant 0 : index
    %c22_242 = arith.constant 22 : index
    %c0_243 = arith.constant 0 : index
    %c0_244 = arith.constant 0 : index
    %231 = vector.load %arg1[%c0_241, %c22_242, %c0_243, %c0_244] : memref<1x28x28x64xbf16, #tpu.memory_space<vmem>>, vector<1x1x28x64xbf16>
    %232 = vector.shape_cast %231 : vector<1x1x28x64xbf16> to vector<28x64xbf16>
    %233 = arith.extf %232 : vector<28x64xbf16> to vector<28x64xf32>
    %c0_245 = arith.constant 0 : index
    %c23 = arith.constant 23 : index
    %c0_246 = arith.constant 0 : index
    %c0_247 = arith.constant 0 : index
    %234 = vector.load %arg1[%c0_245, %c23, %c0_246, %c0_247] : memref<1x28x28x64xbf16, #tpu.memory_space<vmem>>, vector<1x1x28x64xbf16>
    %235 = vector.shape_cast %234 : vector<1x1x28x64xbf16> to vector<28x64xbf16>
    %236 = arith.extf %235 : vector<28x64xbf16> to vector<28x64xf32>
    %237 = arith.maximumf %233, %236 : vector<28x64xf32>
    %c0_248 = arith.constant 0 : index
    %c24 = arith.constant 24 : index
    %c0_249 = arith.constant 0 : index
    %c0_250 = arith.constant 0 : index
    %238 = vector.load %arg1[%c0_248, %c24, %c0_249, %c0_250] : memref<1x28x28x64xbf16, #tpu.memory_space<vmem>>, vector<1x1x28x64xbf16>
    %239 = vector.shape_cast %238 : vector<1x1x28x64xbf16> to vector<28x64xbf16>
    %240 = arith.extf %239 : vector<28x64xbf16> to vector<28x64xf32>
    %241 = arith.maximumf %237, %240 : vector<28x64xf32>
    %c0_251 = arith.constant 0 : index
    %c0_252 = arith.constant 0 : index
    %242 = vector.load %arg3[%c0_251, %c0_252] : memref<28x64xf32, #tpu.memory_space<vmem>>, vector<28x64xf32>
    tpu.vector_store %arg3[%c0_251, %c0_252], %241 {strides = array<i32>} : memref<28x64xf32, #tpu.memory_space<vmem>>, vector<28x64xf32>,
    %c0_253 = arith.constant 0 : index
    %c0_254 = arith.constant 0 : index
    %243 = tpu.strided_load %arg3[%c0_253, %c0_254] {strides = array<i32: 2, 1>} : memref<28x64xf32, #tpu.memory_space<vmem>>, vector<13x64xf32>
    %c1_255 = arith.constant 1 : index
    %c0_256 = arith.constant 0 : index
    %244 = tpu.strided_load %arg3[%c1_255, %c0_256] {strides = array<i32: 2, 1>} : memref<28x64xf32, #tpu.memory_space<vmem>>, vector<13x64xf32>
    %245 = arith.maximumf %243, %244 : vector<13x64xf32>
    %c2_257 = arith.constant 2 : index
    %c0_258 = arith.constant 0 : index
    %246 = tpu.strided_load %arg3[%c2_257, %c0_258] {strides = array<i32: 2, 1>} : memref<28x64xf32, #tpu.memory_space<vmem>>, vector<13x64xf32>
    %247 = arith.maximumf %245, %246 : vector<13x64xf32>
    %248 = arith.truncf %247 : vector<13x64xf32> to vector<13x64xbf16>
    %c0_259 = arith.constant 0 : index
    %c11_260 = arith.constant 11 : index
    %c0_261 = arith.constant 0 : index
    %c0_262 = arith.constant 0 : index
    %249 = vector.load %arg2[%c0_259, %c11_260, %c0_261, %c0_262] : memref<1x13x13x64xbf16, #tpu.memory_space<vmem>>, vector<1x1x13x64xbf16>
    %250 = vector.shape_cast %249 : vector<1x1x13x64xbf16> to vector<13x64xbf16>
    %251 = vector.shape_cast %248 : vector<13x64xbf16> to vector<1x1x13x64xbf16>
    tpu.vector_store %arg2[%c0_259, %c11_260, %c0_261, %c0_262], %251 {strides = array<i32>} : memref<1x13x13x64xbf16, #tpu.memory_space<vmem>>, vector<1x1x13x64xbf16>,
    %c0_263 = arith.constant 0 : index
    %c24_264 = arith.constant 24 : index
    %c0_265 = arith.constant 0 : index
    %c0_266 = arith.constant 0 : index
    %252 = vector.load %arg1[%c0_263, %c24_264, %c0_265, %c0_266] : memref<1x28x28x64xbf16, #tpu.memory_space<vmem>>, vector<1x1x28x64xbf16>
    %253 = vector.shape_cast %252 : vector<1x1x28x64xbf16> to vector<28x64xbf16>
    %254 = arith.extf %253 : vector<28x64xbf16> to vector<28x64xf32>
    %c0_267 = arith.constant 0 : index
    %c25 = arith.constant 25 : index
    %c0_268 = arith.constant 0 : index
    %c0_269 = arith.constant 0 : index
    %255 = vector.load %arg1[%c0_267, %c25, %c0_268, %c0_269] : memref<1x28x28x64xbf16, #tpu.memory_space<vmem>>, vector<1x1x28x64xbf16>
    %256 = vector.shape_cast %255 : vector<1x1x28x64xbf16> to vector<28x64xbf16>
    %257 = arith.extf %256 : vector<28x64xbf16> to vector<28x64xf32>
    %258 = arith.maximumf %254, %257 : vector<28x64xf32>
    %c0_270 = arith.constant 0 : index
    %c26 = arith.constant 26 : index
    %c0_271 = arith.constant 0 : index
    %c0_272 = arith.constant 0 : index
    %259 = vector.load %arg1[%c0_270, %c26, %c0_271, %c0_272] : memref<1x28x28x64xbf16, #tpu.memory_space<vmem>>, vector<1x1x28x64xbf16>
    %260 = vector.shape_cast %259 : vector<1x1x28x64xbf16> to vector<28x64xbf16>
    %261 = arith.extf %260 : vector<28x64xbf16> to vector<28x64xf32>
    %262 = arith.maximumf %258, %261 : vector<28x64xf32>
    %c0_273 = arith.constant 0 : index
    %c0_274 = arith.constant 0 : index
    %263 = vector.load %arg3[%c0_273, %c0_274] : memref<28x64xf32, #tpu.memory_space<vmem>>, vector<28x64xf32>
    tpu.vector_store %arg3[%c0_273, %c0_274], %262 {strides = array<i32>} : memref<28x64xf32, #tpu.memory_space<vmem>>, vector<28x64xf32>,
    %c0_275 = arith.constant 0 : index
    %c0_276 = arith.constant 0 : index
    %264 = tpu.strided_load %arg3[%c0_275, %c0_276] {strides = array<i32: 2, 1>} : memref<28x64xf32, #tpu.memory_space<vmem>>, vector<13x64xf32>
    %c1_277 = arith.constant 1 : index
    %c0_278 = arith.constant 0 : index
    %265 = tpu.strided_load %arg3[%c1_277, %c0_278] {strides = array<i32: 2, 1>} : memref<28x64xf32, #tpu.memory_space<vmem>>, vector<13x64xf32>
    %266 = arith.maximumf %264, %265 : vector<13x64xf32>
    %c2_279 = arith.constant 2 : index
    %c0_280 = arith.constant 0 : index
    %267 = tpu.strided_load %arg3[%c2_279, %c0_280] {strides = array<i32: 2, 1>} : memref<28x64xf32, #tpu.memory_space<vmem>>, vector<13x64xf32>
    %268 = arith.maximumf %266, %267 : vector<13x64xf32>
    %269 = arith.truncf %268 : vector<13x64xf32> to vector<13x64xbf16>
    %c0_281 = arith.constant 0 : index
    %c12_282 = arith.constant 12 : index
    %c0_283 = arith.constant 0 : index
    %c0_284 = arith.constant 0 : index
    %270 = vector.load %arg2[%c0_281, %c12_282, %c0_283, %c0_284] : memref<1x13x13x64xbf16, #tpu.memory_space<vmem>>, vector<1x1x13x64xbf16>
    %271 = vector.shape_cast %270 : vector<1x1x13x64xbf16> to vector<13x64xbf16>
    %272 = vector.shape_cast %269 : vector<13x64xbf16> to vector<1x1x13x64xbf16>
    tpu.vector_store %arg2[%c0_281, %c12_282, %c0_283, %c0_284], %272 {strides = array<i32>} : memref<1x13x13x64xbf16, #tpu.memory_space<vmem>>, vector<1x1x13x64xbf16>,
    return
  }
  func.func @transform_0(%arg0: i32) -> (i32, i32, i32, i32) {
    %c0_i32 = arith.constant 0 : i32
    %c0_i32_0 = arith.constant 0 : i32
    %c0_i32_1 = arith.constant 0 : i32
    %c0_i32_2 = arith.constant 0 : i32
    return %arg0, %c0_i32, %c0_i32_0, %c0_i32_1 : i32, i32, i32, i32
  }
  func.func @transform_1(%arg0: i32) -> (i32, i32, i32, i32) {
    %c0_i32 = arith.constant 0 : i32
    %c0_i32_0 = arith.constant 0 : i32
    %c0_i32_1 = arith.constant 0 : i32
    %c0_i32_2 = arith.constant 0 : i32
    return %arg0, %c0_i32, %c0_i32_0, %c0_i32_1 : i32, i32, i32, i32
  }
}

module attributes {stable_mosaic.version = 11 : i64} {
  func.func @_matmul_bias_act_kernel(%arg0: i32, %arg1: memref<88x1600xbf16, #tpu.memory_space<vmem>>, %arg2: memref<1600x64xbf16, #tpu.memory_space<vmem>>, %arg3: memref<1x64xf32, #tpu.memory_space<vmem>>, %arg4: memref<88x64xbf16, #tpu.memory_space<vmem>>) attributes {dimension_semantics = [#tpu.dimension_semantics<parallel>], iteration_bounds = array<i64: 2>, scalar_prefetch = 0 : i64, scratch_operands = 0 : i64, tpu.core_type = #tpu.core_type<tc>, window_params = [{transform_indices = @transform_0, window_bounds = array<i64: 88, 1600>}, {pipeline_mode = #tpu.pipeline_mode<synchronous>, transform_indices = @transform_1, window_bounds = array<i64: 1600, 64>}, {pipeline_mode = #tpu.pipeline_mode<synchronous>, transform_indices = @transform_2, window_bounds = array<i64: 1, 64>}, {transform_indices = @transform_3, window_bounds = array<i64: 88, 64>}]} {
    %c0 = arith.constant 0 : index
    %c0_0 = arith.constant 0 : index
    %0 = vector.load %arg1[%c0, %c0_0] : memref<88x1600xbf16, #tpu.memory_space<vmem>>, vector<88x1600xbf16>
    %c0_1 = arith.constant 0 : index
    %c0_2 = arith.constant 0 : index
    %1 = vector.load %arg2[%c0_1, %c0_2] : memref<1600x64xbf16, #tpu.memory_space<vmem>>, vector<1600x64xbf16>
    %cst = arith.constant dense<0.000000e+00> : vector<88x64xf32>
    %2 = tpu.matmul %0, %1, %cst {dimension_numbers = #tpu.dot_dimension_numbers<[1], [0], [0], [1], [0, 0, 1, 1], [], []>} : vector<88x1600xbf16>, vector<1600x64xbf16>, vector<88x64xf32> -> vector<88x64xf32>
    %c0_3 = arith.constant 0 : index
    %c0_4 = arith.constant 0 : index
    %3 = vector.load %arg3[%c0_3, %c0_4] : memref<1x64xf32, #tpu.memory_space<vmem>>, vector<1x64xf32>
    %4 = vector.broadcast %3 : vector<1x64xf32> to vector<88x64xf32>
    %5 = arith.addf %2, %4 : vector<88x64xf32>
    %cst_5 = arith.constant 0.000000e+00 : f32
    %6 = vector.broadcast %cst_5 : f32 to vector<88x64xf32>
    %7 = arith.maximumf %5, %6 : vector<88x64xf32>
    %8 = arith.truncf %7 : vector<88x64xf32> to vector<88x64xbf16>
    %c0_6 = arith.constant 0 : index
    %c0_7 = arith.constant 0 : index
    %9 = vector.load %arg4[%c0_6, %c0_7] : memref<88x64xbf16, #tpu.memory_space<vmem>>, vector<88x64xbf16>
    tpu.vector_store %arg4[%c0_6, %c0_7], %8 {strides = array<i32>} : memref<88x64xbf16, #tpu.memory_space<vmem>>, vector<88x64xbf16>,
    return
  }
  func.func @transform_0(%arg0: i32) -> (i32, i32) {
    %c0_i32 = arith.constant 0 : i32
    %c0_i32_0 = arith.constant 0 : i32
    return %arg0, %c0_i32 : i32, i32
  }
  func.func @transform_1(%arg0: i32) -> (i32, i32) {
    %c0_i32 = arith.constant 0 : i32
    %c0_i32_0 = arith.constant 0 : i32
    %c0_i32_1 = arith.constant 0 : i32
    return %c0_i32, %c0_i32_0 : i32, i32
  }
  func.func @transform_2(%arg0: i32) -> (i32, i32) {
    %c0_i32 = arith.constant 0 : i32
    %c0_i32_0 = arith.constant 0 : i32
    %c0_i32_1 = arith.constant 0 : i32
    return %c0_i32, %c0_i32_0 : i32, i32
  }
  func.func @transform_3(%arg0: i32) -> (i32, i32) {
    %c0_i32 = arith.constant 0 : i32
    %c0_i32_0 = arith.constant 0 : i32
    return %arg0, %c0_i32 : i32, i32
  }
}

module attributes {stable_mosaic.version = 11 : i64} {
  func.func @_maxpool_kernel(%arg0: i32, %arg1: memref<1x9x9x64xbf16, #tpu.memory_space<vmem>>, %arg2: memref<1x4x4x64xbf16, #tpu.memory_space<vmem>>, %arg3: memref<9x64xf32, #tpu.memory_space<vmem>>) attributes {dimension_semantics = [#tpu.dimension_semantics<parallel>], iteration_bounds = array<i64: 2>, scalar_prefetch = 0 : i64, scratch_operands = 1 : i64, tpu.core_type = #tpu.core_type<tc>, window_params = [{transform_indices = @transform_0, window_bounds = array<i64: 1, 9, 9, 64>}, {transform_indices = @transform_1, window_bounds = array<i64: 1, 4, 4, 64>}]} {
    %c0 = arith.constant 0 : index
    %c0_0 = arith.constant 0 : index
    %c0_1 = arith.constant 0 : index
    %c0_2 = arith.constant 0 : index
    %0 = vector.load %arg1[%c0, %c0_0, %c0_1, %c0_2] : memref<1x9x9x64xbf16, #tpu.memory_space<vmem>>, vector<1x1x9x64xbf16>
    %1 = vector.shape_cast %0 : vector<1x1x9x64xbf16> to vector<9x64xbf16>
    %2 = arith.extf %1 : vector<9x64xbf16> to vector<9x64xf32>
    %c0_3 = arith.constant 0 : index
    %c1 = arith.constant 1 : index
    %c0_4 = arith.constant 0 : index
    %c0_5 = arith.constant 0 : index
    %3 = vector.load %arg1[%c0_3, %c1, %c0_4, %c0_5] : memref<1x9x9x64xbf16, #tpu.memory_space<vmem>>, vector<1x1x9x64xbf16>
    %4 = vector.shape_cast %3 : vector<1x1x9x64xbf16> to vector<9x64xbf16>
    %5 = arith.extf %4 : vector<9x64xbf16> to vector<9x64xf32>
    %6 = arith.maximumf %2, %5 : vector<9x64xf32>
    %c0_6 = arith.constant 0 : index
    %c2 = arith.constant 2 : index
    %c0_7 = arith.constant 0 : index
    %c0_8 = arith.constant 0 : index
    %7 = vector.load %arg1[%c0_6, %c2, %c0_7, %c0_8] : memref<1x9x9x64xbf16, #tpu.memory_space<vmem>>, vector<1x1x9x64xbf16>
    %8 = vector.shape_cast %7 : vector<1x1x9x64xbf16> to vector<9x64xbf16>
    %9 = arith.extf %8 : vector<9x64xbf16> to vector<9x64xf32>
    %10 = arith.maximumf %6, %9 : vector<9x64xf32>
    %c0_9 = arith.constant 0 : index
    %c0_10 = arith.constant 0 : index
    %11 = vector.load %arg3[%c0_9, %c0_10] : memref<9x64xf32, #tpu.memory_space<vmem>>, vector<9x64xf32>
    tpu.vector_store %arg3[%c0_9, %c0_10], %10 {strides = array<i32>} : memref<9x64xf32, #tpu.memory_space<vmem>>, vector<9x64xf32>,
    %c0_11 = arith.constant 0 : index
    %c0_12 = arith.constant 0 : index
    %12 = tpu.strided_load %arg3[%c0_11, %c0_12] {strides = array<i32: 2, 1>} : memref<9x64xf32, #tpu.memory_space<vmem>>, vector<4x64xf32>
    %c1_13 = arith.constant 1 : index
    %c0_14 = arith.constant 0 : index
    %13 = tpu.strided_load %arg3[%c1_13, %c0_14] {strides = array<i32: 2, 1>} : memref<9x64xf32, #tpu.memory_space<vmem>>, vector<4x64xf32>
    %14 = arith.maximumf %12, %13 : vector<4x64xf32>
    %c2_15 = arith.constant 2 : index
    %c0_16 = arith.constant 0 : index
    %15 = tpu.strided_load %arg3[%c2_15, %c0_16] {strides = array<i32: 2, 1>} : memref<9x64xf32, #tpu.memory_space<vmem>>, vector<4x64xf32>
    %16 = arith.maximumf %14, %15 : vector<4x64xf32>
    %17 = arith.truncf %16 : vector<4x64xf32> to vector<4x64xbf16>
    %c0_17 = arith.constant 0 : index
    %c0_18 = arith.constant 0 : index
    %c0_19 = arith.constant 0 : index
    %c0_20 = arith.constant 0 : index
    %18 = vector.load %arg2[%c0_17, %c0_18, %c0_19, %c0_20] : memref<1x4x4x64xbf16, #tpu.memory_space<vmem>>, vector<1x1x4x64xbf16>
    %19 = vector.shape_cast %18 : vector<1x1x4x64xbf16> to vector<4x64xbf16>
    %20 = vector.shape_cast %17 : vector<4x64xbf16> to vector<1x1x4x64xbf16>
    tpu.vector_store %arg2[%c0_17, %c0_18, %c0_19, %c0_20], %20 {strides = array<i32>} : memref<1x4x4x64xbf16, #tpu.memory_space<vmem>>, vector<1x1x4x64xbf16>,
    %c0_21 = arith.constant 0 : index
    %c2_22 = arith.constant 2 : index
    %c0_23 = arith.constant 0 : index
    %c0_24 = arith.constant 0 : index
    %21 = vector.load %arg1[%c0_21, %c2_22, %c0_23, %c0_24] : memref<1x9x9x64xbf16, #tpu.memory_space<vmem>>, vector<1x1x9x64xbf16>
    %22 = vector.shape_cast %21 : vector<1x1x9x64xbf16> to vector<9x64xbf16>
    %23 = arith.extf %22 : vector<9x64xbf16> to vector<9x64xf32>
    %c0_25 = arith.constant 0 : index
    %c3 = arith.constant 3 : index
    %c0_26 = arith.constant 0 : index
    %c0_27 = arith.constant 0 : index
    %24 = vector.load %arg1[%c0_25, %c3, %c0_26, %c0_27] : memref<1x9x9x64xbf16, #tpu.memory_space<vmem>>, vector<1x1x9x64xbf16>
    %25 = vector.shape_cast %24 : vector<1x1x9x64xbf16> to vector<9x64xbf16>
    %26 = arith.extf %25 : vector<9x64xbf16> to vector<9x64xf32>
    %27 = arith.maximumf %23, %26 : vector<9x64xf32>
    %c0_28 = arith.constant 0 : index
    %c4 = arith.constant 4 : index
    %c0_29 = arith.constant 0 : index
    %c0_30 = arith.constant 0 : index
    %28 = vector.load %arg1[%c0_28, %c4, %c0_29, %c0_30] : memref<1x9x9x64xbf16, #tpu.memory_space<vmem>>, vector<1x1x9x64xbf16>
    %29 = vector.shape_cast %28 : vector<1x1x9x64xbf16> to vector<9x64xbf16>
    %30 = arith.extf %29 : vector<9x64xbf16> to vector<9x64xf32>
    %31 = arith.maximumf %27, %30 : vector<9x64xf32>
    %c0_31 = arith.constant 0 : index
    %c0_32 = arith.constant 0 : index
    %32 = vector.load %arg3[%c0_31, %c0_32] : memref<9x64xf32, #tpu.memory_space<vmem>>, vector<9x64xf32>
    tpu.vector_store %arg3[%c0_31, %c0_32], %31 {strides = array<i32>} : memref<9x64xf32, #tpu.memory_space<vmem>>, vector<9x64xf32>,
    %c0_33 = arith.constant 0 : index
    %c0_34 = arith.constant 0 : index
    %33 = tpu.strided_load %arg3[%c0_33, %c0_34] {strides = array<i32: 2, 1>} : memref<9x64xf32, #tpu.memory_space<vmem>>, vector<4x64xf32>
    %c1_35 = arith.constant 1 : index
    %c0_36 = arith.constant 0 : index
    %34 = tpu.strided_load %arg3[%c1_35, %c0_36] {strides = array<i32: 2, 1>} : memref<9x64xf32, #tpu.memory_space<vmem>>, vector<4x64xf32>
    %35 = arith.maximumf %33, %34 : vector<4x64xf32>
    %c2_37 = arith.constant 2 : index
    %c0_38 = arith.constant 0 : index
    %36 = tpu.strided_load %arg3[%c2_37, %c0_38] {strides = array<i32: 2, 1>} : memref<9x64xf32, #tpu.memory_space<vmem>>, vector<4x64xf32>
    %37 = arith.maximumf %35, %36 : vector<4x64xf32>
    %38 = arith.truncf %37 : vector<4x64xf32> to vector<4x64xbf16>
    %c0_39 = arith.constant 0 : index
    %c1_40 = arith.constant 1 : index
    %c0_41 = arith.constant 0 : index
    %c0_42 = arith.constant 0 : index
    %39 = vector.load %arg2[%c0_39, %c1_40, %c0_41, %c0_42] : memref<1x4x4x64xbf16, #tpu.memory_space<vmem>>, vector<1x1x4x64xbf16>
    %40 = vector.shape_cast %39 : vector<1x1x4x64xbf16> to vector<4x64xbf16>
    %41 = vector.shape_cast %38 : vector<4x64xbf16> to vector<1x1x4x64xbf16>
    tpu.vector_store %arg2[%c0_39, %c1_40, %c0_41, %c0_42], %41 {strides = array<i32>} : memref<1x4x4x64xbf16, #tpu.memory_space<vmem>>, vector<1x1x4x64xbf16>,
    %c0_43 = arith.constant 0 : index
    %c4_44 = arith.constant 4 : index
    %c0_45 = arith.constant 0 : index
    %c0_46 = arith.constant 0 : index
    %42 = vector.load %arg1[%c0_43, %c4_44, %c0_45, %c0_46] : memref<1x9x9x64xbf16, #tpu.memory_space<vmem>>, vector<1x1x9x64xbf16>
    %43 = vector.shape_cast %42 : vector<1x1x9x64xbf16> to vector<9x64xbf16>
    %44 = arith.extf %43 : vector<9x64xbf16> to vector<9x64xf32>
    %c0_47 = arith.constant 0 : index
    %c5 = arith.constant 5 : index
    %c0_48 = arith.constant 0 : index
    %c0_49 = arith.constant 0 : index
    %45 = vector.load %arg1[%c0_47, %c5, %c0_48, %c0_49] : memref<1x9x9x64xbf16, #tpu.memory_space<vmem>>, vector<1x1x9x64xbf16>
    %46 = vector.shape_cast %45 : vector<1x1x9x64xbf16> to vector<9x64xbf16>
    %47 = arith.extf %46 : vector<9x64xbf16> to vector<9x64xf32>
    %48 = arith.maximumf %44, %47 : vector<9x64xf32>
    %c0_50 = arith.constant 0 : index
    %c6 = arith.constant 6 : index
    %c0_51 = arith.constant 0 : index
    %c0_52 = arith.constant 0 : index
    %49 = vector.load %arg1[%c0_50, %c6, %c0_51, %c0_52] : memref<1x9x9x64xbf16, #tpu.memory_space<vmem>>, vector<1x1x9x64xbf16>
    %50 = vector.shape_cast %49 : vector<1x1x9x64xbf16> to vector<9x64xbf16>
    %51 = arith.extf %50 : vector<9x64xbf16> to vector<9x64xf32>
    %52 = arith.maximumf %48, %51 : vector<9x64xf32>
    %c0_53 = arith.constant 0 : index
    %c0_54 = arith.constant 0 : index
    %53 = vector.load %arg3[%c0_53, %c0_54] : memref<9x64xf32, #tpu.memory_space<vmem>>, vector<9x64xf32>
    tpu.vector_store %arg3[%c0_53, %c0_54], %52 {strides = array<i32>} : memref<9x64xf32, #tpu.memory_space<vmem>>, vector<9x64xf32>,
    %c0_55 = arith.constant 0 : index
    %c0_56 = arith.constant 0 : index
    %54 = tpu.strided_load %arg3[%c0_55, %c0_56] {strides = array<i32: 2, 1>} : memref<9x64xf32, #tpu.memory_space<vmem>>, vector<4x64xf32>
    %c1_57 = arith.constant 1 : index
    %c0_58 = arith.constant 0 : index
    %55 = tpu.strided_load %arg3[%c1_57, %c0_58] {strides = array<i32: 2, 1>} : memref<9x64xf32, #tpu.memory_space<vmem>>, vector<4x64xf32>
    %56 = arith.maximumf %54, %55 : vector<4x64xf32>
    %c2_59 = arith.constant 2 : index
    %c0_60 = arith.constant 0 : index
    %57 = tpu.strided_load %arg3[%c2_59, %c0_60] {strides = array<i32: 2, 1>} : memref<9x64xf32, #tpu.memory_space<vmem>>, vector<4x64xf32>
    %58 = arith.maximumf %56, %57 : vector<4x64xf32>
    %59 = arith.truncf %58 : vector<4x64xf32> to vector<4x64xbf16>
    %c0_61 = arith.constant 0 : index
    %c2_62 = arith.constant 2 : index
    %c0_63 = arith.constant 0 : index
    %c0_64 = arith.constant 0 : index
    %60 = vector.load %arg2[%c0_61, %c2_62, %c0_63, %c0_64] : memref<1x4x4x64xbf16, #tpu.memory_space<vmem>>, vector<1x1x4x64xbf16>
    %61 = vector.shape_cast %60 : vector<1x1x4x64xbf16> to vector<4x64xbf16>
    %62 = vector.shape_cast %59 : vector<4x64xbf16> to vector<1x1x4x64xbf16>
    tpu.vector_store %arg2[%c0_61, %c2_62, %c0_63, %c0_64], %62 {strides = array<i32>} : memref<1x4x4x64xbf16, #tpu.memory_space<vmem>>, vector<1x1x4x64xbf16>,
    %c0_65 = arith.constant 0 : index
    %c6_66 = arith.constant 6 : index
    %c0_67 = arith.constant 0 : index
    %c0_68 = arith.constant 0 : index
    %63 = vector.load %arg1[%c0_65, %c6_66, %c0_67, %c0_68] : memref<1x9x9x64xbf16, #tpu.memory_space<vmem>>, vector<1x1x9x64xbf16>
    %64 = vector.shape_cast %63 : vector<1x1x9x64xbf16> to vector<9x64xbf16>
    %65 = arith.extf %64 : vector<9x64xbf16> to vector<9x64xf32>
    %c0_69 = arith.constant 0 : index
    %c7 = arith.constant 7 : index
    %c0_70 = arith.constant 0 : index
    %c0_71 = arith.constant 0 : index
    %66 = vector.load %arg1[%c0_69, %c7, %c0_70, %c0_71] : memref<1x9x9x64xbf16, #tpu.memory_space<vmem>>, vector<1x1x9x64xbf16>
    %67 = vector.shape_cast %66 : vector<1x1x9x64xbf16> to vector<9x64xbf16>
    %68 = arith.extf %67 : vector<9x64xbf16> to vector<9x64xf32>
    %69 = arith.maximumf %65, %68 : vector<9x64xf32>
    %c0_72 = arith.constant 0 : index
    %c8 = arith.constant 8 : index
    %c0_73 = arith.constant 0 : index
    %c0_74 = arith.constant 0 : index
    %70 = vector.load %arg1[%c0_72, %c8, %c0_73, %c0_74] : memref<1x9x9x64xbf16, #tpu.memory_space<vmem>>, vector<1x1x9x64xbf16>
    %71 = vector.shape_cast %70 : vector<1x1x9x64xbf16> to vector<9x64xbf16>
    %72 = arith.extf %71 : vector<9x64xbf16> to vector<9x64xf32>
    %73 = arith.maximumf %69, %72 : vector<9x64xf32>
    %c0_75 = arith.constant 0 : index
    %c0_76 = arith.constant 0 : index
    %74 = vector.load %arg3[%c0_75, %c0_76] : memref<9x64xf32, #tpu.memory_space<vmem>>, vector<9x64xf32>
    tpu.vector_store %arg3[%c0_75, %c0_76], %73 {strides = array<i32>} : memref<9x64xf32, #tpu.memory_space<vmem>>, vector<9x64xf32>,
    %c0_77 = arith.constant 0 : index
    %c0_78 = arith.constant 0 : index
    %75 = tpu.strided_load %arg3[%c0_77, %c0_78] {strides = array<i32: 2, 1>} : memref<9x64xf32, #tpu.memory_space<vmem>>, vector<4x64xf32>
    %c1_79 = arith.constant 1 : index
    %c0_80 = arith.constant 0 : index
    %76 = tpu.strided_load %arg3[%c1_79, %c0_80] {strides = array<i32: 2, 1>} : memref<9x64xf32, #tpu.memory_space<vmem>>, vector<4x64xf32>
    %77 = arith.maximumf %75, %76 : vector<4x64xf32>
    %c2_81 = arith.constant 2 : index
    %c0_82 = arith.constant 0 : index
    %78 = tpu.strided_load %arg3[%c2_81, %c0_82] {strides = array<i32: 2, 1>} : memref<9x64xf32, #tpu.memory_space<vmem>>, vector<4x64xf32>
    %79 = arith.maximumf %77, %78 : vector<4x64xf32>
    %80 = arith.truncf %79 : vector<4x64xf32> to vector<4x64xbf16>
    %c0_83 = arith.constant 0 : index
    %c3_84 = arith.constant 3 : index
    %c0_85 = arith.constant 0 : index
    %c0_86 = arith.constant 0 : index
    %81 = vector.load %arg2[%c0_83, %c3_84, %c0_85, %c0_86] : memref<1x4x4x64xbf16, #tpu.memory_space<vmem>>, vector<1x1x4x64xbf16>
    %82 = vector.shape_cast %81 : vector<1x1x4x64xbf16> to vector<4x64xbf16>
    %83 = vector.shape_cast %80 : vector<4x64xbf16> to vector<1x1x4x64xbf16>
    tpu.vector_store %arg2[%c0_83, %c3_84, %c0_85, %c0_86], %83 {strides = array<i32>} : memref<1x4x4x64xbf16, #tpu.memory_space<vmem>>, vector<1x1x4x64xbf16>,
    return
  }
  func.func @transform_0(%arg0: i32) -> (i32, i32, i32, i32) {
    %c0_i32 = arith.constant 0 : i32
    %c0_i32_0 = arith.constant 0 : i32
    %c0_i32_1 = arith.constant 0 : i32
    %c0_i32_2 = arith.constant 0 : i32
    return %arg0, %c0_i32, %c0_i32_0, %c0_i32_1 : i32, i32, i32, i32
  }
  func.func @transform_1(%arg0: i32) -> (i32, i32, i32, i32) {
    %c0_i32 = arith.constant 0 : i32
    %c0_i32_0 = arith.constant 0 : i32
    %c0_i32_1 = arith.constant 0 : i32
    %c0_i32_2 = arith.constant 0 : i32
    return %arg0, %c0_i32, %c0_i32_0, %c0_i32_1 : i32, i32, i32, i32
  }
}

module attributes {stable_mosaic.version = 11 : i64} {
  func.func @_mlp_kernel(%arg0: i32, %arg1: memref<2x1024xbf16, #tpu.memory_space<vmem>>, %arg2: memref<1024x384xbf16, #tpu.memory_space<vmem>>, %arg3: memref<1x384xf32, #tpu.memory_space<vmem>>, %arg4: memref<384x192xbf16, #tpu.memory_space<vmem>>, %arg5: memref<1x192xf32, #tpu.memory_space<vmem>>, %arg6: memref<192x10xbf16, #tpu.memory_space<vmem>>, %arg7: memref<1x10xf32, #tpu.memory_space<vmem>>, %arg8: memref<2x10xf32, #tpu.memory_space<vmem>>) attributes {dimension_semantics = [#tpu.dimension_semantics<parallel>], iteration_bounds = array<i64: 1>, scalar_prefetch = 0 : i64, scratch_operands = 0 : i64, tpu.core_type = #tpu.core_type<tc>, window_params = [{transform_indices = @transform_0, window_bounds = array<i64: 2, 1024>}, {pipeline_mode = #tpu.pipeline_mode<synchronous>, transform_indices = @transform_1, window_bounds = array<i64: 1024, 384>}, {pipeline_mode = #tpu.pipeline_mode<synchronous>, transform_indices = @transform_2, window_bounds = array<i64: 1, 384>}, {pipeline_mode = #tpu.pipeline_mode<synchronous>, transform_indices = @transform_3, window_bounds = array<i64: 384, 192>}, {pipeline_mode = #tpu.pipeline_mode<synchronous>, transform_indices = @transform_4, window_bounds = array<i64: 1, 192>}, {pipeline_mode = #tpu.pipeline_mode<synchronous>, transform_indices = @transform_5, window_bounds = array<i64: 192, 10>}, {pipeline_mode = #tpu.pipeline_mode<synchronous>, transform_indices = @transform_6, window_bounds = array<i64: 1, 10>}, {transform_indices = @transform_7, window_bounds = array<i64: 2, 10>}]} {
    %c0 = arith.constant 0 : index
    %c0_0 = arith.constant 0 : index
    %0 = vector.load %arg1[%c0, %c0_0] : memref<2x1024xbf16, #tpu.memory_space<vmem>>, vector<2x1024xbf16>
    %c0_1 = arith.constant 0 : index
    %c0_2 = arith.constant 0 : index
    %1 = vector.load %arg2[%c0_1, %c0_2] : memref<1024x384xbf16, #tpu.memory_space<vmem>>, vector<1024x384xbf16>
    %cst = arith.constant dense<0.000000e+00> : vector<2x384xf32>
    %2 = tpu.matmul %0, %1, %cst {dimension_numbers = #tpu.dot_dimension_numbers<[1], [0], [0], [1], [0, 0, 1, 1], [], []>} : vector<2x1024xbf16>, vector<1024x384xbf16>, vector<2x384xf32> -> vector<2x384xf32>
    %c0_3 = arith.constant 0 : index
    %c0_4 = arith.constant 0 : index
    %3 = vector.load %arg3[%c0_3, %c0_4] : memref<1x384xf32, #tpu.memory_space<vmem>>, vector<1x384xf32>
    %4 = vector.broadcast %3 : vector<1x384xf32> to vector<2x384xf32>
    %5 = arith.addf %2, %4 : vector<2x384xf32>
    %cst_5 = arith.constant 0.000000e+00 : f32
    %6 = vector.broadcast %cst_5 : f32 to vector<2x384xf32>
    %7 = arith.maximumf %5, %6 : vector<2x384xf32>
    %8 = arith.truncf %7 : vector<2x384xf32> to vector<2x384xbf16>
    %c0_6 = arith.constant 0 : index
    %c0_7 = arith.constant 0 : index
    %9 = vector.load %arg4[%c0_6, %c0_7] : memref<384x192xbf16, #tpu.memory_space<vmem>>, vector<384x192xbf16>
    %cst_8 = arith.constant dense<0.000000e+00> : vector<2x192xf32>
    %10 = tpu.matmul %8, %9, %cst_8 {dimension_numbers = #tpu.dot_dimension_numbers<[1], [0], [0], [1], [0, 0, 1, 1], [], []>} : vector<2x384xbf16>, vector<384x192xbf16>, vector<2x192xf32> -> vector<2x192xf32>
    %c0_9 = arith.constant 0 : index
    %c0_10 = arith.constant 0 : index
    %11 = vector.load %arg5[%c0_9, %c0_10] : memref<1x192xf32, #tpu.memory_space<vmem>>, vector<1x192xf32>
    %12 = vector.broadcast %11 : vector<1x192xf32> to vector<2x192xf32>
    %13 = arith.addf %10, %12 : vector<2x192xf32>
    %cst_11 = arith.constant 0.000000e+00 : f32
    %14 = vector.broadcast %cst_11 : f32 to vector<2x192xf32>
    %15 = arith.maximumf %13, %14 : vector<2x192xf32>
    %16 = arith.truncf %15 : vector<2x192xf32> to vector<2x192xbf16>
    %c0_12 = arith.constant 0 : index
    %c0_13 = arith.constant 0 : index
    %17 = vector.load %arg6[%c0_12, %c0_13] : memref<192x10xbf16, #tpu.memory_space<vmem>>, vector<192x10xbf16>
    %cst_14 = arith.constant dense<0.000000e+00> : vector<2x10xf32>
    %18 = tpu.matmul %16, %17, %cst_14 {dimension_numbers = #tpu.dot_dimension_numbers<[1], [0], [0], [1], [0, 0, 1, 1], [], []>} : vector<2x192xbf16>, vector<192x10xbf16>, vector<2x10xf32> -> vector<2x10xf32>
    %c0_15 = arith.constant 0 : index
    %c0_16 = arith.constant 0 : index
    %19 = vector.load %arg7[%c0_15, %c0_16] : memref<1x10xf32, #tpu.memory_space<vmem>>, vector<1x10xf32>
    %20 = vector.broadcast %19 : vector<1x10xf32> to vector<2x10xf32>
    %21 = arith.addf %18, %20 : vector<2x10xf32>
    %c0_17 = arith.constant 0 : index
    %c0_18 = arith.constant 0 : index
    %22 = vector.load %arg8[%c0_17, %c0_18] : memref<2x10xf32, #tpu.memory_space<vmem>>, vector<2x10xf32>
    tpu.vector_store %arg8[%c0_17, %c0_18], %21 {strides = array<i32>} : memref<2x10xf32, #tpu.memory_space<vmem>>, vector<2x10xf32>,
    return
  }
  func.func @transform_0(%arg0: i32) -> (i32, i32) {
    %c0_i32 = arith.constant 0 : i32
    %c0_i32_0 = arith.constant 0 : i32
    return %arg0, %c0_i32 : i32, i32
  }
  func.func @transform_1(%arg0: i32) -> (i32, i32) {
    %c0_i32 = arith.constant 0 : i32
    %c0_i32_0 = arith.constant 0 : i32
    %c0_i32_1 = arith.constant 0 : i32
    return %c0_i32, %c0_i32_0 : i32, i32
  }
  func.func @transform_2(%arg0: i32) -> (i32, i32) {
    %c0_i32 = arith.constant 0 : i32
    %c0_i32_0 = arith.constant 0 : i32
    %c0_i32_1 = arith.constant 0 : i32
    return %c0_i32, %c0_i32_0 : i32, i32
  }
  func.func @transform_3(%arg0: i32) -> (i32, i32) {
    %c0_i32 = arith.constant 0 : i32
    %c0_i32_0 = arith.constant 0 : i32
    %c0_i32_1 = arith.constant 0 : i32
    return %c0_i32, %c0_i32_0 : i32, i32
  }
  func.func @transform_4(%arg0: i32) -> (i32, i32) {
    %c0_i32 = arith.constant 0 : i32
    %c0_i32_0 = arith.constant 0 : i32
    %c0_i32_1 = arith.constant 0 : i32
    return %c0_i32, %c0_i32_0 : i32, i32
  }
  func.func @transform_5(%arg0: i32) -> (i32, i32) {
    %c0_i32 = arith.constant 0 : i32
    %c0_i32_0 = arith.constant 0 : i32
    %c0_i32_1 = arith.constant 0 : i32
    return %c0_i32, %c0_i32_0 : i32, i32
  }
  func.func @transform_6(%arg0: i32) -> (i32, i32) {
    %c0_i32 = arith.constant 0 : i32
    %c0_i32_0 = arith.constant 0 : i32
    %c0_i32_1 = arith.constant 0 : i32
    return %c0_i32, %c0_i32_0 : i32, i32
  }
  func.func @transform_7(%arg0: i32) -> (i32, i32) {
    %c0_i32 = arith.constant 0 : i32
    %c0_i32_0 = arith.constant 0 : i32
    return %arg0, %c0_i32 : i32, i32
  }
}

</mosaic_0001>

<bundles_post_ra>
// kernel: cnn_mycifar10_forward.5
= control target key start
LH: loop header
LB: loop body
LE: loop exit
PB: predicated region body
PF: predicated region fallthrough
CT: control target
= control target key end

     0   :  { %s1595_s12 = smov 0   ;;  %s1996_s0 = inlined_call_operand.vmem [shape: bf16[1568,128], index: 0, kind: input, shape index: {}]   ;;  %s1997_s1 = inlined_call_operand.vmem [shape: bf16[128,64], index: 1, kind: input, shape index: {}]   ;;  %s1998_s2 = inlined_call_operand.vmem [shape: f32[1,64], index: 2, kind: input, shape index: {}]   ;;  %s1999_s3 = inlined_call_operand.vmem [shape: bf16[1568,64], index: 3, kind: output, shape index: {}]  }
   0x1 LB: > { %s1239_s13 = sadd.s32 4294967295, %s1573_s12   ;;  %p1243_p0 = scmp.ge.s32.totalorder %s1573_s12, 1  ;;  %s1573_s12 = sphi %s1595_s12, %s13_s12  }
   0x2   : > { %p138_p1 = scmp.lt.s32.totalorder %s1573_s12, 3 }
   0x4   : > { %p139_p2 = pnand %p1243_p0, %p138_p1 }
   0x5   : > { %s162_s22 = smul.u32 (!%p139_p2), 98, %s1239_s13 }
   0x6   : > { %142 = sbr.rel (%p139_p2) target bundleno = 382 (0x17e), region = 32 }
   0x7   : > { %p163_p3 = scmp.lt.s32.totalorder (!%p139_p2), %s162_s22, 195 }
   0xb   : > { %v1532_v0 = vld [vmem:[%s1997_s1 + $0x38] sm:$0xff]  ;;  %v1531_v1 = vld [vmem:[%s1997_s1 + $0x30] sm:$0xff]  ;;  %v1530_v2 = vld [vmem:[%s1997_s1 + $0x28] sm:$0xff]  ;;  %s2001_s22 = smov (!%p163_p3, %s162_s22), 195  ;;  %vm1084_vm0 = vcmask 519168  }
   0xc   : > { %1534 = vmatpush.bf16.msra.mxu2 %v1532_v0  ;;  %1535 = vmatpush.bf16.msra.mxu3 %v1532_v0  ;;  %v1529_v3 = vld [vmem:[%s1997_s1 + $0x20] sm:$0xff]  ;;  %v1528_v4 = vld [vmem:[%s1997_s1 + $0x18] sm:$0xff]  ;;  %v1527_v5 = vld [vmem:[%s1997_s1 + $0x10] sm:$0xff]  ;;  %s1244_s29 = sshll.u32 %s2001_s22, 2 }
   0xd   : > { %634 = vmatpush.bf16.msra.mxu0 %v1532_v0  ;;  %1533 = vmatpush.bf16.msra.mxu1 %v1532_v0  ;;  %v1526_v6 = vld [vmem:[%s1997_s1 + $0x8] sm:$0xff]  ;;  %v1525_v7 = vld [vmem:[%s1997_s1] sm:$0xff]  ;;  %s1635_s7 = scalar_lea.vmem %s1996_s0, %s1244_s29  ;;  %s1685_s13 = scalar_lea.vmem %s1999_s3, %s1244_s29 }
   0xe   : > { %v1500_v8 = vld [vmem:[%s1635_s7 + $0xc0] sm:$0xff]  ;;  %v1513_v9 = vld [vmem:[%s1635_s7 + $0x128] sm:$0xff]  ;;  %v1514_v13 = vld [vmem:[%s1635_s7 + $0x130] sm:$0xff] }
   0xf   : > { %v1476_v10 = vld [vmem:[%s1635_s7] sm:$0xff]  ;;  %v1501_v12 = vld [vmem:[%s1635_s7 + $0xc8] sm:$0xff]  ;;  %v1502_v16 = vld [vmem:[%s1635_s7 + $0xd0] sm:$0xff] }
  0x10   : > { %1537 = vmatpush.bf16.msra.mxu2 %v1531_v1  ;;  %1538 = vmatpush.bf16.msra.mxu3 %v1531_v1  ;;  %v1488_v11 = vld [vmem:[%s1635_s7 + $0x60] sm:$0xff]  ;;  %v1477_v14 = vld [vmem:[%s1635_s7 + $0x8] sm:$0xff]  ;;  %v1515_v17 = vld [vmem:[%s1635_s7 + $0x138] sm:$0xff] }
  0x11   : > { %635 = vmatpush.bf16.msra.mxu0 %v1531_v1  ;;  %1536 = vmatpush.bf16.msra.mxu1 %v1531_v1  ;;  %v1489_v15 = vld [vmem:[%s1635_s7 + $0x68] sm:$0xff]  ;;  %v1478_v18 = vld [vmem:[%s1635_s7 + $0x10] sm:$0xff]  ;;  %v1503_v20 = vld [vmem:[%s1635_s7 + $0xd8] sm:$0xff] }
  0x12   : > { %v1490_v19 = vld [vmem:[%s1635_s7 + $0x70] sm:$0xff]  ;;  %v1516_v21 = vld [vmem:[%s1635_s7 + $0x140] sm:$0xff]  ;;  %v1479_v22 = vld [vmem:[%s1635_s7 + $0x18] sm:$0xff] }
  0x13   : > { %v1491_v23 = vld [vmem:[%s1635_s7 + $0x78] sm:$0xff]  ;;  %v1504_v24 = vld [vmem:[%s1635_s7 + $0xe0] sm:$0xff]  ;;  %v1517_v25 = vld [vmem:[%s1635_s7 + $0x148] sm:$0xff] }
  0x14   : > { %1540 = vmatpush.bf16.msra.mxu2 %v1530_v2  ;;  %1541 = vmatpush.bf16.msra.mxu3 %v1530_v2  ;;  %v1480_v26 = vld [vmem:[%s1635_s7 + $0x20] sm:$0xff]  ;;  %v1505_v28 = vld [vmem:[%s1635_s7 + $0xe8] sm:$0xff]  ;;  %v1518_v29 = vld [vmem:[%s1635_s7 + $0x150] sm:$0xff] }
  0x15   : > { %636 = vmatpush.bf16.msra.mxu0 %v1530_v2  ;;  %1539 = vmatpush.bf16.msra.mxu1 %v1530_v2  ;;  %v1492_v27 = vld [vmem:[%s1635_s7 + $0x80] sm:$0xff]  ;;  %v1481_v30 = vld [vmem:[%s1635_s7 + $0x28] sm:$0xff]  ;;  %v1506_v32 = vld [vmem:[%s1635_s7 + $0xf0] sm:$0xff] }
  0x16   : > { %v1493_v31 = vld [vmem:[%s1635_s7 + $0x88] sm:$0xff]  ;;  %v1519_v33 = vld [vmem:[%s1635_s7 + $0x158] sm:$0xff]  ;;  %v1482_v34 = vld [vmem:[%s1635_s7 + $0x30] sm:$0xff] }
  0x17   : > { %v1494_v35 = vld [vmem:[%s1635_s7 + $0x90] sm:$0xff]  ;;  %v1507_v36 = vld [vmem:[%s1635_s7 + $0xf8] sm:$0xff]  ;;  %v1520_v37 = vld [vmem:[%s1635_s7 + $0x160] sm:$0xff] }
  0x18   : > { %1543 = vmatpush.bf16.msra.mxu2 %v1529_v3  ;;  %1544 = vmatpush.bf16.msra.mxu3 %v1529_v3  ;;  %v1483_v38 = vld [vmem:[%s1635_s7 + $0x38] sm:$0xff]  ;;  %v1508_v40 = vld [vmem:[%s1635_s7 + $0x100] sm:$0xff]  ;;  %v1521_v41 = vld [vmem:[%s1635_s7 + $0x168] sm:$0xff] }
  0x19   : > { %637 = vmatpush.bf16.msra.mxu0 %v1529_v3  ;;  %1542 = vmatpush.bf16.msra.mxu1 %v1529_v3  ;;  %v1495_v39 = vld [vmem:[%s1635_s7 + $0x98] sm:$0xff]  ;;  %v1674_v42 = vld [vmem:[%s1998_s2] ss:$0 sm:$0xff] }
  0x1a   : > { %v1484_v43 = vld [vmem:[%s1635_s7 + $0x40] sm:$0xff] }
  0x1b   : > { %v1496_v44 = vld [vmem:[%s1635_s7 + $0xa0] sm:$0xff] }
  0x1c   : > { %1546 = vmatpush.bf16.msra.mxu2 %v1528_v4  ;;  %1547 = vmatpush.bf16.msra.mxu3 %v1528_v4 }
  0x1d   : > { %638 = vmatpush.bf16.msra.mxu0 %v1528_v4  ;;  %1545 = vmatpush.bf16.msra.mxu1 %v1528_v4 }
  0x20   : > { %1549 = vmatpush.bf16.msra.mxu2 %v1527_v5  ;;  %1550 = vmatpush.bf16.msra.mxu3 %v1527_v5 }
  0x21   : > { %639 = vmatpush.bf16.msra.mxu0 %v1527_v5  ;;  %1548 = vmatpush.bf16.msra.mxu1 %v1527_v5 }
  0x24   : > { %1552 = vmatpush.bf16.msra.mxu2 %v1526_v6  ;;  %1553 = vmatpush.bf16.msra.mxu3 %v1526_v6 }
  0x25   : > { %640 = vmatpush.bf16.msra.mxu0 %v1526_v6  ;;  %1551 = vmatpush.bf16.msra.mxu1 %v1526_v6 }
  0x28   : > { %1555 = vmatpush.bf16.msra.mxu2 %v1525_v7  ;;  %1556 = vmatpush.bf16.msra.mxu3 %v1525_v7 }
  0x29   : > { %641 = vmatpush.bf16.msra.mxu0 %v1525_v7  ;;  %1554 = vmatpush.bf16.msra.mxu1 %v1525_v7 }
  0x2b   : > { %762 = vmatmul.bf16.vlgmr.msra.gmra.mxu2 %v1500_v8  ;;  %827 = vmatmul.bf16.vlgmr.msra.gmra.mxu3 %v1513_v9  ;;  %v1509_v8 = vld [vmem:[%s1635_s7 + $0x108] sm:$0xff] }
  0x2c   : > { %642 = vmatmul.bf16.vlgmr.msra.gmra.mxu0 %v1476_v10  ;;  %702 = vmatmul.bf16.vlgmr.msra.gmra.mxu1 %v1488_v11  ;;  %v1522_v10 = vld [vmem:[%s1635_s7 + $0x170] sm:$0xff]  ;;  %v1485_v11 = vld [vmem:[%s1635_s7 + $0x48] sm:$0xff] }
  0x3b   : > { %767 = vmatmul.bf16.gmra.mxu2 %v1501_v12  ;;  %832 = vmatmul.bf16.gmra.mxu3 %v1514_v13  ;;  %v1497_v12 = vld [vmem:[%s1635_s7 + $0xa8] sm:$0xff] }
  0x3c   : > { %647 = vmatmul.bf16.gmra.mxu0 %v1477_v14  ;;  %707 = vmatmul.bf16.gmra.mxu1 %v1489_v15 }
  0x4b   : > { %772 = vmatmul.bf16.gmra.mxu2 %v1502_v16  ;;  %837 = vmatmul.bf16.gmra.mxu3 %v1515_v17 }
  0x4c   : > { %652 = vmatmul.bf16.gmra.mxu0 %v1478_v18  ;;  %712 = vmatmul.bf16.gmra.mxu1 %v1490_v19 }
  0x5b   : > { %777 = vmatmul.bf16.gmra.mxu2 %v1503_v20  ;;  %842 = vmatmul.bf16.gmra.mxu3 %v1516_v21 }
  0x5c   : > { %657 = vmatmul.bf16.gmra.mxu0 %v1479_v22  ;;  %717 = vmatmul.bf16.gmra.mxu1 %v1491_v23 }
  0x6b   : > { %782 = vmatmul.bf16.gmra.mxu2 %v1504_v24  ;;  %847 = vmatmul.bf16.gmra.mxu3 %v1517_v25 }
  0x6c   : > { %662 = vmatmul.bf16.gmra.mxu0 %v1480_v26  ;;  %722 = vmatmul.bf16.gmra.mxu1 %v1492_v27 }
  0x7b   : > { %787 = vmatmul.bf16.gmra.mxu2 %v1505_v28  ;;  %852 = vmatmul.bf16.gmra.mxu3 %v1518_v29 }
  0x7c   : > { %667 = vmatmul.bf16.gmra.mxu0 %v1481_v30  ;;  %727 = vmatmul.bf16.gmra.mxu1 %v1493_v31 }
  0x8b   : > { %792 = vmatmul.bf16.gmra.mxu2 %v1506_v32  ;;  %857 = vmatmul.bf16.gmra.mxu3 %v1519_v33 }
  0x8c   : > { %672 = vmatmul.bf16.gmra.mxu0 %v1482_v34  ;;  %732 = vmatmul.bf16.gmra.mxu1 %v1494_v35 }
  0x9b   : > { %797 = vmatmul.bf16.gmra.mxu2 %v1507_v36  ;;  %862 = vmatmul.bf16.gmra.mxu3 %v1520_v37 }
  0x9c   : > { %677 = vmatmul.bf16.gmra.mxu0 %v1483_v38  ;;  %737 = vmatmul.bf16.gmra.mxu1 %v1495_v39 }
  0xa9   : > { %v643_v45 = vpop.f32.mrf.mxu0  ;;  %v703_v46 = vpop.f32.mrf.mxu1 }
  0xaa   : > { %v644_v47 = vadd.f32 %v1674_v42, %v643_v45  ;;  %v704_v48 = vadd.f32 %v1674_v42, %v703_v46  ;;  %v1510_v45 = vld [vmem:[%s1635_s7 + $0x110] sm:$0xff] }
  0xab   : > { %802 = vmatmul.bf16.gmra.mxu2 %v1508_v40  ;;  %867 = vmatmul.bf16.gmra.mxu3 %v1521_v41 }
  0xac   : > { %v888_v49 = vmax.f32 %v644_v47, 0.0  ;;  %v912_v50 = vmax.f32 %v704_v48, 0.0  ;;  %682 = vmatmul.bf16.gmra.mxu0 %v1484_v43  ;;  %742 = vmatmul.bf16.gmra.mxu1 %v1496_v44  ;;  %v1523_v47 = vld [vmem:[%s1635_s7 + $0x178] sm:$0xff]  ;;  %v1486_v48 = vld [vmem:[%s1635_s7 + $0x50] sm:$0xff] }
  0xae   : > { %v763_v51 = vpop.f32.mrf.mxu2  ;;  %v986_v52 = vpack.c.bf16 %v888_v49, %v888_v49  ;;  %v1010_v53 = vpack.c.bf16 %v912_v50, %v912_v50  ;;  %v828_v54 = vpop.f32.mrf.mxu3  ;;  %v1498_v49 = vld [vmem:[%s1635_s7 + $0xb0] sm:$0xff] }
  0xaf   : > { %v764_v55 = vadd.f32 %v1674_v42, %v763_v51  ;;  %v829_v56 = vadd.f32 %v1674_v42, %v828_v54 }
  0xb0   : > { %1085 = vst.msk [vmem:[%s1685_s13] sm:$0xf] %vm1084_vm0, %v986_v52 }
  0xb1   : > { %v936_v57 = vmax.f32 %v764_v55, 0.0  ;;  %1109 = vst.msk [vmem:[%s1685_s13 + $0x60] sm:$0xf] %vm1084_vm0, %v1010_v53  ;;  %v962_v58 = vmax.f32 %v829_v56, 0.0  ;;  %v645_v59 = vpop.f32.mrf.mxu0  ;;  %v705_v60 = vpop.f32.mrf.mxu1 }
  0xb2   : > { %v646_v61 = vadd.f32 %v1674_v42, %v645_v59  ;;  %v706_v62 = vadd.f32 %v1674_v42, %v705_v60 }
  0xb3   : > { %v1034_v63 = vpack.c.bf16 %v936_v57, %v936_v57  ;;  %v1060_v0 = vpack.c.bf16 %v962_v58, %v962_v58 }
  0xb4   : > { %v889_v1 = vmax.f32 %v646_v61, 0.0  ;;  %v913_v2 = vmax.f32 %v706_v62, 0.0 }
  0xb5   : > { %1133 = vst.msk [vmem:[%s1685_s13 + $0xc0] sm:$0xf] %vm1084_vm0, %v1034_v63 }
  0xb6   : > { %v765_v3 = vpop.f32.mrf.mxu2  ;;  %1159 = vst.msk [vmem:[%s1685_s13 + $0x128] sm:$0xf] %vm1084_vm0, %v1060_v0  ;;  %v987_v4 = vpack.c.bf16 %v889_v1, %v889_v1  ;;  %v1011_v5 = vpack.c.bf16 %v913_v2, %v913_v2  ;;  %v830_v6 = vpop.f32.mrf.mxu3 }
  0xb7   : > { %v766_v7 = vadd.f32 %v1674_v42, %v765_v3  ;;  %v831_v9 = vadd.f32 %v1674_v42, %v830_v6 }
  0xb8   : > { %1086 = vst.msk [vmem:[%s1685_s13 + $0x4] sm:$0xf] %vm1084_vm0, %v987_v4 }
  0xb9   : > { %v937_v13 = vmax.f32 %v766_v7, 0.0  ;;  %1110 = vst.msk [vmem:[%s1685_s13 + $0x64] sm:$0xf] %vm1084_vm0, %v1011_v5  ;;  %v963_v14 = vmax.f32 %v831_v9, 0.0  ;;  %v648_v15 = vpop.f32.mrf.mxu0  ;;  %v708_v16 = vpop.f32.mrf.mxu1 }
  0xba   : > { %v649_v17 = vadd.f32 %v1674_v42, %v648_v15  ;;  %v709_v18 = vadd.f32 %v1674_v42, %v708_v16 }
  0xbb   : > { %v1035_v19 = vpack.c.bf16 %v937_v13, %v937_v13  ;;  %807 = vmatmul.bf16.gmra.mxu2 %v1509_v8  ;;  %v1061_v20 = vpack.c.bf16 %v963_v14, %v963_v14  ;;  %872 = vmatmul.bf16.gmra.mxu3 %v1522_v10 }
  0xbc   : > { %v890_v21 = vmax.f32 %v649_v17, 0.0  ;;  %v914_v22 = vmax.f32 %v709_v18, 0.0  ;;  %687 = vmatmul.bf16.gmra.mxu0 %v1485_v11  ;;  %747 = vmatmul.bf16.gmra.mxu1 %v1497_v12  ;;  %v1511_v17 = vld [vmem:[%s1635_s7 + $0x118] sm:$0xff] }
  0xbd   : > { %1134 = vst.msk [vmem:[%s1685_s13 + $0xc4] sm:$0xf] %vm1084_vm0, %v1035_v19  ;;  %v1524_v19 = vld [vmem:[%s1635_s7 + $0x180] sm:$0xff] }
  0xbe   : > { %v768_v23 = vpop.f32.mrf.mxu2  ;;  %1160 = vst.msk [vmem:[%s1685_s13 + $0x12c] sm:$0xf] %vm1084_vm0, %v1061_v20  ;;  %v988_v24 = vpack.c.bf16 %v890_v21, %v890_v21  ;;  %v1012_v25 = vpack.c.bf16 %v914_v22, %v914_v22  ;;  %v833_v26 = vpop.f32.mrf.mxu3  ;;  %v1487_v20 = vld [vmem:[%s1635_s7 + $0x58] sm:$0xff] }
  0xbf   : > { %v769_v27 = vadd.f32 %v1674_v42, %v768_v23  ;;  %v834_v28 = vadd.f32 %v1674_v42, %v833_v26  ;;  %v1499_v21 = vld [vmem:[%s1635_s7 + $0xb8] sm:$0xff] }
  0xc0   : > { %1087 = vst.msk [vmem:[%s1685_s13 + $0x8] sm:$0xf] %vm1084_vm0, %v988_v24 }
  0xc1   : > { %v938_v29 = vmax.f32 %v769_v27, 0.0  ;;  %1111 = vst.msk [vmem:[%s1685_s13 + $0x68] sm:$0xf] %vm1084_vm0, %v1012_v25  ;;  %v964_v30 = vmax.f32 %v834_v28, 0.0  ;;  %v650_v31 = vpop.f32.mrf.mxu0  ;;  %v710_v32 = vpop.f32.mrf.mxu1 }
  0xc2   : > { %v651_v33 = vadd.f32 %v1674_v42, %v650_v31  ;;  %v711_v34 = vadd.f32 %v1674_v42, %v710_v32 }
  0xc3   : > { %v1036_v35 = vpack.c.bf16 %v938_v29, %v938_v29  ;;  %v1062_v36 = vpack.c.bf16 %v964_v30, %v964_v30 }
  0xc4   : > { %v891_v37 = vmax.f32 %v651_v33, 0.0  ;;  %v915_v38 = vmax.f32 %v711_v34, 0.0 }
  0xc5   : > { %1135 = vst.msk [vmem:[%s1685_s13 + $0xc8] sm:$0xf] %vm1084_vm0, %v1036_v35 }
  0xc6   : > { %v770_v39 = vpop.f32.mrf.mxu2  ;;  %1161 = vst.msk [vmem:[%s1685_s13 + $0x130] sm:$0xf] %vm1084_vm0, %v1062_v36  ;;  %v989_v40 = vpack.c.bf16 %v891_v37, %v891_v37  ;;  %v1013_v41 = vpack.c.bf16 %v915_v38, %v915_v38  ;;  %v835_v43 = vpop.f32.mrf.mxu3 }
  0xc7   : > { %v771_v44 = vadd.f32 %v1674_v42, %v770_v39  ;;  %v836_v46 = vadd.f32 %v1674_v42, %v835_v43 }
  0xc8   : > { %1088 = vst.msk [vmem:[%s1685_s13 + $0xc] sm:$0xf] %vm1084_vm0, %v989_v40 }
  0xc9   : > { %v939_v50 = vmax.f32 %v771_v44, 0.0  ;;  %1112 = vst.msk [vmem:[%s1685_s13 + $0x6c] sm:$0xf] %vm1084_vm0, %v1013_v41  ;;  %v965_v51 = vmax.f32 %v836_v46, 0.0  ;;  %v653_v52 = vpop.f32.mrf.mxu0  ;;  %v713_v53 = vpop.f32.mrf.mxu1 }
  0xca   : > { %v654_v54 = vadd.f32 %v1674_v42, %v653_v52  ;;  %v714_v55 = vadd.f32 %v1674_v42, %v713_v53 }
  0xcb   : > { %v1037_v56 = vpack.c.bf16 %v939_v50, %v939_v50  ;;  %812 = vmatmul.bf16.gmra.mxu2 %v1510_v45  ;;  %v1063_v57 = vpack.c.bf16 %v965_v51, %v965_v51  ;;  %877 = vmatmul.bf16.gmra.mxu3 %v1523_v47 }
  0xcc   : > { %v892_v58 = vmax.f32 %v654_v54, 0.0  ;;  %v916_v59 = vmax.f32 %v714_v55, 0.0  ;;  %692 = vmatmul.bf16.gmra.mxu0 %v1486_v48  ;;  %752 = vmatmul.bf16.gmra.mxu1 %v1498_v49  ;;  %v1512_v54 = vld [vmem:[%s1635_s7 + $0x120] sm:$0xff] }
  0xcd   : > { %1136 = vst.msk [vmem:[%s1685_s13 + $0xcc] sm:$0xf] %vm1084_vm0, %v1037_v56 }
  0xce   : > { %v773_v60 = vpop.f32.mrf.mxu2  ;;  %1162 = vst.msk [vmem:[%s1685_s13 + $0x134] sm:$0xf] %vm1084_vm0, %v1063_v57  ;;  %v990_v61 = vpack.c.bf16 %v892_v58, %v892_v58  ;;  %v1014_v62 = vpack.c.bf16 %v916_v59, %v916_v59  ;;  %v838_v63 = vpop.f32.mrf.mxu3 }
  0xcf   : > { %v774_v0 = vadd.f32 %v1674_v42, %v773_v60  ;;  %v839_v1 = vadd.f32 %v1674_v42, %v838_v63 }
  0xd0   : > { %1089 = vst.msk [vmem:[%s1685_s13 + $0x10] sm:$0xf] %vm1084_vm0, %v990_v61 }
  0xd1   : > { %v940_v2 = vmax.f32 %v774_v0, 0.0  ;;  %1113 = vst.msk [vmem:[%s1685_s13 + $0x70] sm:$0xf] %vm1084_vm0, %v1014_v62  ;;  %v966_v3 = vmax.f32 %v839_v1, 0.0  ;;  %v655_v4 = vpop.f32.mrf.mxu0  ;;  %v715_v5 = vpop.f32.mrf.mxu1 }
  0xd2   : > { %v656_v6 = vadd.f32 %v1674_v42, %v655_v4  ;;  %v716_v7 = vadd.f32 %v1674_v42, %v715_v5 }
  0xd3   : > { %v1038_v8 = vpack.c.bf16 %v940_v2, %v940_v2  ;;  %v1064_v9 = vpack.c.bf16 %v966_v3, %v966_v3 }
  0xd4   : > { %v893_v10 = vmax.f32 %v656_v6, 0.0  ;;  %v917_v11 = vmax.f32 %v716_v7, 0.0 }
  0xd5   : > { %1137 = vst.msk [vmem:[%s1685_s13 + $0xd0] sm:$0xf] %vm1084_vm0, %v1038_v8 }
  0xd6   : > { %v775_v12 = vpop.f32.mrf.mxu2  ;;  %1163 = vst.msk [vmem:[%s1685_s13 + $0x138] sm:$0xf] %vm1084_vm0, %v1064_v9  ;;  %v991_v13 = vpack.c.bf16 %v893_v10, %v893_v10  ;;  %v1015_v14 = vpack.c.bf16 %v917_v11, %v917_v11  ;;  %v840_v15 = vpop.f32.mrf.mxu3 }
  0xd7   : > { %v776_v16 = vadd.f32 %v1674_v42, %v775_v12  ;;  %v841_v18 = vadd.f32 %v1674_v42, %v840_v15 }
  0xd8   : > { %1090 = vst.msk [vmem:[%s1685_s13 + $0x14] sm:$0xf] %vm1084_vm0, %v991_v13 }
  0xd9   : > { %v941_v22 = vmax.f32 %v776_v16, 0.0  ;;  %1114 = vst.msk [vmem:[%s1685_s13 + $0x74] sm:$0xf] %vm1084_vm0, %v1015_v14  ;;  %v967_v23 = vmax.f32 %v841_v18, 0.0  ;;  %v658_v24 = vpop.f32.mrf.mxu0  ;;  %v718_v25 = vpop.f32.mrf.mxu1 }
  0xda   : > { %v659_v26 = vadd.f32 %v1674_v42, %v658_v24  ;;  %v719_v27 = vadd.f32 %v1674_v42, %v718_v25 }
  0xdb   : > { %v1039_v28 = vpack.c.bf16 %v941_v22, %v941_v22  ;;  %817 = vmatmul.bf16.gmra.mxu2 %v1511_v17  ;;  %v1065_v29 = vpack.c.bf16 %v967_v23, %v967_v23  ;;  %882 = vmatmul.bf16.gmra.mxu3 %v1524_v19 }
  0xdc   : > { %v894_v30 = vmax.f32 %v659_v26, 0.0  ;;  %v918_v31 = vmax.f32 %v719_v27, 0.0  ;;  %697 = vmatmul.bf16.gmra.mxu0 %v1487_v20  ;;  %757 = vmatmul.bf16.gmra.mxu1 %v1499_v21 }
  0xdd   : > { %1138 = vst.msk [vmem:[%s1685_s13 + $0xd4] sm:$0xf] %vm1084_vm0, %v1039_v28 }
  0xde   : > { %v778_v32 = vpop.f32.mrf.mxu2  ;;  %1164 = vst.msk [vmem:[%s1685_s13 + $0x13c] sm:$0xf] %vm1084_vm0, %v1065_v29  ;;  %v992_v33 = vpack.c.bf16 %v894_v30, %v894_v30  ;;  %v1016_v34 = vpack.c.bf16 %v918_v31, %v918_v31  ;;  %v843_v35 = vpop.f32.mrf.mxu3 }
  0xdf   : > { %v779_v36 = vadd.f32 %v1674_v42, %v778_v32  ;;  %v844_v37 = vadd.f32 %v1674_v42, %v843_v35 }
  0xe0   : > { %1091 = vst.msk [vmem:[%s1685_s13 + $0x18] sm:$0xf] %vm1084_vm0, %v992_v33 }
  0xe1   : > { %v942_v38 = vmax.f32 %v779_v36, 0.0  ;;  %1115 = vst.msk [vmem:[%s1685_s13 + $0x78] sm:$0xf] %vm1084_vm0, %v1016_v34  ;;  %v968_v39 = vmax.f32 %v844_v37, 0.0  ;;  %v660_v40 = vpop.f32.mrf.mxu0  ;;  %v720_v41 = vpop.f32.mrf.mxu1 }
  0xe2   : > { %v661_v43 = vadd.f32 %v1674_v42, %v660_v40  ;;  %v721_v44 = vadd.f32 %v1674_v42, %v720_v41 }
  0xe3   : > { %v1040_v45 = vpack.c.bf16 %v942_v38, %v942_v38  ;;  %v1066_v46 = vpack.c.bf16 %v968_v39, %v968_v39 }
  0xe4   : > { %v895_v47 = vmax.f32 %v661_v43, 0.0  ;;  %v919_v48 = vmax.f32 %v721_v44, 0.0 }
  0xe5   : > { %1139 = vst.msk [vmem:[%s1685_s13 + $0xd8] sm:$0xf] %vm1084_vm0, %v1040_v45 }
  0xe6   : > { %v780_v49 = vpop.f32.mrf.mxu2  ;;  %1165 = vst.msk [vmem:[%s1685_s13 + $0x140] sm:$0xf] %vm1084_vm0, %v1066_v46  ;;  %v993_v50 = vpack.c.bf16 %v895_v47, %v895_v47  ;;  %v1017_v51 = vpack.c.bf16 %v919_v48, %v919_v48  ;;  %v845_v52 = vpop.f32.mrf.mxu3 }
  0xe7   : > { %v781_v53 = vadd.f32 %v1674_v42, %v780_v49  ;;  %v846_v55 = vadd.f32 %v1674_v42, %v845_v52 }
  0xe8   : > { %1092 = vst.msk [vmem:[%s1685_s13 + $0x1c] sm:$0xf] %vm1084_vm0, %v993_v50 }
  0xe9   : > { %v943_v56 = vmax.f32 %v781_v53, 0.0  ;;  %1116 = vst.msk [vmem:[%s1685_s13 + $0x7c] sm:$0xf] %vm1084_vm0, %v1017_v51  ;;  %v969_v57 = vmax.f32 %v846_v55, 0.0  ;;  %v663_v58 = vpop.f32.mrf.mxu0  ;;  %v723_v59 = vpop.f32.mrf.mxu1 }
  0xea   : > { %v664_v60 = vadd.f32 %v1674_v42, %v663_v58  ;;  %v724_v61 = vadd.f32 %v1674_v42, %v723_v59 }
  0xeb   : > { %v1041_v62 = vpack.c.bf16 %v943_v56, %v943_v56  ;;  %822 = vmatmul.bf16.gmra.mxu2 %v1512_v54  ;;  %v1067_v63 = vpack.c.bf16 %v969_v57, %v969_v57 }
  0xec   : > { %v896_v0 = vmax.f32 %v664_v60, 0.0  ;;  %v920_v1 = vmax.f32 %v724_v61, 0.0 }
  0xed   : > { %1140 = vst.msk [vmem:[%s1685_s13 + $0xdc] sm:$0xf] %vm1084_vm0, %v1041_v62 }
  0xee   : > { %v783_v2 = vpop.f32.mrf.mxu2  ;;  %1166 = vst.msk [vmem:[%s1685_s13 + $0x144] sm:$0xf] %vm1084_vm0, %v1067_v63  ;;  %v994_v3 = vpack.c.bf16 %v896_v0, %v896_v0  ;;  %v1018_v4 = vpack.c.bf16 %v920_v1, %v920_v1  ;;  %v848_v5 = vpop.f32.mrf.mxu3 }
  0xef   : > { %v784_v6 = vadd.f32 %v1674_v42, %v783_v2  ;;  %v849_v7 = vadd.f32 %v1674_v42, %v848_v5 }
  0xf0   : > { %1093 = vst.msk [vmem:[%s1685_s13 + $0x20] sm:$0xf] %vm1084_vm0, %v994_v3 }
  0xf1   : > { %v944_v8 = vmax.f32 %v784_v6, 0.0  ;;  %1117 = vst.msk [vmem:[%s1685_s13 + $0x80] sm:$0xf] %vm1084_vm0, %v1018_v4  ;;  %v970_v9 = vmax.f32 %v849_v7, 0.0  ;;  %v665_v10 = vpop.f32.mrf.mxu0  ;;  %v725_v11 = vpop.f32.mrf.mxu1 }
  0xf2   : > { %v666_v12 = vadd.f32 %v1674_v42, %v665_v10  ;;  %v726_v13 = vadd.f32 %v1674_v42, %v725_v11 }
  0xf3   : > { %v1042_v14 = vpack.c.bf16 %v944_v8, %v944_v8  ;;  %v1068_v15 = vpack.c.bf16 %v970_v9, %v970_v9 }
  0xf4   : > { %v897_v16 = vmax.f32 %v666_v12, 0.0  ;;  %v921_v17 = vmax.f32 %v726_v13, 0.0 }
  0xf5   : > { %1141 = vst.msk [vmem:[%s1685_s13 + $0xe0] sm:$0xf] %vm1084_vm0, %v1042_v14 }
  0xf6   : > { %v785_v18 = vpop.f32.mrf.mxu2  ;;  %1167 = vst.msk [vmem:[%s1685_s13 + $0x148] sm:$0xf] %vm1084_vm0, %v1068_v15  ;;  %v995_v19 = vpack.c.bf16 %v897_v16, %v897_v16  ;;  %v1019_v20 = vpack.c.bf16 %v921_v17, %v921_v17  ;;  %v850_v21 = vpop.f32.mrf.mxu3 }
  0xf7   : > { %v786_v22 = vadd.f32 %v1674_v42, %v785_v18  ;;  %v851_v23 = vadd.f32 %v1674_v42, %v850_v21 }
  0xf8   : > { %1094 = vst.msk [vmem:[%s1685_s13 + $0x24] sm:$0xf] %vm1084_vm0, %v995_v19 }
  0xf9   : > { %v945_v24 = vmax.f32 %v786_v22, 0.0  ;;  %1118 = vst.msk [vmem:[%s1685_s13 + $0x84] sm:$0xf] %vm1084_vm0, %v1019_v20  ;;  %v971_v25 = vmax.f32 %v851_v23, 0.0  ;;  %v668_v26 = vpop.f32.mrf.mxu0  ;;  %v728_v27 = vpop.f32.mrf.mxu1 }
  0xfa   : > { %v669_v28 = vadd.f32 %v1674_v42, %v668_v26  ;;  %v729_v29 = vadd.f32 %v1674_v42, %v728_v27 }
  0xfb   : > { %v1043_v30 = vpack.c.bf16 %v945_v24, %v945_v24  ;;  %v1069_v31 = vpack.c.bf16 %v971_v25, %v971_v25 }
  0xfc   : > { %v898_v32 = vmax.f32 %v669_v28, 0.0  ;;  %v922_v33 = vmax.f32 %v729_v29, 0.0 }
  0xfd   : > { %1142 = vst.msk [vmem:[%s1685_s13 + $0xe4] sm:$0xf] %vm1084_vm0, %v1043_v30 }
  0xfe   : > { %v788_v34 = vpop.f32.mrf.mxu2  ;;  %1168 = vst.msk [vmem:[%s1685_s13 + $0x14c] sm:$0xf] %vm1084_vm0, %v1069_v31  ;;  %v996_v35 = vpack.c.bf16 %v898_v32, %v898_v32  ;;  %v1020_v36 = vpack.c.bf16 %v922_v33, %v922_v33  ;;  %v853_v37 = vpop.f32.mrf.mxu3 }
  0xff   : > { %v789_v38 = vadd.f32 %v1674_v42, %v788_v34  ;;  %v854_v39 = vadd.f32 %v1674_v42, %v853_v37 }
 0x100   : > { %1095 = vst.msk [vmem:[%s1685_s13 + $0x28] sm:$0xf] %vm1084_vm0, %v996_v35 }
 0x101   : > { %v946_v40 = vmax.f32 %v789_v38, 0.0  ;;  %1119 = vst.msk [vmem:[%s1685_s13 + $0x88] sm:$0xf] %vm1084_vm0, %v1020_v36  ;;  %v972_v41 = vmax.f32 %v854_v39, 0.0  ;;  %v670_v43 = vpop.f32.mrf.mxu0  ;;  %v730_v44 = vpop.f32.mrf.mxu1 }
 0x102   : > { %v671_v45 = vadd.f32 %v1674_v42, %v670_v43  ;;  %v731_v46 = vadd.f32 %v1674_v42, %v730_v44 }
 0x103   : > { %v1044_v47 = vpack.c.bf16 %v946_v40, %v946_v40  ;;  %v1070_v48 = vpack.c.bf16 %v972_v41, %v972_v41 }
 0x104   : > { %v899_v49 = vmax.f32 %v671_v45, 0.0  ;;  %v923_v50 = vmax.f32 %v731_v46, 0.0 }
 0x105   : > { %1143 = vst.msk [vmem:[%s1685_s13 + $0xe8] sm:$0xf] %vm1084_vm0, %v1044_v47 }
 0x106   : > { %v790_v51 = vpop.f32.mrf.mxu2  ;;  %1169 = vst.msk [vmem:[%s1685_s13 + $0x150] sm:$0xf] %vm1084_vm0, %v1070_v48  ;;  %v997_v52 = vpack.c.bf16 %v899_v49, %v899_v49  ;;  %v1021_v53 = vpack.c.bf16 %v923_v50, %v923_v50  ;;  %v855_v54 = vpop.f32.mrf.mxu3 }
 0x107   : > { %v791_v55 = vadd.f32 %v1674_v42, %v790_v51  ;;  %v856_v56 = vadd.f32 %v1674_v42, %v855_v54 }
 0x108   : > { %1096 = vst.msk [vmem:[%s1685_s13 + $0x2c] sm:$0xf] %vm1084_vm0, %v997_v52 }
 0x109   : > { %v947_v57 = vmax.f32 %v791_v55, 0.0  ;;  %1120 = vst.msk [vmem:[%s1685_s13 + $0x8c] sm:$0xf] %vm1084_vm0, %v1021_v53  ;;  %v973_v58 = vmax.f32 %v856_v56, 0.0  ;;  %v673_v59 = vpop.f32.mrf.mxu0  ;;  %v733_v60 = vpop.f32.mrf.mxu1 }
 0x10a   : > { %v674_v61 = vadd.f32 %v1674_v42, %v673_v59  ;;  %v734_v62 = vadd.f32 %v1674_v42, %v733_v60 }
 0x10b   : > { %v1045_v63 = vpack.c.bf16 %v947_v57, %v947_v57  ;;  %v1071_v0 = vpack.c.bf16 %v973_v58, %v973_v58 }
 0x10c   : > { %v900_v1 = vmax.f32 %v674_v61, 0.0  ;;  %v924_v2 = vmax.f32 %v734_v62, 0.0 }
 0x10d   : > { %1144 = vst.msk [vmem:[%s1685_s13 + $0xec] sm:$0xf] %vm1084_vm0, %v1045_v63 }
 0x10e   : > { %v793_v3 = vpop.f32.mrf.mxu2  ;;  %1170 = vst.msk [vmem:[%s1685_s13 + $0x154] sm:$0xf] %vm1084_vm0, %v1071_v0  ;;  %v998_v4 = vpack.c.bf16 %v900_v1, %v900_v1  ;;  %v1022_v5 = vpack.c.bf16 %v924_v2, %v924_v2  ;;  %v858_v6 = vpop.f32.mrf.mxu3 }
 0x10f   : > { %v794_v7 = vadd.f32 %v1674_v42, %v793_v3  ;;  %v859_v8 = vadd.f32 %v1674_v42, %v858_v6 }
 0x110   : > { %1097 = vst.msk [vmem:[%s1685_s13 + $0x30] sm:$0xf] %vm1084_vm0, %v998_v4 }
 0x111   : > { %v948_v9 = vmax.f32 %v794_v7, 0.0  ;;  %1121 = vst.msk [vmem:[%s1685_s13 + $0x90] sm:$0xf] %vm1084_vm0, %v1022_v5  ;;  %v974_v10 = vmax.f32 %v859_v8, 0.0  ;;  %v675_v11 = vpop.f32.mrf.mxu0  ;;  %v735_v12 = vpop.f32.mrf.mxu1 }
 0x112   : > { %v676_v13 = vadd.f32 %v1674_v42, %v675_v11  ;;  %v736_v14 = vadd.f32 %v1674_v42, %v735_v12 }
 0x113   : > { %v1046_v15 = vpack.c.bf16 %v948_v9, %v948_v9  ;;  %v1072_v16 = vpack.c.bf16 %v974_v10, %v974_v10 }
 0x114   : > { %v901_v17 = vmax.f32 %v676_v13, 0.0  ;;  %v925_v18 = vmax.f32 %v736_v14, 0.0 }
 0x115   : > { %1145 = vst.msk [vmem:[%s1685_s13 + $0xf0] sm:$0xf] %vm1084_vm0, %v1046_v15 }
 0x116   : > { %v795_v19 = vpop.f32.mrf.mxu2  ;;  %1171 = vst.msk [vmem:[%s1685_s13 + $0x158] sm:$0xf] %vm1084_vm0, %v1072_v16  ;;  %v999_v20 = vpack.c.bf16 %v901_v17, %v901_v17  ;;  %v1023_v21 = vpack.c.bf16 %v925_v18, %v925_v18  ;;  %v860_v22 = vpop.f32.mrf.mxu3 }
 0x117   : > { %v796_v23 = vadd.f32 %v1674_v42, %v795_v19  ;;  %v861_v24 = vadd.f32 %v1674_v42, %v860_v22 }
 0x118   : > { %1098 = vst.msk [vmem:[%s1685_s13 + $0x34] sm:$0xf] %vm1084_vm0, %v999_v20 }
 0x119   : > { %v949_v25 = vmax.f32 %v796_v23, 0.0  ;;  %1122 = vst.msk [vmem:[%s1685_s13 + $0x94] sm:$0xf] %vm1084_vm0, %v1023_v21  ;;  %v975_v26 = vmax.f32 %v861_v24, 0.0  ;;  %v678_v27 = vpop.f32.mrf.mxu0  ;;  %v738_v28 = vpop.f32.mrf.mxu1 }
 0x11a   : > { %v679_v29 = vadd.f32 %v1674_v42, %v678_v27  ;;  %v739_v30 = vadd.f32 %v1674_v42, %v738_v28 }
 0x11b   : > { %v1047_v31 = vpack.c.bf16 %v949_v25, %v949_v25  ;;  %v1073_v32 = vpack.c.bf16 %v975_v26, %v975_v26 }
 0x11c   : > { %v902_v33 = vmax.f32 %v679_v29, 0.0  ;;  %v926_v34 = vmax.f32 %v739_v30, 0.0 }
 0x11d   : > { %1146 = vst.msk [vmem:[%s1685_s13 + $0xf4] sm:$0xf] %vm1084_vm0, %v1047_v31 }
 0x11e   : > { %v798_v35 = vpop.f32.mrf.mxu2  ;;  %1172 = vst.msk [vmem:[%s1685_s13 + $0x15c] sm:$0xf] %vm1084_vm0, %v1073_v32  ;;  %v1000_v36 = vpack.c.bf16 %v902_v33, %v902_v33  ;;  %v1024_v37 = vpack.c.bf16 %v926_v34, %v926_v34  ;;  %v863_v38 = vpop.f32.mrf.mxu3 }
 0x11f   : > { %v799_v39 = vadd.f32 %v1674_v42, %v798_v35  ;;  %v864_v40 = vadd.f32 %v1674_v42, %v863_v38 }
 0x120   : > { %1099 = vst.msk [vmem:[%s1685_s13 + $0x38] sm:$0xf] %vm1084_vm0, %v1000_v36 }
 0x121   : > { %v950_v41 = vmax.f32 %v799_v39, 0.0  ;;  %1123 = vst.msk [vmem:[%s1685_s13 + $0x98] sm:$0xf] %vm1084_vm0, %v1024_v37  ;;  %v976_v43 = vmax.f32 %v864_v40, 0.0  ;;  %v680_v44 = vpop.f32.mrf.mxu0  ;;  %v740_v45 = vpop.f32.mrf.mxu1 }
 0x122   : > { %v681_v46 = vadd.f32 %v1674_v42, %v680_v44  ;;  %v741_v47 = vadd.f32 %v1674_v42, %v740_v45 }
 0x123   : > { %v1048_v48 = vpack.c.bf16 %v950_v41, %v950_v41  ;;  %v1074_v49 = vpack.c.bf16 %v976_v43, %v976_v43 }
 0x124   : > { %v903_v50 = vmax.f32 %v681_v46, 0.0  ;;  %v927_v51 = vmax.f32 %v741_v47, 0.0 }
 0x125   : > { %1147 = vst.msk [vmem:[%s1685_s13 + $0xf8] sm:$0xf] %vm1084_vm0, %v1048_v48 }
 0x126   : > { %v800_v52 = vpop.f32.mrf.mxu2  ;;  %1173 = vst.msk [vmem:[%s1685_s13 + $0x160] sm:$0xf] %vm1084_vm0, %v1074_v49  ;;  %v1001_v53 = vpack.c.bf16 %v903_v50, %v903_v50  ;;  %v1025_v54 = vpack.c.bf16 %v927_v51, %v927_v51  ;;  %v865_v55 = vpop.f32.mrf.mxu3 }
 0x127   : > { %v801_v56 = vadd.f32 %v1674_v42, %v800_v52  ;;  %v866_v57 = vadd.f32 %v1674_v42, %v865_v55 }
 0x128   : > { %1100 = vst.msk [vmem:[%s1685_s13 + $0x3c] sm:$0xf] %vm1084_vm0, %v1001_v53 }
 0x129   : > { %v951_v58 = vmax.f32 %v801_v56, 0.0  ;;  %1124 = vst.msk [vmem:[%s1685_s13 + $0x9c] sm:$0xf] %vm1084_vm0, %v1025_v54  ;;  %v977_v59 = vmax.f32 %v866_v57, 0.0  ;;  %v683_v60 = vpop.f32.mrf.mxu0  ;;  %v743_v61 = vpop.f32.mrf.mxu1 }
 0x12a   : > { %v684_v62 = vadd.f32 %v1674_v42, %v683_v60  ;;  %v744_v63 = vadd.f32 %v1674_v42, %v743_v61 }
 0x12b   : > { %v1049_v0 = vpack.c.bf16 %v951_v58, %v951_v58  ;;  %v1075_v1 = vpack.c.bf16 %v977_v59, %v977_v59 }
 0x12c   : > { %v904_v2 = vmax.f32 %v684_v62, 0.0  ;;  %v928_v3 = vmax.f32 %v744_v63, 0.0 }
 0x12d   : > { %1148 = vst.msk [vmem:[%s1685_s13 + $0xfc] sm:$0xf] %vm1084_vm0, %v1049_v0 }
 0x12e   : > { %v803_v4 = vpop.f32.mrf.mxu2  ;;  %1174 = vst.msk [vmem:[%s1685_s13 + $0x164] sm:$0xf] %vm1084_vm0, %v1075_v1  ;;  %v1002_v5 = vpack.c.bf16 %v904_v2, %v904_v2  ;;  %v1026_v6 = vpack.c.bf16 %v928_v3, %v928_v3  ;;  %v868_v7 = vpop.f32.mrf.mxu3 }
 0x12f   : > { %v804_v8 = vadd.f32 %v1674_v42, %v803_v4  ;;  %v869_v9 = vadd.f32 %v1674_v42, %v868_v7 }
 0x130   : > { %1101 = vst.msk [vmem:[%s1685_s13 + $0x40] sm:$0xf] %vm1084_vm0, %v1002_v5 }
 0x131   : > { %v952_v10 = vmax.f32 %v804_v8, 0.0  ;;  %1125 = vst.msk [vmem:[%s1685_s13 + $0xa0] sm:$0xf] %vm1084_vm0, %v1026_v6  ;;  %v978_v11 = vmax.f32 %v869_v9, 0.0  ;;  %v685_v12 = vpop.f32.mrf.mxu0  ;;  %v745_v13 = vpop.f32.mrf.mxu1 }
 0x132   : > { %v686_v14 = vadd.f32 %v1674_v42, %v685_v12  ;;  %v746_v15 = vadd.f32 %v1674_v42, %v745_v13 }
 0x133   : > { %v1050_v16 = vpack.c.bf16 %v952_v10, %v952_v10  ;;  %v1076_v17 = vpack.c.bf16 %v978_v11, %v978_v11 }
 0x134   : > { %v905_v18 = vmax.f32 %v686_v14, 0.0  ;;  %v929_v19 = vmax.f32 %v746_v15, 0.0 }
 0x135   : > { %1149 = vst.msk [vmem:[%s1685_s13 + $0x100] sm:$0xf] %vm1084_vm0, %v1050_v16 }
 0x136   : > { %v805_v20 = vpop.f32.mrf.mxu2  ;;  %1175 = vst.msk [vmem:[%s1685_s13 + $0x168] sm:$0xf] %vm1084_vm0, %v1076_v17  ;;  %v1003_v21 = vpack.c.bf16 %v905_v18, %v905_v18  ;;  %v1027_v22 = vpack.c.bf16 %v929_v19, %v929_v19  ;;  %v870_v23 = vpop.f32.mrf.mxu3 }
 0x137   : > { %v806_v24 = vadd.f32 %v1674_v42, %v805_v20  ;;  %v871_v25 = vadd.f32 %v1674_v42, %v870_v23 }
 0x138   : > { %1102 = vst.msk [vmem:[%s1685_s13 + $0x44] sm:$0xf] %vm1084_vm0, %v1003_v21 }
 0x139   : > { %v953_v26 = vmax.f32 %v806_v24, 0.0  ;;  %1126 = vst.msk [vmem:[%s1685_s13 + $0xa4] sm:$0xf] %vm1084_vm0, %v1027_v22  ;;  %v979_v27 = vmax.f32 %v871_v25, 0.0  ;;  %v688_v28 = vpop.f32.mrf.mxu0  ;;  %v748_v29 = vpop.f32.mrf.mxu1 }
 0x13a   : > { %v689_v30 = vadd.f32 %v1674_v42, %v688_v28  ;;  %v749_v31 = vadd.f32 %v1674_v42, %v748_v29 }
 0x13b   : > { %v1051_v32 = vpack.c.bf16 %v953_v26, %v953_v26  ;;  %v1077_v33 = vpack.c.bf16 %v979_v27, %v979_v27 }
 0x13c   : > { %v906_v34 = vmax.f32 %v689_v30, 0.0  ;;  %v930_v35 = vmax.f32 %v749_v31, 0.0 }
 0x13d   : > { %1150 = vst.msk [vmem:[%s1685_s13 + $0x104] sm:$0xf] %vm1084_vm0, %v1051_v32 }
 0x13e   : > { %v808_v36 = vpop.f32.mrf.mxu2  ;;  %1176 = vst.msk [vmem:[%s1685_s13 + $0x16c] sm:$0xf] %vm1084_vm0, %v1077_v33  ;;  %v1004_v37 = vpack.c.bf16 %v906_v34, %v906_v34  ;;  %v1028_v38 = vpack.c.bf16 %v930_v35, %v930_v35  ;;  %v873_v39 = vpop.f32.mrf.mxu3 }
 0x13f   : > { %v809_v40 = vadd.f32 %v1674_v42, %v808_v36  ;;  %v874_v41 = vadd.f32 %v1674_v42, %v873_v39 }
 0x140   : > { %1103 = vst.msk [vmem:[%s1685_s13 + $0x48] sm:$0xf] %vm1084_vm0, %v1004_v37 }
 0x141   : > { %v954_v43 = vmax.f32 %v809_v40, 0.0  ;;  %1127 = vst.msk [vmem:[%s1685_s13 + $0xa8] sm:$0xf] %vm1084_vm0, %v1028_v38  ;;  %v980_v44 = vmax.f32 %v874_v41, 0.0  ;;  %v690_v45 = vpop.f32.mrf.mxu0  ;;  %v750_v46 = vpop.f32.mrf.mxu1 }
 0x142   : > { %v691_v47 = vadd.f32 %v1674_v42, %v690_v45  ;;  %v751_v48 = vadd.f32 %v1674_v42, %v750_v46 }
 0x143   : > { %v1052_v49 = vpack.c.bf16 %v954_v43, %v954_v43  ;;  %v1078_v50 = vpack.c.bf16 %v980_v44, %v980_v44 }
 0x144   : > { %v907_v51 = vmax.f32 %v691_v47, 0.0  ;;  %v931_v52 = vmax.f32 %v751_v48, 0.0 }
 0x145   : > { %1151 = vst.msk [vmem:[%s1685_s13 + $0x108] sm:$0xf] %vm1084_vm0, %v1052_v49 }
 0x146   : > { %v810_v53 = vpop.f32.mrf.mxu2  ;;  %1177 = vst.msk [vmem:[%s1685_s13 + $0x170] sm:$0xf] %vm1084_vm0, %v1078_v50  ;;  %v1005_v54 = vpack.c.bf16 %v907_v51, %v907_v51  ;;  %v1029_v55 = vpack.c.bf16 %v931_v52, %v931_v52  ;;  %v875_v56 = vpop.f32.mrf.mxu3 }
 0x147   : > { %v811_v57 = vadd.f32 %v1674_v42, %v810_v53  ;;  %v876_v58 = vadd.f32 %v1674_v42, %v875_v56 }
 0x148   : > { %1104 = vst.msk [vmem:[%s1685_s13 + $0x4c] sm:$0xf] %vm1084_vm0, %v1005_v54 }
 0x149   : > { %v955_v59 = vmax.f32 %v811_v57, 0.0  ;;  %1128 = vst.msk [vmem:[%s1685_s13 + $0xac] sm:$0xf] %vm1084_vm0, %v1029_v55  ;;  %v981_v60 = vmax.f32 %v876_v58, 0.0  ;;  %v693_v61 = vpop.f32.mrf.mxu0  ;;  %v753_v62 = vpop.f32.mrf.mxu1 }
 0x14a   : > { %v694_v63 = vadd.f32 %v1674_v42, %v693_v61  ;;  %v754_v0 = vadd.f32 %v1674_v42, %v753_v62 }
 0x14b   : > { %v1053_v1 = vpack.c.bf16 %v955_v59, %v955_v59  ;;  %v1079_v2 = vpack.c.bf16 %v981_v60, %v981_v60 }
 0x14c   : > { %v908_v3 = vmax.f32 %v694_v63, 0.0  ;;  %v932_v4 = vmax.f32 %v754_v0, 0.0 }
 0x14d   : > { %1152 = vst.msk [vmem:[%s1685_s13 + $0x10c] sm:$0xf] %vm1084_vm0, %v1053_v1  ;;  %v1566_v1 = vld [vmem:[%s1998_s2] ss:$0 sm:$0xff] }
 0x14e   : > { %v813_v5 = vpop.f32.mrf.mxu2  ;;  %1178 = vst.msk [vmem:[%s1685_s13 + $0x174] sm:$0xf] %vm1084_vm0, %v1079_v2  ;;  %v1006_v6 = vpack.c.bf16 %v908_v3, %v908_v3  ;;  %v1030_v7 = vpack.c.bf16 %v932_v4, %v932_v4  ;;  %v878_v8 = vpop.f32.mrf.mxu3 }
 0x14f   : > { %v814_v9 = vadd.f32 %v1674_v42, %v813_v5  ;;  %v879_v10 = vadd.f32 %v1674_v42, %v878_v8 }
 0x150   : > { %1105 = vst.msk [vmem:[%s1685_s13 + $0x50] sm:$0xf] %vm1084_vm0, %v1006_v6 }
 0x151   : > { %v956_v11 = vmax.f32 %v814_v9, 0.0  ;;  %1129 = vst.msk [vmem:[%s1685_s13 + $0xb0] sm:$0xf] %vm1084_vm0, %v1030_v7  ;;  %v982_v12 = vmax.f32 %v879_v10, 0.0  ;;  %v695_v13 = vpop.f32.mrf.mxu0  ;;  %v755_v14 = vpop.f32.mrf.mxu1 }
 0x152   : > { %v696_v15 = vadd.f32 %v1674_v42, %v695_v13  ;;  %v756_v16 = vadd.f32 %v1674_v42, %v755_v14 }
 0x153   : > { %v1054_v17 = vpack.c.bf16 %v956_v11, %v956_v11  ;;  %v1080_v18 = vpack.c.bf16 %v982_v12, %v982_v12 }
 0x154   : > { %v909_v19 = vmax.f32 %v696_v15, 0.0  ;;  %v933_v20 = vmax.f32 %v756_v16, 0.0 }
 0x155   : > { %1153 = vst.msk [vmem:[%s1685_s13 + $0x110] sm:$0xf] %vm1084_vm0, %v1054_v17 }
 0x156   : > { %v815_v21 = vpop.f32.mrf.mxu2  ;;  %1179 = vst.msk [vmem:[%s1685_s13 + $0x178] sm:$0xf] %vm1084_vm0, %v1080_v18  ;;  %v1007_v22 = vpack.c.bf16 %v909_v19, %v909_v19  ;;  %v1031_v23 = vpack.c.bf16 %v933_v20, %v933_v20  ;;  %v880_v24 = vpop.f32.mrf.mxu3 }
 0x157   : > { %v816_v25 = vadd.f32 %v1674_v42, %v815_v21  ;;  %v881_v26 = vadd.f32 %v1674_v42, %v880_v24 }
 0x158   : > { %1106 = vst.msk [vmem:[%s1685_s13 + $0x54] sm:$0xf] %vm1084_vm0, %v1007_v22 }
 0x159   : > { %v957_v27 = vmax.f32 %v816_v25, 0.0  ;;  %1130 = vst.msk [vmem:[%s1685_s13 + $0xb4] sm:$0xf] %vm1084_vm0, %v1031_v23  ;;  %v983_v28 = vmax.f32 %v881_v26, 0.0  ;;  %v698_v29 = vpop.f32.mrf.mxu0  ;;  %v758_v30 = vpop.f32.mrf.mxu1 }
 0x15a   : > { %v699_v31 = vadd.f32 %v1674_v42, %v698_v29  ;;  %v759_v32 = vadd.f32 %v1674_v42, %v758_v30 }
 0x15b   : > { %v1055_v33 = vpack.c.bf16 %v957_v27, %v957_v27  ;;  %v1081_v34 = vpack.c.bf16 %v983_v28, %v983_v28 }
 0x15c   : > { %v910_v35 = vmax.f32 %v699_v31, 0.0  ;;  %v934_v36 = vmax.f32 %v759_v32, 0.0 }
 0x15d   : > { %1154 = vst.msk [vmem:[%s1685_s13 + $0x114] sm:$0xf] %vm1084_vm0, %v1055_v33 }
 0x15e   : > { %v818_v37 = vpop.f32.mrf.mxu2  ;;  %1180 = vst.msk [vmem:[%s1685_s13 + $0x17c] sm:$0xf] %vm1084_vm0, %v1081_v34  ;;  %v1008_v38 = vpack.c.bf16 %v910_v35, %v910_v35  ;;  %v1032_v39 = vpack.c.bf16 %v934_v36, %v934_v36  ;;  %v883_v40 = vpop.f32.mrf.mxu3 }
 0x15f   : > { %v819_v41 = vadd.f32 %v1674_v42, %v818_v37  ;;  %v884_v43 = vadd.f32 %v1674_v42, %v883_v40 }
 0x160   : > { %1107 = vst.msk [vmem:[%s1685_s13 + $0x58] sm:$0xf] %vm1084_vm0, %v1008_v38 }
 0x161   : > { %v958_v44 = vmax.f32 %v819_v41, 0.0  ;;  %1131 = vst.msk [vmem:[%s1685_s13 + $0xb8] sm:$0xf] %vm1084_vm0, %v1032_v39  ;;  %v984_v45 = vmax.f32 %v884_v43, 0.0  ;;  %v700_v46 = vpop.f32.mrf.mxu0  ;;  %v760_v47 = vpop.f32.mrf.mxu1 }
 0x162   : > { %v701_v48 = vadd.f32 %v1674_v42, %v700_v46  ;;  %v761_v49 = vadd.f32 %v1674_v42, %v760_v47 }
 0x163   : > { %v1056_v50 = vpack.c.bf16 %v958_v44, %v958_v44  ;;  %v1082_v51 = vpack.c.bf16 %v984_v45, %v984_v45 }
 0x164   : > { %v911_v52 = vmax.f32 %v701_v48, 0.0  ;;  %v935_v53 = vmax.f32 %v761_v49, 0.0 }
 0x165   : > { %1155 = vst.msk [vmem:[%s1685_s13 + $0x118] sm:$0xf] %vm1084_vm0, %v1056_v50 }
 0x166   : > { %v820_v54 = vpop.f32.mrf.mxu2  ;;  %1181 = vst.msk [vmem:[%s1685_s13 + $0x180] sm:$0xf] %vm1084_vm0, %v1082_v51  ;;  %v1009_v55 = vpack.c.bf16 %v911_v52, %v911_v52  ;;  %v1033_v56 = vpack.c.bf16 %v935_v53, %v935_v53  ;;  %v885_v57 = vpop.f32.mrf.mxu3 }
 0x167   : > { %v821_v58 = vadd.f32 %v1674_v42, %v820_v54  ;;  %v886_v59 = vadd.f32 %v1674_v42, %v885_v57 }
 0x168   : > { %1108 = vst.msk [vmem:[%s1685_s13 + $0x5c] sm:$0xf] %vm1084_vm0, %v1009_v55 }
 0x169   : > { %v959_v60 = vmax.f32 %v821_v58, 0.0  ;;  %1132 = vst.msk [vmem:[%s1685_s13 + $0xbc] sm:$0xf] %vm1084_vm0, %v1033_v56  ;;  %v985_v61 = vmax.f32 %v886_v59, 0.0 }
 0x16b   : > { %v1057_v62 = vpack.c.bf16 %v959_v60, %v959_v60  ;;  %v1083_v63 = vpack.c.bf16 %v985_v61, %v985_v61 }
 0x16d   : > { %1156 = vst.msk [vmem:[%s1685_s13 + $0x11c] sm:$0xf] %vm1084_vm0, %v1057_v62 }
 0x16e   : > { %v823_v0 = vpop.f32.mrf.mxu2  ;;  %1182 = vst.msk [vmem:[%s1685_s13 + $0x184] sm:$0xf] %vm1084_vm0, %v1083_v63 }
 0x16f   : > { %v824_v2 = vadd.f32 %v1566_v1, %v823_v0 }
 0x171   : > { %v960_v42 = vmax.f32 %v824_v2, 0.0 }
 0x173   : > { %v1058_v3 = vpack.c.bf16 %v960_v42, %v960_v42 }
 0x175   : > { %1157 = vst.msk [vmem:[%s1685_s13 + $0x120] sm:$0xf] %vm1084_vm0, %v1058_v3 }
 0x176   : > { %v825_v4 = vpop.f32.mrf.mxu2 }
 0x177   : > { %v826_v5 = vadd.f32 %v1566_v1, %v825_v4 }
 0x179   : > { %v961_v6 = vmax.f32 %v826_v5, 0.0 }
 0x17b   : > { %v1059_v7 = vpack.c.bf16 %v961_v6, %v961_v6 }
 0x17d   : > { %1158 = vst.msk [vmem:[%s1685_s13 + $0x124] sm:$0xf] %vm1084_vm0, %v1059_v7 }
 0x17e PF: > { %s13_s12 = sadd.s32 1, %s1573_s12  }
 0x17f   : > { %p10_p4 = scmp.ge.s32.totalorder %s13_s12, 4  }
 0x181   :  { %12 = sbr.rel (!%p10_p4) target bundleno = 1 (0x1), region = 62 }

// kernel: cnn_mycifar10_forward.6
= control target key start
LH: loop header
LB: loop body
LE: loop exit
PB: predicated region body
PF: predicated region fallthrough
CT: control target
= control target key end

     0   :  { %s1315_s6 = smov 0   ;;  %s1624_s0 = inlined_call_operand.vmem [shape: bf16[2,28,28,64], index: 0, kind: input, shape index: {}]   ;;  %s1625_s1 = inlined_call_operand.vmem [shape: bf16[2,13,13,64], index: 1, kind: output, shape index: {}]  }
   0x1 LB: > { %s896_s7 = sadd.s32 4294967295, %s1303_s6   ;;  %p900_p0 = scmp.ge.s32.totalorder %s1303_s6, 1  ;;  %s1303_s6 = sphi %s1315_s6, %s11_s6  }
   0x2   : > { %p87_p1 = scmp.lt.s32.totalorder %s1303_s6, 3 }
   0x4   : > { %p88_p2 = pnand %p900_p0, %p87_p1 }
   0x5   : > { %p107_p3 = scmp.lt.s32.totalorder (!%p88_p2), %s896_s7, 1 }
   0x6   : > { %91 = sbr.rel (%p88_p2) target bundleno = 173 (0xad), region = 24 }
   0xb   : > { %s1629_s7 = smov (!%p107_p3, %s896_s7), 1  ;;  %vm151_vm0 = vcmask 523264   ;;  %vm155_vm1 = vcmask 519168   ;;  %vm176_vm2 = vsmask.f32 2304  ;;  %vm175_vm3 = vcmask 518144  }
   0xc   : > { %s1287_s8 = smul.u32 448, %s1629_s7  ;;  %vm1376_vm4 = vmand %vm175_vm3, %vm176_vm2 }
   0xd   : > { %s1288_s12 = smul.u32 104, %s1629_s7 }
   0xe   : > { %s1329_s11 = scalar_lea.vmem %s1624_s0, %s1287_s8 }
   0xf   : > { %v1094_v0 = vld [vmem:[%s1329_s11] sm:$0xff]   ;;  %v1249_v1 = vld [vmem:[%s1329_s11 + $0x10] sm:$0xff]   ;;  %v119_v7 = vld [vmem:[%s1329_s11 + $0x8] sm:$0xf]  ;;  %s1366_s15 = scalar_lea.vmem %s1625_s1, %s1288_s12 }
  0x10   : > { %v1250_v2 = vld [vmem:[%s1329_s11 + $0x20] sm:$0xff]   ;;  %v1095_v3 = vunpack.c.l.bf16 %v1094_v0  ;;  %v1099_v4 = vunpack.c.l.bf16 %v1249_v1  ;;  %v1096_v6 = vunpack.c.h.bf16 %v1094_v0  ;;  %v905_v8 = vld [vmem:[%s1329_s11 + $0x18] sm:$0xf]  ;;  %v909_v9 = vld [vmem:[%s1329_s11 + $0x28] sm:$0xf]  ;;  %v1100_v10 = vunpack.c.h.bf16 %v1249_v1 }
  0x11   : > { %v1103_v5 = vunpack.c.l.bf16 %v1250_v2  ;;  %v1104_v11 = vunpack.c.h.bf16 %v1250_v2  ;;  %v123_v12 = vunpack.c.l.bf16 %v119_v7  ;;  %v132_v13 = vunpack.c.l.bf16 %v905_v8  ;;  %v120_v14 = vld [vmem:[%s1329_s11 + $0xc] sm:$0x3]  ;;  %v906_v15 = vld [vmem:[%s1329_s11 + $0x1c] sm:$0x3]  ;;  %v1252_v21 = vld [vmem:[%s1329_s11 + $0x30] sm:$0xff]  }
  0x12   : > { %v910_v16 = vld [vmem:[%s1329_s11 + $0x2c] sm:$0x3]  ;;  %v134_v17 = vmax.f32 %v1095_v3, %v1099_v4  ;;  %v145_v18 = vunpack.c.l.bf16 %v909_v9  ;;  %v124_v19 = vunpack.c.l.bf16 %v120_v14  ;;  %v133_v20 = vunpack.c.l.bf16 %v906_v15  ;;  %v913_v27 = vld [vmem:[%s1329_s11 + $0x28] sm:$0xf]  ;;  %v917_v28 = vld [vmem:[%s1329_s11 + $0x38] sm:$0xf] }
  0x13   : > { %v135_v22 = vmax.f32 %v1096_v6, %v1100_v10  ;;  %v136_v23 = vmax.f32 %v123_v12, %v132_v13  ;;  %v146_v24 = vunpack.c.l.bf16 %v910_v16  ;;  %v1111_v31 = vunpack.c.l.bf16 %v1252_v21  ;;  %v914_v32 = vld [vmem:[%s1329_s11 + $0x2c] sm:$0x3]  ;;  %v918_v33 = vld [vmem:[%s1329_s11 + $0x3c] sm:$0x3]  ;;  %v1347_v35 = vld [vmem:[%s1329_s11 + $0x40] sm:$0xff]  }
  0x14   : > { %v147_v25 = vmax.f32 %v134_v17, %v1103_v5  ;;  %v137_v26 = vmax.f32 %v124_v19, %v133_v20  ;;  %v1112_v36 = vunpack.c.h.bf16 %v1252_v21  ;;  %v187_v37 = vunpack.c.l.bf16 %v913_v27  ;;  %v921_v39 = vld [vmem:[%s1329_s11 + $0x48] sm:$0xf]  ;;  %v922_v44 = vld [vmem:[%s1329_s11 + $0x4c] sm:$0x3]  ;;  %v1255_v52 = vld [vmem:[%s1329_s11 + $0x50] sm:$0xff]  }
  0x15   : > { %v148_v29 = vmax.f32 %v135_v22, %v1104_v11  ;;  %v149_v30 = vmax.f32 %v136_v23, %v145_v18  ;;  %v196_v38 = vunpack.c.l.bf16 %v917_v28  ;;  %v188_v40 = vunpack.c.l.bf16 %v914_v32  ;;  %v928_v53 = vld [vmem:[%s1329_s11 + $0x48] sm:$0xf]  ;;  %v932_v57 = vld [vmem:[%s1329_s11 + $0x58] sm:$0xf]  ;;  %v929_v61 = vld [vmem:[%s1329_s11 + $0x4c] sm:$0x3] }
  0x16   : > { %152 = vst.msk [vmem:[#allocation2] sm:$0xff] %vm151_vm0, %v147_v25  ;;  %v150_v34 = vmax.f32 %v137_v26, %v146_v24  ;;  %v197_v41 = vunpack.c.l.bf16 %v918_v33  ;;  %v198_v42 = vmax.f32 %v1103_v5, %v1111_v31  ;;  %v1115_v43 = vunpack.c.l.bf16 %v1347_v35  ;;  %v933_v62 = vld [vmem:[%s1329_s11 + $0x5c] sm:$0x3]  ;;  %v1369_v6 = vld [vmem:[%s1329_s11 + $0x60] sm:$0xff]   ;;  %v936_v12 = vld [vmem:[%s1329_s11 + $0x68] sm:$0xf] }
  0x17   : > { %153 = vst.msk [vmem:[#allocation2 + $0x8] sm:$0xff] %vm151_vm0, %v148_v29  ;;  %v199_v45 = vmax.f32 %v1104_v11, %v1112_v36  ;;  %v1116_v46 = vunpack.c.h.bf16 %v1347_v35  ;;  %v200_v47 = vmax.f32 %v187_v37, %v196_v38  ;;  %v209_v48 = vunpack.c.l.bf16 %v921_v39  ;;  %v178_v16 = vld [vmem:[%s1366_s15 + $0x4] sm:$0x7]  ;;  %v937_v19 = vld [vmem:[%s1329_s11 + $0x6c] sm:$0x3]  ;;  %v1258_v29 = vld [vmem:[%s1329_s11 + $0x70] sm:$0xff]  }
  0x18   : > { %154 = vst.msk [vmem:[#allocation2 + $0x10] sm:$0xff] %vm151_vm0, %v149_v30  ;;  %v201_v49 = vmax.f32 %v188_v40, %v197_v41  ;;  %v210_v50 = vunpack.c.l.bf16 %v922_v44  ;;  %v211_v51 = vmax.f32 %v198_v42, %v1115_v43  ;;  %v1123_v2 = vunpack.c.l.bf16 %v1255_v52  ;;  %v943_v30 = vld [vmem:[%s1329_s11 + $0x68] sm:$0xf]  ;;  %v944_v38 = vld [vmem:[%s1329_s11 + $0x6c] sm:$0x3] }
  0x19   : > { %156 = vst.msk [vmem:[#allocation2 + $0x18] sm:$0xf] %vm155_vm1, %v150_v34  ;;  %v212_v56 = vmax.f32 %v199_v45, %v1116_v46  ;;  %v213_v59 = vmax.f32 %v200_v47, %v209_v48  ;;  %v1124_v7 = vunpack.c.h.bf16 %v1255_v52  ;;  %v242_v8 = vunpack.c.l.bf16 %v928_v53  ;;  %v947_v34 = vld [vmem:[%s1329_s11 + $0x78] sm:$0xf]  ;;  %v948_v39 = vld [vmem:[%s1329_s11 + $0x7c] sm:$0x3] }
  0x1a   : > { %v214_v1 = vmax.f32 %v201_v49, %v210_v50  ;;  %v251_v9 = vunpack.c.l.bf16 %v932_v57  ;;  %v243_v13 = vunpack.c.l.bf16 %v929_v61  ;;  %v252_v14 = vunpack.c.l.bf16 %v933_v62  ;;  %v1396_v47 = vld [vmem:[%s1329_s11 + $0x80] sm:$0xff]   ;;  %v951_v53 = vld [vmem:[%s1329_s11 + $0x88] sm:$0xf] }
  0x1b   : > { %v253_v17 = vmax.f32 %v1115_v43, %v1123_v2  ;;  %v1127_v18 = vunpack.c.l.bf16 %v1369_v6  ;;  %v254_v21 = vmax.f32 %v1116_v46, %v1124_v7  ;;  %v1128_v22 = vunpack.c.h.bf16 %v1369_v6  ;;  %v958_v6 = vld [vmem:[%s1329_s11 + $0x88] sm:$0xf] }
  0x1c   : > { %v255_v23 = vmax.f32 %v242_v8, %v251_v9  ;;  %v264_v24 = vunpack.c.l.bf16 %v936_v12  ;;  %v256_v26 = vmax.f32 %v243_v13, %v252_v14  ;;  %v265_v27 = vunpack.c.l.bf16 %v937_v19  ;;  %v959_v14 = vld [vmem:[%s1329_s11 + $0x8c] sm:$0x3] }
  0x1d   : > { %v266_v28 = vmax.f32 %v253_v17, %v1127_v18  ;;  %v267_v33 = vmax.f32 %v254_v21, %v1128_v22  ;;  %v1135_v43 = vunpack.c.l.bf16 %v1258_v29  ;;  %v1136_v48 = vunpack.c.h.bf16 %v1258_v29 }
  0x1e   : > { %v157_v54 = vld [vmem:[#allocation2] ss:$2 sm:$0xff]  ;;  %v161_v55 = vld [vmem:[#allocation2 + $0x1] ss:$2 sm:$0xff]  ;;  %v268_v36 = vmax.f32 %v255_v23, %v264_v24  ;;  %v269_v42 = vmax.f32 %v256_v26, %v265_v27  ;;  %v297_v49 = vunpack.c.l.bf16 %v943_v30  ;;  %v306_v50 = vunpack.c.l.bf16 %v947_v34 }
  0x1f   : > { %v167_v58 = vld [vmem:[#allocation2 + $0x2] ss:$2 sm:$0xff]  ;;  %v164_v60 = vmax.f32 %v157_v54, %v161_v55  ;;  %v298_v54 = vunpack.c.l.bf16 %v944_v38  ;;  %v307_v55 = vunpack.c.l.bf16 %v948_v39  ;;  %v308_v57 = vmax.f32 %v1127_v18, %v1135_v43 }
  0x20   : > { %v159_v63 = vld [vmem:[#allocation2 + $0x10] ss:$2 sm:$0x1f]  ;;  %v163_v0 = vld [vmem:[#allocation2 + $0x11] ss:$2 sm:$0x1f]  ;;  %v309_v61 = vmax.f32 %v1128_v22, %v1136_v48  ;;  %v1140_v62 = vunpack.c.h.bf16 %v1396_v47  ;;  %v352_v26 = vunpack.c.l.bf16 %v958_v6 }
  0x21   : > { %v169_v3 = vld [vmem:[#allocation2 + $0x12] ss:$2 sm:$0x1f]  ;;  %215 = vst.msk [vmem:[#allocation2] sm:$0xff] %vm151_vm0, %v211_v51  ;;  %v170_v4 = vmax.f32 %v164_v60, %v167_v58  ;;  %v165_v5 = vmax.f32 %v159_v63, %v163_v0  ;;  %v1139_v58 = vunpack.c.l.bf16 %v1396_v47  ;;  %v310_v63 = vmax.f32 %v297_v49, %v306_v50  ;;  %v1418_v24 = vld [vmem:[%s1329_s11 + $0xa0] sm:$0xff]  }
  0x22   : > { %216 = vst.msk [vmem:[#allocation2 + $0x8] sm:$0xff] %vm151_vm0, %v212_v56  ;;  %v924_v56 = vld [vmem:[%s1366_s15 + $0xc] sm:$0x7]  ;;  %v319_v0 = vunpack.c.l.bf16 %v951_v53  ;;  %v311_v2 = vmax.f32 %v298_v54, %v307_v55  ;;  %v322_v9 = vmax.f32 %v309_v61, %v1140_v62  ;;  %v966_v30 = vld [vmem:[%s1329_s11 + $0xa8] sm:$0xf]  ;;  %v1152_v39 = vunpack.c.h.bf16 %v1418_v24 }
  0x23   : > { %217 = vst.msk [vmem:[#allocation2 + $0x10] sm:$0xff] %vm151_vm0, %v213_v59  ;;  %v172_v10 = vpack.c.bf16 %v170_v4, %v170_v4  ;;  %v171_v11 = vmax.f32 %v165_v5, %v169_v3  ;;  %v952_v59 = vld [vmem:[%s1329_s11 + $0x8c] sm:$0x3]  ;;  %v321_v4 = vmax.f32 %v308_v57, %v1139_v58  ;;  %v1261_v5 = vld [vmem:[%s1329_s11 + $0x90] sm:$0xff]   ;;  %v973_v47 = vld [vmem:[%s1329_s11 + $0xa8] sm:$0xf] }
  0x24   : > { %218 = vst.msk [vmem:[#allocation2 + $0x18] sm:$0xf] %vm155_vm1, %v214_v1  ;;  %v320_v3 = vunpack.c.l.bf16 %v952_v59  ;;  %v323_v12 = vmax.f32 %v310_v63, %v319_v0  ;;  %v974_v55 = vld [vmem:[%s1329_s11 + $0xac] sm:$0x3]  ;;  %v1440_v0 = vld [vmem:[%s1329_s11 + $0xc0] sm:$0xff]  }
  0x25   : > { %174 = vst.msk [vmem:[%s1366_s15] sm:$0xf] %vm155_vm1, %v172_v10  ;;  %v173_v20 = vpack.c.bf16 %v171_v11, %v171_v11  ;;  %v962_v10 = vld [vmem:[%s1329_s11 + $0x98] sm:$0xf]  ;;  %v981_v6 = vld [vmem:[%s1329_s11 + $0xc8] sm:$0xf] }
  0x26   : > { %v324_v19 = vmax.f32 %v311_v2, %v320_v3  ;;  %v361_v27 = vunpack.c.l.bf16 %v962_v10  ;;  %v407_v2 = vunpack.c.l.bf16 %v973_v47  ;;  %v996_v47 = vld [vmem:[%s1329_s11 + $0xe8] sm:$0xf] }
  0x27   : > { %v179_v25 = vsel %vm1376_vm4, %v173_v20, %v178_v16  ;;  %v963_v16 = vld [vmem:[%s1329_s11 + $0x9c] sm:$0x3]  ;;  %v1147_v20 = vunpack.c.l.bf16 %v1261_v5 }
  0x28   : > { %180 = vst [vmem:[%s1366_s15 + $0x4] sm:$0x7] %v179_v25  ;;  %v1148_v25 = vunpack.c.h.bf16 %v1261_v5 }
  0x29   : > { %v219_v31 = vld [vmem:[#allocation2] ss:$2 sm:$0xff]  ;;  %v221_v32 = vld [vmem:[#allocation2 + $0x1] ss:$2 sm:$0xff]  ;;  %v363_v34 = vmax.f32 %v1139_v58, %v1147_v20 }
  0x2a   : > { %v225_v35 = vld [vmem:[#allocation2 + $0x2] ss:$2 sm:$0xff]  ;;  %v223_v37 = vmax.f32 %v219_v31, %v221_v32  ;;  %v353_v31 = vunpack.c.l.bf16 %v959_v14  ;;  %v362_v32 = vunpack.c.l.bf16 %v963_v16  ;;  %v364_v38 = vmax.f32 %v1140_v62, %v1148_v25 }
  0x2b   : > { %v220_v40 = vld [vmem:[#allocation2 + $0x10] ss:$2 sm:$0x1f]  ;;  %v222_v41 = vld [vmem:[#allocation2 + $0x11] ss:$2 sm:$0x1f]  ;;  %v1164_v16 = vunpack.c.h.bf16 %v1440_v0 }
  0x2c   : > { %v226_v44 = vld [vmem:[#allocation2 + $0x12] ss:$2 sm:$0x1f]  ;;  %270 = vst.msk [vmem:[#allocation2] sm:$0xff] %vm151_vm0, %v266_v28  ;;  %v227_v45 = vmax.f32 %v223_v37, %v225_v35  ;;  %v224_v46 = vmax.f32 %v220_v40, %v222_v41  ;;  %v1151_v35 = vunpack.c.l.bf16 %v1418_v24  ;;  %v365_v40 = vmax.f32 %v352_v26, %v361_v27  ;;  %v988_v24 = vld [vmem:[%s1329_s11 + $0xc8] sm:$0xf] }
  0x2d   : > { %271 = vst.msk [vmem:[#allocation2 + $0x8] sm:$0xff] %vm151_vm0, %v267_v33  ;;  %v939_v33 = vld [vmem:[%s1366_s15 + $0x14] sm:$0x7]  ;;  %v374_v41 = vunpack.c.l.bf16 %v966_v30  ;;  %v366_v43 = vmax.f32 %v353_v31, %v362_v32  ;;  %v377_v50 = vmax.f32 %v364_v38, %v1152_v39  ;;  %v989_v32 = vld [vmem:[%s1329_s11 + $0xcc] sm:$0x3] }
  0x2e   : > { %272 = vst.msk [vmem:[#allocation2 + $0x10] sm:$0xff] %vm151_vm0, %v268_v36  ;;  %v229_v51 = vpack.c.bf16 %v227_v45, %v227_v45  ;;  %v228_v52 = vmax.f32 %v224_v46, %v226_v44  ;;  %v967_v36 = vld [vmem:[%s1329_s11 + $0xac] sm:$0x3]  ;;  %v376_v45 = vmax.f32 %v363_v34, %v1151_v35  ;;  %v1264_v46 = vld [vmem:[%s1329_s11 + $0xb0] sm:$0xff]  }
  0x2f   : > { %273 = vst.msk [vmem:[#allocation2 + $0x18] sm:$0xf] %vm155_vm1, %v269_v42  ;;  %v375_v44 = vunpack.c.l.bf16 %v967_v36  ;;  %v378_v53 = vmax.f32 %v365_v40, %v374_v41  ;;  %v1462_v41 = vld [vmem:[%s1329_s11 + $0xe0] sm:$0xff]  }
  0x30   : > { %923 = vst.msk [vmem:[%s1366_s15 + $0x8] sm:$0xf] %vm155_vm1, %v229_v51  ;;  %v230_v60 = vpack.c.bf16 %v228_v52, %v228_v52  ;;  %v977_v51 = vld [vmem:[%s1329_s11 + $0xb8] sm:$0xf] }
  0x31   : > { %v379_v59 = vmax.f32 %v366_v43, %v375_v44  ;;  %v416_v3 = vunpack.c.l.bf16 %v977_v51  ;;  %v462_v43 = vunpack.c.l.bf16 %v988_v24  ;;  %v1011_v24 = vld [vmem:[%s1329_s11 + $0x108] sm:$0xf] }
  0x32   : > { %v234_v1 = vsel %vm1376_vm4, %v230_v60, %v924_v56  ;;  %v978_v56 = vld [vmem:[%s1329_s11 + $0xbc] sm:$0x3]  ;;  %v1159_v60 = vunpack.c.l.bf16 %v1264_v46 }
  0x33   : > { %925 = vst [vmem:[%s1366_s15 + $0xc] sm:$0x7] %v234_v1  ;;  %v1160_v1 = vunpack.c.h.bf16 %v1264_v46 }
  0x34   : > { %v274_v7 = vld [vmem:[#allocation2] ss:$2 sm:$0xff]  ;;  %v276_v8 = vld [vmem:[#allocation2 + $0x1] ss:$2 sm:$0xff]  ;;  %v418_v10 = vmax.f32 %v1151_v35, %v1159_v60 }
  0x35   : > { %v280_v11 = vld [vmem:[#allocation2 + $0x2] ss:$2 sm:$0xff]  ;;  %v278_v13 = vmax.f32 %v274_v7, %v276_v8  ;;  %v408_v7 = vunpack.c.l.bf16 %v974_v55  ;;  %v417_v8 = vunpack.c.l.bf16 %v978_v56  ;;  %v419_v14 = vmax.f32 %v1152_v39, %v1160_v1 }
  0x36   : > { %v275_v17 = vld [vmem:[#allocation2 + $0x10] ss:$2 sm:$0x1f]  ;;  %v277_v18 = vld [vmem:[#allocation2 + $0x11] ss:$2 sm:$0x1f]  ;;  %v1176_v56 = vunpack.c.h.bf16 %v1462_v41 }
  0x37   : > { %v281_v21 = vld [vmem:[#allocation2 + $0x12] ss:$2 sm:$0x1f]  ;;  %325 = vst.msk [vmem:[#allocation2] sm:$0xff] %vm151_vm0, %v321_v4  ;;  %v282_v22 = vmax.f32 %v278_v13, %v280_v11  ;;  %v279_v23 = vmax.f32 %v275_v17, %v277_v18  ;;  %v1163_v11 = vunpack.c.l.bf16 %v1440_v0  ;;  %v420_v17 = vmax.f32 %v407_v2, %v416_v3  ;;  %v1003_v0 = vld [vmem:[%s1329_s11 + $0xe8] sm:$0xf] }
  0x38   : > { %326 = vst.msk [vmem:[#allocation2 + $0x8] sm:$0xff] %vm151_vm0, %v322_v9  ;;  %v954_v9 = vld [vmem:[%s1366_s15 + $0x1c] sm:$0x7]  ;;  %v429_v18 = vunpack.c.l.bf16 %v981_v6  ;;  %v421_v20 = vmax.f32 %v408_v7, %v417_v8  ;;  %v432_v27 = vmax.f32 %v419_v14, %v1164_v16  ;;  %v1004_v8 = vld [vmem:[%s1329_s11 + $0xec] sm:$0x3] }
  0x39   : > { %327 = vst.msk [vmem:[#allocation2 + $0x10] sm:$0xff] %vm151_vm0, %v323_v12  ;;  %v284_v28 = vpack.c.bf16 %v282_v22, %v282_v22  ;;  %v283_v29 = vmax.f32 %v279_v23, %v281_v21  ;;  %v982_v12 = vld [vmem:[%s1329_s11 + $0xcc] sm:$0x3]  ;;  %v431_v22 = vmax.f32 %v418_v10, %v1163_v11  ;;  %v1267_v23 = vld [vmem:[%s1329_s11 + $0xd0] sm:$0xff]  }
  0x3a   : > { %328 = vst.msk [vmem:[#allocation2 + $0x18] sm:$0xf] %vm155_vm1, %v324_v19  ;;  %v430_v21 = vunpack.c.l.bf16 %v982_v12  ;;  %v433_v30 = vmax.f32 %v420_v17, %v429_v18  ;;  %v1484_v18 = vld [vmem:[%s1329_s11 + $0x100] sm:$0xff]  }
  0x3b   : > { %938 = vst.msk [vmem:[%s1366_s15 + $0x10] sm:$0xf] %vm155_vm1, %v284_v28  ;;  %v285_v37 = vpack.c.bf16 %v283_v29, %v283_v29  ;;  %v992_v28 = vld [vmem:[%s1329_s11 + $0xd8] sm:$0xf] }
  0x3c   : > { %v434_v36 = vmax.f32 %v421_v20, %v430_v21  ;;  %v471_v44 = vunpack.c.l.bf16 %v992_v28  ;;  %v517_v20 = vunpack.c.l.bf16 %v1003_v0  ;;  %v1026_v0 = vld [vmem:[%s1329_s11 + $0x128] sm:$0xf] }
  0x3d   : > { %v289_v42 = vsel %vm1376_vm4, %v285_v37, %v939_v33  ;;  %v993_v33 = vld [vmem:[%s1329_s11 + $0xdc] sm:$0x3]  ;;  %v1171_v37 = vunpack.c.l.bf16 %v1267_v23 }
  0x3e   : > { %940 = vst [vmem:[%s1366_s15 + $0x14] sm:$0x7] %v289_v42  ;;  %v1172_v42 = vunpack.c.h.bf16 %v1267_v23 }
  0x3f   : > { %v329_v48 = vld [vmem:[#allocation2] ss:$2 sm:$0xff]  ;;  %v331_v49 = vld [vmem:[#allocation2 + $0x1] ss:$2 sm:$0xff]  ;;  %v473_v51 = vmax.f32 %v1163_v11, %v1171_v37 }
  0x40   : > { %v335_v52 = vld [vmem:[#allocation2 + $0x2] ss:$2 sm:$0xff]  ;;  %v333_v54 = vmax.f32 %v329_v48, %v331_v49  ;;  %v463_v48 = vunpack.c.l.bf16 %v989_v32  ;;  %v472_v49 = vunpack.c.l.bf16 %v993_v33  ;;  %v474_v55 = vmax.f32 %v1164_v16, %v1172_v42 }
  0x41   : > { %v330_v57 = vld [vmem:[#allocation2 + $0x10] ss:$2 sm:$0x1f]  ;;  %v332_v58 = vld [vmem:[#allocation2 + $0x11] ss:$2 sm:$0x1f]  ;;  %v1188_v33 = vunpack.c.h.bf16 %v1484_v18 }
  0x42   : > { %v336_v61 = vld [vmem:[#allocation2 + $0x12] ss:$2 sm:$0x1f]  ;;  %380 = vst.msk [vmem:[#allocation2] sm:$0xff] %vm151_vm0, %v376_v45  ;;  %v337_v62 = vmax.f32 %v333_v54, %v335_v52  ;;  %v334_v63 = vmax.f32 %v330_v57, %v332_v58  ;;  %v1175_v52 = vunpack.c.l.bf16 %v1462_v41  ;;  %v475_v57 = vmax.f32 %v462_v43, %v471_v44  ;;  %v1018_v41 = vld [vmem:[%s1329_s11 + $0x108] sm:$0xf] }
  0x43   : > { %381 = vst.msk [vmem:[#allocation2 + $0x8] sm:$0xff] %vm151_vm0, %v377_v50  ;;  %v969_v50 = vld [vmem:[%s1366_s15 + $0x24] sm:$0x7]  ;;  %v484_v58 = vunpack.c.l.bf16 %v996_v47  ;;  %v476_v60 = vmax.f32 %v463_v48, %v472_v49  ;;  %v487_v3 = vmax.f32 %v474_v55, %v1176_v56  ;;  %v1019_v49 = vld [vmem:[%s1329_s11 + $0x10c] sm:$0x3] }
  0x44   : > { %382 = vst.msk [vmem:[#allocation2 + $0x10] sm:$0xff] %vm151_vm0, %v378_v53  ;;  %v339_v4 = vpack.c.bf16 %v337_v62, %v337_v62  ;;  %v338_v5 = vmax.f32 %v334_v63, %v336_v61  ;;  %v997_v53 = vld [vmem:[%s1329_s11 + $0xec] sm:$0x3]  ;;  %v486_v62 = vmax.f32 %v473_v51, %v1175_v52  ;;  %v1270_v63 = vld [vmem:[%s1329_s11 + $0xf0] sm:$0xff]  }
  0x45   : > { %383 = vst.msk [vmem:[#allocation2 + $0x18] sm:$0xf] %vm155_vm1, %v379_v59  ;;  %v485_v61 = vunpack.c.l.bf16 %v997_v53  ;;  %v488_v6 = vmax.f32 %v475_v57, %v484_v58  ;;  %v1506_v58 = vld [vmem:[%s1329_s11 + $0x120] sm:$0xff]  }
  0x46   : > { %953 = vst.msk [vmem:[%s1366_s15 + $0x18] sm:$0xf] %vm155_vm1, %v339_v4  ;;  %v340_v13 = vpack.c.bf16 %v338_v5, %v338_v5  ;;  %v1007_v4 = vld [vmem:[%s1329_s11 + $0xf8] sm:$0xf] }
  0x47   : > { %v489_v12 = vmax.f32 %v476_v60, %v485_v61  ;;  %v526_v21 = vunpack.c.l.bf16 %v1007_v4  ;;  %v572_v60 = vunpack.c.l.bf16 %v1018_v41  ;;  %v1041_v41 = vld [vmem:[%s1329_s11 + $0x148] sm:$0xf] }
  0x48   : > { %v344_v19 = vsel %vm1376_vm4, %v340_v13, %v954_v9  ;;  %v1008_v9 = vld [vmem:[%s1329_s11 + $0xfc] sm:$0x3]  ;;  %v1183_v13 = vunpack.c.l.bf16 %v1270_v63 }
  0x49   : > { %955 = vst [vmem:[%s1366_s15 + $0x1c] sm:$0x7] %v344_v19  ;;  %v1184_v19 = vunpack.c.h.bf16 %v1270_v63 }
  0x4a   : > { %v384_v25 = vld [vmem:[#allocation2] ss:$2 sm:$0xff]  ;;  %v386_v26 = vld [vmem:[#allocation2 + $0x1] ss:$2 sm:$0xff]  ;;  %v528_v28 = vmax.f32 %v1175_v52, %v1183_v13 }
  0x4b   : > { %v390_v29 = vld [vmem:[#allocation2 + $0x2] ss:$2 sm:$0xff]  ;;  %v388_v31 = vmax.f32 %v384_v25, %v386_v26  ;;  %v518_v25 = vunpack.c.l.bf16 %v1004_v8  ;;  %v527_v26 = vunpack.c.l.bf16 %v1008_v9  ;;  %v529_v32 = vmax.f32 %v1176_v56, %v1184_v19 }
  0x4c   : > { %v385_v34 = vld [vmem:[#allocation2 + $0x10] ss:$2 sm:$0x1f]  ;;  %v387_v35 = vld [vmem:[#allocation2 + $0x11] ss:$2 sm:$0x1f]  ;;  %v1200_v9 = vunpack.c.h.bf16 %v1506_v58 }
  0x4d   : > { %v391_v38 = vld [vmem:[#allocation2 + $0x12] ss:$2 sm:$0x1f]  ;;  %435 = vst.msk [vmem:[#allocation2] sm:$0xff] %vm151_vm0, %v431_v22  ;;  %v392_v39 = vmax.f32 %v388_v31, %v390_v29  ;;  %v389_v40 = vmax.f32 %v385_v34, %v387_v35  ;;  %v1187_v29 = vunpack.c.l.bf16 %v1484_v18  ;;  %v530_v34 = vmax.f32 %v517_v20, %v526_v21  ;;  %v1033_v18 = vld [vmem:[%s1329_s11 + $0x128] sm:$0xf] }
  0x4e   : > { %436 = vst.msk [vmem:[#allocation2 + $0x8] sm:$0xff] %vm151_vm0, %v432_v27  ;;  %v984_v27 = vld [vmem:[%s1366_s15 + $0x2c] sm:$0x7]  ;;  %v539_v35 = vunpack.c.l.bf16 %v1011_v24  ;;  %v531_v37 = vmax.f32 %v518_v25, %v527_v26  ;;  %v542_v44 = vmax.f32 %v529_v32, %v1188_v33 }
  0x4f   : > { %437 = vst.msk [vmem:[#allocation2 + $0x10] sm:$0xff] %vm151_vm0, %v433_v30  ;;  %v394_v45 = vpack.c.bf16 %v392_v39, %v392_v39  ;;  %v393_v46 = vmax.f32 %v389_v40, %v391_v38  ;;  %v1012_v30 = vld [vmem:[%s1329_s11 + $0x10c] sm:$0x3]  ;;  %v541_v39 = vmax.f32 %v528_v28, %v1187_v29  ;;  %v1273_v40 = vld [vmem:[%s1329_s11 + $0x110] sm:$0xff]  }
  0x50   : > { %438 = vst.msk [vmem:[#allocation2 + $0x18] sm:$0xf] %vm155_vm1, %v434_v36  ;;  %v540_v38 = vunpack.c.l.bf16 %v1012_v30  ;;  %v543_v47 = vmax.f32 %v530_v34, %v539_v35  ;;  %v1034_v26 = vld [vmem:[%s1329_s11 + $0x12c] sm:$0x3]  ;;  %v1528_v35 = vld [vmem:[%s1329_s11 + $0x140] sm:$0xff]  }
  0x51   : > { %968 = vst.msk [vmem:[%s1366_s15 + $0x20] sm:$0xf] %vm155_vm1, %v394_v45  ;;  %v395_v54 = vpack.c.bf16 %v393_v46, %v393_v46  ;;  %v1022_v45 = vld [vmem:[%s1329_s11 + $0x118] sm:$0xf] }
  0x52   : > { %v544_v53 = vmax.f32 %v531_v37, %v540_v38  ;;  %v581_v61 = vunpack.c.l.bf16 %v1022_v45  ;;  %v627_v37 = vunpack.c.l.bf16 %v1033_v18  ;;  %v1056_v18 = vld [vmem:[%s1329_s11 + $0x168] sm:$0xf] }
  0x53   : > { %v399_v59 = vsel %vm1376_vm4, %v395_v54, %v969_v50  ;;  %v1023_v50 = vld [vmem:[%s1329_s11 + $0x11c] sm:$0x3]  ;;  %v1195_v54 = vunpack.c.l.bf16 %v1273_v40 }
  0x54   : > { %970 = vst [vmem:[%s1366_s15 + $0x24] sm:$0x7] %v399_v59  ;;  %v1196_v59 = vunpack.c.h.bf16 %v1273_v40 }
  0x55   : > { %v439_v1 = vld [vmem:[#allocation2] ss:$2 sm:$0xff]  ;;  %v441_v2 = vld [vmem:[#allocation2 + $0x1] ss:$2 sm:$0xff]  ;;  %v583_v4 = vmax.f32 %v1187_v29, %v1195_v54 }
  0x56   : > { %v445_v5 = vld [vmem:[#allocation2 + $0x2] ss:$2 sm:$0xff]  ;;  %v443_v7 = vmax.f32 %v439_v1, %v441_v2  ;;  %v573_v1 = vunpack.c.l.bf16 %v1019_v49  ;;  %v582_v2 = vunpack.c.l.bf16 %v1023_v50  ;;  %v584_v8 = vmax.f32 %v1188_v33, %v1196_v59 }
  0x57   : > { %v440_v10 = vld [vmem:[#allocation2 + $0x10] ss:$2 sm:$0x1f]  ;;  %v442_v11 = vld [vmem:[#allocation2 + $0x11] ss:$2 sm:$0x1f]  ;;  %v1212_v50 = vunpack.c.h.bf16 %v1528_v35 }
  0x58   : > { %v446_v14 = vld [vmem:[#allocation2 + $0x12] ss:$2 sm:$0x1f]  ;;  %490 = vst.msk [vmem:[#allocation2] sm:$0xff] %vm151_vm0, %v486_v62  ;;  %v447_v16 = vmax.f32 %v443_v7, %v445_v5  ;;  %v444_v17 = vmax.f32 %v440_v10, %v442_v11  ;;  %v1199_v5 = vunpack.c.l.bf16 %v1506_v58  ;;  %v585_v10 = vmax.f32 %v572_v60, %v581_v61  ;;  %v1048_v58 = vld [vmem:[%s1329_s11 + $0x148] sm:$0xf] }
  0x59   : > { %491 = vst.msk [vmem:[#allocation2 + $0x8] sm:$0xff] %vm151_vm0, %v487_v3  ;;  %v999_v3 = vld [vmem:[%s1366_s15 + $0x34] sm:$0x7]  ;;  %v594_v11 = vunpack.c.l.bf16 %v1026_v0  ;;  %v586_v13 = vmax.f32 %v573_v1, %v582_v2  ;;  %v597_v21 = vmax.f32 %v584_v8, %v1200_v9  ;;  %v1049_v2 = vld [vmem:[%s1329_s11 + $0x14c] sm:$0x3] }
  0x5a   : > { %492 = vst.msk [vmem:[#allocation2 + $0x10] sm:$0xff] %vm151_vm0, %v488_v6  ;;  %v449_v22 = vpack.c.bf16 %v447_v16, %v447_v16  ;;  %v448_v23 = vmax.f32 %v444_v17, %v446_v14  ;;  %v1027_v6 = vld [vmem:[%s1329_s11 + $0x12c] sm:$0x3]  ;;  %v596_v16 = vmax.f32 %v583_v4, %v1199_v5  ;;  %v1276_v17 = vld [vmem:[%s1329_s11 + $0x130] sm:$0xff]  }
  0x5b   : > { %493 = vst.msk [vmem:[#allocation2 + $0x18] sm:$0xf] %vm155_vm1, %v489_v12  ;;  %v595_v14 = vunpack.c.l.bf16 %v1027_v6  ;;  %v598_v24 = vmax.f32 %v585_v10, %v594_v11  ;;  %v1550_v11 = vld [vmem:[%s1329_s11 + $0x160] sm:$0xff]  }
  0x5c   : > { %983 = vst.msk [vmem:[%s1366_s15 + $0x28] sm:$0xf] %vm155_vm1, %v449_v22  ;;  %v450_v31 = vpack.c.bf16 %v448_v23, %v448_v23  ;;  %v1037_v22 = vld [vmem:[%s1329_s11 + $0x138] sm:$0xf] }
  0x5d   : > { %v599_v30 = vmax.f32 %v586_v13, %v595_v14  ;;  %v636_v38 = vunpack.c.l.bf16 %v1037_v22  ;;  %v682_v13 = vunpack.c.l.bf16 %v1048_v58  ;;  %v1071_v58 = vld [vmem:[%s1329_s11 + $0x188] sm:$0xf] }
  0x5e   : > { %v454_v36 = vsel %vm1376_vm4, %v450_v31, %v984_v27  ;;  %v1038_v27 = vld [vmem:[%s1329_s11 + $0x13c] sm:$0x3]  ;;  %v1207_v31 = vunpack.c.l.bf16 %v1276_v17 }
  0x5f   : > { %985 = vst [vmem:[%s1366_s15 + $0x2c] sm:$0x7] %v454_v36  ;;  %v1208_v36 = vunpack.c.h.bf16 %v1276_v17 }
  0x60   : > { %v494_v42 = vld [vmem:[#allocation2] ss:$2 sm:$0xff]  ;;  %v496_v43 = vld [vmem:[#allocation2 + $0x1] ss:$2 sm:$0xff]  ;;  %v638_v45 = vmax.f32 %v1199_v5, %v1207_v31 }
  0x61   : > { %v500_v46 = vld [vmem:[#allocation2 + $0x2] ss:$2 sm:$0xff]  ;;  %v498_v48 = vmax.f32 %v494_v42, %v496_v43  ;;  %v628_v42 = vunpack.c.l.bf16 %v1034_v26  ;;  %v637_v43 = vunpack.c.l.bf16 %v1038_v27  ;;  %v639_v49 = vmax.f32 %v1200_v9, %v1208_v36 }
  0x62   : > { %v495_v51 = vld [vmem:[#allocation2 + $0x10] ss:$2 sm:$0x1f]  ;;  %v497_v52 = vld [vmem:[#allocation2 + $0x11] ss:$2 sm:$0x1f]  ;;  %v1224_v27 = vunpack.c.h.bf16 %v1550_v11 }
  0x63   : > { %v501_v55 = vld [vmem:[#allocation2 + $0x12] ss:$2 sm:$0x1f]  ;;  %545 = vst.msk [vmem:[#allocation2] sm:$0xff] %vm151_vm0, %v541_v39  ;;  %v502_v56 = vmax.f32 %v498_v48, %v500_v46  ;;  %v499_v57 = vmax.f32 %v495_v51, %v497_v52  ;;  %v1211_v46 = vunpack.c.l.bf16 %v1528_v35  ;;  %v640_v51 = vmax.f32 %v627_v37, %v636_v38  ;;  %v1063_v35 = vld [vmem:[%s1329_s11 + $0x168] sm:$0xf] }
  0x64   : > { %546 = vst.msk [vmem:[#allocation2 + $0x8] sm:$0xff] %vm151_vm0, %v542_v44  ;;  %v1014_v44 = vld [vmem:[%s1366_s15 + $0x3c] sm:$0x7]  ;;  %v649_v52 = vunpack.c.l.bf16 %v1041_v41  ;;  %v641_v54 = vmax.f32 %v628_v42, %v637_v43  ;;  %v652_v61 = vmax.f32 %v639_v49, %v1212_v50  ;;  %v1064_v43 = vld [vmem:[%s1329_s11 + $0x16c] sm:$0x3] }
  0x65   : > { %547 = vst.msk [vmem:[#allocation2 + $0x10] sm:$0xff] %vm151_vm0, %v543_v47  ;;  %v504_v62 = vpack.c.bf16 %v502_v56, %v502_v56  ;;  %v503_v63 = vmax.f32 %v499_v57, %v501_v55  ;;  %v1042_v47 = vld [vmem:[%s1329_s11 + $0x14c] sm:$0x3]  ;;  %v651_v56 = vmax.f32 %v638_v45, %v1211_v46  ;;  %v1279_v57 = vld [vmem:[%s1329_s11 + $0x150] sm:$0xff]  }
  0x66   : > { %548 = vst.msk [vmem:[#allocation2 + $0x18] sm:$0xf] %vm155_vm1, %v544_v53  ;;  %v650_v55 = vunpack.c.l.bf16 %v1042_v47  ;;  %v653_v0 = vmax.f32 %v640_v51, %v649_v52  ;;  %v1572_v52 = vld [vmem:[%s1329_s11 + $0x180] sm:$0xff]  }
  0x67   : > { %998 = vst.msk [vmem:[%s1366_s15 + $0x30] sm:$0xf] %vm155_vm1, %v504_v62  ;;  %v505_v7 = vpack.c.bf16 %v503_v63, %v503_v63  ;;  %v1052_v62 = vld [vmem:[%s1329_s11 + $0x158] sm:$0xf] }
  0x68   : > { %v654_v6 = vmax.f32 %v641_v54, %v650_v55  ;;  %v691_v14 = vunpack.c.l.bf16 %v1052_v62  ;;  %v737_v54 = vunpack.c.l.bf16 %v1063_v35  ;;  %v1086_v35 = vld [vmem:[%s1329_s11 + $0x1a8] sm:$0xf] }
  0x69   : > { %v509_v12 = vsel %vm1376_vm4, %v505_v7, %v999_v3  ;;  %v1053_v3 = vld [vmem:[%s1329_s11 + $0x15c] sm:$0x3]  ;;  %v1219_v7 = vunpack.c.l.bf16 %v1279_v57 }
  0x6a   : > { %1000 = vst [vmem:[%s1366_s15 + $0x34] sm:$0x7] %v509_v12  ;;  %v1220_v12 = vunpack.c.h.bf16 %v1279_v57 }
  0x6b   : > { %v549_v19 = vld [vmem:[#allocation2] ss:$2 sm:$0xff]  ;;  %v551_v20 = vld [vmem:[#allocation2 + $0x1] ss:$2 sm:$0xff]  ;;  %v693_v22 = vmax.f32 %v1211_v46, %v1219_v7 }
  0x6c   : > { %v555_v23 = vld [vmem:[#allocation2 + $0x2] ss:$2 sm:$0xff]  ;;  %v553_v25 = vmax.f32 %v549_v19, %v551_v20  ;;  %v683_v19 = vunpack.c.l.bf16 %v1049_v2  ;;  %v692_v20 = vunpack.c.l.bf16 %v1053_v3  ;;  %v694_v26 = vmax.f32 %v1212_v50, %v1220_v12 }
  0x6d   : > { %v550_v28 = vld [vmem:[#allocation2 + $0x10] ss:$2 sm:$0x1f]  ;;  %v552_v29 = vld [vmem:[#allocation2 + $0x11] ss:$2 sm:$0x1f]  ;;  %v1236_v3 = vunpack.c.h.bf16 %v1572_v52 }
  0x6e   : > { %v556_v32 = vld [vmem:[#allocation2 + $0x12] ss:$2 sm:$0x1f]  ;;  %600 = vst.msk [vmem:[#allocation2] sm:$0xff] %vm151_vm0, %v596_v16  ;;  %v557_v33 = vmax.f32 %v553_v25, %v555_v23  ;;  %v554_v34 = vmax.f32 %v550_v28, %v552_v29  ;;  %v1223_v23 = vunpack.c.l.bf16 %v1550_v11  ;;  %v695_v28 = vmax.f32 %v682_v13, %v691_v14  ;;  %v1078_v11 = vld [vmem:[%s1329_s11 + $0x188] sm:$0xf] }
  0x6f   : > { %601 = vst.msk [vmem:[#allocation2 + $0x8] sm:$0xff] %vm151_vm0, %v597_v21  ;;  %v1029_v21 = vld [vmem:[%s1366_s15 + $0x44] sm:$0x7]  ;;  %v704_v29 = vunpack.c.l.bf16 %v1056_v18  ;;  %v696_v31 = vmax.f32 %v683_v19, %v692_v20  ;;  %v707_v38 = vmax.f32 %v694_v26, %v1224_v27  ;;  %v1079_v20 = vld [vmem:[%s1329_s11 + $0x18c] sm:$0x3] }
  0x70   : > { %602 = vst.msk [vmem:[#allocation2 + $0x10] sm:$0xff] %vm151_vm0, %v598_v24  ;;  %v559_v39 = vpack.c.bf16 %v557_v33, %v557_v33  ;;  %v558_v40 = vmax.f32 %v554_v34, %v556_v32  ;;  %v1057_v24 = vld [vmem:[%s1329_s11 + $0x16c] sm:$0x3]  ;;  %v706_v33 = vmax.f32 %v693_v22, %v1223_v23  ;;  %v1282_v34 = vld [vmem:[%s1329_s11 + $0x170] sm:$0xff]  }
  0x71   : > { %603 = vst.msk [vmem:[#allocation2 + $0x18] sm:$0xf] %vm155_vm1, %v599_v30  ;;  %v705_v32 = vunpack.c.l.bf16 %v1057_v24  ;;  %v708_v41 = vmax.f32 %v695_v28, %v704_v29  ;;  %v1286_v29 = vld [vmem:[%s1329_s11 + $0x1a0] sm:$0xff]  }
  0x72   : > { %1013 = vst.msk [vmem:[%s1366_s15 + $0x38] sm:$0xf] %vm155_vm1, %v559_v39  ;;  %v560_v48 = vpack.c.bf16 %v558_v40, %v558_v40  ;;  %v1067_v39 = vld [vmem:[%s1329_s11 + $0x178] sm:$0xf] }
  0x73   : > { %v709_v47 = vmax.f32 %v696_v31, %v705_v32  ;;  %v746_v55 = vunpack.c.l.bf16 %v1067_v39  ;;  %v792_v31 = vunpack.c.l.bf16 %v1078_v11 }
  0x74   : > { %v564_v53 = vsel %vm1376_vm4, %v560_v48, %v1014_v44  ;;  %v1068_v44 = vld [vmem:[%s1329_s11 + $0x17c] sm:$0x3]  ;;  %v1231_v48 = vunpack.c.l.bf16 %v1282_v34 }
  0x75   : > { %1015 = vst [vmem:[%s1366_s15 + $0x3c] sm:$0x7] %v564_v53  ;;  %v1232_v53 = vunpack.c.h.bf16 %v1282_v34 }
  0x76   : > { %v604_v59 = vld [vmem:[#allocation2] ss:$2 sm:$0xff]  ;;  %v606_v60 = vld [vmem:[#allocation2 + $0x1] ss:$2 sm:$0xff]  ;;  %v748_v62 = vmax.f32 %v1223_v23, %v1231_v48 }
  0x77   : > { %v610_v63 = vld [vmem:[#allocation2 + $0x2] ss:$2 sm:$0xff]  ;;  %v608_v1 = vmax.f32 %v604_v59, %v606_v60  ;;  %v738_v59 = vunpack.c.l.bf16 %v1064_v43  ;;  %v747_v60 = vunpack.c.l.bf16 %v1068_v44  ;;  %v749_v2 = vmax.f32 %v1224_v27, %v1232_v53 }
  0x78   : > { %v605_v4 = vld [vmem:[#allocation2 + $0x10] ss:$2 sm:$0x1f]  ;;  %v607_v5 = vld [vmem:[#allocation2 + $0x11] ss:$2 sm:$0x1f]  ;;  %v1248_v44 = vunpack.c.h.bf16 %v1286_v29 }
  0x79   : > { %v611_v8 = vld [vmem:[#allocation2 + $0x12] ss:$2 sm:$0x1f]  ;;  %655 = vst.msk [vmem:[#allocation2] sm:$0xff] %vm151_vm0, %v651_v56  ;;  %v612_v9 = vmax.f32 %v608_v1, %v610_v63  ;;  %v609_v10 = vmax.f32 %v605_v4, %v607_v5  ;;  %v1235_v63 = vunpack.c.l.bf16 %v1572_v52  ;;  %v750_v4 = vmax.f32 %v737_v54, %v746_v55 }
  0x7a   : > { %656 = vst.msk [vmem:[#allocation2 + $0x8] sm:$0xff] %vm151_vm0, %v652_v61  ;;  %v1044_v61 = vld [vmem:[%s1366_s15 + $0x4c] sm:$0x7]  ;;  %v759_v5 = vunpack.c.l.bf16 %v1071_v58  ;;  %v751_v7 = vmax.f32 %v738_v59, %v747_v60  ;;  %v762_v14 = vmax.f32 %v749_v2, %v1236_v3 }
  0x7b   : > { %657 = vst.msk [vmem:[#allocation2 + $0x10] sm:$0xff] %vm151_vm0, %v653_v0  ;;  %v614_v16 = vpack.c.bf16 %v612_v9, %v612_v9  ;;  %v613_v17 = vmax.f32 %v609_v10, %v611_v8  ;;  %v1072_v0 = vld [vmem:[%s1329_s11 + $0x18c] sm:$0x3]  ;;  %v761_v9 = vmax.f32 %v748_v62, %v1235_v63  ;;  %v1285_v10 = vld [vmem:[%s1329_s11 + $0x190] sm:$0xff]  }
  0x7c   : > { %658 = vst.msk [vmem:[#allocation2 + $0x18] sm:$0xf] %vm155_vm1, %v654_v6  ;;  %v760_v8 = vunpack.c.l.bf16 %v1072_v0  ;;  %v763_v18 = vmax.f32 %v750_v4, %v759_v5 }
  0x7d   : > { %1028 = vst.msk [vmem:[%s1366_s15 + $0x40] sm:$0xf] %vm155_vm1, %v614_v16  ;;  %v615_v25 = vpack.c.bf16 %v613_v17, %v613_v17  ;;  %v1082_v16 = vld [vmem:[%s1329_s11 + $0x198] sm:$0xf] }
  0x7e   : > { %v764_v24 = vmax.f32 %v751_v7, %v760_v8  ;;  %v801_v32 = vunpack.c.l.bf16 %v1082_v16  ;;  %v1089_v16 = vld [vmem:[%s1366_s15 + $0x64] sm:$0x7] }
  0x7f   : > { %v619_v30 = vsel %vm1376_vm4, %v615_v25, %v1029_v21  ;;  %v1083_v21 = vld [vmem:[%s1329_s11 + $0x19c] sm:$0x3]  ;;  %v1243_v25 = vunpack.c.l.bf16 %v1285_v10 }
  0x80   : > { %1030 = vst [vmem:[%s1366_s15 + $0x44] sm:$0x7] %v619_v30  ;;  %v1244_v30 = vunpack.c.h.bf16 %v1285_v10 }
  0x81   : > { %v659_v36 = vld [vmem:[#allocation2] ss:$2 sm:$0xff]  ;;  %v661_v37 = vld [vmem:[#allocation2 + $0x1] ss:$2 sm:$0xff]  ;;  %v803_v39 = vmax.f32 %v1235_v63, %v1243_v25 }
  0x82   : > { %v665_v40 = vld [vmem:[#allocation2 + $0x2] ss:$2 sm:$0xff]  ;;  %v663_v42 = vmax.f32 %v659_v36, %v661_v37  ;;  %v793_v36 = vunpack.c.l.bf16 %v1079_v20  ;;  %v802_v37 = vunpack.c.l.bf16 %v1083_v21  ;;  %v804_v43 = vmax.f32 %v1236_v3, %v1244_v30 }
  0x83   : > { %v660_v45 = vld [vmem:[#allocation2 + $0x10] ss:$2 sm:$0x1f]  ;;  %v662_v46 = vld [vmem:[#allocation2 + $0x11] ss:$2 sm:$0x1f] }
  0x84   : > { %v666_v49 = vld [vmem:[#allocation2 + $0x12] ss:$2 sm:$0x1f]  ;;  %710 = vst.msk [vmem:[#allocation2] sm:$0xff] %vm151_vm0, %v706_v33  ;;  %v667_v50 = vmax.f32 %v663_v42, %v665_v40  ;;  %v664_v51 = vmax.f32 %v660_v45, %v662_v46  ;;  %v1247_v40 = vunpack.c.l.bf16 %v1286_v29  ;;  %v805_v45 = vmax.f32 %v792_v31, %v801_v32 }
  0x85   : > { %711 = vst.msk [vmem:[#allocation2 + $0x8] sm:$0xff] %vm151_vm0, %v707_v38  ;;  %v1059_v38 = vld [vmem:[%s1366_s15 + $0x54] sm:$0x7]  ;;  %v814_v46 = vunpack.c.l.bf16 %v1086_v35  ;;  %v806_v48 = vmax.f32 %v793_v36, %v802_v37  ;;  %v817_v53 = vmax.f32 %v804_v43, %v1248_v44 }
  0x86   : > { %712 = vst.msk [vmem:[#allocation2 + $0x10] sm:$0xff] %vm151_vm0, %v708_v41  ;;  %v669_v56 = vpack.c.bf16 %v667_v50, %v667_v50  ;;  %v668_v57 = vmax.f32 %v664_v51, %v666_v49  ;;  %v1087_v41 = vld [vmem:[%s1329_s11 + $0x1ac] sm:$0x3]  ;;  %v816_v50 = vmax.f32 %v803_v39, %v1247_v40 }
  0x87   : > { %713 = vst.msk [vmem:[#allocation2 + $0x18] sm:$0xf] %vm155_vm1, %v709_v47  ;;  %v815_v49 = vunpack.c.l.bf16 %v1087_v41  ;;  %v818_v55 = vmax.f32 %v805_v45, %v814_v46 }
  0x88   : > { %1043 = vst.msk [vmem:[%s1366_s15 + $0x48] sm:$0xf] %vm155_vm1, %v669_v56  ;;  %v670_v1 = vpack.c.bf16 %v668_v57, %v668_v57 }
  0x89   : > { %v819_v59 = vmax.f32 %v806_v48, %v815_v49 }
  0x8a   : > { %v674_v6 = vsel %vm1376_vm4, %v670_v1, %v1044_v61  ;;  %v1074_v1 = vld [vmem:[%s1366_s15 + $0x5c] sm:$0x7] }
  0x8b   : > { %1045 = vst [vmem:[%s1366_s15 + $0x4c] sm:$0x7] %v674_v6 }
  0x8c   : > { %v714_v12 = vld [vmem:[#allocation2] ss:$2 sm:$0xff]  ;;  %v716_v13 = vld [vmem:[#allocation2 + $0x1] ss:$2 sm:$0xff] }
  0x8d   : > { %v720_v17 = vld [vmem:[#allocation2 + $0x2] ss:$2 sm:$0xff]  ;;  %v718_v19 = vmax.f32 %v714_v12, %v716_v13 }
  0x8e   : > { %v715_v22 = vld [vmem:[#allocation2 + $0x10] ss:$2 sm:$0x1f]  ;;  %v717_v23 = vld [vmem:[#allocation2 + $0x11] ss:$2 sm:$0x1f] }
  0x8f   : > { %v721_v26 = vld [vmem:[#allocation2 + $0x12] ss:$2 sm:$0x1f]  ;;  %765 = vst.msk [vmem:[#allocation2] sm:$0xff] %vm151_vm0, %v761_v9  ;;  %v722_v27 = vmax.f32 %v718_v19, %v720_v17  ;;  %v719_v28 = vmax.f32 %v715_v22, %v717_v23 }
  0x90   : > { %766 = vst.msk [vmem:[#allocation2 + $0x8] sm:$0xff] %vm151_vm0, %v762_v14 }
  0x91   : > { %767 = vst.msk [vmem:[#allocation2 + $0x10] sm:$0xff] %vm151_vm0, %v763_v18  ;;  %v724_v33 = vpack.c.bf16 %v722_v27, %v722_v27  ;;  %v723_v34 = vmax.f32 %v719_v28, %v721_v26 }
  0x92   : > { %768 = vst.msk [vmem:[#allocation2 + $0x18] sm:$0xf] %vm155_vm1, %v764_v24 }
  0x93   : > { %1058 = vst.msk [vmem:[%s1366_s15 + $0x50] sm:$0xf] %vm155_vm1, %v724_v33  ;;  %v725_v42 = vpack.c.bf16 %v723_v34, %v723_v34 }
  0x95   : > { %v729_v47 = vsel %vm1376_vm4, %v725_v42, %v1059_v38 }
  0x96   : > { %1060 = vst [vmem:[%s1366_s15 + $0x54] sm:$0x7] %v729_v47 }
  0x97   : > { %v769_v51 = vld [vmem:[#allocation2] ss:$2 sm:$0xff]  ;;  %v771_v52 = vld [vmem:[#allocation2 + $0x1] ss:$2 sm:$0xff] }
  0x98   : > { %v775_v54 = vld [vmem:[#allocation2 + $0x2] ss:$2 sm:$0xff]  ;;  %v773_v56 = vmax.f32 %v769_v51, %v771_v52 }
  0x99   : > { %v770_v57 = vld [vmem:[#allocation2 + $0x10] ss:$2 sm:$0x1f]  ;;  %v772_v58 = vld [vmem:[#allocation2 + $0x11] ss:$2 sm:$0x1f] }
  0x9a   : > { %v776_v60 = vld [vmem:[#allocation2 + $0x12] ss:$2 sm:$0x1f]  ;;  %820 = vst.msk [vmem:[#allocation2] sm:$0xff] %vm151_vm0, %v816_v50  ;;  %v777_v61 = vmax.f32 %v773_v56, %v775_v54  ;;  %v774_v62 = vmax.f32 %v770_v57, %v772_v58 }
  0x9b   : > { %821 = vst.msk [vmem:[#allocation2 + $0x8] sm:$0xff] %vm151_vm0, %v817_v53 }
  0x9c   : > { %822 = vst.msk [vmem:[#allocation2 + $0x10] sm:$0xff] %vm151_vm0, %v818_v55  ;;  %v779_v63 = vpack.c.bf16 %v777_v61, %v777_v61  ;;  %v778_v0 = vmax.f32 %v774_v62, %v776_v60 }
  0x9d   : > { %823 = vst.msk [vmem:[#allocation2 + $0x18] sm:$0xf] %vm155_vm1, %v819_v59 }
  0x9e   : > { %1073 = vst.msk [vmem:[%s1366_s15 + $0x58] sm:$0xf] %vm155_vm1, %v779_v63  ;;  %v780_v2 = vpack.c.bf16 %v778_v0, %v778_v0 }
  0xa0   : > { %v784_v3 = vsel %vm1376_vm4, %v780_v2, %v1074_v1 }
  0xa1   : > { %1075 = vst [vmem:[%s1366_s15 + $0x5c] sm:$0x7] %v784_v3 }
  0xa2   : > { %v824_v4 = vld [vmem:[#allocation2] ss:$2 sm:$0xff]  ;;  %v826_v5 = vld [vmem:[#allocation2 + $0x1] ss:$2 sm:$0xff] }
  0xa3   : > { %v828_v6 = vmax.f32 %v824_v4, %v826_v5  ;;  %v830_v7 = vld [vmem:[#allocation2 + $0x2] ss:$2 sm:$0xff] }
  0xa4   : > { %v825_v8 = vld [vmem:[#allocation2 + $0x10] ss:$2 sm:$0x1f]  ;;  %v827_v9 = vld [vmem:[#allocation2 + $0x11] ss:$2 sm:$0x1f] }
  0xa5   : > { %v832_v10 = vmax.f32 %v828_v6, %v830_v7  ;;  %v829_v11 = vmax.f32 %v825_v8, %v827_v9  ;;  %v831_v12 = vld [vmem:[#allocation2 + $0x12] ss:$2 sm:$0x1f] }
  0xa7   : > { %v834_v13 = vpack.c.bf16 %v832_v10, %v832_v10  ;;  %v833_v14 = vmax.f32 %v829_v11, %v831_v12 }
  0xa9   : > { %1088 = vst.msk [vmem:[%s1366_s15 + $0x60] sm:$0xf] %vm155_vm1, %v834_v13  ;;  %v835_v17 = vpack.c.bf16 %v833_v14, %v833_v14 }
  0xab   : > { %v839_v18 = vsel %vm1376_vm4, %v835_v17, %v1089_v16 }
  0xac   : > { %1090 = vst [vmem:[%s1366_s15 + $0x64] sm:$0x7] %v839_v18 }
  0xad PF: > { %s11_s6 = sadd.s32 1, %s1303_s6  }
  0xae   : > { %p8_p4 = scmp.ge.s32.totalorder %s11_s6, 4  }
  0xb0   :  { %10 = sbr.rel (!%p8_p4) target bundleno = 1 (0x1), region = 97 }

// kernel: cnn_mycifar10_forward.7
= control target key start
LH: loop header
LB: loop body
LE: loop exit
PB: predicated region body
PF: predicated region fallthrough
CT: control target
= control target key end

     0   :  { %s3328_s12 = smov 0   ;;  %s3330_s13 = smov 0   ;;  %s4067_s0 = inlined_call_operand.vmem [shape: bf16[162,1600], index: 0, kind: input, shape index: {}]   ;;  %s4068_s1 = inlined_call_operand.vmem [shape: bf16[1600,64], index: 1, kind: input, shape index: {}]   ;;  %s4069_s2 = inlined_call_operand.vmem [shape: f32[1,64], index: 2, kind: input, shape index: {}]   ;;  %s4070_s3 = inlined_call_operand.vmem [shape: bf16[162,64], index: 3, kind: output, shape index: {}]  }
   0x1   :  { %s3332_s14 = smov 0  }
   0x2 LB: > { %s3341_s15 = sadd.s32 4294967295, %s3274_s14   ;;  %s3343_s16 = sadd.s32 1, %s3274_s14   ;;  %s3274_s14 = sphi %s3332_s14, %s4078_s14   ;;  %s3270_s13 = sphi %s3330_s13, %s4077_s13   ;;  %s3266_s12 = sphi %s3328_s12, %s4076_s12  }
   0x3   : > { %s85_s17 = ssub.s32 %s3274_s14, %s3343_s16  ;;  %s88_s18 = sadd.s32 1, %s3270_s13 }
   0x4   : > { %p86_p0 = scmp.eq.s32.totalorder %s85_s17, 0  ;;  %p98_p1 = scmp.ne.s32.totalorder %s3270_s13, %s3266_s12 }
   0x5   : > { %p99_p2 = scmp.eq.s32.totalorder %s3341_s15, 1  ;;  %p2260_p3 = scmp.ge.s32.totalorder %s3274_s14, 1 }
   0x6   : > { %s3351_s19 = scalar_select %p86_p0, %s3270_s13, %s88_s18  }
   0x7   : > { %p3353_p4 = por %p99_p2, %p98_p1  ;;  %p149_p5 = scmp.lt.s32.totalorder %s3274_s14, 3 }
   0x9   : > { %p150_p6 = pnand %p2260_p3, %p149_p5 }
   0xa   : > { %s3373_s4 = smul.u32 (!%p150_p6), 11, %s3341_s15 }
   0xb   : > { %153 = sbr.rel (%p150_p6) target bundleno = 554 (0x22a), region = 32 }
   0xc   : > { %p184_p7 = scmp.lt.s32.totalorder (!%p150_p6), %s3373_s4, 20 }
  0x10   : > { %v3012_v0 = vld [vmem:[%s4068_s1 + $0x38] sm:$0xff]  ;;  %v3011_v1 = vld [vmem:[%s4068_s1 + $0x30] sm:$0xff]  ;;  %v3010_v4 = vld [vmem:[%s4068_s1 + $0x28] sm:$0xff]  ;;  %s185_s17 = scalar_select %p184_p7, %s3373_s4, 20  ;;  %vm1452_vm0 = vcmask 523264   ;;  %vm1987_vm1 = vcmask 519168  }
  0x11   : > { %3106 = vmatpush.bf16.msra.mxu1 %v3012_v0  ;;  %3107 = vmatpush.bf16.msra.mxu2 %v3012_v0  ;;  %v3036_v2 = vld [vmem:[%s4068_s1 + $0xf8] sm:$0xff]  ;;  %v3035_v3 = vld [vmem:[%s4068_s1 + $0xf0] sm:$0xff]  ;;  %v3034_v5 = vld [vmem:[%s4068_s1 + $0xe8] sm:$0xff] }
  0x12   : > { %1471 = vmatpush.bf16.msra.mxu0 %v3012_v0  ;;  %1585 = vmatpush.bf16.msra.mxu3 %v3036_v2  ;;  %v3009_v6 = vld [vmem:[%s4068_s1 + $0x20] sm:$0xff]  ;;  %v3008_v8 = vld [vmem:[%s4068_s1 + $0x18] sm:$0xff]  ;;  %v3007_v10 = vld [vmem:[%s4068_s1 + $0x10] sm:$0xff]  ;;  %s3123_s24 = smul.u32 52, %s185_s17 }
  0x13   : > { %v3033_v7 = vld [vmem:[%s4068_s1 + $0xe0] sm:$0xff]  ;;  %v3032_v9 = vld [vmem:[%s4068_s1 + $0xd8] sm:$0xff]  ;;  %v3031_v11 = vld [vmem:[%s4068_s1 + $0xd0] sm:$0xff]  ;;  %s3105_s17 = smul.u32 (%p3353_p4), 44, %s3341_s15 }
  0x14   : > { %v3006_v12 = vld [vmem:[%s4068_s1 + $0x8] sm:$0xff]  ;;  %s3404_s5 = scalar_lea.vmem %s4067_s0, %s3123_s24  ;;  %v3005_v14 = vld [vmem:[%s4068_s1] sm:$0xff]  ;;  %v3028_v19 = vld [vmem:[%s4068_s1 + $0xb8] sm:$0xff] }
  0x15   : > { %3108 = vmatpush.bf16.msra.mxu1 %v3011_v1  ;;  %3109 = vmatpush.bf16.msra.mxu2 %v3011_v1  ;;  %v3030_v13 = vld [vmem:[%s4068_s1 + $0xc8] sm:$0xff]  ;;  %v2368_v15 = vld [vmem:[%s3404_s5 + $0xd0] sm:$0xf]  ;;  %v2972_v16 = vld [vmem:[%s3404_s5 + $0x100] sm:$0xf0]  ;;  %s3998_s22 = scalar_lea.vmem (%p3353_p4), %s4070_s3, %s3105_s17  }
  0x16   : > { %1472 = vmatpush.bf16.msra.mxu0 %v3011_v1  ;;  %1586 = vmatpush.bf16.msra.mxu3 %v3035_v3  ;;  %v2472_v17 = vld [vmem:[%s3404_s5 + $0x1a0] sm:$0xf]  ;;  %v2998_v18 = vld [vmem:[%s3404_s5 + $0x1d0] sm:$0xf0]  ;;  %v3020_v22 = vld [vmem:[%s4068_s1 + $0x78] sm:$0xff]  ;;  %v2369_v24 = vor.u32 %v2972_v16, %v2368_v15 }
  0x17   : > { %v2264_v20 = vld [vmem:[%s3404_s5] sm:$0xf]  ;;  %v2946_v21 = vld [vmem:[%s3404_s5 + $0x30] sm:$0xf0]  ;;  %v3044_v23 = vld [vmem:[%s4068_s1 + $0x138] sm:$0xff]  ;;  %v2473_v25 = vor.u32 %v2998_v18, %v2472_v17 }
  0x18   : > { %v2265_v26 = vor.u32 %v2946_v21, %v2264_v20  ;;  %v3029_v27 = vld [vmem:[%s4068_s1 + $0xc0] sm:$0xff]  ;;  %v2941_v28 = vld [vmem:[%s3404_s5 + $0xc] sm:$0xf]  ;;  %v3027_v30 = vld [vmem:[%s4068_s1 + $0xb0] sm:$0xff] }
  0x19   : > { %3110 = vmatpush.bf16.msra.mxu1 %v3010_v4  ;;  %3111 = vmatpush.bf16.msra.mxu2 %v3010_v4  ;;  %v2274_v29 = vld [vmem:[%s3404_s5 + $0x3c] sm:$0xf0]  ;;  %v3019_v31 = vld [vmem:[%s4068_s1 + $0x70] sm:$0xff]  ;;  %v3068_v34 = vld [vmem:[%s4068_s1 + $0x1f8] sm:$0xff] }
  0x1a   : > { %1473 = vmatpush.bf16.msra.mxu0 %v3010_v4  ;;  %1587 = vmatpush.bf16.msra.mxu3 %v3034_v5  ;;  %v3043_v32 = vld [vmem:[%s4068_s1 + $0x130] sm:$0xff]  ;;  %v2277_v33 = vor.u32 %v2941_v28, %v2274_v29  ;;  %v3026_v35 = vld [vmem:[%s4068_s1 + $0xa8] sm:$0xff]  ;;  %v3025_v40 = vld [vmem:[%s4068_s1 + $0xa0] sm:$0xff] }
  0x1b   : > { %v3018_v36 = vld [vmem:[%s4068_s1 + $0x68] sm:$0xff]  ;;  %v3067_v39 = vld [vmem:[%s4068_s1 + $0x1f0] sm:$0xff]  ;;  %v3017_v41 = vld [vmem:[%s4068_s1 + $0x60] sm:$0xff] }
  0x1c   : > { %v3042_v37 = vld [vmem:[%s4068_s1 + $0x128] sm:$0xff]  ;;  %v3041_v42 = vld [vmem:[%s4068_s1 + $0x120] sm:$0xff]  ;;  %v2420_v44 = vld [vmem:[%s3404_s5 + $0x138] sm:$0xf] }
  0x1d   : > { %3112 = vmatpush.bf16.msra.mxu1 %v3009_v6  ;;  %3113 = vmatpush.bf16.msra.mxu2 %v3009_v6  ;;  %v3454_v38 = vld [vmem:[%s3404_s5 + $0x208] sm:$0xff]  ;;  %v3024_v46 = vld [vmem:[%s4068_s1 + $0x98] sm:$0xff]  ;;  %v2954_v54 = vld [vmem:[%s3404_s5 + $0x74] sm:$0xf] }
  0x1e   : > { %1474 = vmatpush.bf16.msra.mxu0 %v3009_v6  ;;  %1588 = vmatpush.bf16.msra.mxu3 %v3033_v7  ;;  %v689_v43 = vunpack.c.l.b16 %v3454_v38  ;;  %v2985_v45 = vld [vmem:[%s3404_s5 + $0x168] sm:$0xf0]  ;;  %v2316_v47 = vld [vmem:[%s3404_s5 + $0x68] sm:$0xf]  ;;  %v2959_v48 = vld [vmem:[%s3404_s5 + $0x98] sm:$0xf0] }
  0x1f   : > { %v3016_v49 = vld [vmem:[%s4068_s1 + $0x58] sm:$0xff]  ;;  %v2421_v51 = vor.u32 %v2985_v45, %v2420_v44  ;;  %v2317_v53 = vor.u32 %v2959_v48, %v2316_v47  ;;  %v2326_v55 = vld [vmem:[%s3404_s5 + $0xa4] sm:$0xf0]  ;;  %v3023_v56 = vld [vmem:[%s4068_s1 + $0x90] sm:$0xff] }
  0x20   : > { %v3040_v50 = vld [vmem:[%s4068_s1 + $0x118] sm:$0xff]  ;;  %v767_v52 = vpack.c.b16 %v689_v43, %v689_v43  ;;  %v3015_v57 = vld [vmem:[%s4068_s1 + $0x50] sm:$0xff]  ;;  %v2329_v59 = vor.u32 %v2954_v54, %v2326_v55  ;;  %v3022_v60 = vld [vmem:[%s4068_s1 + $0x88] sm:$0xff] }
  0x21   : > { %3114 = vmatpush.bf16.msra.mxu1 %v3008_v8  ;;  %3115 = vmatpush.bf16.msra.mxu2 %v3008_v8  ;;  %v3039_v58 = vld [vmem:[%s4068_s1 + $0x110] sm:$0xff]  ;;  %v3066_v61 = vld [vmem:[%s4068_s1 + $0x1e8] sm:$0xff]  ;;  %v3021_v0 = vld [vmem:[%s4068_s1 + $0x80] sm:$0xff] }
  0x22   : > { %1475 = vmatpush.bf16.msra.mxu0 %v3008_v8  ;;  %1589 = vmatpush.bf16.msra.mxu3 %v3032_v9  ;;  %v3014_v62 = vld [vmem:[%s4068_s1 + $0x48] sm:$0xff]  ;;  %v3013_v1 = vld [vmem:[%s4068_s1 + $0x40] sm:$0xff]  ;;  %v2266_v4 = vld [vmem:[%s3404_s5 + $0x34] sm:$0xf0] }
  0x23   : > { %v3038_v63 = vld [vmem:[%s4068_s1 + $0x108] sm:$0xff]  ;;  %v3037_v2 = vld [vmem:[%s4068_s1 + $0x100] sm:$0xff]  ;;  %v3060_v5 = vld [vmem:[%s4068_s1 + $0x1b8] sm:$0xff] }
  0x24   : > { %v2940_v3 = vld [vmem:[%s3404_s5 + $0x4] sm:$0xf]  ;;  %v3052_v6 = vld [vmem:[%s4068_s1 + $0x178] sm:$0xff]  ;;  %v2272_v7 = vld [vmem:[%s3404_s5 + $0x8] sm:$0xf] }
  0x25   : > { %3116 = vmatpush.bf16.msra.mxu1 %v3007_v10  ;;  %3117 = vmatpush.bf16.msra.mxu2 %v3007_v10  ;;  %v2947_v8 = vld [vmem:[%s3404_s5 + $0x38] sm:$0xf0]  ;;  %v3059_v15 = vld [vmem:[%s4068_s1 + $0x1b0] sm:$0xff]  ;;  %v3058_v21 = vld [vmem:[%s4068_s1 + $0x1a8] sm:$0xff] }
  0x26   : > { %1476 = vmatpush.bf16.msra.mxu0 %v3007_v10  ;;  %1590 = vmatpush.bf16.msra.mxu3 %v3031_v11  ;;  %v3076_v9 = vld [vmem:[%s4068_s1 + $0x238] sm:$0xff]  ;;  %v2280_v10 = vld [vmem:[%s3404_s5 + $0x10] sm:$0xf]  ;;  %v2948_v11 = vld [vmem:[%s3404_s5 + $0x40] sm:$0xf0] }
  0x27   : > { %v2967_v16 = vld [vmem:[%s3404_s5 + $0xdc] sm:$0xf]  ;;  %v2378_v17 = vld [vmem:[%s3404_s5 + $0x10c] sm:$0xf0]  ;;  %v2953_v28 = vld [vmem:[%s3404_s5 + $0x6c] sm:$0xf] }
  0x28   : > { %v3051_v18 = vld [vmem:[%s4068_s1 + $0x170] sm:$0xff]  ;;  %v2381_v20 = vor.u32 %v2967_v16, %v2378_v17  ;;  %v2318_v29 = vld [vmem:[%s3404_s5 + $0x9c] sm:$0xf0]  ;;  %v3048_v43 = vld [vmem:[%s4068_s1 + $0x158] sm:$0xff] }
  0x29   : > { %3118 = vmatpush.bf16.msra.mxu1 %v3006_v12  ;;  %3119 = vmatpush.bf16.msra.mxu2 %v3006_v12  ;;  %v3072_v44 = vld [vmem:[%s4068_s1 + $0x218] sm:$0xff]  ;;  %v3055_v45 = vld [vmem:[%s4068_s1 + $0x190] sm:$0xff]  ;;  %v2370_v48 = vld [vmem:[%s3404_s5 + $0x104] sm:$0xf0] }
  0x2a   : > { %1477 = vmatpush.bf16.msra.mxu0 %v3006_v12  ;;  %1591 = vmatpush.bf16.msra.mxu3 %v3030_v13  ;;  %v2269_v12 = vor.u32 %v2940_v3, %v2266_v4  ;;  %v2273_v13 = vor.u32 %v2947_v8, %v2272_v7  ;;  %v2966_v47 = vld [vmem:[%s3404_s5 + $0xd4] sm:$0xf]  ;;  %v2992_v16 = vld [vmem:[%s3404_s5 + $0x1a4] sm:$0xf]  ;;  %v2474_v17 = vld [vmem:[%s3404_s5 + $0x1d4] sm:$0xf0] }
  0x2b   : > { %v2986_v3 = vld [vmem:[%s3404_s5 + $0x170] sm:$0xf0] }
  0x2c   : > { %v272_v4 = vld [vmem:[%s3404_s5 + $0x210] sm:$0xff] }
  0x2d   : > { %3120 = vmatpush.bf16.msra.mxu1 %v3005_v14  ;;  %3121 = vmatpush.bf16.msra.mxu2 %v3005_v14 }
  0x2e   : > { %1478 = vmatpush.bf16.msra.mxu0 %v3005_v14  ;;  %1592 = vmatpush.bf16.msra.mxu3 %v3029_v27  ;;  %v2281_v14 = vor.u32 %v2948_v11, %v2280_v10  ;;  %v3073_v27 = vld [vmem:[%s4068_s1 + $0x220] sm:$0xff] }
  0x30   : > { %1489 = vmatmul.bf16.vlgmr.msra.gmra.mxu1 %v2369_v24  ;;  %1499 = vmatmul.bf16.vlgmr.msra.gmra.mxu2 %v2473_v25  ;;  %v3074_v24 = vld [vmem:[%s4068_s1 + $0x228] sm:$0xff]  ;;  %v3057_v25 = vld [vmem:[%s4068_s1 + $0x1a0] sm:$0xff] }
  0x31   : > { %1547 = vmatpush.bf16.msrb.mxu2 %v3028_v19  ;;  %1509 = vmatpush.bf16.msrb.mxu1 %v3020_v22  ;;  %v3075_v19 = vld [vmem:[%s4068_s1 + $0x230] sm:$0xff]  ;;  %v3065_v22 = vld [vmem:[%s4068_s1 + $0x1e0] sm:$0xff] }
  0x32   : > { %1623 = vmatpush.bf16.msrb.mxu0 %v3044_v23  ;;  %1593 = vmatmul.bf16.vlgmr.msra.gmra.mxu3 %v2277_v33  ;;  %v3050_v23 = vld [vmem:[%s4068_s1 + $0x168] sm:$0xff] }
  0x33   : > { %1479 = vmatmul.bf16.vlgmr.msra.gmra.mxu0 %v2265_v26  ;;  %1737 = vmatpush.bf16.msrb.mxu3 %v3068_v34  ;;  %v3049_v26 = vld [vmem:[%s4068_s1 + $0x160] sm:$0xff]  ;;  %v2961_v33 = vld [vmem:[%s3404_s5 + $0xa8] sm:$0xf0]  ;;  %v2321_v34 = vor.u32 %v2953_v28, %v2318_v29  ;;  %v3092_v29 = vld [vmem:[%s4068_s1 + $0x2b8] sm:$0xff] }
  0x35   : > { %1548 = vmatpush.bf16.msrb.mxu2 %v3027_v30  ;;  %1510 = vmatpush.bf16.msrb.mxu1 %v3019_v31  ;;  %v2324_v30 = vld [vmem:[%s3404_s5 + $0x70] sm:$0xf]  ;;  %v2960_v31 = vld [vmem:[%s3404_s5 + $0xa0] sm:$0xf0] }
  0x36   : > { %1624 = vmatpush.bf16.msrb.mxu0 %v3043_v32  ;;  %v2332_v32 = vld [vmem:[%s3404_s5 + $0x78] sm:$0xf] }
  0x37   : > { %1738 = vmatpush.bf16.msrb.mxu3 %v3067_v39  ;;  %v2430_v39 = vld [vmem:[%s3404_s5 + $0x174] sm:$0xf0] }
  0x39   : > { %1549 = vmatpush.bf16.msrb.mxu2 %v3026_v35  ;;  %1511 = vmatpush.bf16.msrb.mxu1 %v3018_v36  ;;  %v2325_v35 = vor.u32 %v2960_v31, %v2324_v30  ;;  %v2333_v36 = vor.u32 %v2961_v33, %v2332_v32  ;;  %v3100_v30 = vld [vmem:[%s4068_s1 + $0x2f8] sm:$0xff] }
  0x3a   : > { %1625 = vmatpush.bf16.msrb.mxu0 %v3042_v37  ;;  %v2980_v37 = vld [vmem:[%s3404_s5 + $0x144] sm:$0xf]  ;;  %v3084_v31 = vld [vmem:[%s4068_s1 + $0x278] sm:$0xff] }
  0x3b   : > { %1739 = vmatpush.bf16.msrb.mxu3 %v3066_v61  ;;  %v3054_v61 = vld [vmem:[%s4068_s1 + $0x188] sm:$0xff]  ;;  %v3650_v32 = vld [vmem:[%s3404_s5 + $0x218] sm:$0xff] }
  0x3c   : > { %v3104_v33 = vld [vmem:[%s4068_s1 + $0x318] sm:$0xff] }
  0x3d   : > { %1550 = vmatpush.bf16.msrb.mxu2 %v3025_v40  ;;  %1512 = vmatpush.bf16.msrb.mxu1 %v3017_v41  ;;  %v2433_v40 = vor.u32 %v2980_v37, %v2430_v39  ;;  %v3056_v41 = vld [vmem:[%s4068_s1 + $0x198] sm:$0xff] }
  0x3e   : > { %1626 = vmatpush.bf16.msrb.mxu0 %v3041_v42  ;;  %v3064_v42 = vld [vmem:[%s4068_s1 + $0x1d8] sm:$0xff] }
  0x3f   : > { %1740 = vmatpush.bf16.msrb.mxu3 %v3065_v22  ;;  %v2477_v22 = vor.u32 %v2992_v16, %v2474_v17 }
  0x40   : > { %1494 = vmatmul.bf16.gmra.mxu1 %v2421_v51  ;;  %1504 = vmatmul.bf16.gmra.mxu2 %v767_v52  ;;  %v2384_v51 = vld [vmem:[%s3404_s5 + $0xe0] sm:$0xf]  ;;  %v2974_v52 = vld [vmem:[%s3404_s5 + $0x110] sm:$0xf0] }
  0x41   : > { %1551 = vmatpush.bf16.msrb.mxu2 %v3024_v46  ;;  %1513 = vmatpush.bf16.msrb.mxu1 %v3016_v49  ;;  %v3063_v46 = vld [vmem:[%s4068_s1 + $0x1d0] sm:$0xff]  ;;  %v2376_v49 = vld [vmem:[%s3404_s5 + $0xd8] sm:$0xf]  ;;  %v2385_v55 = vor.u32 %v2974_v52, %v2384_v51  ;;  %v2949_v51 = vld [vmem:[%s3404_s5 + $0x48] sm:$0xf0] }
  0x42   : > { %1627 = vmatpush.bf16.msrb.mxu0 %v3040_v50  ;;  %1598 = vmatmul.bf16.gmra.mxu3 %v2329_v59  ;;  %v2973_v50 = vld [vmem:[%s3404_s5 + $0x108] sm:$0xf0]  ;;  %v3047_v59 = vld [vmem:[%s4068_s1 + $0x150] sm:$0xff]  ;;  %v2296_v52 = vld [vmem:[%s3404_s5 + $0x20] sm:$0xf] }
  0x43   : > { %1484 = vmatmul.bf16.gmra.mxu0 %v2317_v53  ;;  %1741 = vmatpush.bf16.msrb.mxu3 %v3064_v42  ;;  %v2373_v53 = vor.u32 %v2966_v47, %v2370_v48  ;;  %v2377_v54 = vor.u32 %v2973_v50, %v2376_v49  ;;  %v2956_v42 = vld [vmem:[%s3404_s5 + $0x84] sm:$0xf]  ;;  %v2942_v47 = vld [vmem:[%s3404_s5 + $0x14] sm:$0xf]  ;;  %v3098_v48 = vld [vmem:[%s4068_s1 + $0x2e8] sm:$0xff] }
  0x44   : > { %v2282_v49 = vld [vmem:[%s3404_s5 + $0x44] sm:$0xf0]  ;;  %v2288_v50 = vld [vmem:[%s3404_s5 + $0x18] sm:$0xf] }
  0x45   : > { %1552 = vmatpush.bf16.msrb.mxu2 %v3023_v56  ;;  %1514 = vmatpush.bf16.msrb.mxu1 %v3015_v57  ;;  %v2993_v56 = vld [vmem:[%s3404_s5 + $0x1ac] sm:$0xf]  ;;  %v2482_v57 = vld [vmem:[%s3404_s5 + $0x1dc] sm:$0xf0] }
  0x46   : > { %1628 = vmatpush.bf16.msrb.mxu0 %v3039_v58  ;;  %v2485_v58 = vor.u32 %v2993_v56, %v2482_v57  ;;  %v2289_v56 = vor.u32 %v2949_v51, %v2288_v50 }
  0x47   : > { %1742 = vmatpush.bf16.msrb.mxu3 %v3063_v46  ;;  %v3090_v46 = vld [vmem:[%s4068_s1 + $0x2a8] sm:$0xff] }
  0x49   : > { %1553 = vmatpush.bf16.msrb.mxu2 %v3022_v60  ;;  %1515 = vmatpush.bf16.msrb.mxu1 %v3014_v62  ;;  %v3071_v60 = vld [vmem:[%s4068_s1 + $0x210] sm:$0xff]  ;;  %v3062_v62 = vld [vmem:[%s4068_s1 + $0x1c8] sm:$0xff] }
  0x4a   : > { %1629 = vmatpush.bf16.msrb.mxu0 %v3038_v63  ;;  %v3046_v63 = vld [vmem:[%s4068_s1 + $0x148] sm:$0xff] }
  0x4b   : > { %1743 = vmatpush.bf16.msrb.mxu3 %v3062_v62 }
  0x4d   : > { %1554 = vmatpush.bf16.msrb.mxu2 %v3021_v0  ;;  %1516 = vmatpush.bf16.msrb.mxu1 %v3013_v1  ;;  %v2979_v0 = vld [vmem:[%s3404_s5 + $0x13c] sm:$0xf]  ;;  %v2422_v1 = vld [vmem:[%s3404_s5 + $0x16c] sm:$0xf0] }
  0x4e   : > { %1630 = vmatpush.bf16.msrb.mxu0 %v3037_v2  ;;  %v2428_v2 = vld [vmem:[%s3404_s5 + $0x140] sm:$0xf]  ;;  %v2425_v7 = vor.u32 %v2979_v0, %v2422_v1 }
  0x4f   : > { %v2429_v8 = vor.u32 %v2986_v3, %v2428_v2  ;;  %v3693_v0 = vld [vmem:[%s4069_s2] ss:$0 sm:$0xff] }
  0x50   : > { %1517 = vmatmul.bf16.vlgmr.msrb.gmra.mxu1 %v2269_v12  ;;  %1555 = vmatmul.bf16.vlgmr.msrb.gmra.mxu2 %v2273_v13  ;;  %v3070_v12 = vld [vmem:[%s4068_s1 + $0x208] sm:$0xff]  ;;  %v3053_v13 = vld [vmem:[%s4068_s1 + $0x180] sm:$0xff] }
  0x51   : > { %1699 = vmatpush.bf16.msra.mxu2 %v3060_v5  ;;  %1661 = vmatpush.bf16.msra.mxu1 %v3052_v6  ;;  %v2436_v5 = vld [vmem:[%s3404_s5 + $0x148] sm:$0xf]  ;;  %v2987_v6 = vld [vmem:[%s3404_s5 + $0x178] sm:$0xf0] }
  0x52   : > { %1775 = vmatpush.bf16.msra.mxu0 %v3076_v9  ;;  %1603 = vmatmul.bf16.gmra.mxu3 %v2381_v20  ;;  %v692_v9 = vunpack.c.h.b16 %v272_v4  ;;  %v2437_v10 = vor.u32 %v2987_v6, %v2436_v5  ;;  %v2488_v20 = vld [vmem:[%s3404_s5 + $0x1b0] sm:$0xf]  ;;  %v3089_v5 = vld [vmem:[%s4068_s1 + $0x2a0] sm:$0xff] }
  0x53   : > { %1631 = vmatmul.bf16.vlgmr.msrb.gmra.mxu0 %v2281_v14  ;;  %v3061_v14 = vld [vmem:[%s4068_s1 + $0x1c0] sm:$0xff] }
  0x54   : > { %v770_v11 = vpack.c.b16 %v692_v9, %v692_v9  ;;  %1744 = vmatpush.bf16.msrb.mxu3 %v3061_v14  ;;  %v3097_v6 = vld [vmem:[%s4068_s1 + $0x2e0] sm:$0xff]  ;;  %v2955_v9 = vld [vmem:[%s3404_s5 + $0x7c] sm:$0xf] }
  0x55   : > { %1700 = vmatpush.bf16.msra.mxu2 %v3059_v15  ;;  %1662 = vmatpush.bf16.msra.mxu1 %v3051_v18  ;;  %v3045_v15 = vld [vmem:[%s4068_s1 + $0x140] sm:$0xff]  ;;  %v2480_v18 = vld [vmem:[%s3404_s5 + $0x1a8] sm:$0xf]  ;;  %v2963_v14 = vld [vmem:[%s3404_s5 + $0xb8] sm:$0xf0] }
  0x56   : > { %1776 = vmatpush.bf16.msra.mxu0 %v3075_v19  ;;  %v2999_v19 = vld [vmem:[%s3404_s5 + $0x1d8] sm:$0xf0] }
  0x58   : > { %1889 = vmatpush.bf16.msra.mxu3 %v3100_v30 }
  0x59   : > { %1701 = vmatpush.bf16.msra.mxu2 %v3058_v21  ;;  %1663 = vmatpush.bf16.msra.mxu1 %v3050_v23  ;;  %v3000_v21 = vld [vmem:[%s3404_s5 + $0x1e0] sm:$0xf0]  ;;  %v2481_v23 = vor.u32 %v2999_v19, %v2480_v18 }
  0x5a   : > { %1777 = vmatpush.bf16.msra.mxu0 %v3074_v24  ;;  %v3069_v24 = vld [vmem:[%s4068_s1 + $0x200] sm:$0xff] }
  0x5d   : > { %1702 = vmatpush.bf16.msra.mxu2 %v3057_v25  ;;  %1664 = vmatpush.bf16.msra.mxu1 %v3049_v26  ;;  %v2489_v25 = vor.u32 %v3000_v21, %v2488_v20  ;;  %v2943_v26 = vld [vmem:[%s3404_s5 + $0x1c] sm:$0xf]  ;;  %v2982_v21 = vld [vmem:[%s3404_s5 + $0x154] sm:$0xf] }
  0x5e   : > { %1778 = vmatpush.bf16.msra.mxu0 %v3073_v27  ;;  %v2290_v27 = vld [vmem:[%s3404_s5 + $0x4c] sm:$0xf0] }
  0x5f   : > { %v2293_v28 = vor.u32 %v2943_v26, %v2290_v27  ;;  %v3088_v26 = vld [vmem:[%s4068_s1 + $0x298] sm:$0xff] }
  0x60   : > { %1522 = vmatmul.bf16.gmra.mxu1 %v2321_v34  ;;  %1560 = vmatmul.bf16.gmra.mxu2 %v2325_v35  ;;  %v690_v34 = vunpack.c.h.b16 %v3454_v38  ;;  %v691_v35 = vunpack.c.l.b16 %v272_v4  ;;  %v3099_v38 = vld [vmem:[%s4068_s1 + $0x2f0] sm:$0xff]  ;;  %v3096_v27 = vld [vmem:[%s4068_s1 + $0x2d8] sm:$0xff] }
  0x61   : > { %1703 = vmatpush.bf16.msra.mxu2 %v3056_v41  ;;  %1665 = vmatpush.bf16.msra.mxu1 %v3048_v43  ;;  %v2342_v43 = vld [vmem:[%s3404_s5 + $0xb4] sm:$0xf0] }
  0x62   : > { %1608 = vmatmul.bf16.gmra.mxu3 %v2433_v40  ;;  %1779 = vmatpush.bf16.msra.mxu0 %v3072_v44  ;;  %v768_v37 = vpack.c.b16 %v690_v34, %v690_v34  ;;  %v769_v39 = vpack.c.b16 %v691_v35, %v691_v35  ;;  %v3091_v40 = vld [vmem:[%s4068_s1 + $0x2b0] sm:$0xff]  ;;  %v2345_v44 = vor.u32 %v2956_v42, %v2342_v43  ;;  %v3102_v34 = vld [vmem:[%s4068_s1 + $0x308] sm:$0xff]  ;;  %v2976_v42 = vld [vmem:[%s3404_s5 + $0x120] sm:$0xf0] }
  0x63   : > { %1636 = vmatmul.bf16.gmra.mxu0 %v2333_v36  ;;  %v693_v36 = vunpack.c.l.b16 %v3650_v32  ;;  %1890 = vmatpush.bf16.msra.mxu3 %v3099_v38 }
  0x65   : > { %1704 = vmatpush.bf16.msra.mxu2 %v3055_v45  ;;  %1666 = vmatpush.bf16.msra.mxu1 %v3047_v59  ;;  %v771_v41 = vpack.c.b16 %v693_v36, %v693_v36  ;;  %v3083_v45 = vld [vmem:[%s4068_s1 + $0x270] sm:$0xff]  ;;  %v2969_v59 = vld [vmem:[%s3404_s5 + $0xec] sm:$0xf]  ;;  %v2968_v36 = vld [vmem:[%s3404_s5 + $0xe4] sm:$0xf] }
  0x66   : > { %1780 = vmatpush.bf16.msra.mxu0 %v3071_v60  ;;  %v2394_v60 = vld [vmem:[%s3404_s5 + $0x11c] sm:$0xf0] }
  0x67   : > { %1891 = vmatpush.bf16.msra.mxu3 %v3098_v48  ;;  %v2397_v62 = vor.u32 %v2969_v59, %v2394_v60  ;;  %v2995_v48 = vld [vmem:[%s3404_s5 + $0x1bc] sm:$0xf] }
  0x69   : > { %1705 = vmatpush.bf16.msra.mxu2 %v3054_v61  ;;  %1667 = vmatpush.bf16.msra.mxu1 %v3046_v63  ;;  %v3103_v63 = vld [vmem:[%s4068_s1 + $0x310] sm:$0xff] }
  0x6a   : > { %1781 = vmatpush.bf16.msra.mxu0 %v3070_v12  ;;  %v2962_v12 = vld [vmem:[%s3404_s5 + $0xb0] sm:$0xf0] }
  0x6b   : > { %1892 = vmatpush.bf16.msra.mxu3 %v3097_v6  ;;  %v3094_v6 = vld [vmem:[%s4068_s1 + $0x2c8] sm:$0xff] }
  0x6d   : > { %1706 = vmatpush.bf16.msra.mxu2 %v3053_v13  ;;  %1668 = vmatpush.bf16.msra.mxu1 %v3045_v15  ;;  %v2348_v13 = vld [vmem:[%s3404_s5 + $0x88] sm:$0xf] }
  0x6e   : > { %1782 = vmatpush.bf16.msra.mxu0 %v3069_v24  ;;  %v2349_v20 = vor.u32 %v2963_v14, %v2348_v13  ;;  %v2452_v13 = vld [vmem:[%s3404_s5 + $0x158] sm:$0xf]  ;;  %v2989_v14 = vld [vmem:[%s3404_s5 + $0x188] sm:$0xf0] }
  0x6f   : > { %1893 = vmatpush.bf16.msra.mxu3 %v3096_v27 }
  0x70   : > { %1527 = vmatmul.bf16.gmra.mxu1 %v2373_v53  ;;  %1565 = vmatmul.bf16.gmra.mxu2 %v2377_v54  ;;  %v2950_v53 = vld [vmem:[%s3404_s5 + $0x50] sm:$0xf0]  ;;  %v3082_v54 = vld [vmem:[%s4068_s1 + $0x268] sm:$0xff] }
  0x71   : > { %1851 = vmatpush.bf16.msrb.mxu2 %v3092_v29  ;;  %1813 = vmatpush.bf16.msrb.mxu1 %v3084_v31 }
  0x72   : > { %1613 = vmatmul.bf16.gmra.mxu3 %v2485_v58  ;;  %1931 = vmatpush.bf16.msrb.mxu0 %v3104_v33  ;;  %v2297_v58 = vor.u32 %v2950_v53, %v2296_v52  ;;  %v3080_v33 = vld [vmem:[%s4068_s1 + $0x258] sm:$0xff]  ;;  %v3087_v52 = vld [vmem:[%s4068_s1 + $0x290] sm:$0xff] }
  0x73   : > { %1641 = vmatmul.bf16.gmra.mxu0 %v2385_v55  ;;  %v2285_v55 = vor.u32 %v2942_v47, %v2282_v49  ;;  %v2498_v49 = vld [vmem:[%s3404_s5 + $0x1ec] sm:$0xf0] }
  0x74   : > { %v3095_v53 = vld [vmem:[%s4068_s1 + $0x2d0] sm:$0xff] }
  0x75   : > { %1852 = vmatpush.bf16.msrb.mxu2 %v3091_v40  ;;  %1814 = vmatpush.bf16.msrb.mxu1 %v3083_v45  ;;  %v2975_v40 = vld [vmem:[%s3404_s5 + $0x118] sm:$0xf0] }
  0x76   : > { %1932 = vmatpush.bf16.msrb.mxu0 %v3103_v63  ;;  %1894 = vmatpush.bf16.msra.mxu3 %v3095_v53  ;;  %v3002_v53 = vld [vmem:[%s3404_s5 + $0x1f0] sm:$0xf0] }
  0x79   : > { %1853 = vmatpush.bf16.msrb.mxu2 %v3090_v46  ;;  %1815 = vmatpush.bf16.msrb.mxu1 %v3082_v54 }
  0x7a   : > { %1933 = vmatpush.bf16.msrb.mxu0 %v3102_v34  ;;  %1895 = vmatpush.bf16.msra.mxu3 %v3094_v6  ;;  %v3078_v34 = vld [vmem:[%s4068_s1 + $0x248] sm:$0xff] }
  0x7d   : > { %1854 = vmatpush.bf16.msrb.mxu2 %v3089_v5  ;;  %v3086_v5 = vld [vmem:[%s4068_s1 + $0x288] sm:$0xff] }
  0x80   : > { %1532 = vmatmul.bf16.gmra.mxu1 %v2425_v7  ;;  %1570 = vmatmul.bf16.gmra.mxu2 %v2429_v8  ;;  %v3081_v7 = vld [vmem:[%s4068_s1 + $0x260] sm:$0xff] }
  0x81   : > { %1816 = vmatpush.bf16.msrb.mxu1 %v3081_v7  ;;  %1855 = vmatpush.bf16.msrb.mxu2 %v3088_v26  ;;  %v2981_v7 = vld [vmem:[%s3404_s5 + $0x14c] sm:$0xf]  ;;  %v2453_v26 = vor.u32 %v2989_v14, %v2452_v13 }
  0x82   : > { %1618 = vmatmul.bf16.gmra.mxu3 %v770_v11  ;;  %v2340_v11 = vld [vmem:[%s3404_s5 + $0x80] sm:$0xf] }
  0x83   : > { %1646 = vmatmul.bf16.gmra.mxu0 %v2437_v10  ;;  %v2334_v10 = vld [vmem:[%s3404_s5 + $0xac] sm:$0xf0]  ;;  %v2341_v18 = vor.u32 %v2962_v12, %v2340_v11  ;;  %v3789_v12 = vld [vmem:[%s3404_s5 + $0x220] sm:$0xff] }
  0x84   : > { %v2337_v17 = vor.u32 %v2955_v9, %v2334_v10  ;;  %v2438_v9 = vld [vmem:[%s3404_s5 + $0x17c] sm:$0xf0]  ;;  %v2444_v11 = vld [vmem:[%s3404_s5 + $0x150] sm:$0xf] }
  0x85   : > { %1817 = vmatpush.bf16.msrb.mxu1 %v3080_v33  ;;  %1856 = vmatpush.bf16.msrb.mxu2 %v3087_v52  ;;  %v2504_v52 = vld [vmem:[%s3404_s5 + $0x1c0] sm:$0xf] }
  0x89   : > { %1857 = vmatpush.bf16.msrb.mxu2 %v3086_v5 }
  0x90   : > { %1537 = vmatmul.bf16.gmra.mxu1 %v2477_v22  ;;  %1575 = vmatmul.bf16.gmra.mxu2 %v2481_v23  ;;  %v2446_v22 = vld [vmem:[%s3404_s5 + $0x184] sm:$0xf0] }
  0x92   : > { %1745 = vmatmul.bf16.vlgmr.msrb.gmra.mxu3 %v2293_v28 }
  0x93   : > { %1651 = vmatmul.bf16.gmra.mxu0 %v2489_v25  ;;  %v2449_v25 = vor.u32 %v2982_v21, %v2446_v22  ;;  %v696_v22 = vunpack.c.h.b16 %v3789_v12 }
  0xa0   : > { %1542 = vmatmul.bf16.gmra.mxu1 %v768_v37  ;;  %1580 = vmatmul.bf16.gmra.mxu2 %v769_v39  ;;  %v2386_v37 = vld [vmem:[%s3404_s5 + $0x114] sm:$0xf0]  ;;  %v2392_v39 = vld [vmem:[%s3404_s5 + $0xe8] sm:$0xf] }
  0xa1   : > { %v2393_v45 = vor.u32 %v2975_v40, %v2392_v39 }
  0xa2   : > { %1750 = vmatmul.bf16.gmra.mxu3 %v2345_v44  ;;  %v2389_v44 = vor.u32 %v2968_v36, %v2386_v37  ;;  %v774_v37 = vpack.c.b16 %v696_v22, %v696_v22  ;;  %v694_v22 = vunpack.c.h.b16 %v3650_v32 }
  0xa3   : > { %1656 = vmatmul.bf16.gmra.mxu0 %v771_v41  ;;  %v2400_v41 = vld [vmem:[%s3404_s5 + $0xf0] sm:$0xf] }
  0xa4   : > { %v2401_v47 = vor.u32 %v2976_v42, %v2400_v41 }
  0xad   : > { %v3683_v57 = vpop.f32.mrf.mxu1 }
  0xb0   : > { %v1480_v61 = vpop.f32.mrf.mxu0  ;;  %1669 = vmatmul.bf16.vlgmr.msra.gmra.mxu1 %v2285_v55  ;;  %1707 = vmatmul.bf16.vlgmr.msra.gmra.mxu2 %v2289_v56  ;;  %v2501_v55 = vor.u32 %v2995_v48, %v2498_v49  ;;  %v3079_v56 = vld [vmem:[%s4068_s1 + $0x250] sm:$0xff] }
  0xb1   : > { %v1481_v38 = vadd.f32 %v3693_v0, %v1480_v61  ;;  %1818 = vmatpush.bf16.msrb.mxu1 %v3079_v56  ;;  %v2994_v48 = vld [vmem:[%s3404_s5 + $0x1b4] sm:$0xf]  ;;  %v1491_v56 = vadd.f32 %v3693_v0, %v3683_v57 }
  0xb2   : > { %1755 = vmatmul.bf16.gmra.mxu3 %v2397_v62 }
  0xb3   : > { %1783 = vmatmul.bf16.vlgmr.msra.gmra.mxu0 %v2297_v58  ;;  %v1500_v1 = vpop.f32.mrf.mxu2 }
  0xb4   : > { %v3696_v2 = vadd.f32 %v3693_v0, %v1500_v1 }
  0xb5   : > { %v3698_v3 = vpop.f32.mrf.mxu1  ;;  %v3711_v8 = vpop.f32.mrf.mxu3  ;;  %1819 = vmatpush.bf16.msrb.mxu1 %v3078_v34 }
  0xb6   : > { %v1493_v13 = vadd.f32 %v3693_v0, %v3698_v3 }
  0xb8   : > { %v3700_v4 = vpop.f32.mrf.mxu0 }
  0xb9   : > { %v1483_v59 = vadd.f32 %v3693_v0, %v3700_v4 }
  0xbb   : > { %v1502_v15 = vpop.f32.mrf.mxu2 }
  0xbc   : > { %v3720_v16 = vadd.f32 %v3693_v0, %v1502_v15 }
  0xbd   : > { %v3722_v19 = vpop.f32.mrf.mxu1  ;;  %v3728_v24 = vpop.f32.mrf.mxu3 }
  0xc0   : > { %v3726_v23 = vpop.f32.mrf.mxu0  ;;  %1674 = vmatmul.bf16.gmra.mxu1 %v2337_v17  ;;  %1712 = vmatmul.bf16.gmra.mxu2 %v2341_v18  ;;  %v2441_v17 = vor.u32 %v2981_v7, %v2438_v9 }
  0xc1   : > { %v1486_v18 = vadd.f32 %v3693_v0, %v3726_v23 }
  0xc2   : > { %1760 = vmatmul.bf16.gmra.mxu3 %v2449_v25 }
  0xc3   : > { %1788 = vmatmul.bf16.gmra.mxu0 %v2349_v20  ;;  %v1505_v28 = vpop.f32.mrf.mxu2 }
  0xc4   : > { %v3737_v29 = vadd.f32 %v3693_v0, %v1505_v28 }
  0xc5   : > { %v3739_v30 = vpop.f32.mrf.mxu1  ;;  %v3749_v35 = vpop.f32.mrf.mxu3 }
  0xc8   : > { %v3741_v31 = vpop.f32.mrf.mxu0 }
  0xc9   : > { %v1488_v40 = vadd.f32 %v3693_v0, %v3741_v31  ;;  %v3085_v31 = vld [vmem:[%s4068_s1 + $0x280] sm:$0xff] }
  0xca   : > { %1858 = vmatpush.bf16.msrb.mxu2 %v3085_v31 }
  0xcb   : > { %v1507_v43 = vpop.f32.mrf.mxu2 }
  0xcc   : > { %v3093_v43 = vld [vmem:[%s4068_s1 + $0x2c0] sm:$0xff] }
  0xcd   : > { %v1518_v46 = vpop.f32.mrf.mxu1  ;;  %v3766_v54 = vpop.f32.mrf.mxu3  ;;  %1896 = vmatpush.bf16.msra.mxu3 %v3093_v43 }
  0xce   : > { %v1519_v50 = vadd.f32 %v1518_v46, %v1481_v38  ;;  %v3077_v46 = vld [vmem:[%s4068_s1 + $0x240] sm:$0xff] }
  0xcf   : > { %1820 = vmatpush.bf16.msrb.mxu1 %v3077_v46 }
  0xd0   : > { %v1632_v51 = vpop.f32.mrf.mxu0  ;;  %1679 = vmatmul.bf16.gmra.mxu1 %v2389_v44  ;;  %1717 = vmatmul.bf16.gmra.mxu2 %v2393_v45 }
  0xd2   : > { %1765 = vmatmul.bf16.gmra.mxu3 %v2501_v55 }
  0xd3   : > { %1793 = vmatmul.bf16.gmra.mxu0 %v2401_v47  ;;  %v1556_v58 = vpop.f32.mrf.mxu2 }
  0xd4   : > { %v1557_v60 = vadd.f32 %v1556_v58, %v1519_v50  ;;  %v2496_v50 = vld [vmem:[%s3404_s5 + $0x1b8] sm:$0xf] }
  0xd5   : > { %v1520_v61 = vpop.f32.mrf.mxu1  ;;  %v3780_v4 = vpop.f32.mrf.mxu3 }
  0xd6   : > { %v1595_v62 = vadd.f32 %v3711_v8, %v1557_v60  ;;  %v1521_v63 = vadd.f32 %v1520_v61, %v1483_v59  ;;  %v2988_v8 = vld [vmem:[%s3404_s5 + $0x180] sm:$0xf0] }
  0xd7   : > { %v2445_v21 = vor.u32 %v2988_v8, %v2444_v11 }
  0xd8   : > { %v1634_v1 = vpop.f32.mrf.mxu0  ;;  %v3784_v10 = vadd.f32 %v1632_v51, %v1595_v62  ;;  %v3001_v51 = vld [vmem:[%s3404_s5 + $0x1e8] sm:$0xf0]  ;;  %v2505_v62 = vor.u32 %v3002_v53, %v2504_v52  ;;  %v2298_v52 = vld [vmem:[%s3404_s5 + $0x54] sm:$0xf0]  ;;  %v2304_v53 = vld [vmem:[%s3404_s5 + $0x28] sm:$0xf] }
  0xd9   : > { %v2497_v60 = vor.u32 %v3001_v51, %v2496_v50  ;;  %v2944_v50 = vld [vmem:[%s3404_s5 + $0x24] sm:$0xf] }
  0xdb   : > { %v1558_v15 = vpop.f32.mrf.mxu2 }
  0xdc   : > { %v1559_v20 = vadd.f32 %v1558_v15, %v1521_v63  ;;  %v2945_v63 = vld [vmem:[%s3404_s5 + $0x2c] sm:$0xf] }
  0xdd   : > { %v1523_v25 = vpop.f32.mrf.mxu1  ;;  %v3800_v36 = vpop.f32.mrf.mxu3 }
  0xde   : > { %v1597_v27 = vadd.f32 %v3728_v24, %v1559_v20  ;;  %v1524_v28 = vadd.f32 %v1523_v25, %v1486_v18  ;;  %v3101_v24 = vld [vmem:[%s4068_s1 + $0x300] sm:$0xff]  ;;  %v3840_v20 = vld [vmem:[%s3404_s5 + $0x228] sm:$0xff]  ;;  %v695_v25 = vunpack.c.l.b16 %v3789_v12 }
  0xdf   : > { %1934 = vmatpush.bf16.msrb.mxu0 %v3101_v24  ;;  %v697_v3 = vunpack.c.l.b16 %v3840_v20 }
  0xe0   : > { %v1637_v33 = vpop.f32.mrf.mxu0  ;;  %1684 = vmatmul.bf16.gmra.mxu1 %v2441_v17  ;;  %1722 = vmatmul.bf16.gmra.mxu2 %v2445_v21  ;;  %v3802_v23 = vadd.f32 %v1634_v1, %v1597_v27  ;;  %v2306_v1 = vld [vmem:[%s3404_s5 + $0x5c] sm:$0xf0]  ;;  %v773_v34 = vpack.c.b16 %v695_v25, %v695_v25 }
  0xe1   : > { %v2309_v11 = vor.u32 %v2945_v63, %v2306_v1  ;;  %v775_v24 = vpack.c.b16 %v697_v3, %v697_v3  ;;  %v2410_v63 = vld [vmem:[%s3404_s5 + $0x12c] sm:$0xf0]  ;;  %v2350_v25 = vld [vmem:[%s3404_s5 + $0xbc] sm:$0xf0] }
  0xe2   : > { %1770 = vmatmul.bf16.gmra.mxu3 %v774_v37  ;;  %v2356_v3 = vld [vmem:[%s3404_s5 + $0x90] sm:$0xf] }
  0xe3   : > { %1798 = vmatmul.bf16.gmra.mxu0 %v2453_v26  ;;  %v1561_v39 = vpop.f32.mrf.mxu2 }
  0xe4   : > { %v1562_v41 = vadd.f32 %v1561_v39, %v1524_v28  ;;  %v1496_v28 = vadd.f32 %v3693_v0, %v3722_v19  ;;  %v2958_v39 = vld [vmem:[%s3404_s5 + $0x94] sm:$0xf] }
  0xe5   : > { %v1525_v42 = vpop.f32.mrf.mxu1  ;;  %v3819_v47 = vpop.f32.mrf.mxu3 }
  0xe6   : > { %v1600_v38 = vadd.f32 %v3749_v35, %v1562_v41  ;;  %v1526_v44 = vadd.f32 %v1525_v42, %v1488_v40  ;;  %v2490_v35 = vld [vmem:[%s3404_s5 + $0x1e4] sm:$0xf0] }
  0xe7   : > { %v2493_v59 = vor.u32 %v2994_v48, %v2490_v35  ;;  %v2358_v40 = vld [vmem:[%s3404_s5 + $0xc4] sm:$0xf0] }
  0xe8   : > { %v1639_v45 = vpop.f32.mrf.mxu0  ;;  %v3822_v49 = vadd.f32 %v1637_v33, %v1600_v38  ;;  %v772_v33 = vpack.c.b16 %v694_v22, %v694_v22  ;;  %v2361_v43 = vor.u32 %v2958_v39, %v2358_v40  ;;  %v2984_v40 = vld [vmem:[%s3404_s5 + $0x164] sm:$0xf] }
  0xeb   : > { %v1563_v55 = vpop.f32.mrf.mxu2 }
  0xec   : > { %v1564_v58 = vadd.f32 %v1563_v55, %v1526_v44  ;;  %v2951_v55 = vld [vmem:[%s3404_s5 + $0x58] sm:$0xf0] }
  0xed   : > { %v1528_v61 = vpop.f32.mrf.mxu1  ;;  %v1611_v9 = vpop.f32.mrf.mxu3 }
  0xee   : > { %v1602_v5 = vadd.f32 %v3766_v54, %v1564_v58  ;;  %v1529_v6 = vadd.f32 %v1528_v61, %v1491_v56  ;;  %v2312_v56 = vld [vmem:[%s3404_s5 + $0x30] sm:$0xf]  ;;  %v2952_v58 = vld [vmem:[%s3404_s5 + $0x60] sm:$0xf0] }
  0xf0   : > { %v1642_v7 = vpop.f32.mrf.mxu0  ;;  %1689 = vmatmul.bf16.gmra.mxu1 %v2493_v59  ;;  %1727 = vmatmul.bf16.gmra.mxu2 %v2497_v60  ;;  %v3834_v8 = vadd.f32 %v1639_v45, %v1602_v5  ;;  %v2305_v60 = vor.u32 %v2951_v55, %v2304_v53  ;;  %v2408_v53 = vld [vmem:[%s3404_s5 + $0xf8] sm:$0xf]  ;;  %v2977_v55 = vld [vmem:[%s3404_s5 + $0x128] sm:$0xf0] }
  0xf2   : > { %1897 = vmatmul.bf16.vlgmr.msra.gmra.mxu3 %v2309_v11 }
  0xf3   : > { %1803 = vmatmul.bf16.gmra.mxu0 %v2505_v62  ;;  %v1566_v57 = vpop.f32.mrf.mxu2  ;;  %v2313_v62 = vor.u32 %v2952_v58, %v2312_v56  ;;  %v2416_v56 = vld [vmem:[%s3404_s5 + $0x100] sm:$0xf]  ;;  %v2978_v58 = vld [vmem:[%s3404_s5 + $0x130] sm:$0xf0] }
  0xf4   : > { %v1567_v14 = vadd.f32 %v1566_v57, %v1529_v6 }
  0xf5   : > { %v1530_v15 = vpop.f32.mrf.mxu1  ;;  %v1614_v21 = vpop.f32.mrf.mxu3 }
  0xf6   : > { %v1605_v17 = vadd.f32 %v3780_v4, %v1567_v14  ;;  %v1531_v54 = vadd.f32 %v1530_v15, %v1493_v13 }
  0xf8   : > { %v1644_v18 = vpop.f32.mrf.mxu0  ;;  %v3844_v26 = vadd.f32 %v1642_v7, %v1605_v17 }
  0xfb   : > { %v1568_v27 = vpop.f32.mrf.mxu2 }
  0xfc   : > { %v1569_v4 = vadd.f32 %v1568_v27, %v1531_v54  ;;  %v2964_v27 = vld [vmem:[%s3404_s5 + $0xc0] sm:$0xf0] }
  0xfd   : > { %v1533_v37 = vpop.f32.mrf.mxu1  ;;  %v3852_v12 = vpop.f32.mrf.mxu3 }
  0xfe   : > { %v1607_v41 = vadd.f32 %v3800_v36, %v1569_v4  ;;  %v1534_v32 = vadd.f32 %v1533_v37, %v1496_v28  ;;  %v1498_v36 = vadd.f32 %v3693_v0, %v3739_v30  ;;  %v2301_v30 = vor.u32 %v2944_v50, %v2298_v52  ;;  %v2364_v28 = vld [vmem:[%s3404_s5 + $0x98] sm:$0xf]  ;;  %v2965_v4 = vld [vmem:[%s3404_s5 + $0xc8] sm:$0xf0]  ;;  %v2402_v52 = vld [vmem:[%s3404_s5 + $0x124] sm:$0xf0] }
 0x100   : > { %v1647_v42 = vpop.f32.mrf.mxu0  ;;  %1694 = vmatmul.bf16.gmra.mxu1 %v772_v33  ;;  %1732 = vmatmul.bf16.gmra.mxu2 %v773_v34  ;;  %v3854_v19 = vadd.f32 %v1644_v18, %v1607_v41  ;;  %v2957_v18 = vld [vmem:[%s3404_s5 + $0x8c] sm:$0xf] }
 0x101   : > { %v2353_v37 = vor.u32 %v2957_v18, %v2350_v25  ;;  %v2460_v18 = vld [vmem:[%s3404_s5 + $0x160] sm:$0xf]  ;;  %v2990_v25 = vld [vmem:[%s3404_s5 + $0x190] sm:$0xf0] }
 0x102   : > { %1902 = vmatmul.bf16.gmra.mxu3 %v2361_v43 }
 0x103   : > { %1808 = vmatmul.bf16.gmra.mxu0 %v775_v24  ;;  %v1571_v38 = vpop.f32.mrf.mxu2  ;;  %v2357_v24 = vor.u32 %v2964_v27, %v2356_v3  ;;  %v3909_v3 = vld [vmem:[%s3404_s5 + $0x230] sm:$0xff]  ;;  %v2468_v27 = vld [vmem:[%s3404_s5 + $0x168] sm:$0xf] }
 0x104   : > { %v1572_v44 = vadd.f32 %v1571_v38, %v1534_v32 }
 0x105   : > { %v1535_v45 = vpop.f32.mrf.mxu1  ;;  %v1619_v35 = vpop.f32.mrf.mxu3 }
 0x106   : > { %v1610_v31 = vadd.f32 %v3819_v47, %v1572_v44  ;;  %v1536_v46 = vadd.f32 %v1535_v45, %v1498_v36  ;;  %v2971_v47 = vld [vmem:[%s3404_s5 + $0xfc] sm:$0xf] }
 0x107   : > { %v2413_v11 = vor.u32 %v2971_v47, %v2410_v63  ;;  %v2514_v47 = vld [vmem:[%s3404_s5 + $0x1fc] sm:$0xf0] }
 0x108   : > { %v1649_v48 = vpop.f32.mrf.mxu0  ;;  %v3860_v51 = vadd.f32 %v1647_v42, %v1610_v31 }
 0x10b   : > { %v1573_v59 = vpop.f32.mrf.mxu2 }
 0x10c   : > { %v1574_v0 = vadd.f32 %v1573_v59, %v1536_v46 }
 0x10d   : > { %v1538_v61 = vpop.f32.mrf.mxu1  ;;  %v1621_v7 = vpop.f32.mrf.mxu3 }
 0x10e   : > { %v1612_v1 = vadd.f32 %v1611_v9, %v1574_v0  ;;  %v1539_v5 = vadd.f32 %v1538_v61, %v3696_v2  ;;  %v2417_v61 = vor.u32 %v2978_v58, %v2416_v56  ;;  %v3004_v56 = vld [vmem:[%s3404_s5 + $0x200] sm:$0xf0] }
 0x110   : > { %v1652_v6 = vpop.f32.mrf.mxu0  ;;  %1821 = vmatmul.bf16.vlgmr.msrb.gmra.mxu1 %v2301_v30  ;;  %1859 = vmatmul.bf16.vlgmr.msrb.gmra.mxu2 %v2305_v60  ;;  %v3870_v57 = vadd.f32 %v1649_v48, %v1612_v1  ;;  %v2970_v48 = vld [vmem:[%s3404_s5 + $0xf4] sm:$0xf]  ;;  %v2409_v30 = vor.u32 %v2977_v55, %v2408_v53  ;;  %v3003_v53 = vld [vmem:[%s3404_s5 + $0x1f8] sm:$0xf0]  ;;  %v2520_v55 = vld [vmem:[%s3404_s5 + $0x1d0] sm:$0xf] }
 0x111   : > { %v2405_v0 = vor.u32 %v2970_v48, %v2402_v52  ;;  %v2506_v48 = vld [vmem:[%s3404_s5 + $0x1f4] sm:$0xf0]  ;;  %v2512_v52 = vld [vmem:[%s3404_s5 + $0x1c8] sm:$0xf] }
 0x112   : > { %1907 = vmatmul.bf16.gmra.mxu3 %v2413_v11 }
 0x113   : > { %2922 = vmatmul.msk.bf16.vlgmr.msrb.gmra.mxu0 %vm1452_vm0, %v2313_v62  ;;  %v1576_v13 = vpop.f32.mrf.mxu2  ;;  %v2997_v62 = vld [vmem:[%s3404_s5 + $0x1cc] sm:$0xf] }
 0x114   : > { %v1577_v9 = vadd.f32 %v1576_v13, %v1539_v5  ;;  %v2517_v5 = vor.u32 %v2997_v62, %v2514_v47 }
 0x115   : > { %v1540_v2 = vpop.f32.mrf.mxu1  ;;  %v1746_v54 = vpop.f32.mrf.mxu3 }
 0x116   : > { %v1615_v14 = vadd.f32 %v1614_v21, %v1577_v9  ;;  %v1541_v15 = vadd.f32 %v1540_v2, %v3720_v16  ;;  %v2365_v21 = vor.u32 %v2965_v4, %v2364_v28  ;;  %v2462_v16 = vld [vmem:[%s3404_s5 + $0x194] sm:$0xf0]  ;;  %v2991_v28 = vld [vmem:[%s3404_s5 + $0x198] sm:$0xf0] }
 0x117   : > { %v2465_v38 = vor.u32 %v2984_v40, %v2462_v16 }
 0x118   : > { %v1654_v17 = vpop.f32.mrf.mxu0  ;;  %v3875_v22 = vadd.f32 %v1652_v6, %v1615_v14  ;;  %v2983_v14 = vld [vmem:[%s3404_s5 + $0x15c] sm:$0xf] }
 0x11b   : > { %v1578_v33 = vpop.f32.mrf.mxu2 }
 0x11c   : > { %v1579_v34 = vadd.f32 %v1578_v33, %v1541_v15  ;;  %v2454_v15 = vld [vmem:[%s3404_s5 + $0x18c] sm:$0xf0] }
 0x11d   : > { %v1543_v39 = vpop.f32.mrf.mxu1  ;;  %v1748_v43 = vpop.f32.mrf.mxu3 }
 0x11e   : > { %v1617_v41 = vadd.f32 %v3852_v12, %v1579_v34  ;;  %v1544_v32 = vadd.f32 %v1543_v39, %v3737_v29  ;;  %v2457_v34 = vor.u32 %v2983_v14, %v2454_v15 }
 0x120   : > { %v1657_v42 = vpop.f32.mrf.mxu0  ;;  %1826 = vmatmul.bf16.gmra.mxu1 %v2353_v37  ;;  %1864 = vmatmul.bf16.gmra.mxu2 %v2357_v24  ;;  %v3886_v36 = vadd.f32 %v1654_v17, %v1617_v41  ;;  %v2461_v37 = vor.u32 %v2990_v25, %v2460_v18 }
 0x122   : > { %1912 = vmatmul.bf16.gmra.mxu3 %v2465_v38 }
 0x123   : > { %2923 = vmatmul.msk.bf16.gmra.mxu0 %vm1452_vm0, %v2365_v21  ;;  %v1581_v44 = vpop.f32.mrf.mxu2 }
 0x124   : > { %v1582_v45 = vadd.f32 %v1581_v44, %v1544_v32 }
 0x125   : > { %v1545_v12 = vpop.f32.mrf.mxu1  ;;  %v1751_v46 = vpop.f32.mrf.mxu3 }
 0x126   : > { %v1620_v29 = vadd.f32 %v1619_v35, %v1582_v45 }
 0x128   : > { %v1659_v31 = vpop.f32.mrf.mxu0  ;;  %v3890_v50 = vadd.f32 %v1657_v42, %v1620_v29  ;;  %v2996_v29 = vld [vmem:[%s3404_s5 + $0x1c4] sm:$0xf] }
 0x12b   : > { %v1583_v59 = vpop.f32.mrf.mxu2 }
 0x12d   : > { %v1670_v60 = vpop.f32.mrf.mxu1  ;;  %v1753_v1 = vpop.f32.mrf.mxu3 }
 0x12e   : > { %v1671_v35 = vadd.f32 %v1670_v60, %v3784_v10 }
 0x130   : > { %v1784_v63 = vpop.f32.mrf.mxu0  ;;  %1831 = vmatmul.bf16.gmra.mxu1 %v2405_v0  ;;  %1869 = vmatmul.bf16.gmra.mxu2 %v2409_v30  ;;  %v2509_v0 = vor.u32 %v2996_v29, %v2506_v48  ;;  %v2513_v30 = vor.u32 %v3003_v53, %v2512_v52 }
 0x132   : > { %1917 = vmatmul.bf16.gmra.mxu3 %v2517_v5 }
 0x133   : > { %2924 = vmatmul.msk.bf16.gmra.mxu0 %vm1452_vm0, %v2417_v61  ;;  %v1708_v6 = vpop.f32.mrf.mxu2  ;;  %v2521_v61 = vor.u32 %v3004_v56, %v2520_v55 }
 0x134   : > { %v1709_v7 = vadd.f32 %v1708_v6, %v1671_v35 }
 0x135   : > { %v1672_v11 = vpop.f32.mrf.mxu1  ;;  %v1756_v2 = vpop.f32.mrf.mxu3 }
 0x136   : > { %v1747_v13 = vadd.f32 %v1746_v54, %v1709_v7  ;;  %v1673_v10 = vadd.f32 %v1672_v11, %v3802_v23  ;;  %v700_v54 = vunpack.c.h.b16 %v3909_v3  ;;  %v2469_v23 = vor.u32 %v2991_v28, %v2468_v27 }
 0x138   : > { %v1786_v9 = vpop.f32.mrf.mxu0  ;;  %v3904_v17 = vadd.f32 %v1784_v63, %v1747_v13  ;;  %v778_v41 = vpack.c.b16 %v700_v54, %v700_v54 }
 0x13b   : > { %v1710_v4 = vpop.f32.mrf.mxu2 }
 0x13c   : > { %v1711_v33 = vadd.f32 %v1710_v4, %v1673_v10  ;;  %v277_v10 = vld [vmem:[%s3404_s5 + $0x238] sm:$0xf]  ;;  %s175_s5 = sand.u32 1, %s3266_s12   ;;  %s2007_s12 = ssub.s32 (%p3353_p4), 21, %s3373_s4 }
 0x13d   : > { %v1675_v24 = vpop.f32.mrf.mxu1  ;;  %v1758_v16 = vpop.f32.mrf.mxu3  ;;  %v701_v15 = vunpack.c.l.b16 %v277_v10  ;;  %s3122_s11 = smul.u32 44, %s175_s5  ;;  %p2008_p8 = scmp.lt.s32.totalorder (%p3353_p4), %s2007_s12, 11 }
 0x13e   : > { %v1749_v39 = vadd.f32 %v1748_v43, %v1711_v33  ;;  %v1676_v21 = vadd.f32 %v1675_v24, %v3822_v49 }
 0x13f   : > { %v779_v33 = vpack.c.b16 %v701_v15, %v701_v15  ;;  %s3958_s14 = scalar_lea.vmem [#allocation2], %s3122_s11  }
 0x140   : > { %v1789_v40 = vpop.f32.mrf.mxu0  ;;  %1836 = vmatmul.bf16.gmra.mxu1 %v2457_v34  ;;  %1874 = vmatmul.bf16.gmra.mxu2 %v2461_v37  ;;  %v3915_v32 = vadd.f32 %v1786_v9, %v1749_v39 }
 0x142   : > { %1922 = vmatmul.bf16.gmra.mxu3 %v778_v41 }
 0x143   : > { %2925 = vmatmul.msk.bf16.gmra.mxu0 %vm1452_vm0, %v2469_v23  ;;  %v1713_v42 = vpop.f32.mrf.mxu2 }
 0x144   : > { %v1714_v38 = vadd.f32 %v1713_v42, %v1676_v21 }
 0x145   : > { %v1677_v43 = vpop.f32.mrf.mxu1  ;;  %v1761_v12 = vpop.f32.mrf.mxu3 }
 0x146   : > { %v1752_v49 = vadd.f32 %v1751_v46, %v1714_v38  ;;  %v1678_v44 = vadd.f32 %v1677_v43, %v3834_v8 }
 0x148   : > { %v1791_v45 = vpop.f32.mrf.mxu0  ;;  %v3920_v31 = vadd.f32 %v1789_v40, %v1752_v49 }
 0x14b   : > { %v1715_v58 = vpop.f32.mrf.mxu2 }
 0x14c   : > { %v1716_v59 = vadd.f32 %v1715_v58, %v1678_v44 }
 0x14d   : > { %v1680_v60 = vpop.f32.mrf.mxu1  ;;  %v1763_v47 = vpop.f32.mrf.mxu3 }
 0x14e   : > { %v1754_v46 = vadd.f32 %v1753_v1, %v1716_v59  ;;  %v1681_v8 = vadd.f32 %v1680_v60, %v3844_v26  ;;  %v698_v1 = vunpack.c.h.b16 %v3840_v20  ;;  %v699_v26 = vunpack.c.l.b16 %v3909_v3 }
 0x150   : > { %v1794_v62 = vpop.f32.mrf.mxu0  ;;  %1841 = vmatmul.bf16.gmra.mxu1 %v2509_v0  ;;  %1879 = vmatmul.bf16.gmra.mxu2 %v2513_v30  ;;  %v3928_v35 = vadd.f32 %v1791_v45, %v1754_v46  ;;  %v776_v27 = vpack.c.b16 %v698_v1, %v698_v1  ;;  %v777_v28 = vpack.c.b16 %v699_v26, %v699_v26 }
 0x153   : > { %2926 = vmatmul.msk.bf16.gmra.mxu0 %vm1452_vm0, %v2521_v61  ;;  %v1718_v63 = vpop.f32.mrf.mxu2 }
 0x154   : > { %v1719_v5 = vadd.f32 %v1718_v63, %v1681_v8 }
 0x155   : > { %v1682_v6 = vpop.f32.mrf.mxu1  ;;  %v1766_v9 = vpop.f32.mrf.mxu3 }
 0x156   : > { %v1757_v7 = vadd.f32 %v1756_v2, %v1719_v5  ;;  %v1683_v11 = vadd.f32 %v1682_v6, %v3854_v19 }
 0x158   : > { %v1796_v13 = vpop.f32.mrf.mxu0  ;;  %v3935_v14 = vadd.f32 %v1794_v62, %v1757_v7 }
 0x15b   : > { %v1720_v18 = vpop.f32.mrf.mxu2 }
 0x15c   : > { %v1721_v25 = vadd.f32 %v1720_v18, %v1683_v11 }
 0x15d   : > { %v1685_v4 = vpop.f32.mrf.mxu1  ;;  %v1768_v37 = vpop.f32.mrf.mxu3 }
 0x15e   : > { %v1759_v34 = vadd.f32 %v1758_v16, %v1721_v25  ;;  %v1686_v2 = vadd.f32 %v1685_v4, %v3860_v51 }
 0x160   : > { %v1799_v19 = vpop.f32.mrf.mxu0  ;;  %1846 = vmatmul.bf16.gmra.mxu1 %v776_v27  ;;  %1884 = vmatmul.bf16.gmra.mxu2 %v777_v28  ;;  %v3938_v54 = vadd.f32 %v1796_v13, %v1759_v34 }
 0x163   : > { %2927 = vmatmul.msk.bf16.gmra.mxu0 %vm1452_vm0, %v779_v33  ;;  %v1723_v20 = vpop.f32.mrf.mxu2 }
 0x164   : > { %v1724_v3 = vadd.f32 %v1723_v20, %v1686_v2 }
 0x165   : > { %v1687_v24 = vpop.f32.mrf.mxu1  ;;  %v1771_v40 = vpop.f32.mrf.mxu3 }
 0x166   : > { %v1762_v23 = vadd.f32 %v1761_v12, %v1724_v3  ;;  %v1688_v39 = vadd.f32 %v1687_v24, %v3870_v57 }
 0x168   : > { %v1801_v21 = vpop.f32.mrf.mxu0  ;;  %v3942_v41 = vadd.f32 %v1799_v19, %v1762_v23 }
 0x16b   : > { %v1725_v16 = vpop.f32.mrf.mxu2 }
 0x16c   : > { %v1726_v51 = vadd.f32 %v1725_v16, %v1688_v39 }
 0x16d   : > { %v1690_v42 = vpop.f32.mrf.mxu1  ;;  %v1773_v44 = vpop.f32.mrf.mxu3 }
 0x16e   : > { %v1764_v38 = vadd.f32 %v1763_v47, %v1726_v51  ;;  %v1691_v43 = vadd.f32 %v1690_v42, %v3875_v22 }
 0x170   : > { %v1804_v49 = vpop.f32.mrf.mxu0  ;;  %v3945_v45 = vadd.f32 %v1801_v21, %v1764_v38 }
 0x173   : > { %v1728_v29 = vpop.f32.mrf.mxu2 }
 0x174   : > { %v1729_v48 = vadd.f32 %v1728_v29, %v1691_v43 }
 0x175   : > { %v1692_v52 = vpop.f32.mrf.mxu1  ;;  %v1898_v55 = vpop.f32.mrf.mxu3 }
 0x176   : > { %v1767_v12 = vadd.f32 %v1766_v9, %v1729_v48  ;;  %v1693_v57 = vadd.f32 %v1692_v52, %v3886_v36 }
 0x178   : > { %v1806_v53 = vpop.f32.mrf.mxu0  ;;  %v3948_v56 = vadd.f32 %v1804_v49, %v1767_v12 }
 0x17b   : > { %v1730_v58 = vpop.f32.mrf.mxu2 }
 0x17c   : > { %v1731_v59 = vadd.f32 %v1730_v58, %v1693_v57 }
 0x17d   : > { %v1695_v0 = vpop.f32.mrf.mxu1  ;;  %v1900_v61 = vpop.f32.mrf.mxu3 }
 0x17e   : > { %v1769_v30 = vadd.f32 %v1768_v37, %v1731_v59  ;;  %v1696_v22 = vadd.f32 %v1695_v0, %v3890_v50 }
 0x180   : > { %v1809_v60 = vpop.f32.mrf.mxu0  ;;  %v3951_v46 = vadd.f32 %v1806_v53, %v1769_v30 }
 0x183   : > { %v1733_v8 = vpop.f32.mrf.mxu2 }
 0x184   : > { %v1734_v62 = vadd.f32 %v1733_v8, %v1696_v22 }
 0x185   : > { %v1697_v47 = vpop.f32.mrf.mxu1  ;;  %v1903_v5 = vpop.f32.mrf.mxu3 }
 0x186   : > { %v1772_v63 = vadd.f32 %v1771_v40, %v1734_v62 }
 0x188   : > { %v1811_v36 = vpop.f32.mrf.mxu0  ;;  %v3953_v6 = vadd.f32 %v1809_v60, %v1772_v63 }
 0x18b   : > { %v1735_v7 = vpop.f32.mrf.mxu2 }
 0x18d   : > { %v1822_v11 = vpop.f32.mrf.mxu1  ;;  %v1905_v10 = vpop.f32.mrf.mxu3 }
 0x18e   : > { %v1823_v9 = vadd.f32 %v1822_v11, %v3904_v17 }
 0x190   : > { %v1936_v13 = vpop.f32.mrf.mxu0 }
 0x193   : > { %v1860_v50 = vpop.f32.mrf.mxu2 }
 0x194   : > { %v1861_v1 = vadd.f32 %v1860_v50, %v1823_v9 }
 0x195   : > { %v1824_v26 = vpop.f32.mrf.mxu1  ;;  %v1908_v25 = vpop.f32.mrf.mxu3 }
 0x196   : > { %v1899_v15 = vadd.f32 %v1898_v55, %v1861_v1  ;;  %v1825_v4 = vadd.f32 %v1824_v26, %v3915_v32 }
 0x198   : > { %v1938_v18 = vpop.f32.mrf.mxu0  ;;  %v1937_v27 = vadd.f32 %v1936_v13, %v1899_v15 }
 0x19a   : > { %v1965_v28 = vmax.f32 %v1937_v27, 0.0 }
 0x19b   : > { %v1862_v33 = vpop.f32.mrf.mxu2 }
 0x19c   : > { %v1976_v34 = vpack.c.bf16 %v1965_v28, %v1965_v28  ;;  %v1863_v2 = vadd.f32 %v1862_v33, %v1825_v4 }
 0x19d   : > { %v1827_v19 = vpop.f32.mrf.mxu1  ;;  %v1910_v20 = vpop.f32.mrf.mxu3 }
 0x19e   : > { %1988 = vst.msk [vmem:[%s3958_s14] sm:$0xf] %vm1987_vm1, %v1976_v34  ;;  %v1901_v17 = vadd.f32 %v1900_v61, %v1863_v2  ;;  %v1828_v23 = vadd.f32 %v1827_v19, %v3920_v31 }
 0x1a0   : > { %v1941_v37 = vpop.f32.mrf.mxu0  ;;  %v1939_v3 = vadd.f32 %v1938_v18, %v1901_v17 }
 0x1a2   : > { %v1966_v24 = vmax.f32 %v1939_v3, 0.0 }
 0x1a3   : > { %v1865_v32 = vpop.f32.mrf.mxu2 }
 0x1a4   : > { %v1977_v39 = vpack.c.bf16 %v1966_v24, %v1966_v24  ;;  %v1866_v21 = vadd.f32 %v1865_v32, %v1828_v23 }
 0x1a5   : > { %v1829_v40 = vpop.f32.mrf.mxu1  ;;  %v1913_v42 = vpop.f32.mrf.mxu3 }
 0x1a6   : > { %1989 = vst.msk [vmem:[%s3958_s14 + $0x4] sm:$0xf] %vm1987_vm1, %v1977_v39  ;;  %v1904_v16 = vadd.f32 %v1903_v5, %v1866_v21  ;;  %v1830_v49 = vadd.f32 %v1829_v40, %v3928_v35 }
 0x1a8   : > { %v1943_v51 = vpop.f32.mrf.mxu0  ;;  %v1942_v38 = vadd.f32 %v1941_v37, %v1904_v16 }
 0x1aa   : > { %v1967_v43 = vmax.f32 %v1942_v38, 0.0 }
 0x1ab   : > { %v1867_v44 = vpop.f32.mrf.mxu2 }
 0x1ac   : > { %v1978_v29 = vpack.c.bf16 %v1967_v43, %v1967_v43  ;;  %v1868_v48 = vadd.f32 %v1867_v44, %v1830_v49 }
 0x1ad   : > { %v1832_v52 = vpop.f32.mrf.mxu1  ;;  %v1915_v57 = vpop.f32.mrf.mxu3 }
 0x1ae   : > { %1990 = vst.msk [vmem:[%s3958_s14 + $0x8] sm:$0xf] %vm1987_vm1, %v1978_v29  ;;  %v1906_v31 = vadd.f32 %v1905_v10, %v1868_v48  ;;  %v1833_v58 = vadd.f32 %v1832_v52, %v3935_v14 }
 0x1b0   : > { %v1946_v12 = vpop.f32.mrf.mxu0  ;;  %v1944_v53 = vadd.f32 %v1943_v51, %v1906_v31 }
 0x1b2   : > { %v1968_v55 = vmax.f32 %v1944_v53, 0.0 }
 0x1b3   : > { %v1870_v59 = vpop.f32.mrf.mxu2 }
 0x1b4   : > { %v1979_v0 = vpack.c.bf16 %v1968_v55, %v1968_v55  ;;  %v1871_v30 = vadd.f32 %v1870_v59, %v1833_v58 }
 0x1b5   : > { %v1834_v22 = vpop.f32.mrf.mxu1  ;;  %v1918_v61 = vpop.f32.mrf.mxu3 }
 0x1b6   : > { %1991 = vst.msk [vmem:[%s3958_s14 + $0xc] sm:$0xf] %vm1987_vm1, %v1979_v0  ;;  %v1909_v35 = vadd.f32 %v1908_v25, %v1871_v30  ;;  %v1835_v47 = vadd.f32 %v1834_v22, %v3938_v54 }
 0x1b8   : > { %v1948_v60 = vpop.f32.mrf.mxu0  ;;  %v1947_v8 = vadd.f32 %v1946_v12, %v1909_v35 }
 0x1ba   : > { %v1969_v62 = vmax.f32 %v1947_v8, 0.0 }
 0x1bb   : > { %v1872_v63 = vpop.f32.mrf.mxu2 }
 0x1bc   : > { %v1980_v36 = vpack.c.bf16 %v1969_v62, %v1969_v62  ;;  %v1873_v5 = vadd.f32 %v1872_v63, %v1835_v47 }
 0x1bd   : > { %v1837_v7 = vpop.f32.mrf.mxu1  ;;  %v1920_v13 = vpop.f32.mrf.mxu3 }
 0x1be   : > { %1992 = vst.msk [vmem:[%s3958_s14 + $0x10] sm:$0xf] %vm1987_vm1, %v1980_v36  ;;  %v1911_v14 = vadd.f32 %v1910_v20, %v1873_v5  ;;  %v1838_v50 = vadd.f32 %v1837_v7, %v3942_v41 }
 0x1c0   : > { %v1951_v11 = vpop.f32.mrf.mxu0  ;;  %v1949_v10 = vadd.f32 %v1948_v60, %v1911_v14 }
 0x1c2   : > { %v1970_v9 = vmax.f32 %v1949_v10, 0.0 }
 0x1c3   : > { %v1875_v1 = vpop.f32.mrf.mxu2 }
 0x1c4   : > { %v1981_v26 = vpack.c.bf16 %v1970_v9, %v1970_v9  ;;  %v1876_v15 = vadd.f32 %v1875_v1, %v1838_v50 }
 0x1c5   : > { %v1839_v18 = vpop.f32.mrf.mxu1  ;;  %v1923_v27 = vpop.f32.mrf.mxu3 }
 0x1c6   : > { %1993 = vst.msk [vmem:[%s3958_s14 + $0x14] sm:$0xf] %vm1987_vm1, %v1981_v26  ;;  %v1914_v54 = vadd.f32 %v1913_v42, %v1876_v15  ;;  %v1840_v33 = vadd.f32 %v1839_v18, %v3945_v45 }
 0x1c8   : > { %v1953_v25 = vpop.f32.mrf.mxu0  ;;  %v1952_v28 = vadd.f32 %v1951_v11, %v1914_v54 }
 0x1ca   : > { %v1971_v4 = vmax.f32 %v1952_v28, 0.0 }
 0x1cb   : > { %v1877_v34 = vpop.f32.mrf.mxu2 }
 0x1cc   : > { %v1982_v2 = vpack.c.bf16 %v1971_v4, %v1971_v4  ;;  %v1878_v19 = vadd.f32 %v1877_v34, %v1840_v33 }
 0x1cd   : > { %v1842_v17 = vpop.f32.mrf.mxu1  ;;  %v1925_v20 = vpop.f32.mrf.mxu3 }
 0x1ce   : > { %1994 = vst.msk [vmem:[%s3958_s14 + $0x18] sm:$0xf] %vm1987_vm1, %v1982_v2  ;;  %v1916_v41 = vadd.f32 %v1915_v57, %v1878_v19  ;;  %v1843_v23 = vadd.f32 %v1842_v17, %v3948_v56 }
 0x1d0   : > { %v1956_v37 = vpop.f32.mrf.mxu0  ;;  %v1954_v3 = vadd.f32 %v1953_v25, %v1916_v41 }
 0x1d2   : > { %v1972_v24 = vmax.f32 %v1954_v3, 0.0 }
 0x1d3   : > { %v1880_v32 = vpop.f32.mrf.mxu2 }
 0x1d4   : > { %v1983_v39 = vpack.c.bf16 %v1972_v24, %v1972_v24  ;;  %v1881_v21 = vadd.f32 %v1880_v32, %v1843_v23 }
 0x1d5   : > { %v1844_v40 = vpop.f32.mrf.mxu1 }
 0x1d6   : > { %1995 = vst.msk [vmem:[%s3958_s14 + $0x1c] sm:$0xf] %vm1987_vm1, %v1983_v39  ;;  %v1919_v45 = vadd.f32 %v1918_v61, %v1881_v21  ;;  %v1845_v38 = vadd.f32 %v1844_v40, %v3951_v46 }
 0x1d8   : > { %v1958_v16 = vpop.f32.mrf.mxu0  ;;  %v1957_v51 = vadd.f32 %v1956_v37, %v1919_v45 }
 0x1da   : > { %v1973_v42 = vmax.f32 %v1957_v51, 0.0 }
 0x1db   : > { %v1882_v43 = vpop.f32.mrf.mxu2 }
 0x1dc   : > { %v1984_v49 = vpack.c.bf16 %v1973_v42, %v1973_v42  ;;  %v1883_v44 = vadd.f32 %v1882_v43, %v1845_v38 }
 0x1dd   : > { %v1847_v29 = vpop.f32.mrf.mxu1 }
 0x1de   : > { %1996 = vst.msk [vmem:[%s3958_s14 + $0x20] sm:$0xf] %vm1987_vm1, %v1984_v49  ;;  %v1921_v56 = vadd.f32 %v1920_v13, %v1883_v44  ;;  %v1848_v12 = vadd.f32 %v1847_v29, %v3953_v6 }
 0x1e0   : > { %v1961_v48 = vpop.f32.mrf.mxu0  ;;  %v1959_v52 = vadd.f32 %v1958_v16, %v1921_v56 }
 0x1e2   : > { %v1974_v31 = vmax.f32 %v1959_v52, 0.0 }
 0x1e3   : > { %v1885_v57 = vpop.f32.mrf.mxu2 }
 0x1e4   : > { %v1985_v53 = vpack.c.bf16 %v1974_v31, %v1974_v31  ;;  %v1886_v55 = vadd.f32 %v1885_v57, %v1848_v12 }
 0x1e5   : > { %v1849_v58 = vpop.f32.mrf.mxu1 }
 0x1e6   : > { %1997 = vst.msk [vmem:[%s3958_s14 + $0x24] sm:$0xf] %vm1987_vm1, %v1985_v53  ;;  %v1924_v46 = vadd.f32 %v1923_v27, %v1886_v55 }
 0x1e8   : > { %v1963_v59 = vpop.f32.mrf.mxu0  ;;  %v1962_v0 = vadd.f32 %v1961_v48, %v1924_v46 }
 0x1ea   : > { %v1975_v30 = vmax.f32 %v1962_v0, 0.0  ;;  %2005 = sbr.rel (!%p3353_p4) target bundleno = 554 (0x22a), region = 36 }
 0x1eb   : > { %v1887_v22 = vpop.f32.mrf.mxu2 }
 0x1ec   : > { %v1986_v35 = vpack.c.bf16 %v1975_v30, %v1975_v30 }
 0x1ee   : > { %1998 = vst.msk [vmem:[%s3958_s14 + $0x28] sm:$0xf] %vm1987_vm1, %v1986_v35 }
 0x1ef   : > { %s4080_s12 = smov (!%p2008_p8, %s2007_s12), 11 }
 0x1f0   : > { %s2928_s23 = sshll.u32 %s4080_s12, 2 }
 0x1f1   : > { %p2931_p9 = scmp.eq.s32.totalorder %s2928_s23, 0 }
 0x1f2   : > { %3214 = sdivrem.u32 (!%p2931_p9), %s4080_s12, 11 }
 0x1f3   : > { %2016 = sbr.rel (%p2931_p9) target bundleno = 554 (0x22a), region = 40 }
 0x1fb   : > { %s4004_s20 = spop.drf %3214 }
 0x1fc   : > { %s3216_s24 = spop.drf %3214  ;;  %p2932_p10 = scmp.le.s32.totalorder %s4004_s20, 0 }
 0x1fd   : > { %s4072_s15 = smov (!%p2932_p10), %s3998_s22  ;;  %s4073_s4 = smov (!%p2932_p10), %s3958_s14 }
 0x1fe   : > { %2213 = sbr.rel (%p2932_p10) target bundleno = 528 (0x210), region = 112  ;;  %s4013_s25 = smov (!%p2932_p10), 0  }
 0x1ff   : > { %s4015_s26 = smov (!%p2932_p10), 0  }
 0x203 LB: >> { %v2034_v6 = vld [vmem:[%s3282_s4] sm:$0xf]  ;;  %v2036_v60 = vld [vmem:[%s3282_s4 + $0x4] sm:$0xf]  ;;  %v2038_v61 = vld [vmem:[%s3282_s4 + $0x8] sm:$0xf]  ;;  %s3290_s26 = sphi %s4015_s26, %s2028_s26   ;;  %s3286_s25 = sphi %s4013_s25, %s4075_s25   ;;  %s3282_s4 = sphi %s4073_s4, %s2061_s4   ;;  %s3278_s15 = sphi %s4072_s15, %s4074_s15  }
 0x204   : >> { %2035 = vst [vmem:[%s3278_s15] sm:$0xf] %v2034_v6  ;;  %v2040_v8 = vld [vmem:[%s3282_s4 + $0xc] sm:$0xf]  ;;  %s2056_s27 = sadd.s32 1, %s3286_s25  ;;  %v2042_v62 = vld [vmem:[%s3282_s4 + $0x10] sm:$0xf] }
 0x205   : >> { %2037 = vst [vmem:[%s3278_s15 + $0x4] sm:$0xf] %v2036_v60  ;;  %p2057_p11 = scmp.ge.s32.totalorder %s2056_s27, %s4004_s20  ;;  %v2044_v47 = vld [vmem:[%s3282_s4 + $0x14] sm:$0xf]  ;;  %v2046_v63 = vld [vmem:[%s3282_s4 + $0x18] sm:$0xf] }
 0x206   : >> { %2039 = vst [vmem:[%s3278_s15 + $0x8] sm:$0xf] %v2038_v61  ;;  %v2048_v36 = vld [vmem:[%s3282_s4 + $0x1c] sm:$0xf]  ;;  %v2050_v5 = vld [vmem:[%s3282_s4 + $0x20] sm:$0xf] }
 0x207   : >> { %2041 = vst [vmem:[%s3278_s15 + $0xc] sm:$0xf] %v2040_v8  ;;  %s4082_s27 = smov (%p2057_p11, %s2056_s27), 0  ;;  %v2052_v7 = vld [vmem:[%s3282_s4 + $0x24] sm:$0xf]  ;;  %s2028_s26 = sadd.s32 1, %s3290_s26  }
 0x208   : >> { %2043 = vst [vmem:[%s3278_s15 + $0x10] sm:$0xf] %v2042_v62  ;;  %s2059_s28 = smul.u32 44, %s4082_s27  ;;  %v2054_v14 = vld [vmem:[%s3282_s4 + $0x28] sm:$0xf]  ;;  %p2027_p12 = scmp.ge.s32.totalorder %s2028_s26, %s4004_s20 }
 0x209   : >> { %2045 = vst [vmem:[%s3278_s15 + $0x14] sm:$0xf] %v2044_v47  ;;  %s4075_s25 = smov %s4082_s27 }
 0x20a   : >> { %2047 = vst [vmem:[%s3278_s15 + $0x18] sm:$0xf] %v2046_v63  ;;  %s2061_s4 = scalar_lea.vmem %s3958_s14, %s2059_s28 [#allocation2]   ;;  %s2062_s29 = scalar_lea.vmem %s3998_s22, %s2059_s28  }
 0x20b   : >> { %2049 = vst [vmem:[%s3278_s15 + $0x1c] sm:$0xf] %v2048_v36  ;;  %2030 = sbr.rel (!%p2027_p12) target bundleno = 515 (0x203), region = 118 }
 0x20c   : >> { %2051 = vst [vmem:[%s3278_s15 + $0x20] sm:$0xf] %v2050_v5 }
 0x20d   : >> { %2053 = vst [vmem:[%s3278_s15 + $0x24] sm:$0xf] %v2052_v7 }
 0x20e   : >> { %2055 = vst [vmem:[%s3278_s15 + $0x28] sm:$0xf] %v2054_v14  ;;  %s4074_s15 = smov %s2062_s29 }
 0x210 PF: > { %3217 = sdivrem.u32 %s4080_s12, 11 }
 0x211   : > { %s2933_s30 = smul.u32 44, %s4004_s20 }
 0x213   : > { %s4052_s6 = scalar_lea.vmem %s3958_s14, %s2933_s30 [#allocation2]   ;;  %s2069_s7 = scalar_lea.vmem %s3998_s22, %s2933_s30  }
 0x219   : > { %s3218_s8 = spop.drf %3217 }
 0x21a   : > { %s3219_s9 = spop.drf %3217 }
 0x21b   : > { %p2935_p13 = scmp.le.s32.totalorder %s3219_s9, 0 }
 0x21c   : > { %s3292_s10 = smov (!%p2935_p13), %s2069_s7   ;;  %s3296_s5 = smov (!%p2935_p13), %s4052_s6  }
 0x21d   : > { %2227 = sbr.rel (%p2935_p13) target bundleno = 554 (0x22a), region = 123  ;;  %s3300_s11 = smov (!%p2935_p13), 0  }
 0x21e   : > { %s3304_s17 = smov (!%p2935_p13), 0  }
 0x222 LB: >> { %v2079_v11 = vld [vmem:[%s3298_s5] sm:$0xf]  ;;  %s2081_s14 = sadd.s32 1, %s3302_s11  ;;  %s2073_s17 = sadd.s32 1, %s3306_s17   ;;  %s3306_s17 = sphi %s3304_s17, %s2073_s17   ;;  %s3302_s11 = sphi %s3300_s11, %s3301_s11   ;;  %s3298_s5 = sphi %s3296_s5, %s2086_s5   ;;  %s3294_s10 = sphi %s3292_s10, %s2087_s10  }
 0x223   : >> { %2080 = vst [vmem:[%s3294_s10] sm:$0xf] %v2079_v11  ;;  %p2082_p0 = scmp.ge.s32.totalorder %s2081_s14, %s3219_s9  ;;  %p2072_p1 = scmp.ge.s32.totalorder %s2073_s17, %s3219_s9 }
 0x225   : >> { %s4084_s14 = smov (%p2082_p0, %s2081_s14), 0  ;;  %2075 = sbr.rel (!%p2072_p1) target bundleno = 546 (0x222), region = 129 }
 0x226   : >> { %s2936_s12 = sshll.u32 %s4084_s14, 2  ;;  %s3301_s11 = smov %s4084_s14  }
 0x227   : >> { %s2086_s5 = scalar_lea.vmem %s4052_s6, %s2936_s12 [#allocation2]   ;;  %s2087_s10 = scalar_lea.vmem %s2069_s7, %s2936_s12  }
 0x22a PF: > { %p10_p2 = scmp.ge.s32.totalorder %s3343_s16, 4   ;;  %s4076_s12 = smov %s3270_s13 }
 0x22b   : > { %s4077_s13 = smov %s3351_s19  ;;  %s4078_s14 = smov %s3343_s16 }
 0x22c   :  { %12 = sbr.rel (!%p10_p2) target bundleno = 2 (0x2), region = 140 }

// kernel: cnn_mycifar10_forward.8
= control target key start
LH: loop header
LB: loop body
LE: loop exit
PB: predicated region body
PF: predicated region fallthrough
CT: control target
= control target key end

     0   :  { %s351_s6 = smov 0   ;;  %s416_s0 = inlined_call_operand.vmem [shape: bf16[2,9,9,64], index: 0, kind: input, shape index: {}]   ;;  %s417_s1 = inlined_call_operand.vmem [shape: bf16[2,4,4,64], index: 1, kind: output, shape index: {}]  }
   0x1 LB: > { %s288_s7 = sadd.s32 4294967295, %s339_s6   ;;  %p292_p0 = scmp.ge.s32.totalorder %s339_s6, 1  ;;  %s339_s6 = sphi %s351_s6, %s11_s6  }
   0x2   : > { %p87_p1 = scmp.lt.s32.totalorder %s339_s6, 3 }
   0x4   : > { %p88_p2 = pnand %p292_p0, %p87_p1 }
   0x5   : > { %p107_p3 = scmp.lt.s32.totalorder (!%p88_p2), %s288_s7, 1 }
   0x6   : > { %91 = sbr.rel (%p88_p2) target bundleno = 64 (0x40), region = 24 }
   0xb   : > { %s419_s7 = smov (!%p107_p3, %s288_s7), 1  ;;  %vm135_vm0 = vcmask 523264   ;;  %vm137_vm1 = vcmask 516096   ;;  %vm147_vm2 = vcmask 517120  }
   0xc   : > { %s324_s8 = smul.u32 72, %s419_s7  ;;  %s323_s12 = sshll.u32 %s419_s7, 3 }
   0xd   : > { %s393_s15 = scalar_lea.vmem %s417_s1, %s323_s12 }
   0xe   : > { %s365_s11 = scalar_lea.vmem %s416_s0, %s324_s8 }
   0xf   : > { %v117_v0 = vld [vmem:[%s365_s11] sm:$0xf]  ;;  %v296_v1 = vld [vmem:[%s365_s11 + $0x8] sm:$0xf]  ;;  %v298_v2 = vld [vmem:[%s365_s11 + $0x10] sm:$0xf] }
  0x10   : > { %v119_v3 = vunpack.c.l.bf16 %v117_v0  ;;  %v124_v4 = vunpack.c.l.bf16 %v296_v1  ;;  %v131_v5 = vunpack.c.l.bf16 %v298_v2  ;;  %v118_v6 = vld [vmem:[%s365_s11 + $0x4] sm:$0x1]  ;;  %v297_v7 = vld [vmem:[%s365_s11 + $0xc] sm:$0x1]  ;;  %v299_v8 = vld [vmem:[%s365_s11 + $0x14] sm:$0x1] }
  0x11   : > { %v120_v9 = vunpack.c.l.bf16 %v118_v6  ;;  %v125_v10 = vunpack.c.l.bf16 %v297_v7  ;;  %v132_v11 = vunpack.c.l.bf16 %v299_v8  ;;  %v300_v12 = vld [vmem:[%s365_s11 + $0x10] sm:$0xf]  ;;  %v302_v13 = vld [vmem:[%s365_s11 + $0x18] sm:$0xf]  ;;  %v301_v15 = vld [vmem:[%s365_s11 + $0x14] sm:$0x1] }
  0x12   : > { %v126_v14 = vmax.f32 %v119_v3, %v124_v4  ;;  %v303_v16 = vld [vmem:[%s365_s11 + $0x1c] sm:$0x1]  ;;  %v151_v18 = vunpack.c.l.bf16 %v300_v12  ;;  %v156_v19 = vunpack.c.l.bf16 %v302_v13  ;;  %v304_v21 = vld [vmem:[%s365_s11 + $0x20] sm:$0xf]  ;;  %v152_v22 = vunpack.c.l.bf16 %v301_v15  ;;  %v305_v25 = vld [vmem:[%s365_s11 + $0x24] sm:$0x1] }
  0x13   : > { %v127_v17 = vmax.f32 %v120_v9, %v125_v10  ;;  %v157_v23 = vunpack.c.l.bf16 %v303_v16  ;;  %v163_v27 = vunpack.c.l.bf16 %v304_v21  ;;  %v164_v29 = vunpack.c.l.bf16 %v305_v25  ;;  %v307_v30 = vld [vmem:[%s365_s11 + $0x20] sm:$0xf]  ;;  %v309_v31 = vld [vmem:[%s365_s11 + $0x28] sm:$0xf]  ;;  %v308_v32 = vld [vmem:[%s365_s11 + $0x24] sm:$0x1] }
  0x14   : > { %v133_v20 = vmax.f32 %v126_v14, %v131_v5  ;;  %v158_v26 = vmax.f32 %v151_v18, %v156_v19  ;;  %v310_v33 = vld [vmem:[%s365_s11 + $0x2c] sm:$0x1]  ;;  %v179_v36 = vunpack.c.l.bf16 %v307_v30  ;;  %v184_v37 = vunpack.c.l.bf16 %v309_v31  ;;  %v311_v38 = vld [vmem:[%s365_s11 + $0x30] sm:$0xf]  ;;  %v312_v45 = vld [vmem:[%s365_s11 + $0x34] sm:$0x1] }
  0x15   : > { %v134_v24 = vmax.f32 %v127_v17, %v132_v11  ;;  %v159_v28 = vmax.f32 %v152_v22, %v157_v23  ;;  %v180_v41 = vunpack.c.l.bf16 %v308_v32  ;;  %v185_v42 = vunpack.c.l.bf16 %v310_v33  ;;  %v314_v52 = vld [vmem:[%s365_s11 + $0x30] sm:$0xf]  ;;  %v316_v53 = vld [vmem:[%s365_s11 + $0x38] sm:$0xf]  ;;  %v315_v54 = vld [vmem:[%s365_s11 + $0x34] sm:$0x1] }
  0x16   : > { %136 = vst.msk [vmem:[#allocation2] sm:$0xff] %vm135_vm0, %v133_v20  ;;  %v165_v34 = vmax.f32 %v158_v26, %v163_v27  ;;  %v186_v47 = vmax.f32 %v179_v36, %v184_v37  ;;  %v191_v48 = vunpack.c.l.bf16 %v311_v38  ;;  %v192_v50 = vunpack.c.l.bf16 %v312_v45  ;;  %v317_v55 = vld [vmem:[%s365_s11 + $0x3c] sm:$0x1]  ;;  %v318_v60 = vld [vmem:[%s365_s11 + $0x40] sm:$0xf] }
  0x17   : > { %138 = vst.msk [vmem:[#allocation2 + $0x8] sm:$0x1] %vm137_vm1, %v134_v24  ;;  %v166_v35 = vmax.f32 %v159_v28, %v164_v29  ;;  %v187_v49 = vmax.f32 %v180_v41, %v185_v42  ;;  %v207_v58 = vunpack.c.l.bf16 %v314_v52  ;;  %v212_v59 = vunpack.c.l.bf16 %v316_v53  ;;  %v319_v3 = vld [vmem:[%s365_s11 + $0x44] sm:$0x1] }
  0x18   : > { %v193_v56 = vmax.f32 %v186_v47, %v191_v48  ;;  %v208_v63 = vunpack.c.l.bf16 %v315_v54  ;;  %v213_v0 = vunpack.c.l.bf16 %v317_v55  ;;  %v219_v6 = vunpack.c.l.bf16 %v318_v60 }
  0x19   : > { %v194_v57 = vmax.f32 %v187_v49, %v192_v50  ;;  %v214_v5 = vmax.f32 %v207_v58, %v212_v59  ;;  %v220_v8 = vunpack.c.l.bf16 %v319_v3 }
  0x1a   : > { %v215_v7 = vmax.f32 %v208_v63, %v213_v0 }
  0x1b   : > { %v221_v10 = vmax.f32 %v214_v5, %v219_v6 }
  0x1c   : > { %v222_v11 = vmax.f32 %v215_v7, %v220_v8 }
  0x1d   : > { %v139_v39 = vld [vmem:[#allocation2] ss:$2 sm:$0xf]  ;;  %v141_v40 = vld [vmem:[#allocation2 + $0x1] ss:$2 sm:$0xf] }
  0x1e   : > { %v144_v43 = vld [vmem:[#allocation2 + $0x2] ss:$2 sm:$0xf]  ;;  %v142_v44 = vmax.f32 %v139_v39, %v141_v40 }
  0x1f   : > { %167 = vst.msk [vmem:[#allocation2] sm:$0xff] %vm135_vm0, %v165_v34 }
  0x20   : > { %168 = vst.msk [vmem:[#allocation2 + $0x8] sm:$0x1] %vm137_vm1, %v166_v35  ;;  %v145_v46 = vmax.f32 %v142_v44, %v144_v43 }
  0x22   : > { %v146_v51 = vpack.c.bf16 %v145_v46, %v145_v46 }
  0x24   : > { %148 = vst.msk [vmem:[%s393_s15] sm:$0x3] %vm147_vm2, %v146_v51 }
  0x26   : > { %v169_v61 = vld [vmem:[#allocation2] ss:$2 sm:$0xf]  ;;  %v170_v62 = vld [vmem:[#allocation2 + $0x1] ss:$2 sm:$0xf] }
  0x27   : > { %v172_v1 = vld [vmem:[#allocation2 + $0x2] ss:$2 sm:$0xf]  ;;  %v171_v2 = vmax.f32 %v169_v61, %v170_v62 }
  0x28   : > { %195 = vst.msk [vmem:[#allocation2] sm:$0xff] %vm135_vm0, %v193_v56 }
  0x29   : > { %196 = vst.msk [vmem:[#allocation2 + $0x8] sm:$0x1] %vm137_vm1, %v194_v57  ;;  %v173_v4 = vmax.f32 %v171_v2, %v172_v1 }
  0x2b   : > { %v174_v9 = vpack.c.bf16 %v173_v4, %v173_v4 }
  0x2d   : > { %306 = vst.msk [vmem:[%s393_s15 + $0x2] sm:$0x3] %vm147_vm2, %v174_v9 }
  0x2f   : > { %v197_v12 = vld [vmem:[#allocation2] ss:$2 sm:$0xf]  ;;  %v198_v13 = vld [vmem:[#allocation2 + $0x1] ss:$2 sm:$0xf] }
  0x30   : > { %v200_v14 = vld [vmem:[#allocation2 + $0x2] ss:$2 sm:$0xf]  ;;  %v199_v15 = vmax.f32 %v197_v12, %v198_v13 }
  0x31   : > { %223 = vst.msk [vmem:[#allocation2] sm:$0xff] %vm135_vm0, %v221_v10 }
  0x32   : > { %224 = vst.msk [vmem:[#allocation2 + $0x8] sm:$0x1] %vm137_vm1, %v222_v11  ;;  %v201_v16 = vmax.f32 %v199_v15, %v200_v14 }
  0x34   : > { %v202_v17 = vpack.c.bf16 %v201_v16, %v201_v16 }
  0x36   : > { %313 = vst.msk [vmem:[%s393_s15 + $0x4] sm:$0x3] %vm147_vm2, %v202_v17 }
  0x38   : > { %v225_v18 = vld [vmem:[#allocation2] ss:$2 sm:$0xf]  ;;  %v226_v19 = vld [vmem:[#allocation2 + $0x1] ss:$2 sm:$0xf] }
  0x39   : > { %v227_v20 = vmax.f32 %v225_v18, %v226_v19  ;;  %v228_v21 = vld [vmem:[#allocation2 + $0x2] ss:$2 sm:$0xf] }
  0x3b   : > { %v229_v22 = vmax.f32 %v227_v20, %v228_v21 }
  0x3d   : > { %v230_v23 = vpack.c.bf16 %v229_v22, %v229_v22 }
  0x3f   : > { %320 = vst.msk [vmem:[%s393_s15 + $0x6] sm:$0x3] %vm147_vm2, %v230_v23 }
  0x40 PF: > { %s11_s6 = sadd.s32 1, %s339_s6  }
  0x41   : > { %p8_p4 = scmp.ge.s32.totalorder %s11_s6, 4  }
  0x43   :  { %10 = sbr.rel (!%p8_p4) target bundleno = 1 (0x1), region = 67 }

// kernel: cnn_mycifar10_forward.9
= control target key start
LH: loop header
LB: loop body
LE: loop exit
PB: predicated region body
PF: predicated region fallthrough
CT: control target
= control target key end

     0   :  { %s5043_s0 = inlined_call_operand.vmem [shape: bf16[2,1024], index: 0, kind: input, shape index: {}]   ;;  %s5044_s1 = inlined_call_operand.vmem [shape: bf16[1024,384], index: 1, kind: input, shape index: {}]   ;;  %s5045_s2 = inlined_call_operand.vmem [shape: f32[1,384], index: 2, kind: input, shape index: {}]   ;;  %s5046_s3 = inlined_call_operand.vmem [shape: bf16[384,192], index: 3, kind: input, shape index: {}]   ;;  %s5047_s4 = inlined_call_operand.vmem [shape: f32[1,192], index: 4, kind: input, shape index: {}]   ;;  %s5048_s5 = inlined_call_operand.vmem [shape: bf16[192,10], index: 5, kind: input, shape index: {}]   ;;  %s5049_s6 = inlined_call_operand.vmem [shape: f32[1,10], index: 6, kind: input, shape index: {}]   ;;  %s5050_s7 = inlined_call_operand.hbm [shape: f32[2,10], index: 7, kind: output, shape index: {}]  }
   0x1   :  { %v2263_v0 = vld [vmem:[%s5044_s1 + $0xa8] sm:$0xf]  ;;  %v3208_v1 = vld [vmem:[%s5044_s1 + $0xb0] sm:$0xf0]  ;;  %v2251_v11 = vld [vmem:[%s5044_s1 + $0x90] sm:$0xf] }
   0x2   :  { %v2359_v2 = vld [vmem:[%s5044_s1 + $0x168] sm:$0xf]  ;;  %v2264_v3 = vor.u32 %v3208_v1, %v2263_v0  ;;  %v3232_v4 = vld [vmem:[%s5044_s1 + $0x170] sm:$0xf0]  ;;  %v3205_v13 = vld [vmem:[%s5044_s1 + $0x98] sm:$0xf0] }
   0x3   :  { %v2455_v5 = vld [vmem:[%s5044_s1 + $0x228] sm:$0xf]  ;;  %v3256_v6 = vld [vmem:[%s5044_s1 + $0x230] sm:$0xf0]  ;;  %v2360_v7 = vor.u32 %v3232_v4, %v2359_v2  ;;  %v2347_v14 = vld [vmem:[%s5044_s1 + $0x150] sm:$0xf]  ;;  %v2252_v16 = vor.u32 %v3205_v13, %v2251_v11 }
   0x4   :  { %v2456_v8 = vor.u32 %v3256_v6, %v2455_v5  ;;  %v2551_v9 = vld [vmem:[%s5044_s1 + $0x2e8] sm:$0xf]  ;;  %v3280_v10 = vld [vmem:[%s5044_s1 + $0x2f0] sm:$0xf0]  ;;  %1335 = vmatpush.bf16.msra.mxu0 %v2264_v3  ;;  %v3229_v15 = vld [vmem:[%s5044_s1 + $0x158] sm:$0xf0] }
   0x5   :  { %v2552_v12 = vor.u32 %v3280_v10, %v2551_v9  ;;  %1348 = vmatpush.bf16.msra.mxu1 %v2360_v7  ;;  %v2348_v17 = vor.u32 %v3229_v15, %v2347_v14  ;;  %v2443_v18 = vld [vmem:[%s5044_s1 + $0x210] sm:$0xf]  ;;  %v3253_v19 = vld [vmem:[%s5044_s1 + $0x218] sm:$0xf0]  ;;  %v2239_v23 = vld [vmem:[%s5044_s1 + $0x78] sm:$0xf] }
   0x6   :  { %1361 = vmatpush.bf16.msra.mxu2 %v2456_v8  ;;  %v2539_v20 = vld [vmem:[%s5044_s1 + $0x2d0] sm:$0xf]  ;;  %v2444_v21 = vor.u32 %v3253_v19, %v2443_v18  ;;  %v3277_v22 = vld [vmem:[%s5044_s1 + $0x2d8] sm:$0xf0]  ;;  %v3202_v24 = vld [vmem:[%s5044_s1 + $0x80] sm:$0xf0] }
   0x7   :  { %1374 = vmatpush.bf16.msra.mxu3 %v2552_v12  ;;  %v2540_v25 = vor.u32 %v3277_v22, %v2539_v20  ;;  %v2335_v26 = vld [vmem:[%s5044_s1 + $0x138] sm:$0xf]  ;;  %v3226_v27 = vld [vmem:[%s5044_s1 + $0x140] sm:$0xf0]  ;;  %v2240_v29 = vor.u32 %v3202_v24, %v2239_v23  ;;  %v2227_v35 = vld [vmem:[%s5044_s1 + $0x60] sm:$0xf] }
   0x8   :  { %v2431_v28 = vld [vmem:[%s5044_s1 + $0x1f8] sm:$0xf]  ;;  %1336 = vmatpush.bf16.msra.mxu0 %v2252_v16  ;;  %v3250_v30 = vld [vmem:[%s5044_s1 + $0x200] sm:$0xf0]  ;;  %v2336_v33 = vor.u32 %v3226_v27, %v2335_v26  ;;  %v3199_v36 = vld [vmem:[%s5044_s1 + $0x68] sm:$0xf0] }
   0x9   :  { %v2527_v31 = vld [vmem:[%s5044_s1 + $0x2b8] sm:$0xf]  ;;  %v3274_v32 = vld [vmem:[%s5044_s1 + $0x2c0] sm:$0xf0]  ;;  %1349 = vmatpush.bf16.msra.mxu1 %v2348_v17  ;;  %v2432_v34 = vor.u32 %v3250_v30, %v2431_v28  ;;  %v2323_v37 = vld [vmem:[%s5044_s1 + $0x120] sm:$0xf]  ;;  %v2228_v44 = vor.u32 %v3199_v36, %v2227_v35 }
   0xa   :  { %1362 = vmatpush.bf16.msra.mxu2 %v2444_v21  ;;  %v2528_v38 = vor.u32 %v3274_v32, %v2527_v31  ;;  %v3223_v39 = vld [vmem:[%s5044_s1 + $0x128] sm:$0xf0]  ;;  %v2419_v40 = vld [vmem:[%s5044_s1 + $0x1e0] sm:$0xf]  ;;  %v2215_v47 = vld [vmem:[%s5044_s1 + $0x48] sm:$0xf] }
   0xb   :  { %1375 = vmatpush.bf16.msra.mxu3 %v2540_v25  ;;  %v3247_v41 = vld [vmem:[%s5044_s1 + $0x1e8] sm:$0xf0]  ;;  %v2515_v42 = vld [vmem:[%s5044_s1 + $0x2a0] sm:$0xf]  ;;  %v2324_v45 = vor.u32 %v3223_v39, %v2323_v37  ;;  %v3196_v48 = vld [vmem:[%s5044_s1 + $0x50] sm:$0xf0] }
   0xc   :  { %v3271_v43 = vld [vmem:[%s5044_s1 + $0x2a8] sm:$0xf0]  ;;  %1337 = vmatpush.bf16.msra.mxu0 %v2240_v29  ;;  %v2420_v46 = vor.u32 %v3247_v41, %v2419_v40  ;;  %v2311_v49 = vld [vmem:[%s5044_s1 + $0x108] sm:$0xf]  ;;  %v3220_v51 = vld [vmem:[%s5044_s1 + $0x110] sm:$0xf0]  ;;  %v2216_v56 = vor.u32 %v3196_v48, %v2215_v47 }
   0xd   :  { %1350 = vmatpush.bf16.msra.mxu1 %v2336_v33  ;;  %v2516_v50 = vor.u32 %v3271_v43, %v2515_v42  ;;  %v2407_v52 = vld [vmem:[%s5044_s1 + $0x1c8] sm:$0xf]  ;;  %v3244_v53 = vld [vmem:[%s5044_s1 + $0x1d0] sm:$0xf0]  ;;  %v2312_v57 = vor.u32 %v3220_v51, %v2311_v49  ;;  %v2203_v59 = vld [vmem:[%s5044_s1 + $0x30] sm:$0xf] }
   0xe   :  { %1363 = vmatpush.bf16.msra.mxu2 %v2432_v34  ;;  %v2503_v54 = vld [vmem:[%s5044_s1 + $0x288] sm:$0xf]  ;;  %v3268_v55 = vld [vmem:[%s5044_s1 + $0x290] sm:$0xf0]  ;;  %v2408_v58 = vor.u32 %v3244_v53, %v2407_v52  ;;  %v3193_v60 = vld [vmem:[%s5044_s1 + $0x38] sm:$0xf0] }
   0xf   :  { %1376 = vmatpush.bf16.msra.mxu3 %v2528_v38  ;;  %v2299_v61 = vld [vmem:[%s5044_s1 + $0xf0] sm:$0xf]  ;;  %v2504_v62 = vor.u32 %v3268_v55, %v2503_v54  ;;  %v3217_v63 = vld [vmem:[%s5044_s1 + $0xf8] sm:$0xf0]  ;;  %v2204_v4 = vor.u32 %v3193_v60, %v2203_v59  ;;  %v2191_v7 = vld [vmem:[%s5044_s1 + $0x18] sm:$0xf] }
  0x10   :  { %1338 = vmatpush.bf16.msra.mxu0 %v2228_v44  ;;  %v2395_v0 = vld [vmem:[%s5044_s1 + $0x1b0] sm:$0xf]  ;;  %v3241_v1 = vld [vmem:[%s5044_s1 + $0x1b8] sm:$0xf0]  ;;  %v2300_v5 = vor.u32 %v3217_v63, %v2299_v61  ;;  %v3190_v8 = vld [vmem:[%s5044_s1 + $0x20] sm:$0xf0] }
  0x11   :  { %1351 = vmatpush.bf16.msra.mxu1 %v2324_v45  ;;  %v2491_v2 = vld [vmem:[%s5044_s1 + $0x270] sm:$0xf]  ;;  %v3265_v3 = vld [vmem:[%s5044_s1 + $0x278] sm:$0xf0]  ;;  %v2396_v6 = vor.u32 %v3241_v1, %v2395_v0  ;;  %v2287_v9 = vld [vmem:[%s5044_s1 + $0xd8] sm:$0xf]  ;;  %v2192_v16 = vor.u32 %v3190_v8, %v2191_v7 }
  0x12   :  { %1364 = vmatpush.bf16.msra.mxu2 %v2420_v46  ;;  %v2492_v10 = vor.u32 %v3265_v3, %v2491_v2  ;;  %v3214_v11 = vld [vmem:[%s5044_s1 + $0xe0] sm:$0xf0]  ;;  %v2383_v12 = vld [vmem:[%s5044_s1 + $0x198] sm:$0xf]  ;;  %v2179_v17 = vld [vmem:[%s5044_s1] sm:$0xf] }
  0x13   :  { %1377 = vmatpush.bf16.msra.mxu3 %v2516_v50  ;;  %v3238_v13 = vld [vmem:[%s5044_s1 + $0x1a0] sm:$0xf0]  ;;  %v2479_v14 = vld [vmem:[%s5044_s1 + $0x258] sm:$0xf]  ;;  %v3187_v18 = vld [vmem:[%s5044_s1 + $0x8] sm:$0xf0]  ;;  %v2288_v19 = vor.u32 %v3214_v11, %v2287_v9 }
  0x14   :  { %1339 = vmatpush.bf16.msra.mxu0 %v2216_v56  ;;  %v3262_v15 = vld [vmem:[%s5044_s1 + $0x260] sm:$0xf0]  ;;  %v2384_v20 = vor.u32 %v3238_v13, %v2383_v12  ;;  %v2275_v21 = vld [vmem:[%s5044_s1 + $0xc0] sm:$0xf]  ;;  %v3211_v22 = vld [vmem:[%s5044_s1 + $0xc8] sm:$0xf0]  ;;  %v2180_v31 = vor.u32 %v3187_v18, %v2179_v17 }
  0x15   :  { %1352 = vmatpush.bf16.msra.mxu1 %v2312_v57  ;;  %v2371_v23 = vld [vmem:[%s5044_s1 + $0x180] sm:$0xf]  ;;  %v2480_v24 = vor.u32 %v3262_v15, %v2479_v14  ;;  %v3235_v25 = vld [vmem:[%s5044_s1 + $0x188] sm:$0xf0]  ;;  %v2647_v28 = vld [vmem:[%s5044_s1 + $0x3a8] sm:$0xf]  ;;  %v2276_v35 = vor.u32 %v3211_v22, %v2275_v21 }
  0x16   :  { %1365 = vmatpush.bf16.msra.mxu2 %v2408_v58  ;;  %v2467_v26 = vld [vmem:[%s5044_s1 + $0x240] sm:$0xf]  ;;  %v3259_v27 = vld [vmem:[%s5044_s1 + $0x248] sm:$0xf0]  ;;  %v3304_v29 = vld [vmem:[%s5044_s1 + $0x3b0] sm:$0xf0]  ;;  %v2372_v36 = vor.u32 %v3235_v25, %v2371_v23 }
  0x17   :  { %1378 = vmatpush.bf16.msra.mxu3 %v2504_v62  ;;  %v2743_v30 = vld [vmem:[%s5044_s1 + $0x468] sm:$0xf]  ;;  %v3328_v32 = vld [vmem:[%s5044_s1 + $0x470] sm:$0xf0]  ;;  %v2468_v39 = vor.u32 %v3259_v27, %v2467_v26  ;;  %v2648_v40 = vor.u32 %v3304_v29, %v2647_v28  ;;  %v2635_v43 = vld [vmem:[%s5044_s1 + $0x390] sm:$0xf] }
  0x18   :  { %1340 = vmatpush.bf16.msra.mxu0 %v2204_v4  ;;  %v2839_v33 = vld [vmem:[%s5044_s1 + $0x528] sm:$0xf]  ;;  %v3352_v34 = vld [vmem:[%s5044_s1 + $0x530] sm:$0xf0]  ;;  %v2744_v41 = vor.u32 %v3328_v32, %v2743_v30  ;;  %v3301_v44 = vld [vmem:[%s5044_s1 + $0x398] sm:$0xf0] }
  0x19   :  { %1353 = vmatpush.bf16.msra.mxu1 %v2300_v5  ;;  %v2935_v37 = vld [vmem:[%s5044_s1 + $0x5e8] sm:$0xf]  ;;  %v3376_v38 = vld [vmem:[%s5044_s1 + $0x5f0] sm:$0xf0]  ;;  %v2840_v42 = vor.u32 %v3352_v34, %v2839_v33  ;;  %v2731_v45 = vld [vmem:[%s5044_s1 + $0x450] sm:$0xf]  ;;  %v2636_v52 = vor.u32 %v3301_v44, %v2635_v43 }
  0x1a   :  { %1366 = vmatpush.bf16.msra.mxu2 %v2396_v6  ;;  %v2936_v46 = vor.u32 %v3376_v38, %v2935_v37  ;;  %v3325_v47 = vld [vmem:[%s5044_s1 + $0x458] sm:$0xf0]  ;;  %v2827_v48 = vld [vmem:[%s5044_s1 + $0x510] sm:$0xf]  ;;  %v2623_v53 = vld [vmem:[%s5044_s1 + $0x378] sm:$0xf] }
  0x1b   :  { %1379 = vmatpush.bf16.msra.mxu3 %v2492_v10  ;;  %v3349_v49 = vld [vmem:[%s5044_s1 + $0x518] sm:$0xf0]  ;;  %v2923_v50 = vld [vmem:[%s5044_s1 + $0x5d0] sm:$0xf]  ;;  %v3298_v54 = vld [vmem:[%s5044_s1 + $0x380] sm:$0xf0]  ;;  %v2732_v55 = vor.u32 %v3325_v47, %v2731_v45 }
  0x1c   :  { %1341 = vmatpush.bf16.msra.mxu0 %v2192_v16  ;;  %v3373_v51 = vld [vmem:[%s5044_s1 + $0x5d8] sm:$0xf0]  ;;  %v2828_v56 = vor.u32 %v3349_v49, %v2827_v48  ;;  %v2719_v57 = vld [vmem:[%s5044_s1 + $0x438] sm:$0xf]  ;;  %v3322_v58 = vld [vmem:[%s5044_s1 + $0x440] sm:$0xf0]  ;;  %v2624_v1 = vor.u32 %v3298_v54, %v2623_v53 }
  0x1d   :  { %1354 = vmatpush.bf16.msra.mxu1 %v2288_v19  ;;  %v28_v59 = vld [vmem:[%s5043_s0] sm:$0xff]  ;;  %v2924_v60 = vor.u32 %v3373_v51, %v2923_v50  ;;  %v2815_v61 = vld [vmem:[%s5044_s1 + $0x4f8] sm:$0xf]  ;;  %v2720_v2 = vor.u32 %v3322_v58, %v2719_v57  ;;  %v3295_v5 = vld [vmem:[%s5044_s1 + $0x368] sm:$0xf0] }
  0x1e   :  { %1367 = vmatpush.bf16.msra.mxu2 %v2384_v20  ;;  %v3346_v62 = vld [vmem:[%s5044_s1 + $0x500] sm:$0xf0]  ;;  %294 = vst [vmem:[#allocation1] ss:$9 sm:$0xff] %v28_v59  ;;  %v2911_v63 = vld [vmem:[%s5044_s1 + $0x5b8] sm:$0xf] }
  0x1f   :  { %1380 = vmatpush.bf16.msra.mxu3 %v2480_v24  ;;  %v3370_v0 = vld [vmem:[%s5044_s1 + $0x5c0] sm:$0xf0]  ;;  %v2816_v3 = vor.u32 %v3346_v62, %v2815_v61  ;;  %v2611_v4 = vld [vmem:[%s5044_s1 + $0x360] sm:$0xf]  ;;  %v3319_v8 = vld [vmem:[%s5044_s1 + $0x428] sm:$0xf0] }
  0x20   :  { %1342 = vmatpush.bf16.msra.mxu0 %v2180_v31  ;;  %v2707_v6 = vld [vmem:[%s5044_s1 + $0x420] sm:$0xf]  ;;  %v2912_v7 = vor.u32 %v3370_v0, %v2911_v63  ;;  %v3343_v10 = vld [vmem:[%s5044_s1 + $0x4e8] sm:$0xf0]  ;;  %v2599_v13 = vld [vmem:[%s5044_s1 + $0x348] sm:$0xf]  ;;  %v2612_v14 = vor.u32 %v3295_v5, %v2611_v4 }
  0x21   :  { %1355 = vmatpush.bf16.msra.mxu1 %v2276_v35  ;;  %v2803_v9 = vld [vmem:[%s5044_s1 + $0x4e0] sm:$0xf]  ;;  %v3367_v12 = vld [vmem:[%s5044_s1 + $0x5a8] sm:$0xf0]  ;;  %v3292_v15 = vld [vmem:[%s5044_s1 + $0x350] sm:$0xf0]  ;;  %v2708_v18 = vor.u32 %v3319_v8, %v2707_v6 }
  0x22   :  { %1368 = vmatpush.bf16.msra.mxu2 %v2372_v36  ;;  %v2899_v11 = vld [vmem:[%s5044_s1 + $0x5a0] sm:$0xf]  ;;  %v2695_v16 = vld [vmem:[%s5044_s1 + $0x408] sm:$0xf]  ;;  %v3316_v17 = vld [vmem:[%s5044_s1 + $0x410] sm:$0xf0]  ;;  %v2804_v19 = vor.u32 %v3343_v10, %v2803_v9  ;;  %v2600_v29 = vor.u32 %v3292_v15, %v2599_v13 }
  0x23   :  { %1381 = vmatpush.bf16.msra.mxu3 %v2468_v39  ;;  %v2900_v23 = vor.u32 %v3367_v12, %v2899_v11  ;;  %v2791_v24 = vld [vmem:[%s5044_s1 + $0x4c8] sm:$0xf]  ;;  %v3340_v25 = vld [vmem:[%s5044_s1 + $0x4d0] sm:$0xf0]  ;;  %v2696_v30 = vor.u32 %v3316_v17, %v2695_v16  ;;  %v2587_v32 = vld [vmem:[%s5044_s1 + $0x330] sm:$0xf] }
  0x24   :  { %1387 = vmatpush.bf16.msrb.mxu0 %v2648_v40  ;;  %v2887_v27 = vld [vmem:[%s5044_s1 + $0x588] sm:$0xf]  ;;  %v3364_v28 = vld [vmem:[%s5044_s1 + $0x590] sm:$0xf0]  ;;  %v2792_v31 = vor.u32 %v3340_v25, %v2791_v24  ;;  %v3289_v33 = vld [vmem:[%s5044_s1 + $0x338] sm:$0xf0] }
  0x25   :  { %1400 = vmatpush.bf16.msrb.mxu1 %v2744_v41  ;;  %v3816_v20 = vld [vmem:[#allocation1 + $0x12] sm:$0xff]  ;;  %v3818_v21 = vld [vmem:[#allocation1] sm:$0xff]  ;;  %v3829_v26 = vld [vmem:[#allocation1 + $0x9] sm:$0xff]  ;;  %v2888_v35 = vor.u32 %v3364_v28, %v2887_v27  ;;  %v2588_v41 = vor.u32 %v3289_v33, %v2587_v32 }
  0x26   :  { %1413 = vmatpush.bf16.msrb.mxu2 %v2840_v42  ;;  %v3820_v22 = vld [vmem:[#allocation1 + $0x1b] sm:$0xff]  ;;  %1343 = vmatmul.bf16.vlgmr.msra.gmra.mxu0 %v3818_v21  ;;  %v2683_v34 = vld [vmem:[%s5044_s1 + $0x3f0] sm:$0xf]  ;;  %v3286_v45 = vld [vmem:[%s5044_s1 + $0x320] sm:$0xf0] }
  0x27   :  { %1426 = vmatpush.bf16.msrb.mxu3 %v2936_v46  ;;  %1369 = vmatmul.bf16.vlgmr.msra.gmra.mxu2 %v3816_v20  ;;  %v3313_v36 = vld [vmem:[%s5044_s1 + $0x3f8] sm:$0xf0]  ;;  %v2779_v37 = vld [vmem:[%s5044_s1 + $0x4b0] sm:$0xf]  ;;  %v2575_v44 = vld [vmem:[%s5044_s1 + $0x318] sm:$0xf] }
  0x28   :  { %1388 = vmatpush.bf16.msrb.mxu0 %v2636_v52  ;;  %1382 = vmatmul.bf16.vlgmr.msra.gmra.mxu3 %v3820_v22  ;;  %v3337_v38 = vld [vmem:[%s5044_s1 + $0x4b8] sm:$0xf0]  ;;  %v2875_v39 = vld [vmem:[%s5044_s1 + $0x570] sm:$0xf]  ;;  %v2684_v42 = vor.u32 %v3313_v36, %v2683_v34  ;;  %v2671_v46 = vld [vmem:[%s5044_s1 + $0x3d8] sm:$0xf]  ;;  %v2576_v53 = vor.u32 %v3286_v45, %v2575_v44 }
  0x29   :  { %1401 = vmatpush.bf16.msrb.mxu1 %v2732_v55  ;;  %v3361_v40 = vld [vmem:[%s5044_s1 + $0x578] sm:$0xf0]  ;;  %v2780_v43 = vor.u32 %v3337_v38, %v2779_v37  ;;  %v3310_v48 = vld [vmem:[%s5044_s1 + $0x3e0] sm:$0xf0]  ;;  %v2767_v49 = vld [vmem:[%s5044_s1 + $0x498] sm:$0xf] }
  0x2a   :  { %1414 = vmatpush.bf16.msrb.mxu2 %v2828_v56  ;;  %1356 = vmatmul.bf16.vlgmr.msra.gmra.mxu1 %v3829_v26  ;;  %v2876_v47 = vor.u32 %v3361_v40, %v2875_v39  ;;  %v3334_v50 = vld [vmem:[%s5044_s1 + $0x4a0] sm:$0xf0]  ;;  %v2863_v51 = vld [vmem:[%s5044_s1 + $0x558] sm:$0xf]  ;;  %v2563_v54 = vld [vmem:[%s5044_s1 + $0x300] sm:$0xf]  ;;  %v2672_v56 = vor.u32 %v3310_v48, %v2671_v46 }
  0x2b   :  { %1427 = vmatpush.bf16.msrb.mxu3 %v2924_v60  ;;  %v3358_v52 = vld [vmem:[%s5044_s1 + $0x560] sm:$0xf0]  ;;  %v3283_v55 = vld [vmem:[%s5044_s1 + $0x308] sm:$0xf0]  ;;  %v2768_v57 = vor.u32 %v3334_v50, %v2767_v49  ;;  %v2659_v58 = vld [vmem:[%s5044_s1 + $0x3c0] sm:$0xf] }
  0x2c   :  { %1389 = vmatpush.bf16.msrb.mxu0 %v2624_v1  ;;  %v3307_v59 = vld [vmem:[%s5044_s1 + $0x3c8] sm:$0xf0]  ;;  %v2755_v60 = vld [vmem:[%s5044_s1 + $0x480] sm:$0xf]  ;;  %v2864_v61 = vor.u32 %v3358_v52, %v2863_v51  ;;  %v2564_v4 = vor.u32 %v3283_v55, %v2563_v54  ;;  %v2361_v5 = vld [vmem:[%s5044_s1 + $0x174] sm:$0xf0] }
  0x2d   :  { %1402 = vmatpush.bf16.msrb.mxu1 %v2720_v2  ;;  %v3331_v62 = vld [vmem:[%s5044_s1 + $0x488] sm:$0xf0]  ;;  %v2851_v63 = vld [vmem:[%s5044_s1 + $0x540] sm:$0xf]  ;;  %v2265_v2 = vld [vmem:[%s5044_s1 + $0xb4] sm:$0xf0]  ;;  %v2660_v8 = vor.u32 %v3307_v59, %v2659_v58 }
  0x2e   :  { %1415 = vmatpush.bf16.msrb.mxu2 %v2816_v3  ;;  %v3355_v0 = vld [vmem:[%s5044_s1 + $0x548] sm:$0xf0]  ;;  %v2756_v9 = vor.u32 %v3331_v62, %v2755_v60  ;;  %v2553_v11 = vld [vmem:[%s5044_s1 + $0x2f4] sm:$0xf0]  ;;  %v3204_v16 = vld [vmem:[%s5044_s1 + $0x94] sm:$0xf] }
  0x2f   :  { %1428 = vmatpush.bf16.msrb.mxu3 %v2912_v7  ;;  %v3207_v1 = vld [vmem:[%s5044_s1 + $0xac] sm:$0xf]  ;;  %v2457_v7 = vld [vmem:[%s5044_s1 + $0x234] sm:$0xf0]  ;;  %v2852_v12 = vor.u32 %v3355_v0, %v2851_v63  ;;  %v2253_v17 = vld [vmem:[%s5044_s1 + $0x9c] sm:$0xf0] }
  0x30   :  { %1390 = vmatpush.bf16.msrb.mxu0 %v2612_v14  ;;  %v3231_v3 = vld [vmem:[%s5044_s1 + $0x16c] sm:$0xf]  ;;  %v2268_v13 = vor.u32 %v3207_v1, %v2265_v2  ;;  %v3252_v24 = vld [vmem:[%s5044_s1 + $0x214] sm:$0xf]  ;;  %v2445_v25 = vld [vmem:[%s5044_s1 + $0x21c] sm:$0xf0] }
  0x31   :  { %1403 = vmatpush.bf16.msrb.mxu1 %v2708_v18  ;;  %v3255_v6 = vld [vmem:[%s5044_s1 + $0x22c] sm:$0xf]  ;;  %v2364_v14 = vor.u32 %v3231_v3, %v2361_v5  ;;  %v3228_v18 = vld [vmem:[%s5044_s1 + $0x154] sm:$0xf]  ;;  %v2541_v28 = vld [vmem:[%s5044_s1 + $0x2dc] sm:$0xf0] }
  0x32   :  { %1416 = vmatpush.bf16.msrb.mxu2 %v2804_v19  ;;  %v3279_v10 = vld [vmem:[%s5044_s1 + $0x2ec] sm:$0xf]  ;;  %v2460_v15 = vor.u32 %v3255_v6, %v2457_v7  ;;  %v3276_v27 = vld [vmem:[%s5044_s1 + $0x2d4] sm:$0xf]  ;;  %v3965_v32 = vld [vmem:[#allocation1 + $0x24] sm:$0xff] }
  0x33   :  { %1429 = vmatpush.bf16.msrb.mxu3 %v2900_v23  ;;  %v2556_v19 = vor.u32 %v3279_v10, %v2553_v11  ;;  %v2349_v23 = vld [vmem:[%s5044_s1 + $0x15c] sm:$0xf0]  ;;  %v2241_v36 = vld [vmem:[%s5044_s1 + $0x84] sm:$0xf0]  ;;  %v3225_v37 = vld [vmem:[%s5044_s1 + $0x13c] sm:$0xf]  ;;  %v2544_v39 = vor.u32 %v3276_v27, %v2541_v28 }
  0x34   :  { %1391 = vmatpush.bf16.msrb.mxu0 %v2600_v29  ;;  %v3960_v29 = vld [vmem:[#allocation1 + $0x36] sm:$0xff]  ;;  %v3967_v33 = vld [vmem:[#allocation1 + $0x3f] sm:$0xff]  ;;  %v2352_v34 = vor.u32 %v3228_v18, %v2349_v23  ;;  %v3975_v38 = vld [vmem:[#allocation1 + $0x2d] sm:$0xff] }
  0x35   :  { %1404 = vmatpush.bf16.msrb.mxu1 %v2696_v30  ;;  %v2256_v30 = vor.u32 %v3204_v16, %v2253_v17  ;;  %v2337_v40 = vld [vmem:[%s5044_s1 + $0x144] sm:$0xf0]  ;;  %v3198_v48 = vld [vmem:[%s5044_s1 + $0x64] sm:$0xf]  ;;  %v2229_v49 = vld [vmem:[%s5044_s1 + $0x6c] sm:$0xf0] }
  0x36   :  { %1417 = vmatpush.bf16.msrb.mxu2 %v2792_v31  ;;  %v3201_v31 = vld [vmem:[%s5044_s1 + $0x7c] sm:$0xf]  ;;  %v2529_v44 = vld [vmem:[%s5044_s1 + $0x2c4] sm:$0xf0]  ;;  %v2340_v46 = vor.u32 %v3225_v37, %v2337_v40  ;;  %v3222_v50 = vld [vmem:[%s5044_s1 + $0x124] sm:$0xf] }
  0x37   :  { %1430 = vmatpush.bf16.msrb.mxu3 %v2888_v35  ;;  %v2448_v35 = vor.u32 %v3252_v24, %v2445_v25  ;;  %v2244_v45 = vor.u32 %v3201_v31, %v2241_v36  ;;  %v2325_v52 = vld [vmem:[%s5044_s1 + $0x12c] sm:$0xf0]  ;;  %v3270_v55 = vld [vmem:[%s5044_s1 + $0x2a4] sm:$0xf]  ;;  %v3195_v60 = vld [vmem:[%s5044_s1 + $0x4c] sm:$0xf] }
  0x38   :  { %1392 = vmatpush.bf16.msrb.mxu0 %v2588_v41  ;;  %v3249_v41 = vld [vmem:[%s5044_s1 + $0x1fc] sm:$0xf]  ;;  %v2421_v54 = vld [vmem:[%s5044_s1 + $0x1ec] sm:$0xf0]  ;;  %v2328_v58 = vor.u32 %v3222_v50, %v2325_v52  ;;  %v3219_v62 = vld [vmem:[%s5044_s1 + $0x10c] sm:$0xf] }
  0x39   :  { %1405 = vmatpush.bf16.msrb.mxu1 %v2684_v42  ;;  %v2433_v42 = vld [vmem:[%s5044_s1 + $0x204] sm:$0xf0]  ;;  %v2313_v0 = vld [vmem:[%s5044_s1 + $0x114] sm:$0xf0]  ;;  %v3243_v1 = vld [vmem:[%s5044_s1 + $0x1cc] sm:$0xf] }
  0x3a   :  { %1418 = vmatpush.bf16.msrb.mxu2 %v2780_v43  ;;  %v3273_v43 = vld [vmem:[%s5044_s1 + $0x2bc] sm:$0xf]  ;;  %v2409_v2 = vld [vmem:[%s5044_s1 + $0x1d4] sm:$0xf0]  ;;  %v3267_v3 = vld [vmem:[%s5044_s1 + $0x28c] sm:$0xf]  ;;  %v2316_v6 = vor.u32 %v3219_v62, %v2313_v0 }
  0x3b   :  { %1431 = vmatpush.bf16.msrb.mxu3 %v2876_v47  ;;  %v2436_v47 = vor.u32 %v3249_v41, %v2433_v42  ;;  %v2532_v51 = vor.u32 %v3273_v43, %v2529_v44  ;;  %v2412_v7 = vor.u32 %v3243_v1, %v2409_v2  ;;  %v3216_v10 = vld [vmem:[%s5044_s1 + $0xf4] sm:$0xf]  ;;  %v2493_v16 = vld [vmem:[%s5044_s1 + $0x27c] sm:$0xf0]  ;;  %v3189_v23 = vld [vmem:[%s5044_s1 + $0x1c] sm:$0xf] }
  0x3c   :  { %1393 = vmatpush.bf16.msrb.mxu0 %v2576_v53  ;;  %v3246_v53 = vld [vmem:[%s5044_s1 + $0x1e4] sm:$0xf]  ;;  %v2193_v24 = vld [vmem:[%s5044_s1 + $0x24] sm:$0xf0]  ;;  %v3213_v25 = vld [vmem:[%s5044_s1 + $0xdc] sm:$0xf] }
  0x3d   :  { %1406 = vmatpush.bf16.msrb.mxu1 %v2672_v56  ;;  %v2517_v56 = vld [vmem:[%s5044_s1 + $0x2ac] sm:$0xf0]  ;;  %v2424_v59 = vor.u32 %v3246_v53, %v2421_v54  ;;  %v2289_v28 = vld [vmem:[%s5044_s1 + $0xe4] sm:$0xf0]  ;;  %v3186_v36 = vld [vmem:[%s5044_s1 + $0x4] sm:$0xf]  ;;  %v2196_v37 = vor.u32 %v3189_v23, %v2193_v24 }
  0x3e   :  { %1419 = vmatpush.bf16.msrb.mxu2 %v2768_v57  ;;  %v2232_v57 = vor.u32 %v3198_v48, %v2229_v49  ;;  %v2520_v63 = vor.u32 %v3270_v55, %v2517_v56  ;;  %v2385_v31 = vld [vmem:[%s5044_s1 + $0x1a4] sm:$0xf0]  ;;  %v3210_v40 = vld [vmem:[%s5044_s1 + $0xc4] sm:$0xf]  ;;  %v2277_v41 = vld [vmem:[%s5044_s1 + $0xcc] sm:$0xf0]  ;;  %v2292_v42 = vor.u32 %v3213_v25, %v2289_v28 }
  0x3f   :  { %1432 = vmatpush.bf16.msrb.mxu3 %v2864_v61  ;;  %v2217_v61 = vld [vmem:[%s5044_s1 + $0x54] sm:$0xf0]  ;;  %v3234_v44 = vld [vmem:[%s5044_s1 + $0x184] sm:$0xf]  ;;  %v2469_v48 = vld [vmem:[%s5044_s1 + $0x24c] sm:$0xf0] }
  0x40   :  { %1394 = vmatpush.bf16.msrb.mxu0 %v2564_v4  ;;  %v2505_v4 = vld [vmem:[%s5044_s1 + $0x294] sm:$0xf0]  ;;  %v2220_v5 = vor.u32 %v3195_v60, %v2217_v61  ;;  %v3303_v49 = vld [vmem:[%s5044_s1 + $0x3ac] sm:$0xf] }
  0x41   :  { %1407 = vmatpush.bf16.msrb.mxu1 %v2660_v8  ;;  %v3192_v8 = vld [vmem:[%s5044_s1 + $0x34] sm:$0xf]  ;;  %v2508_v11 = vor.u32 %v3267_v3, %v2505_v4  ;;  %v2649_v50 = vld [vmem:[%s5044_s1 + $0x3b4] sm:$0xf0] }
  0x42   :  { %1420 = vmatpush.bf16.msrb.mxu2 %v2756_v9  ;;  %v2205_v9 = vld [vmem:[%s5044_s1 + $0x3c] sm:$0xf0] }
  0x43   :  { %1433 = vmatpush.bf16.msrb.mxu3 %v2852_v12  ;;  %1395 = vmatmul.bf16.vlgmr.msrb.gmra.mxu0 %v3965_v32  ;;  %v2301_v12 = vld [vmem:[%s5044_s1 + $0xfc] sm:$0xf0]  ;;  %v2208_v17 = vor.u32 %v3192_v8, %v2205_v9 }
  0x44   :  { %1439 = vmatpush.bf16.msra.mxu0 %v2268_v13  ;;  %1408 = vmatmul.bf16.vlgmr.msrb.gmra.mxu1 %v3975_v38  ;;  %v3240_v13 = vld [vmem:[%s5044_s1 + $0x1b4] sm:$0xf]  ;;  %v2304_v18 = vor.u32 %v3216_v10, %v2301_v12 }
  0x45   :  { %1452 = vmatpush.bf16.msra.mxu1 %v2364_v14  ;;  %1421 = vmatmul.bf16.vlgmr.msrb.gmra.mxu2 %v3960_v29  ;;  %v2397_v14 = vld [vmem:[%s5044_s1 + $0x1bc] sm:$0xf0] }
  0x46   :  { %1465 = vmatpush.bf16.msra.mxu2 %v2460_v15  ;;  %1434 = vmatmul.bf16.vlgmr.msrb.gmra.mxu3 %v3967_v33  ;;  %v3264_v15 = vld [vmem:[%s5044_s1 + $0x274] sm:$0xf] }
  0x47   :  { %1478 = vmatpush.bf16.msra.mxu3 %v2556_v19  ;;  %v2400_v19 = vor.u32 %v3240_v13, %v2397_v14  ;;  %v2496_v27 = vor.u32 %v3264_v15, %v2493_v16 }
  0x48   :  { %1440 = vmatpush.bf16.msra.mxu0 %v2256_v30  ;;  %v3237_v30 = vld [vmem:[%s5044_s1 + $0x19c] sm:$0xf] }
  0x49   :  { %1453 = vmatpush.bf16.msra.mxu1 %v2352_v34  ;;  %v3261_v34 = vld [vmem:[%s5044_s1 + $0x25c] sm:$0xf]  ;;  %v2388_v43 = vor.u32 %v3237_v30, %v2385_v31 }
  0x4a   :  { %1466 = vmatpush.bf16.msra.mxu2 %v2448_v35  ;;  %v2481_v35 = vld [vmem:[%s5044_s1 + $0x264] sm:$0xf0] }
  0x4b   :  { %1479 = vmatpush.bf16.msra.mxu3 %v2544_v39  ;;  %v2181_v39 = vld [vmem:[%s5044_s1 + $0xc] sm:$0xf0] }
  0x4c   :  { %1441 = vmatpush.bf16.msra.mxu0 %v2244_v45  ;;  %v2373_v45 = vld [vmem:[%s5044_s1 + $0x18c] sm:$0xf0] }
  0x4d   :  { %1454 = vmatpush.bf16.msra.mxu1 %v2340_v46  ;;  %v3258_v46 = vld [vmem:[%s5044_s1 + $0x244] sm:$0xf] }
  0x4e   :  { %1467 = vmatpush.bf16.msra.mxu2 %v2436_v47  ;;  %v2484_v47 = vor.u32 %v3261_v34, %v2481_v35 }
  0x4f   :  { %1480 = vmatpush.bf16.msra.mxu3 %v2532_v51  ;;  %v3327_v51 = vld [vmem:[%s5044_s1 + $0x46c] sm:$0xf] }
  0x50   :  { %1442 = vmatpush.bf16.msra.mxu0 %v2232_v57 }
  0x51   :  { %1455 = vmatpush.bf16.msra.mxu1 %v2328_v58 }
  0x52   :  { %1468 = vmatpush.bf16.msra.mxu2 %v2424_v59 }
  0x53   :  { %1481 = vmatpush.bf16.msra.mxu3 %v2520_v63 }
  0x54   :  { %1443 = vmatpush.bf16.msra.mxu0 %v2220_v5 }
  0x55   :  { %1456 = vmatpush.bf16.msra.mxu1 %v2316_v6 }
  0x56   :  { %1469 = vmatpush.bf16.msra.mxu2 %v2412_v7 }
  0x57   :  { %1482 = vmatpush.bf16.msra.mxu3 %v2508_v11 }
  0x58   :  { %1444 = vmatpush.bf16.msra.mxu0 %v2208_v17 }
  0x59   :  { %1457 = vmatpush.bf16.msra.mxu1 %v2304_v18 }
  0x5a   :  { %1470 = vmatpush.bf16.msra.mxu2 %v2400_v19 }
  0x5b   :  { %1483 = vmatpush.bf16.msra.mxu3 %v2496_v27 }
  0x5c   :  { %12 = vsyncpa [#allocation3], 0  ;;  %1445 = vmatpush.bf16.msra.mxu0 %v2196_v37  ;;  %v2184_v52 = vor.u32 %v3186_v36, %v2181_v39  ;;  %v2745_v53 = vld [vmem:[%s5044_s1 + $0x474] sm:$0xf0]  ;;  %v3351_v54 = vld [vmem:[%s5044_s1 + $0x52c] sm:$0xf]  ;;  %v2280_v56 = vor.u32 %v3210_v40, %v2277_v41  ;;  %v2376_v57 = vor.u32 %v3234_v44, %v2373_v45  ;;  %v2472_v60 = vor.u32 %v3258_v46, %v2469_v48 }
  0x5d   :  { %v2841_v55 = vld [vmem:[%s5044_s1 + $0x534] sm:$0xf0]  ;;  %1458 = vmatpush.bf16.msra.mxu1 %v2292_v42  ;;  %v3375_v58 = vld [vmem:[%s5044_s1 + $0x5ec] sm:$0xf]  ;;  %v2652_v61 = vor.u32 %v3303_v49, %v2649_v50  ;;  %v2748_v62 = vor.u32 %v3327_v51, %v2745_v53  ;;  %v3300_v0 = vld [vmem:[%s5044_s1 + $0x394] sm:$0xf] }
  0x5e   :  { %1471 = vmatpush.bf16.msra.mxu2 %v2388_v43  ;;  %v2937_v59 = vld [vmem:[%s5044_s1 + $0x5f4] sm:$0xf0]  ;;  %v2844_v63 = vor.u32 %v3351_v54, %v2841_v55  ;;  %v2637_v1 = vld [vmem:[%s5044_s1 + $0x39c] sm:$0xf0]  ;;  %v3324_v2 = vld [vmem:[%s5044_s1 + $0x454] sm:$0xf] }
  0x5f   :  { %1484 = vmatpush.bf16.msra.mxu3 %v2484_v47  ;;  %v2940_v3 = vor.u32 %v3375_v58, %v2937_v59  ;;  %v2733_v4 = vld [vmem:[%s5044_s1 + $0x45c] sm:$0xf0]  ;;  %v3348_v5 = vld [vmem:[%s5044_s1 + $0x514] sm:$0xf]  ;;  %v2640_v9 = vor.u32 %v3300_v0, %v2637_v1  ;;  %v3297_v12 = vld [vmem:[%s5044_s1 + $0x37c] sm:$0xf] }
  0x60   :  { %1446 = vmatpush.bf16.msra.mxu0 %v2184_v52  ;;  %v2829_v6 = vld [vmem:[%s5044_s1 + $0x51c] sm:$0xf0]  ;;  %v3372_v7 = vld [vmem:[%s5044_s1 + $0x5d4] sm:$0xf]  ;;  %v2736_v10 = vor.u32 %v3324_v2, %v2733_v4  ;;  %v2625_v13 = vld [vmem:[%s5044_s1 + $0x384] sm:$0xf0] }
  0x61   :  { %1459 = vmatpush.bf16.msra.mxu1 %v2280_v56  ;;  %v2925_v8 = vld [vmem:[%s5044_s1 + $0x5dc] sm:$0xf0]  ;;  %v2832_v11 = vor.u32 %v3348_v5, %v2829_v6  ;;  %v3321_v14 = vld [vmem:[%s5044_s1 + $0x43c] sm:$0xf]  ;;  %v2721_v16 = vld [vmem:[%s5044_s1 + $0x444] sm:$0xf0]  ;;  %v2628_v24 = vor.u32 %v3297_v12, %v2625_v13 }
  0x62   :  { %1472 = vmatpush.bf16.msra.mxu2 %v2376_v57  ;;  %v2928_v15 = vor.u32 %v3372_v7, %v2925_v8  ;;  %v3345_v17 = vld [vmem:[%s5044_s1 + $0x4fc] sm:$0xf]  ;;  %v2817_v18 = vld [vmem:[%s5044_s1 + $0x504] sm:$0xf0]  ;;  %v2724_v25 = vor.u32 %v3321_v14, %v2721_v16  ;;  %v3294_v28 = vld [vmem:[%s5044_s1 + $0x364] sm:$0xf] }
  0x63   :  { %1485 = vmatpush.bf16.msra.mxu3 %v2472_v60  ;;  %v3369_v19 = vld [vmem:[%s5044_s1 + $0x5bc] sm:$0xf]  ;;  %v2913_v23 = vld [vmem:[%s5044_s1 + $0x5c4] sm:$0xf0]  ;;  %1447 = vmatmul.bf16.vlgmr.msra.gmra.mxu0 %v3818_v21  ;;  %v2820_v27 = vor.u32 %v3345_v17, %v2817_v18  ;;  %v2613_v30 = vld [vmem:[%s5044_s1 + $0x36c] sm:$0xf0] }
  0x64   :  { %1491 = vmatpush.bf16.msrb.mxu0 %v2652_v61  ;;  %1460 = vmatmul.bf16.vlgmr.msra.gmra.mxu1 %v3829_v26  ;;  %v3318_v21 = vld [vmem:[%s5044_s1 + $0x424] sm:$0xf]  ;;  %v2709_v31 = vld [vmem:[%s5044_s1 + $0x42c] sm:$0xf0]  ;;  %v2616_v39 = vor.u32 %v3294_v28, %v2613_v30  ;;  %v3291_v42 = vld [vmem:[%s5044_s1 + $0x34c] sm:$0xf] }
  0x65   :  { %1504 = vmatpush.bf16.msrb.mxu1 %v2748_v62  ;;  %1473 = vmatmul.bf16.vlgmr.msra.gmra.mxu2 %v3816_v20  ;;  %v3342_v34 = vld [vmem:[%s5044_s1 + $0x4e4] sm:$0xf]  ;;  %v2805_v35 = vld [vmem:[%s5044_s1 + $0x4ec] sm:$0xf0]  ;;  %v2712_v40 = vor.u32 %v3318_v21, %v2709_v31  ;;  %v2601_v43 = vld [vmem:[%s5044_s1 + $0x354] sm:$0xf0] }
  0x66   :  { %1517 = vmatpush.bf16.msrb.mxu2 %v2844_v63  ;;  %1486 = vmatmul.bf16.vlgmr.msra.gmra.mxu3 %v3820_v22  ;;  %v2916_v22 = vor.u32 %v3369_v19, %v2913_v23  ;;  %v3366_v36 = vld [vmem:[%s5044_s1 + $0x5a4] sm:$0xf]  ;;  %v2901_v37 = vld [vmem:[%s5044_s1 + $0x5ac] sm:$0xf0]  ;;  %v2808_v41 = vor.u32 %v3342_v34, %v2805_v35  ;;  %v3315_v44 = vld [vmem:[%s5044_s1 + $0x40c] sm:$0xf]  ;;  %v2604_v51 = vor.u32 %v3291_v42, %v2601_v43 }
  0x67   :  { %1530 = vmatpush.bf16.msrb.mxu3 %v2940_v3  ;;  %v2904_v45 = vor.u32 %v3366_v36, %v2901_v37  ;;  %v2697_v46 = vld [vmem:[%s5044_s1 + $0x414] sm:$0xf0]  ;;  %v3339_v47 = vld [vmem:[%s5044_s1 + $0x4cc] sm:$0xf]  ;;  %v3288_v54 = vld [vmem:[%s5044_s1 + $0x334] sm:$0xf] }
  0x68   :  { %1492 = vmatpush.bf16.msrb.mxu0 %v2640_v9  ;;  %v2793_v48 = vld [vmem:[%s5044_s1 + $0x4d4] sm:$0xf0]  ;;  %v3363_v49 = vld [vmem:[%s5044_s1 + $0x58c] sm:$0xf]  ;;  %v2700_v52 = vor.u32 %v3315_v44, %v2697_v46  ;;  %v2589_v55 = vld [vmem:[%s5044_s1 + $0x33c] sm:$0xf0] }
  0x69   :  { %1505 = vmatpush.bf16.msrb.mxu1 %v2736_v10  ;;  %v2889_v50 = vld [vmem:[%s5044_s1 + $0x594] sm:$0xf0]  ;;  %v2796_v53 = vor.u32 %v3339_v47, %v2793_v48  ;;  %v3312_v56 = vld [vmem:[%s5044_s1 + $0x3f4] sm:$0xf]  ;;  %v2685_v58 = vld [vmem:[%s5044_s1 + $0x3fc] sm:$0xf0]  ;;  %v2592_v63 = vor.u32 %v3288_v54, %v2589_v55 }
  0x6a   :  { %1518 = vmatpush.bf16.msrb.mxu2 %v2832_v11  ;;  %v2892_v57 = vor.u32 %v3363_v49, %v2889_v50  ;;  %v3336_v59 = vld [vmem:[%s5044_s1 + $0x4b4] sm:$0xf]  ;;  %v2781_v60 = vld [vmem:[%s5044_s1 + $0x4bc] sm:$0xf0]  ;;  %v2688_v0 = vor.u32 %v3312_v56, %v2685_v58  ;;  %v3285_v2 = vld [vmem:[%s5044_s1 + $0x31c] sm:$0xf] }
  0x6b   :  { %1531 = vmatpush.bf16.msrb.mxu3 %v2928_v15  ;;  %v3360_v61 = vld [vmem:[%s5044_s1 + $0x574] sm:$0xf]  ;;  %v2877_v62 = vld [vmem:[%s5044_s1 + $0x57c] sm:$0xf0]  ;;  %v2784_v1 = vor.u32 %v3336_v59, %v2781_v60  ;;  %v2577_v3 = vld [vmem:[%s5044_s1 + $0x324] sm:$0xf0] }
  0x6c   :  { %1493 = vmatpush.bf16.msrb.mxu0 %v2628_v24  ;;  %v3309_v4 = vld [vmem:[%s5044_s1 + $0x3dc] sm:$0xf]  ;;  %v2880_v5 = vor.u32 %v3360_v61, %v2877_v62  ;;  %v2673_v6 = vld [vmem:[%s5044_s1 + $0x3e4] sm:$0xf0]  ;;  %v2580_v11 = vor.u32 %v3285_v2, %v2577_v3  ;;  %v3282_v12 = vld [vmem:[%s5044_s1 + $0x304] sm:$0xf] }
  0x6d   :  { %1506 = vmatpush.bf16.msrb.mxu1 %v2724_v25  ;;  %v3333_v7 = vld [vmem:[%s5044_s1 + $0x49c] sm:$0xf]  ;;  %v2769_v8 = vld [vmem:[%s5044_s1 + $0x4a4] sm:$0xf0]  ;;  %v2565_v13 = vld [vmem:[%s5044_s1 + $0x30c] sm:$0xf0]  ;;  %v2676_v14 = vor.u32 %v3309_v4, %v2673_v6 }
  0x6e   :  { %1519 = vmatpush.bf16.msrb.mxu2 %v2820_v27  ;;  %v3357_v9 = vld [vmem:[%s5044_s1 + $0x55c] sm:$0xf]  ;;  %v2865_v10 = vld [vmem:[%s5044_s1 + $0x564] sm:$0xf0]  ;;  %v2772_v15 = vor.u32 %v3333_v7, %v2769_v8  ;;  %v3306_v16 = vld [vmem:[%s5044_s1 + $0x3c4] sm:$0xf]  ;;  %v2568_v21 = vor.u32 %v3282_v12, %v2565_v13 }
  0x6f   :  { %1532 = vmatpush.bf16.msrb.mxu3 %v2916_v22  ;;  %v2661_v17 = vld [vmem:[%s5044_s1 + $0x3cc] sm:$0xf0]  ;;  %v3330_v18 = vld [vmem:[%s5044_s1 + $0x484] sm:$0xf]  ;;  %v2868_v19 = vor.u32 %v3357_v9, %v2865_v10  ;;  %v3209_v28 = vld [vmem:[%s5044_s1 + $0xb8] sm:$0xf0] }
  0x70   :  { %1494 = vmatpush.bf16.msrb.mxu0 %v2616_v39  ;;  %v2757_v23 = vld [vmem:[%s5044_s1 + $0x48c] sm:$0xf0]  ;;  %v3354_v24 = vld [vmem:[%s5044_s1 + $0x544] sm:$0xf]  ;;  %v3233_v22 = vld [vmem:[%s5044_s1 + $0x178] sm:$0xf0]  ;;  %v2664_v35 = vor.u32 %v3306_v16, %v2661_v17 }
  0x71   :  { %1507 = vmatpush.bf16.msrb.mxu1 %v2712_v40  ;;  %v2853_v25 = vld [vmem:[%s5044_s1 + $0x54c] sm:$0xf0]  ;;  %v3257_v34 = vld [vmem:[%s5044_s1 + $0x238] sm:$0xf0]  ;;  %v2760_v36 = vor.u32 %v3330_v18, %v2757_v23  ;;  %v2259_v44 = vld [vmem:[%s5044_s1 + $0x98] sm:$0xf] }
  0x72   :  { %1520 = vmatpush.bf16.msrb.mxu2 %v2808_v41  ;;  %v2271_v27 = vld [vmem:[%s5044_s1 + $0xb0] sm:$0xf]  ;;  %v3281_v39 = vld [vmem:[%s5044_s1 + $0x2f8] sm:$0xf0]  ;;  %v2856_v40 = vor.u32 %v3354_v24, %v2853_v25  ;;  %v2355_v46 = vld [vmem:[%s5044_s1 + $0x158] sm:$0xf] }
  0x73   :  { %1533 = vmatpush.bf16.msrb.mxu3 %v2904_v45  ;;  %v2367_v30 = vld [vmem:[%s5044_s1 + $0x170] sm:$0xf]  ;;  %v2272_v41 = vor.u32 %v3209_v28, %v2271_v27  ;;  %v3206_v45 = vld [vmem:[%s5044_s1 + $0xa0] sm:$0xf0]  ;;  %v2451_v49 = vld [vmem:[%s5044_s1 + $0x218] sm:$0xf] }
  0x74   :  { %1495 = vmatpush.bf16.msrb.mxu0 %v2604_v51  ;;  %v2463_v31 = vld [vmem:[%s5044_s1 + $0x230] sm:$0xf]  ;;  %v2368_v42 = vor.u32 %v3233_v22, %v2367_v30  ;;  %v3230_v48 = vld [vmem:[%s5044_s1 + $0x160] sm:$0xf0]  ;;  %v2547_v51 = vld [vmem:[%s5044_s1 + $0x2d8] sm:$0xf] }
  0x75   :  { %1508 = vmatpush.bf16.msrb.mxu1 %v2700_v52  ;;  %v2559_v37 = vld [vmem:[%s5044_s1 + $0x2f0] sm:$0xf]  ;;  %v2464_v43 = vor.u32 %v3257_v34, %v2463_v31  ;;  %v3254_v50 = vld [vmem:[%s5044_s1 + $0x220] sm:$0xf0]  ;;  %v2356_v54 = vor.u32 %v3230_v48, %v2355_v46  ;;  %v2247_v56 = vld [vmem:[%s5044_s1 + $0x80] sm:$0xf] }
  0x76   :  { %1521 = vmatpush.bf16.msrb.mxu2 %v2796_v53  ;;  %v2560_v47 = vor.u32 %v3281_v39, %v2559_v37  ;;  %v3278_v52 = vld [vmem:[%s5044_s1 + $0x2e0] sm:$0xf0]  ;;  %v2260_v53 = vor.u32 %v3206_v45, %v2259_v44  ;;  %v2452_v55 = vor.u32 %v3254_v50, %v2451_v49  ;;  %v2343_v58 = vld [vmem:[%s5044_s1 + $0x140] sm:$0xf]  ;;  %v3227_v60 = vld [vmem:[%s5044_s1 + $0x148] sm:$0xf0] }
  0x77   :  { %1534 = vmatpush.bf16.msrb.mxu3 %v2892_v57  ;;  %v3203_v57 = vld [vmem:[%s5044_s1 + $0x88] sm:$0xf0]  ;;  %v2548_v59 = vor.u32 %v3278_v52, %v2547_v51  ;;  %v2439_v61 = vld [vmem:[%s5044_s1 + $0x200] sm:$0xf]  ;;  %v2331_v3 = vld [vmem:[%s5044_s1 + $0x128] sm:$0xf] }
  0x78   :  { %1496 = vmatpush.bf16.msrb.mxu0 %v2592_v63  ;;  %v3251_v62 = vld [vmem:[%s5044_s1 + $0x208] sm:$0xf0]  ;;  %v3248_v6 = vld [vmem:[%s5044_s1 + $0x1f0] sm:$0xf0]  ;;  %v2523_v7 = vld [vmem:[%s5044_s1 + $0x2a8] sm:$0xf] }
  0x79   :  { %1509 = vmatpush.bf16.msrb.mxu1 %v2688_v0  ;;  %v3275_v63 = vld [vmem:[%s5044_s1 + $0x2c8] sm:$0xf0]  ;;  %v2248_v0 = vor.u32 %v3203_v57, %v2247_v56  ;;  %v2440_v2 = vor.u32 %v3251_v62, %v2439_v61  ;;  %v3272_v8 = vld [vmem:[%s5044_s1 + $0x2b0] sm:$0xf0]  ;;  %v2223_v12 = vld [vmem:[%s5044_s1 + $0x50] sm:$0xf] }
  0x7a   :  { %1522 = vmatpush.bf16.msrb.mxu2 %v2784_v1  ;;  %v2344_v1 = vor.u32 %v3227_v60, %v2343_v58  ;;  %v3197_v13 = vld [vmem:[%s5044_s1 + $0x58] sm:$0xf0]  ;;  %v2415_v17 = vld [vmem:[%s5044_s1 + $0x1d0] sm:$0xf]  ;;  %v2211_v28 = vld [vmem:[%s5044_s1 + $0x38] sm:$0xf] }
  0x7b   :  { %1535 = vmatpush.bf16.msrb.mxu3 %v2880_v5  ;;  %v2427_v5 = vld [vmem:[%s5044_s1 + $0x1e8] sm:$0xf]  ;;  %v3221_v16 = vld [vmem:[%s5044_s1 + $0x118] sm:$0xf0]  ;;  %v2224_v24 = vor.u32 %v3197_v13, %v2223_v12  ;;  %v3194_v30 = vld [vmem:[%s5044_s1 + $0x40] sm:$0xf0] }
  0x7c   :  { %1497 = vmatpush.bf16.msrb.mxu0 %v2580_v11  ;;  %v2428_v11 = vor.u32 %v3248_v6, %v2427_v5  ;;  %v3245_v18 = vld [vmem:[%s5044_s1 + $0x1d8] sm:$0xf0]  ;;  %v3218_v31 = vld [vmem:[%s5044_s1 + $0x100] sm:$0xf0]  ;;  %v2403_v34 = vld [vmem:[%s5044_s1 + $0x1b8] sm:$0xf]  ;;  %v2212_v39 = vor.u32 %v3194_v30, %v2211_v28 }
  0x7d   :  { %1510 = vmatpush.bf16.msrb.mxu1 %v2676_v14  ;;  %v2319_v14 = vld [vmem:[%s5044_s1 + $0x110] sm:$0xf]  ;;  %v3269_v23 = vld [vmem:[%s5044_s1 + $0x298] sm:$0xf0]  ;;  %v2416_v27 = vor.u32 %v3245_v18, %v2415_v17  ;;  %v3266_v37 = vld [vmem:[%s5044_s1 + $0x280] sm:$0xf0] }
  0x7e   :  { %1523 = vmatpush.bf16.msrb.mxu2 %v2772_v15  ;;  %v2524_v15 = vor.u32 %v3272_v8, %v2523_v7  ;;  %v2320_v25 = vor.u32 %v3221_v16, %v2319_v14  ;;  %v2295_v44 = vld [vmem:[%s5044_s1 + $0xe0] sm:$0xf]  ;;  %v3215_v46 = vld [vmem:[%s5044_s1 + $0xe8] sm:$0xf0]  ;;  %v2187_v52 = vld [vmem:[%s5044_s1 + $0x8] sm:$0xf] }
  0x7f   :  { %1536 = vmatpush.bf16.msrb.mxu3 %v2868_v19  ;;  %v2511_v19 = vld [vmem:[%s5044_s1 + $0x290] sm:$0xf]  ;;  %v3239_v48 = vld [vmem:[%s5044_s1 + $0x1a8] sm:$0xf0]  ;;  %v2487_v49 = vld [vmem:[%s5044_s1 + $0x260] sm:$0xf] }
  0x80   :  { %1498 = vmatpush.bf16.msrb.mxu0 %v2568_v21  ;;  %v2307_v21 = vld [vmem:[%s5044_s1 + $0xf8] sm:$0xf]  ;;  %v2512_v22 = vor.u32 %v3269_v23, %v2511_v19  ;;  %v3263_v50 = vld [vmem:[%s5044_s1 + $0x268] sm:$0xf0]  ;;  %v2283_v56 = vld [vmem:[%s5044_s1 + $0xc8] sm:$0xf] }
  0x81   :  { %1511 = vmatpush.bf16.msrb.mxu1 %v2664_v35  ;;  %v3242_v35 = vld [vmem:[%s5044_s1 + $0x1c0] sm:$0xf0]  ;;  %v3212_v57 = vld [vmem:[%s5044_s1 + $0xd0] sm:$0xf0]  ;;  %v2379_v58 = vld [vmem:[%s5044_s1 + $0x188] sm:$0xf] }
  0x82   :  { %1524 = vmatpush.bf16.msrb.mxu2 %v2760_v36  ;;  %v2499_v36 = vld [vmem:[%s5044_s1 + $0x278] sm:$0xf]  ;;  %v3236_v60 = vld [vmem:[%s5044_s1 + $0x190] sm:$0xf0]  ;;  %v2475_v61 = vld [vmem:[%s5044_s1 + $0x248] sm:$0xf] }
  0x83   :  { %1537 = vmatpush.bf16.msrb.mxu3 %v2856_v40  ;;  %1499 = vmatmul.bf16.vlgmr.msrb.gmra.mxu0 %v3965_v32  ;;  %v2235_v32 = vld [vmem:[%s5044_s1 + $0x68] sm:$0xf]  ;;  %v2308_v40 = vor.u32 %v3218_v31, %v2307_v21  ;;  %v2500_v45 = vor.u32 %v3266_v37, %v2499_v36  ;;  %v3260_v62 = vld [vmem:[%s5044_s1 + $0x250] sm:$0xf0]  ;;  %v3377_v5 = vld [vmem:[%s5044_s1 + $0x5f8] sm:$0xf0] }
  0x84   :  { %1543 = vmatpush.bf16.msra.mxu0 %v2272_v41  ;;  %1512 = vmatmul.bf16.vlgmr.msrb.gmra.mxu1 %v3975_v38  ;;  %v3224_v38 = vld [vmem:[%s5044_s1 + $0x130] sm:$0xf0]  ;;  %v2404_v41 = vor.u32 %v3242_v35, %v2403_v34  ;;  %v2476_v6 = vor.u32 %v3260_v62, %v2475_v61  ;;  %v2739_v12 = vld [vmem:[%s5044_s1 + $0x458] sm:$0xf]  ;;  %v3326_v14 = vld [vmem:[%s5044_s1 + $0x460] sm:$0xf0] }
  0x85   :  { %1556 = vmatpush.bf16.msra.mxu1 %v2368_v42  ;;  %1525 = vmatmul.bf16.vlgmr.msrb.gmra.mxu2 %v3960_v29  ;;  %v2535_v29 = vld [vmem:[%s5044_s1 + $0x2c0] sm:$0xf]  ;;  %v2332_v10 = vor.u32 %v3224_v38, %v2331_v3  ;;  %v2284_v3 = vor.u32 %v3212_v57, %v2283_v56  ;;  %v2943_v38 = vld [vmem:[%s5044_s1 + $0x5f0] sm:$0xf]  ;;  %v3350_v16 = vld [vmem:[%s5044_s1 + $0x520] sm:$0xf0]  ;;  %v2740_v23 = vor.u32 %v3326_v14, %v2739_v12 }
  0x86   :  { %1569 = vmatpush.bf16.msra.mxu2 %v2464_v43  ;;  %1538 = vmatmul.bf16.vlgmr.msrb.gmra.mxu3 %v3967_v33  ;;  %v3200_v33 = vld [vmem:[%s5044_s1 + $0x70] sm:$0xf0]  ;;  %v2536_v4 = vor.u32 %v3275_v63, %v2535_v29  ;;  %v2199_v42 = vld [vmem:[%s5044_s1 + $0x20] sm:$0xf]  ;;  %v3191_v43 = vld [vmem:[%s5044_s1 + $0x28] sm:$0xf0]  ;;  %v2944_v13 = vor.u32 %v3377_v5, %v2943_v38 }
  0x87   :  { %1582 = vmatpush.bf16.msra.mxu3 %v2560_v47  ;;  %v2236_v9 = vor.u32 %v3200_v33, %v2235_v32  ;;  %v2391_v47 = vld [vmem:[%s5044_s1 + $0x1a0] sm:$0xf]  ;;  %v2200_v51 = vor.u32 %v3191_v43, %v2199_v42  ;;  %v2655_v29 = vld [vmem:[%s5044_s1 + $0x3b0] sm:$0xf]  ;;  %v3305_v63 = vld [vmem:[%s5044_s1 + $0x3b8] sm:$0xf0] }
  0x88   :  { %1544 = vmatpush.bf16.msra.mxu0 %v2260_v53  ;;  %v3188_v53 = vld [vmem:[%s5044_s1 + $0x10] sm:$0xf0]  ;;  %v2847_v32 = vld [vmem:[%s5044_s1 + $0x530] sm:$0xf]  ;;  %v3353_v33 = vld [vmem:[%s5044_s1 + $0x538] sm:$0xf0]  ;;  %v2656_v7 = vor.u32 %v3305_v63, %v2655_v29 }
  0x89   :  { %1557 = vmatpush.bf16.msra.mxu1 %v2356_v54  ;;  %v2296_v54 = vor.u32 %v3215_v46, %v2295_v44  ;;  %v2931_v17 = vld [vmem:[%s5044_s1 + $0x5d8] sm:$0xf]  ;;  %v3374_v18 = vld [vmem:[%s5044_s1 + $0x5e0] sm:$0xf0]  ;;  %v2727_v28 = vld [vmem:[%s5044_s1 + $0x440] sm:$0xf] }
  0x8a   :  { %1570 = vmatpush.bf16.msra.mxu2 %v2452_v55  ;;  %v2392_v55 = vor.u32 %v3239_v48, %v2391_v47  ;;  %v2932_v30 = vor.u32 %v3374_v18, %v2931_v17  ;;  %v3323_v21 = vld [vmem:[%s5044_s1 + $0x448] sm:$0xf0]  ;;  %v2919_v34 = vld [vmem:[%s5044_s1 + $0x5c0] sm:$0xf]  ;;  %v3296_v42 = vld [vmem:[%s5044_s1 + $0x370] sm:$0xf0] }
  0x8b   :  { %1583 = vmatpush.bf16.msra.mxu3 %v2548_v59  ;;  %v2488_v59 = vor.u32 %v3263_v50, %v2487_v49  ;;  %v3347_v31 = vld [vmem:[%s5044_s1 + $0x508] sm:$0xf0]  ;;  %v3440_v35 = vld [vmem:[#allocation1] sm:$0xff]  ;;  %v2715_v43 = vld [vmem:[%s5044_s1 + $0x428] sm:$0xf]  ;;  %vm2129_vm0 = vcmask 523264  }
  0x8c   :  { %1545 = vmatpush.bf16.msra.mxu0 %v2248_v0  ;;  %v2751_v0 = vld [vmem:[%s5044_s1 + $0x470] sm:$0xf]  ;;  %v3441_v36 = vld [vmem:[#allocation1 + $0x1b] sm:$0xff]  ;;  %v3344_v46 = vld [vmem:[%s5044_s1 + $0x4f0] sm:$0xf0]  ;;  %s3472_s0 = smov [#allocation2]  }
  0x8d   :  { %1558 = vmatpush.bf16.msra.mxu1 %v2344_v1  ;;  %v2188_v1 = vor.u32 %v3188_v53, %v2187_v52  ;;  %v2907_v47 = vld [vmem:[%s5044_s1 + $0x5a8] sm:$0xf]  ;;  %v3368_v48 = vld [vmem:[%s5044_s1 + $0x5b0] sm:$0xf0]  ;;  %v2607_v52 = vld [vmem:[%s5044_s1 + $0x350] sm:$0xf] }
  0x8e   :  { %1571 = vmatpush.bf16.msra.mxu2 %v2440_v2  ;;  %v3329_v2 = vld [vmem:[%s5044_s1 + $0x478] sm:$0xf0]  ;;  %v2799_v57 = vld [vmem:[%s5044_s1 + $0x4d0] sm:$0xf]  ;;  %v2595_v63 = vld [vmem:[%s5044_s1 + $0x338] sm:$0xf] }
  0x8f   :  { %1584 = vmatpush.bf16.msra.mxu3 %v2536_v4  ;;  %v2380_v4 = vor.u32 %v3236_v60, %v2379_v58  ;;  %v2752_v8 = vor.u32 %v3329_v2, %v2751_v0  ;;  %v3293_v53 = vld [vmem:[%s5044_s1 + $0x358] sm:$0xf0]  ;;  %v3290_v0 = vld [vmem:[%s5044_s1 + $0x340] sm:$0xf0]  ;;  %v2679_v12 = vld [vmem:[%s5044_s1 + $0x3e0] sm:$0xf] }
  0x90   :  { %1546 = vmatpush.bf16.msra.mxu0 %v2236_v9  ;;  %v2848_v9 = vor.u32 %v3353_v33, %v2847_v32  ;;  %v3317_v56 = vld [vmem:[%s5044_s1 + $0x418] sm:$0xf0]  ;;  %v2608_v61 = vor.u32 %v3293_v53, %v2607_v52  ;;  %v3314_v32 = vld [vmem:[%s5044_s1 + $0x400] sm:$0xf0]  ;;  %v2787_v33 = vld [vmem:[%s5044_s1 + $0x4b8] sm:$0xf]  ;;  %v2596_v5 = vor.u32 %v3290_v0, %v2595_v63 }
  0x91   :  { %1559 = vmatpush.bf16.msra.mxu1 %v2332_v10  ;;  %v2643_v10 = vld [vmem:[%s5044_s1 + $0x398] sm:$0xf]  ;;  %v3341_v58 = vld [vmem:[%s5044_s1 + $0x4d8] sm:$0xf0]  ;;  %v3362_v38 = vld [vmem:[%s5044_s1 + $0x580] sm:$0xf0] }
  0x92   :  { %1572 = vmatpush.bf16.msra.mxu2 %v2428_v11  ;;  %v3302_v11 = vld [vmem:[%s5044_s1 + $0x3a0] sm:$0xf0]  ;;  %v3365_v60 = vld [vmem:[%s5044_s1 + $0x598] sm:$0xf0]  ;;  %v2800_v29 = vor.u32 %v3341_v58, %v2799_v57  ;;  %v3335_v17 = vld [vmem:[%s5044_s1 + $0x4a8] sm:$0xf0] }
  0x93   :  { %1585 = vmatpush.bf16.msra.mxu3 %v2524_v15  ;;  %v2835_v15 = vld [vmem:[%s5044_s1 + $0x518] sm:$0xf]  ;;  %v2644_v19 = vor.u32 %v3302_v11, %v2643_v10  ;;  %v2583_v10 = vld [vmem:[%s5044_s1 + $0x320] sm:$0xf]  ;;  %v3287_v11 = vld [vmem:[%s5044_s1 + $0x328] sm:$0xf0] }
  0x94   :  { %1547 = vmatpush.bf16.msra.mxu0 %v2224_v24  ;;  %v2836_v24 = vor.u32 %v3350_v16, %v2835_v15  ;;  %v3311_v15 = vld [vmem:[%s5044_s1 + $0x3e8] sm:$0xf0]  ;;  %v2775_v16 = vld [vmem:[%s5044_s1 + $0x4a0] sm:$0xf]  ;;  %v2987_v0 = vld [vmem:[%s5046_s3 + $0x50] sm:$0xf] }
  0x95   :  { %1560 = vmatpush.bf16.msra.mxu1 %v2320_v25  ;;  %v2631_v25 = vld [vmem:[%s5044_s1 + $0x380] sm:$0xf]  ;;  %s2168_s20 = sshll.u32 %s5050_s7, 4  ;;  %vm2159_vm1 = vcmask 74752   ;;  %s2169_s20 = int_to_ptr.hbm [resolvable:$true] %s2168_s20 }
  0x96   :  { %1573 = vmatpush.bf16.msra.mxu2 %v2416_v27  ;;  %v3299_v27 = vld [vmem:[%s5044_s1 + $0x388] sm:$0xf0]  ;;  %v2871_v18 = vld [vmem:[%s5044_s1 + $0x560] sm:$0xf] }
  0x97   :  { %1586 = vmatpush.bf16.msra.mxu3 %v2512_v22  ;;  %v2823_v22 = vld [vmem:[%s5044_s1 + $0x500] sm:$0xf]  ;;  %v2632_v37 = vor.u32 %v3299_v27, %v2631_v25  ;;  %v2571_v25 = vld [vmem:[%s5044_s1 + $0x308] sm:$0xf]  ;;  %v2680_v27 = vor.u32 %v3311_v15, %v2679_v12  ;;  %v2981_v12 = vld [vmem:[%s5046_s3 + $0x48] sm:$0xf0] }
  0x98   :  { %1548 = vmatpush.bf16.msra.mxu0 %v2212_v39  ;;  %v2728_v39 = vor.u32 %v3323_v21, %v2727_v28  ;;  %v2776_v28 = vor.u32 %v3335_v17, %v2775_v16  ;;  %v2667_v21 = vld [vmem:[%s5044_s1 + $0x3c8] sm:$0xf]  ;;  %v2995_v53 = vld [vmem:[%s5046_s3 + $0x60] sm:$0xf]  ;;  %v3385_v17 = vld [vmem:[%s5046_s3 + $0x34] sm:$0xf0] }
  0x99   :  { %1561 = vmatpush.bf16.msra.mxu1 %v2308_v40  ;;  %v2824_v40 = vor.u32 %v3347_v31, %v2823_v22  ;;  %v3308_v22 = vld [vmem:[%s5044_s1 + $0x3d0] sm:$0xf0] }
  0x9a   :  { %1574 = vmatpush.bf16.msra.mxu2 %v2404_v41  ;;  %v2619_v41 = vld [vmem:[%s5044_s1 + $0x368] sm:$0xf] }
  0x9b   :  { %1587 = vmatpush.bf16.msra.mxu3 %v2500_v45  ;;  %v2811_v45 = vld [vmem:[%s5044_s1 + $0x4e8] sm:$0xf]  ;;  %v2620_v49 = vor.u32 %v3296_v42, %v2619_v41  ;;  %v3393_v41 = vld [vmem:[%s5046_s3 + $0x74] sm:$0xf0] }
  0x9c   :  { %1549 = vmatpush.bf16.msra.mxu0 %v2200_v51  ;;  %v2812_v51 = vor.u32 %v3344_v46, %v2811_v45  ;;  %v2668_v46 = vor.u32 %v3308_v22, %v2667_v21 }
  0x9d   :  { %1562 = vmatpush.bf16.msra.mxu1 %v2296_v54  ;;  %v2703_v54 = vld [vmem:[%s5044_s1 + $0x410] sm:$0xf] }
  0x9e   :  { %1575 = vmatpush.bf16.msra.mxu2 %v2392_v55  ;;  %v2908_v55 = vor.u32 %v3368_v48, %v2907_v47  ;;  %v2704_v62 = vor.u32 %v3317_v56, %v2703_v54  ;;  %v3391_v54 = vld [vmem:[%s5046_s3 + $0x64] sm:$0xf0]  ;;  %v2997_v56 = vld [vmem:[%s5046_s3 + $0x68] sm:$0xf0] }
  0x9f   :  { %1588 = vmatpush.bf16.msra.mxu3 %v2488_v59  ;;  %v2895_v59 = vld [vmem:[%s5044_s1 + $0x590] sm:$0xf]  ;;  %v2996_v58 = vor.u32 %v3391_v54, %v2995_v53 }
  0xa0   :  { %1550 = vmatpush.bf16.msra.mxu0 %v2188_v1  ;;  %v2691_v1 = vld [vmem:[%s5044_s1 + $0x3f8] sm:$0xf]  ;;  %v2896_v2 = vor.u32 %v3365_v60, %v2895_v59  ;;  %v3067_v60 = vld [vmem:[%s5046_s3 + $0xf0] sm:$0xf] }
  0xa1   :  { %1563 = vmatpush.bf16.msra.mxu1 %v2284_v3  ;;  %v3338_v3 = vld [vmem:[%s5044_s1 + $0x4c0] sm:$0xf0] }
  0xa2   :  { %1576 = vmatpush.bf16.msra.mxu2 %v2380_v4  ;;  %v2883_v4 = vld [vmem:[%s5044_s1 + $0x578] sm:$0xf] }
  0xa3   :  { %1589 = vmatpush.bf16.msra.mxu3 %v2476_v6  ;;  %1551 = vmatmul.bf16.vlgmr.msra.gmra.mxu0 %v3440_v35  ;;  %v4657_v6 = vld [vmem:[%s5045_s2] sm:$0x7]  ;;  %v2884_v14 = vor.u32 %v3362_v38, %v2883_v4  ;;  %v3332_v35 = vld [vmem:[%s5044_s1 + $0x490] sm:$0xf0]  ;;  %v2989_v4 = vld [vmem:[%s5046_s3 + $0x58] sm:$0xf0] }
  0xa4   :  { %1595 = vmatpush.bf16.msrb.mxu0 %v2656_v7  ;;  %1564 = vmatmul.bf16.vlgmr.msra.gmra.mxu1 %v3829_v26  ;;  %v3320_v26 = vld [vmem:[%s5044_s1 + $0x430] sm:$0xf0]  ;;  %v1344_v7 = vpop.f32.mrf.mxu0  ;;  %v3445_v38 = vld [vmem:[#allocation1 + $0x3f] sm:$0xff] }
  0xa5   :  { %1608 = vmatpush.bf16.msrb.mxu1 %v2752_v8  ;;  %1577 = vmatmul.bf16.vlgmr.msra.gmra.mxu2 %v3816_v20  ;;  %v3371_v20 = vld [vmem:[%s5044_s1 + $0x5c8] sm:$0xf0]  ;;  %v2716_v50 = vor.u32 %v3320_v26, %v2715_v43  ;;  %v2692_v8 = vor.u32 %v3314_v32, %v2691_v1  ;;  %v3005_v26 = vld [vmem:[%s5046_s3 + $0x78] sm:$0xf0]  ;;  %v3389_v1 = vld [vmem:[%s5046_s3 + $0x54] sm:$0xf0] }
  0xa6   :  { %1621 = vmatpush.bf16.msrb.mxu2 %v2848_v9  ;;  %1590 = vmatmul.bf16.vlgmr.msra.gmra.mxu3 %v3441_v36  ;;  %v2920_v44 = vor.u32 %v3371_v20, %v2919_v34  ;;  %v2788_v9 = vor.u32 %v3338_v3, %v2787_v33  ;;  %v2763_v20 = vld [vmem:[%s5044_s1 + $0x488] sm:$0xf]  ;;  %v3443_v32 = vld [vmem:[#allocation1 + $0x2d] sm:$0xff]  ;;  %v3444_v33 = vld [vmem:[#allocation1 + $0x36] sm:$0xff] }
  0xa7   :  { %1634 = vmatpush.bf16.msrb.mxu3 %v2944_v13  ;;  %v1357_v13 = vpop.f32.mrf.mxu1  ;;  %v2859_v36 = vld [vmem:[%s5044_s1 + $0x548] sm:$0xf]  ;;  %v2764_v47 = vor.u32 %v3332_v35, %v2763_v20  ;;  %v3388_v3 = vld [vmem:[%s5046_s3 + $0x54] sm:$0xf]  ;;  %v3382_v20 = vld [vmem:[%s5046_s3 + $0x24] sm:$0xf] }
  0xa8   :  { %1596 = vmatpush.bf16.msrb.mxu0 %v2644_v19  ;;  %v3359_v19 = vld [vmem:[%s5044_s1 + $0x568] sm:$0xf0] }
  0xa9   :  { %1609 = vmatpush.bf16.msrb.mxu1 %v2740_v23  ;;  %v287_v23 = vperm.slane %v4657_v6, 0  ;;  %v2872_v34 = vor.u32 %v3359_v19, %v2871_v18 }
  0xaa   :  { %1622 = vmatpush.bf16.msrb.mxu2 %v2836_v24  ;;  %v2584_v24 = vor.u32 %v3287_v11, %v2583_v10  ;;  %v1370_v31 = vpop.f32.mrf.mxu2  ;;  %v3387_v10 = vld [vmem:[%s5046_s3 + $0x44] sm:$0xf0]  ;;  %v3386_v11 = vld [vmem:[%s5046_s3 + $0x44] sm:$0xf] }
  0xab   :  { %1635 = vmatpush.bf16.msrb.mxu3 %v2932_v30  ;;  %v3284_v30 = vld [vmem:[%s5044_s1 + $0x310] sm:$0xf0]  ;;  %v1345_v42 = vadd.f32 %v1344_v7, %v287_v23  ;;  %v2984_v16 = vor.u32 %v3386_v11, %v2981_v12  ;;  %v3059_v23 = vld [vmem:[%s5046_s3 + $0xe0] sm:$0xf]  ;;  %v3402_v11 = vld [vmem:[%s5046_s3 + $0xc4] sm:$0xf] }
  0xac   :  { %1597 = vmatpush.bf16.msrb.mxu0 %v2632_v37  ;;  %v1383_v37 = vpop.f32.mrf.mxu3  ;;  %v2572_v43 = vor.u32 %v3284_v30, %v2571_v25  ;;  %v1346_v45 = vpop.f32.mrf.mxu0  ;;  %v3384_v25 = vld [vmem:[%s5046_s3 + $0x34] sm:$0xf]  ;;  %v3045_v12 = vld [vmem:[%s5046_s3 + $0xc8] sm:$0xf0] }
  0xad   :  { %1610 = vmatpush.bf16.msrb.mxu1 %v2728_v39  ;;  %v3356_v39 = vld [vmem:[%s5044_s1 + $0x550] sm:$0xf0]  ;;  %v1358_v52 = vadd.f32 %v1357_v13, %v1345_v42 }
  0xae   :  { %1623 = vmatpush.bf16.msrb.mxu2 %v2824_v40  ;;  %v3003_v40 = vld [vmem:[%s5046_s3 + $0x70] sm:$0xf] }
  0xaf   :  { %1636 = vmatpush.bf16.msrb.mxu3 %v2920_v44  ;;  %v3392_v44 = vld [vmem:[%s5046_s3 + $0x74] sm:$0xf]  ;;  %v1359_v48 = vpop.f32.mrf.mxu1  ;;  %v1371_v63 = vadd.f32 %v1370_v31, %v1358_v52  ;;  %v2963_v31 = vld [vmem:[%s5046_s3 + $0x20] sm:$0xf]  ;;  %v2957_v52 = vld [vmem:[%s5046_s3 + $0x18] sm:$0xf0] }
  0xb0   :  { %1598 = vmatpush.bf16.msrb.mxu0 %v2620_v49  ;;  %v2860_v49 = vor.u32 %v3356_v39, %v2859_v36  ;;  %v2965_v36 = vld [vmem:[%s5046_s3 + $0x28] sm:$0xf0]  ;;  %v3051_v39 = vld [vmem:[%s5046_s3 + $0xd0] sm:$0xf]  ;;  %v3381_v48 = vld [vmem:[%s5046_s3 + $0x14] sm:$0xf0] }
  0xb1   :  { %1611 = vmatpush.bf16.msrb.mxu1 %v2716_v50  ;;  %v3004_v50 = vor.u32 %v3393_v41, %v3003_v40  ;;  %v1384_v7 = vadd.f32 %v1383_v37, %v1371_v63  ;;  %v3405_v40 = vld [vmem:[%s5046_s3 + $0xd4] sm:$0xf0] }
  0xb2   :  { %1624 = vmatpush.bf16.msrb.mxu2 %v2812_v51  ;;  %v3008_v51 = vor.u32 %v3392_v44, %v3005_v26  ;;  %v1372_v57 = vpop.f32.mrf.mxu2  ;;  %v3052_v42 = vor.u32 %v3405_v40, %v3051_v39  ;;  %v3403_v44 = vld [vmem:[%s5046_s3 + $0xc4] sm:$0xf0]  ;;  %v3011_v39 = vld [vmem:[%s5046_s3 + $0x80] sm:$0xf] }
  0xb3   :  { %1637 = vmatpush.bf16.msrb.mxu3 %v2908_v55  ;;  %v3390_v55 = vld [vmem:[%s5046_s3 + $0x64] sm:$0xf]  ;;  %v3395_v40 = vld [vmem:[%s5046_s3 + $0x84] sm:$0xf0] }
  0xb4   :  { %1599 = vmatpush.bf16.msrb.mxu0 %v2608_v61  ;;  %v1385_v59 = vpop.f32.mrf.mxu3  ;;  %v3409_v61 = vld [vmem:[%s5046_s3 + $0xf4] sm:$0xf0] }
  0xb5   :  { %1612 = vmatpush.bf16.msrb.mxu1 %v2704_v62  ;;  %v3442_v62 = vld [vmem:[#allocation1 + $0x24] sm:$0xff] }
  0xb6   :  { %1625 = vmatpush.bf16.msrb.mxu2 %v2800_v29  ;;  %v3000_v29 = vor.u32 %v3390_v55, %v2997_v56  ;;  %v3035_v55 = vld [vmem:[%s5046_s3 + $0xb0] sm:$0xf]  ;;  %v3401_v56 = vld [vmem:[%s5046_s3 + $0xb4] sm:$0xf0]  ;;  %v3379_v59 = vld [vmem:[%s5046_s3 + $0x4] sm:$0xf0] }
  0xb7   :  { %1638 = vmatpush.bf16.msrb.mxu3 %v2896_v2  ;;  %v3068_v2 = vor.u32 %v3409_v61, %v3067_v60  ;;  %v3378_v60 = vld [vmem:[%s5046_s3 + $0x4] sm:$0xf] }
  0xb8   :  { %1600 = vmatpush.bf16.msrb.mxu0 %v2596_v5  ;;  %v2988_v5 = vor.u32 %v3389_v1, %v2987_v0  ;;  %v3408_v0 = vld [vmem:[%s5046_s3 + $0xf4] sm:$0xf]  ;;  %v3069_v1 = vld [vmem:[%s5046_s3 + $0xf8] sm:$0xf0] }
  0xb9   :  { %1613 = vmatpush.bf16.msrb.mxu1 %v2692_v8  ;;  %v2992_v8 = vor.u32 %v3388_v3, %v2989_v4  ;;  %v3072_v3 = vor.u32 %v3408_v0, %v3069_v1  ;;  %v3406_v4 = vld [vmem:[%s5046_s3 + $0xe4] sm:$0xf]  ;;  %v3423_v0 = vld [vmem:[%s5046_s3 + $0x164] sm:$0xf0] }
  0xba   :  { %1626 = vmatpush.bf16.msrb.mxu2 %v2788_v9  ;;  %v2979_v9 = vld [vmem:[%s5046_s3 + $0x40] sm:$0xf] }
  0xbb   :  { %1639 = vmatpush.bf16.msrb.mxu3 %v2884_v14  ;;  %v2980_v13 = vor.u32 %v3387_v10, %v2979_v9  ;;  %v2971_v14 = vld [vmem:[%s5046_s3 + $0x30] sm:$0xf]  ;;  %v3053_v9 = vld [vmem:[%s5046_s3 + $0xd8] sm:$0xf0] }
  0xbc   :  { %1601 = vmatpush.bf16.msrb.mxu0 %v2584_v24  ;;  %v3407_v24 = vld [vmem:[%s5046_s3 + $0xe4] sm:$0xf0]  ;;  %v2972_v21 = vor.u32 %v3385_v17, %v2971_v14 }
  0xbd   :  { %1614 = vmatpush.bf16.msrb.mxu1 %v2680_v27  ;;  %v2973_v27 = vld [vmem:[%s5046_s3 + $0x38] sm:$0xf0] }
  0xbe   :  { %1627 = vmatpush.bf16.msrb.mxu2 %v2776_v28  ;;  %v3060_v28 = vor.u32 %v3407_v24, %v3059_v23  ;;  %v2976_v22 = vor.u32 %v3384_v25, %v2973_v27  ;;  %v3398_v25 = vld [vmem:[%s5046_s3 + $0xa4] sm:$0xf]  ;;  %v3029_v27 = vld [vmem:[%s5046_s3 + $0xa8] sm:$0xf0] }
  0xbf   :  { %1640 = vmatpush.bf16.msrb.mxu3 %v2872_v34  ;;  %v3383_v34 = vld [vmem:[%s5046_s3 + $0x24] sm:$0xf0] }
  0xc0   :  { %1602 = vmatpush.bf16.msrb.mxu0 %v2572_v43  ;;  %v1396_v15 = vpop.f32.mrf.mxu0  ;;  %v3043_v43 = vld [vmem:[%s5046_s3 + $0xc0] sm:$0xf]  ;;  %v2964_v26 = vor.u32 %v3383_v34, %v2963_v31  ;;  %v3032_v34 = vor.u32 %v3398_v25, %v3029_v27  ;;  %v3099_v27 = vld [vmem:[%s5046_s3 + $0x130] sm:$0xf] }
  0xc1   :  { %1615 = vmatpush.bf16.msrb.mxu1 %v2668_v46  ;;  %v1397_v18 = vadd.f32 %v1396_v15, %v1384_v7  ;;  %v1409_v19 = vpop.f32.mrf.mxu1  ;;  %v2968_v46 = vor.u32 %v3382_v20, %v2965_v36  ;;  %v3400_v15 = vld [vmem:[%s5046_s3 + $0xb4] sm:$0xf]  ;;  %v3021_v36 = vld [vmem:[%s5046_s3 + $0x98] sm:$0xf0] }
  0xc2   :  { %1628 = vmatpush.bf16.msrb.mxu2 %v2764_v47  ;;  %v2955_v47 = vld [vmem:[%s5046_s3 + $0x10] sm:$0xf] }
  0xc3   :  { %1641 = vmatpush.bf16.msrb.mxu3 %v2860_v49  ;;  %1603 = vmatmul.bf16.vlgmr.msrb.gmra.mxu0 %v3442_v62  ;;  %v1410_v30 = vadd.f32 %v1409_v19, %v1397_v18  ;;  %v2956_v54 = vor.u32 %v3381_v48, %v2955_v47  ;;  %v3036_v62 = vor.u32 %v3401_v56, %v3035_v55  ;;  %v3027_v18 = vld [vmem:[%s5046_s3 + $0xa0] sm:$0xf]  ;;  %v3399_v19 = vld [vmem:[%s5046_s3 + $0xa4] sm:$0xf0] }
  0xc4   :  { %1947 = vmatpush.bf16.msra.mxu0 %v3004_v50  ;;  %1616 = vmatmul.bf16.vlgmr.msrb.gmra.mxu1 %v3443_v32  ;;  %v3044_v50 = vor.u32 %v3403_v44, %v3043_v43  ;;  %v3028_v23 = vor.u32 %v3399_v19, %v3027_v18  ;;  %v3394_v44 = vld [vmem:[%s5046_s3 + $0x84] sm:$0xf] }
  0xc5   :  { %1629 = vmatmul.bf16.vlgmr.msrb.gmra.mxu2 %v3444_v33  ;;  %1960 = vmatpush.bf16.msra.mxu1 %v3068_v2  ;;  %v3418_v19 = vld [vmem:[%s5046_s3 + $0x144] sm:$0xf] }
  0xc6   :  { %1642 = vmatmul.bf16.vlgmr.msrb.gmra.mxu3 %v3445_v38  ;;  %v3061_v38 = vld [vmem:[%s5046_s3 + $0xe8] sm:$0xf0] }
  0xc7   :  { %1986 = vmatpush.bf16.msra.mxu3 %v3008_v51  ;;  %v3380_v51 = vld [vmem:[%s5046_s3 + $0x14] sm:$0xf]  ;;  %v3064_v7 = vor.u32 %v3406_v4, %v3061_v38 }
  0xc8   :  { %1948 = vmatpush.bf16.msra.mxu0 %v2996_v58  ;;  %v1422_v35 = vpop.f32.mrf.mxu2  ;;  %v1398_v45 = vpop.f32.mrf.mxu0  ;;  %v2960_v57 = vor.u32 %v3380_v51, %v2957_v52  ;;  %v2947_v58 = vld [vmem:[%s5046_s3] sm:$0xf] }
  0xc9   :  { %1961 = vmatpush.bf16.msra.mxu1 %v3060_v28  ;;  %v1435_v37 = vpop.f32.mrf.mxu3  ;;  %v1423_v41 = vadd.f32 %v1422_v35, %v1410_v30  ;;  %v1411_v49 = vpop.f32.mrf.mxu1  ;;  %v2948_v32 = vor.u32 %v3379_v59, %v2947_v58  ;;  %v3019_v30 = vld [vmem:[%s5046_s3 + $0x90] sm:$0xf]  ;;  %v3396_v35 = vld [vmem:[%s5046_s3 + $0x94] sm:$0xf] }
  0xca   :  { %v3024_v43 = vor.u32 %v3396_v35, %v3021_v36  ;;  %v3131_v59 = vld [vmem:[%s5046_s3 + $0x170] sm:$0xf]  ;;  %v3414_v35 = vld [vmem:[%s5046_s3 + $0x124] sm:$0xf] }
  0xcb   :  { %1987 = vmatpush.bf16.msra.mxu3 %v3000_v29  ;;  %v1436_v53 = vadd.f32 %v1435_v37, %v1423_v41  ;;  %v2949_v29 = vld [vmem:[%s5046_s3 + $0x8] sm:$0xf0]  ;;  %v3012_v41 = vor.u32 %v3395_v40, %v3011_v39 }
  0xcc   :  { %1949 = vmatpush.bf16.msra.mxu0 %v2988_v5  ;;  %v2952_v33 = vor.u32 %v3378_v60, %v2949_v29  ;;  %v3425_v60 = vld [vmem:[%s5046_s3 + $0x174] sm:$0xf0]  ;;  %v3133_v29 = vld [vmem:[%s5046_s3 + $0x178] sm:$0xf0]  ;;  %v3093_v39 = vld [vmem:[%s5046_s3 + $0x128] sm:$0xf0] }
  0xcd   :  { %1962 = vmatpush.bf16.msra.mxu1 %v3052_v42  ;;  %v1647_v2 = vmax.f32 %v1436_v53, 0.0  ;;  %v288_v42 = vperm.slane %v4657_v6, 1 }
  0xcf   :  { %1988 = vmatpush.bf16.msra.mxu3 %v2992_v8  ;;  %v1650_v5 = vpack.c.bf16 %v1647_v2, %v1647_v2  ;;  %v3404_v8 = vld [vmem:[%s5046_s3 + $0xd4] sm:$0xf] }
  0xd0   :  { %1950 = vmatpush.bf16.msra.mxu0 %v2980_v13  ;;  %v1424_v61 = vpop.f32.mrf.mxu2  ;;  %v3056_v10 = vor.u32 %v3404_v8, %v3053_v9  ;;  %v3048_v13 = vor.u32 %v3402_v11, %v3045_v12  ;;  %v3115_v9 = vld [vmem:[%s5046_s3 + $0x150] sm:$0xf]  ;;  %v3420_v11 = vld [vmem:[%s5046_s3 + $0x154] sm:$0xf] }
  0xd1   :  { %1963 = vmatpush.bf16.msra.mxu1 %v3044_v50  ;;  %v1437_v63 = vpop.f32.mrf.mxu3  ;;  %v3424_v61 = vld [vmem:[%s5046_s3 + $0x174] sm:$0xf] }
  0xd2   :  { %v3123_v63 = vld [vmem:[%s5046_s3 + $0x160] sm:$0xf] }
  0xd3   :  { %1989 = vmatpush.bf16.msra.mxu3 %v2984_v16  ;;  %v3037_v16 = vld [vmem:[%s5046_s3 + $0xb8] sm:$0xf0]  ;;  %v3124_v38 = vor.u32 %v3423_v0, %v3123_v63 }
  0xd4   :  { %1951 = vmatpush.bf16.msra.mxu0 %v2972_v21  ;;  %v3040_v24 = vor.u32 %v3400_v15, %v3037_v16  ;;  %v3397_v21 = vld [vmem:[%s5046_s3 + $0x94] sm:$0xf0]  ;;  %v3107_v16 = vld [vmem:[%s5046_s3 + $0x140] sm:$0xf] }
  0xd5   :  { %1964 = vmatpush.bf16.msra.mxu1 %v3036_v62  ;;  %v3020_v31 = vor.u32 %v3397_v21, %v3019_v30  ;;  %v3132_v62 = vor.u32 %v3425_v60, %v3131_v59  ;;  %v3416_v30 = vld [vmem:[%s5046_s3 + $0x134] sm:$0xf] }
  0xd7   :  { %1990 = vmatpush.bf16.msra.mxu3 %v2976_v22  ;;  %1973 = vmatpush.bf16.msra.mxu2 %v3132_v62 }
  0xd8   :  { %1952 = vmatpush.bf16.msra.mxu0 %v2964_v26  ;;  %v3013_v26 = vld [vmem:[%s5046_s3 + $0x88] sm:$0xf0] }
  0xd9   :  { %1965 = vmatpush.bf16.msra.mxu1 %v3028_v23  ;;  %v3016_v48 = vor.u32 %v3394_v44, %v3013_v26  ;;  %v3109_v23 = vld [vmem:[%s5046_s3 + $0x148] sm:$0xf0]  ;;  %v3412_v44 = vld [vmem:[%s5046_s3 + $0x114] sm:$0xf] }
  0xda   :  { %v3112_v25 = vor.u32 %v3418_v19, %v3109_v23  ;;  %v3430_v19 = vld [vmem:[%s5048_s5 + $0x20] sm:$0xff]  ;;  %v3429_v23 = vld [vmem:[%s5048_s5 + $0x18] sm:$0xff] }
  0xdb   :  { %1991 = vmatpush.bf16.msra.mxu3 %v2968_v46  ;;  %1974 = vmatpush.bf16.msra.mxu2 %v3124_v38 }
  0xdc   :  { %1953 = vmatpush.bf16.msra.mxu0 %v2956_v54 }
  0xdd   :  { %1966 = vmatpush.bf16.msra.mxu1 %v3020_v31 }
  0xdf   :  { %1992 = vmatpush.bf16.msra.mxu3 %v2960_v57 }
  0xe0   :  { %1954 = vmatpush.bf16.msra.mxu0 %v2948_v32  ;;  %v1448_v14 = vpop.f32.mrf.mxu0  ;;  %v3136_v32 = vor.u32 %v3424_v61, %v3133_v29 }
  0xe1   :  { %v1461_v17 = vpop.f32.mrf.mxu1  ;;  %1967 = vmatpush.bf16.msra.mxu1 %v3012_v41  ;;  %v1449_v47 = vadd.f32 %v1448_v14, %v288_v42  ;;  %v3117_v14 = vld [vmem:[%s5046_s3 + $0x158] sm:$0xf0]  ;;  %v3096_v41 = vor.u32 %v3414_v35, %v3093_v39  ;;  %v3083_v42 = vld [vmem:[%s5046_s3 + $0x110] sm:$0xf]  ;;  %v3434_v35 = vld [vmem:[%s5048_s5 + $0x40] sm:$0xff] }
  0xe2   :  { %v3120_v18 = vor.u32 %v3420_v11, %v3117_v14  ;;  %v3433_v14 = vld [vmem:[%s5048_s5 + $0x38] sm:$0xff] }
  0xe3   :  { %1993 = vmatpush.bf16.msra.mxu3 %v2952_v33  ;;  %1955 = vmatmul.bf16.vlgmr.msra.gmra.mxu0 %v1650_v5  ;;  %v1462_v49 = vadd.f32 %v1461_v17, %v1449_v47  ;;  %v3422_v33 = vld [vmem:[%s5046_s3 + $0x164] sm:$0xf]  ;;  %v3419_v17 = vld [vmem:[%s5046_s3 + $0x144] sm:$0xf0] }
  0xe4   :  { %1999 = vmatpush.bf16.msrb.mxu0 %v3072_v3  ;;  %v3125_v3 = vld [vmem:[%s5046_s3 + $0x168] sm:$0xf0] }
  0xe5   :  { %2012 = vmatpush.bf16.msrb.mxu1 %v3136_v32 }
  0xe6   :  { %1994 = vmatmul.bf16.vlgmr.msra.gmra.mxu3 %v1650_v5 }
  0xe8   :  { %2000 = vmatpush.bf16.msrb.mxu0 %v3064_v7  ;;  %v1474_v28 = vpop.f32.mrf.mxu2  ;;  %v1450_v20 = vpop.f32.mrf.mxu0  ;;  %v3128_v7 = vor.u32 %v3422_v33, %v3125_v3 }
  0xe9   :  { %v1487_v22 = vpop.f32.mrf.mxu3  ;;  %v1463_v37 = vpop.f32.mrf.mxu1  ;;  %v1475_v50 = vadd.f32 %v1474_v28, %v1462_v49  ;;  %v3417_v28 = vld [vmem:[%s5046_s3 + $0x134] sm:$0xf0]  ;;  %v3415_v20 = vld [vmem:[%s5046_s3 + $0x124] sm:$0xf0]  ;;  %v3075_v49 = vld [vmem:[%s5046_s3 + $0x100] sm:$0xf] }
  0xea   :  { %2013 = vmatpush.bf16.msrb.mxu1 %v3128_v7  ;;  %v3100_v21 = vor.u32 %v3417_v28, %v3099_v27 }
  0xeb   :  { %v1488_v51 = vadd.f32 %v1487_v22, %v1475_v50  ;;  %v3101_v22 = vld [vmem:[%s5046_s3 + $0x138] sm:$0xf0]  ;;  %v3411_v50 = vld [vmem:[%s5046_s3 + $0x104] sm:$0xf0] }
  0xec   :  { %2001 = vmatpush.bf16.msrb.mxu0 %v3056_v10  ;;  %v3421_v10 = vld [vmem:[%s5046_s3 + $0x154] sm:$0xf0]  ;;  %v3104_v31 = vor.u32 %v3416_v30, %v3101_v22 }
  0xee   :  { %2014 = vmatpush.bf16.msrb.mxu1 %v3120_v18  ;;  %v3431_v18 = vld [vmem:[%s5048_s5 + $0x28] sm:$0xff] }
  0xf0   :  { %2002 = vmatpush.bf16.msrb.mxu0 %v3048_v13  ;;  %v1476_v45 = vpop.f32.mrf.mxu2  ;;  %v3116_v13 = vor.u32 %v3421_v10, %v3115_v9 }
  0xf1   :  { %v1489_v46 = vpop.f32.mrf.mxu3  ;;  %v3085_v45 = vld [vmem:[%s5046_s3 + $0x118] sm:$0xf0] }
  0xf2   :  { %1975 = vmatpush.bf16.msra.mxu2 %v3116_v13  ;;  %2015 = vmatpush.bf16.msrb.mxu1 %v3112_v25  ;;  %v3088_v47 = vor.u32 %v3412_v44, %v3085_v45 }
  0xf4   :  { %2003 = vmatpush.bf16.msrb.mxu0 %v3040_v24  ;;  %v3108_v24 = vor.u32 %v3419_v17, %v3107_v16  ;;  %v3432_v16 = vld [vmem:[%s5048_s5 + $0x30] sm:$0xff] }
  0xf5   :  { %v3436_v17 = vld [vmem:[%s5048_s5 + $0x50] sm:$0xff] }
  0xf6   :  { %1976 = vmatpush.bf16.msra.mxu2 %v3108_v24  ;;  %2016 = vmatpush.bf16.msrb.mxu1 %v3104_v31  ;;  %v1701_v24 = vld [vmem:[%s5047_s4] sm:$0x3] }
  0xf7   :  { %v1703_v25 = vperm.slane %v1701_v24, 0  ;;  %v1704_v39 = vperm.slane %v1701_v24, 1 }
  0xf8   :  { %2004 = vmatpush.bf16.msrb.mxu0 %v3032_v34  ;;  %v3091_v34 = vld [vmem:[%s5046_s3 + $0x120] sm:$0xf] }
  0xf9   :  { %v3092_v37 = vor.u32 %v3415_v20, %v3091_v34  ;;  %v3435_v34 = vld [vmem:[%s5048_s5 + $0x48] sm:$0xff]  ;;  %v3428_v20 = vld [vmem:[%s5048_s5 + $0x10] sm:$0xff] }
  0xfa   :  { %1977 = vmatpush.bf16.msra.mxu2 %v3100_v21  ;;  %2017 = vmatpush.bf16.msrb.mxu1 %v3096_v41 }
  0xfc   :  { %2005 = vmatpush.bf16.msrb.mxu0 %v3024_v43  ;;  %v3413_v43 = vld [vmem:[%s5046_s3 + $0x114] sm:$0xf0] }
  0xfd   :  { %v3084_v26 = vor.u32 %v3413_v43, %v3083_v42 }
  0xfe   :  { %1978 = vmatpush.bf16.msra.mxu2 %v3092_v37  ;;  %2018 = vmatpush.bf16.msrb.mxu1 %v3088_v47  ;;  %v3426_v37 = vld [vmem:[%s5048_s5] sm:$0xff] }
 0x100   :  { %2006 = vmatpush.bf16.msrb.mxu0 %v3016_v48  ;;  %v1500_v52 = vpop.f32.mrf.mxu0 }
 0x101   :  { %v1501_v53 = vadd.f32 %v1500_v52, %v1488_v51  ;;  %v1513_v54 = vpop.f32.mrf.mxu1  ;;  %v3410_v51 = vld [vmem:[%s5046_s3 + $0x104] sm:$0xf] }
 0x102   :  { %1979 = vmatpush.bf16.msra.mxu2 %v3084_v26 }
 0x103   :  { %v1514_v55 = vadd.f32 %v1513_v54, %v1501_v53  ;;  %v3076_v53 = vor.u32 %v3411_v50, %v3075_v49  ;;  %v3077_v54 = vld [vmem:[%s5046_s3 + $0x108] sm:$0xf0]  ;;  %s2166_s3 = sshll.u32 %s3472_s0, 4  ;;  %s2167_s3 = int_to_ptr.vmem [resolvable:$true] %s2166_s3 }
 0x106   :  { %1980 = vmatpush.bf16.msra.mxu2 %v3076_v53 }
 0x108   :  { %v1526_v56 = vpop.f32.mrf.mxu2  ;;  %v1502_v2 = vpop.f32.mrf.mxu0 }
 0x109   :  { %v1527_v57 = vadd.f32 %v1526_v56, %v1514_v55  ;;  %v1539_v58 = vpop.f32.mrf.mxu3  ;;  %v1515_v4 = vpop.f32.mrf.mxu1  ;;  %v3080_v56 = vor.u32 %v3410_v51, %v3077_v54 }
 0x10a   :  { %2133 = vmatpush.bf16.msrb.mxu2 %v3433_v14 }
 0x10b   :  { %v1540_v1 = vadd.f32 %v1539_v58, %v1527_v57  ;;  %2019 = vmatpush.bf16.msrb.mxu1 %v3080_v56  ;;  %v289_v57 = vperm.slane %v4657_v6, 2 }
 0x10d   :  { %v1648_v5 = vmax.f32 %v1540_v1, 0.0 }
 0x10e   :  { %2134 = vmatpush.bf16.msrb.mxu2 %v3432_v16 }
 0x10f   :  { %v1651_v8 = vpack.c.bf16 %v1648_v5, %v1648_v5 }
 0x110   :  { %v1528_v12 = vpop.f32.mrf.mxu2 }
 0x111   :  { %1968 = vmatmul.bf16.vlgmr.msra.gmra.mxu1 %v1651_v8  ;;  %2007 = vmatmul.bf16.vlgmr.msrb.gmra.mxu0 %v1651_v8  ;;  %v1541_v15 = vpop.f32.mrf.mxu3 }
 0x112   :  { %v3437_v15 = vld [vmem:[%s5048_s5 + $0x58] sm:$0xff]  ;;  %2135 = vmatpush.bf16.msrb.mxu2 %v3431_v18 }
 0x113   :  { %2150 = vmatpush.bf16.msrb.mxu3 %v3437_v15 }
 0x116   :  { %2136 = vmatpush.bf16.msrb.mxu2 %v3430_v19 }
 0x117   :  { %2151 = vmatpush.bf16.msrb.mxu3 %v3436_v17 }
 0x11a   :  { %2137 = vmatpush.bf16.msrb.mxu2 %v3429_v23 }
 0x11b   :  { %2152 = vmatpush.bf16.msrb.mxu3 %v3435_v34 }
 0x11e   :  { %2138 = vmatpush.bf16.msrb.mxu2 %v3428_v20 }
 0x11f   :  { %2153 = vmatpush.bf16.msrb.mxu3 %v3434_v35 }
 0x120   :  { %v1552_v36 = vpop.f32.mrf.mxu0 }
 0x121   :  { %v1565_v40 = vpop.f32.mrf.mxu1  ;;  %v1553_v60 = vadd.f32 %v1552_v36, %v289_v57  ;;  %v3427_v36 = vld [vmem:[%s5048_s5 + $0x8] sm:$0xff] }
 0x122   :  { %2139 = vmatpush.bf16.msrb.mxu2 %v3427_v36 }
 0x123   :  { %v1566_v61 = vadd.f32 %v1565_v40, %v1553_v60 }
 0x126   :  { %2140 = vmatpush.bf16.msrb.mxu2 %v3426_v37 }
 0x128   :  { %v1578_v46 = vpop.f32.mrf.mxu2  ;;  %v1554_v52 = vpop.f32.mrf.mxu0 }
 0x129   :  { %v1591_v48 = vpop.f32.mrf.mxu3  ;;  %v1567_v55 = vpop.f32.mrf.mxu1  ;;  %v1579_v62 = vadd.f32 %v1578_v46, %v1566_v61  ;;  %v3439_v52 = vld [vmem:[%s5049_s6] ss:$0 sm:$0xff] }
 0x12b   :  { %v1592_v29 = vadd.f32 %v1591_v48, %v1579_v62 }
 0x130   :  { %v1580_v58 = vpop.f32.mrf.mxu2 }
 0x131   :  { %v1593_v59 = vpop.f32.mrf.mxu3 }
 0x140   :  { %v1604_v63 = vpop.f32.mrf.mxu0 }
 0x141   :  { %v1617_v0 = vpop.f32.mrf.mxu1  ;;  %v1605_v1 = vadd.f32 %v1604_v63, %v1592_v29 }
 0x143   :  { %v1618_v2 = vadd.f32 %v1617_v0, %v1605_v1 }
 0x148   :  { %v1630_v32 = vpop.f32.mrf.mxu2  ;;  %v1606_v4 = vpop.f32.mrf.mxu0 }
 0x149   :  { %v1631_v33 = vadd.f32 %v1630_v32, %v1618_v2  ;;  %v1643_v3 = vpop.f32.mrf.mxu3  ;;  %v1619_v38 = vpop.f32.mrf.mxu1 }
 0x14b   :  { %v1644_v5 = vadd.f32 %v1643_v3, %v1631_v33 }
 0x14d   :  { %v1649_v7 = vmax.f32 %v1644_v5, 0.0 }
 0x14f   :  { %v1652_v8 = vpack.c.bf16 %v1649_v7, %v1649_v7 }
 0x150   :  { %v1632_v9 = vpop.f32.mrf.mxu2 }
 0x151   :  { %v1645_v6 = vpop.f32.mrf.mxu3  ;;  %1981 = vmatmul.bf16.vlgmr.msra.gmra.mxu2 %v1652_v8  ;;  %2020 = vmatmul.bf16.vlgmr.msrb.gmra.mxu1 %v1652_v8 }
 0x160   :  { %v1956_v10 = vpop.f32.mrf.mxu0 }
 0x161   :  { %v1957_v27 = vadd.f32 %v1956_v10, %v1703_v25 }
 0x168   :  { %v1958_v12 = vpop.f32.mrf.mxu0 }
 0x169   :  { %v1995_v11 = vpop.f32.mrf.mxu3 }
 0x16a   :  { %v1996_v40 = vadd.f32 %v1995_v11, %v1704_v39 }
 0x171   :  { %v1997_v13 = vpop.f32.mrf.mxu3 }
 0x18e   :  { %v1969_v28 = vpop.f32.mrf.mxu1  ;;  %v2008_v30 = vpop.f32.mrf.mxu0 }
 0x18f   :  { %v1970_v21 = vadd.f32 %v1969_v28, %v1957_v27  ;;  %v2009_v41 = vadd.f32 %v2008_v30, %v1996_v40 }
 0x196   :  { %v1971_v22 = vpop.f32.mrf.mxu1  ;;  %v2010_v31 = vpop.f32.mrf.mxu0 }
 0x1ce   :  { %v2021_v42 = vpop.f32.mrf.mxu1 }
 0x1cf   :  { %v2022_v43 = vadd.f32 %v2021_v42, %v2009_v41 }
 0x1d1   :  { %v2026_v44 = vmax.f32 %v2022_v43, 0.0 }
 0x1d3   :  { %v2028_v26 = vpack.c.bf16 %v2026_v44, %v2026_v44 }
 0x1d4   :  { %v1982_v45 = vpop.f32.mrf.mxu2 }
 0x1d5   :  { %v1983_v46 = vadd.f32 %v1982_v45, %v1970_v21  ;;  %3185 = vmatmul.msk.bf16.vlgmr.msrb.gmra.mxu3 %vm2129_vm0, %v2028_v26 }
 0x1d6   :  { %v2023_v47 = vpop.f32.mrf.mxu1 }
 0x1d7   :  { %v2025_v48 = vmax.f32 %v1983_v46, 0.0 }
 0x1d9   :  { %v2027_v49 = vpack.c.bf16 %v2025_v48, %v2025_v48 }
 0x1db   :  { %2141 = vmatmul.bf16.vlgmr.msrb.gmra.mxu2 %v2027_v49 }
 0x1dc   :  { %v1984_v50 = vpop.f32.mrf.mxu2 }
 0x258   :  { %v2155_v51 = vpop.f32.mrf.mxu3 }
 0x25e   :  { %v2142_v53 = vpop.f32.mrf.mxu2 }
 0x25f   :  { %v2143_v54 = vadd.f32 %v3439_v52, %v2142_v53 }
 0x260   :  { %v2157_v55 = vpop.f32.mrf.mxu3 }
 0x261   :  { %v2156_v56 = vadd.f32 %v2155_v51, %v2143_v54 }
 0x263   :  { %2160 = vst.msk [vmem:[#allocation2] sm:$0x3] %vm2159_vm1, %v2156_v56 }
 0x264   :  { %2171 = dma.vmem_to_hbm [thread:$0]  %s2167_s3, 32, %s2169_s20, [#allocation3]  }
 0x266   :  { %v2144_v57 = vpop.f32.mrf.mxu2 }
 0x267   :  { %3470 = dma.done.wait [#allocation3], 32  }
 0x268   :  { %3471 = vsyncadd [#allocation3], 4294967264 }
 0x269   :  { %2176 = vsyncpa [#allocation3], 1 }

</bundles_post_ra>
